<compile_context>
chip_gen: v6e
topology: v6e:2x2x1
jax: 0.10.0
libtpu: 0.0.40
codegen_flags: <defaults>
</compile_context>

<pallas_src>
import functools
import math

import numpy as np
import jax
import jax.numpy as jnp
from jax import lax
from jax.experimental import pallas as pl
from jax.experimental.pallas import tpu as pltpu


# ----------------------------------------------------------------------------
# In-kernel helpers.  Activations are flat (C, L) with L = H * Wp, where each
# image row occupies Wp lanes (columns W..Wp-1 are zero padding).
# ----------------------------------------------------------------------------
def _taps(a, shifts, L, pad):
    """Shifted copies: s[:, i] = a[:, i + d], zero outside [0, L)."""
    C = a.shape[0]
    zeros = jnp.zeros((C, pad), a.dtype)
    z = jnp.concatenate([zeros, a, zeros], axis=1)
    return [lax.slice_in_dim(z, pad + d, pad + d + L, axis=1) for d in shifts]


def _conv3x3(a, w_ref, b, Wp, L, dil, relu):
    """3x3 'same' conv (dilation `dil`) as one stacked-tap MXU matmul.

    a:     (Cin, L) f32, pad columns zero.
    w_ref: (Cout, 9*Cin) bf16 ref, tap-major: w[co, t*Cin + ci], t = ky*3+kx.
    b:     (Cout, 1) f32 value or None.
    """
    shifts = [dy * Wp + dx for dy in (-dil, 0, dil) for dx in (-dil, 0, dil)]
    taps = _taps(a, shifts, L, dil * (Wp + 1))
    stacked = jnp.concatenate(taps, axis=0).astype(jnp.bfloat16)     # (9Cin, L)
    out = jnp.dot(w_ref[...], stacked, preferred_element_type=jnp.float32)
    if b is not None:
        out = out + b
    if relu:
        out = jnp.maximum(out, 0.0)
    return out


def _pconv3x3_relu(a, w_ref, Wp, L, dil):
    """PConv2d(dim, n_div=4) + ReLU: bias-free conv on the first dim//4
    channels, rest untouched, ReLU on the concatenation."""
    cd = w_ref.shape[0]
    y1 = _conv3x3(a[:cd], w_ref, None, Wp, L, dil, relu=False)
    return jnp.maximum(jnp.concatenate([y1, a[cd:]], axis=0), 0.0)


def _avgpool2x2_to_even_sites(a, Wp, L):
    """AvgPool2d(2,2) via shift-add; result valid at even (y,x) canvas sites
    (other sites hold harmless finite values that dilated layers never read)."""
    t1, t2, t3 = _taps(a, [1, Wp, Wp + 1], L, Wp + 2)
    return 0.25 * (a + t1 + t2 + t3)


def _bilinear_up2x_from_even_sites(d, Wp, L, row_even, col_even,
                                   row0, rowlast, col0, collast):
    """Bilinear x2, align_corners=False, from values at even (y,x) sites to all
    sites.  Exact shift-add with parity/border selects (no dense matrices)."""
    dm2, dm1, dp1 = _taps(d, [-2 * Wp, -Wp, Wp], L, 2 * Wp)
    even_y = 0.75 * d + 0.25 * jnp.where(row0, d, dm2)
    odd_y = 0.75 * dm1 + 0.25 * jnp.where(rowlast, dm1, dp1)
    u = jnp.where(row_even, even_y, odd_y)

    um2, um1, up1 = _taps(u, [-2, -1, 1], L, 2)
    even_x = 0.75 * u + 0.25 * jnp.where(col0, u, um2)
    odd_x = 0.75 * um1 + 0.25 * jnp.where(collast, um1, up1)
    return jnp.where(col_even, even_x, odd_x)


# ----------------------------------------------------------------------------
# The fused kernel: full FilterSimulation4 forward for one batch element
# ----------------------------------------------------------------------------
def _filter_sim4_kernel(x_ref, rc_ref,
                        we1_ref, be1_ref, wp1_ref,
                        we2_ref, be2_ref, wp2_ref,
                        wd1_ref, bd1_ref, wp3_ref,
                        wf_ref, bf_ref,
                        o_ref, *, H, W, Wp):
    L = H * Wp
    rc = rc_ref[...]
    row = rc[0:1, :]
    col = rc[1:2, :]
    col_valid = (col < W).astype(jnp.float32)      # zeroes pad columns
    row_even = (row % 2) == 0
    col_even = (col % 2) == 0
    row0 = row == 0
    rowlast = row == (H - 1)
    col0 = col == 0
    collast = col == (W - 1)

    x = x_ref[...].astype(jnp.float32)

    # --- encoder (full resolution, dilation 1) ---
    a = _conv3x3(x, we1_ref, be1_ref[...], Wp, L, 1, relu=True) * col_valid
    a = _pconv3x3_relu(a, wp1_ref, Wp, L, 1)
    # AvgPool2d(2,2): half-res values live at even (y,x) canvas sites; the
    # half-res layers run dilation=2 on the same canvas (no compaction).
    a = _avgpool2x2_to_even_sites(a, Wp, L)
    a = _conv3x3(a, we2_ref, be2_ref[...], Wp, L, 2, relu=True) * col_valid
    a = _pconv3x3_relu(a, wp2_ref, Wp, L, 2)

    # --- decoder (still at even sites, dilation 2) ---
    a = _conv3x3(a, wd1_ref, bd1_ref[...], Wp, L, 2, relu=True) * col_valid
    a = _pconv3x3_relu(a, wp3_ref, Wp, L, 2)

    # --- bilinear x2 upsample + final conv (full resolution) ---
    a = _bilinear_up2x_from_even_sites(a, Wp, L, row_even, col_even,
                                       row0, rowlast, col0, collast)
    a = a * col_valid
    out = _conv3x3(a, wf_ref, bf_ref[...], Wp, L, 1, relu=False)
    o_ref[...] = out.astype(o_ref.dtype)


# ----------------------------------------------------------------------------
# Host-side prep
# ----------------------------------------------------------------------------
def _canvas_width(H, W):
    """Row stride: >= W+2 zero columns (covers dilated dx=-2 wrap reads) and,
    when cheap, rounded so H*Wp is a multiple of 128 (lane-dense tiles)."""
    base = W + 2
    lane_mult = 128 // math.gcd(H, 128)
    Wp = lane_mult * pl.cdiv(base, lane_mult)
    if Wp > 2 * base:          # don't over-inflate awkward shapes
        Wp = base
    return Wp


def _prep_conv_w(w, cin_pad=None, cout_pad=None):
    """(Cout, Cin, 3, 3) -> (Cout[_pad], 9*Cin[_pad]) bf16, tap-major layout
    matching the stacked (9*Cin, L) operand built in-kernel."""
    w = jnp.asarray(w, jnp.float32)
    cout, cin = w.shape[0], w.shape[1]
    if cin_pad is not None and cin_pad > cin:
        w = jnp.pad(w, ((0, 0), (0, cin_pad - cin), (0, 0), (0, 0)))
    if cout_pad is not None and cout_pad > cout:
        w = jnp.pad(w, ((0, cout_pad - cout), (0, 0), (0, 0), (0, 0)))
    co, ci = w.shape[0], w.shape[1]
    return jnp.transpose(w, (0, 2, 3, 1)).reshape(co, 9 * ci).astype(jnp.bfloat16)


def filter_simulation4_forward(x, params):
    """x: (N, C, H, W) float32 NCHW. Returns (N, 3, H, W) float32."""
    N, C, H, W = x.shape
    assert H % 2 == 0 and W % 2 == 0, "AvgPool2d(2,2) needs even spatial dims"

    Wp = _canvas_width(H, W)
    L = H * Wp
    Cpad = 8 * pl.cdiv(C, 8)
    COUT = 8                                   # final conv padded 3 -> 8 (dense store)

    # Zero-padded canvas: the pad columns ARE the conv zero padding, so the
    # kernel never needs per-tap border masks.
    xc = jnp.pad(x.astype(jnp.float32),
                 ((0, 0), (0, Cpad - C), (0, 0), (0, Wp - W))).reshape(N, Cpad, L)

    # Tiny host-built row/col index table (replaces in-kernel iota / div / mod).
    rowcol = jnp.asarray(
        np.stack([np.repeat(np.arange(H, dtype=np.int32), Wp),
                  np.tile(np.arange(Wp, dtype=np.int32), H)]))       # (2, L)

    we1 = _prep_conv_w(params["enc_conv1_w"], cin_pad=Cpad)
    be1 = params["enc_conv1_b"].reshape(-1, 1).astype(jnp.float32)
    wp1 = _prep_conv_w(params["enc_pconv1_w"])
    we2 = _prep_conv_w(params["enc_conv2_w"])
    be2 = params["enc_conv2_b"].reshape(-1, 1).astype(jnp.float32)
    wp2 = _prep_conv_w(params["enc_pconv2_w"])
    wd1 = _prep_conv_w(params["dec_conv1_w"])
    bd1 = params["dec_conv1_b"].reshape(-1, 1).astype(jnp.float32)
    wp3 = _prep_conv_w(params["dec_pconv1_w"])
    wf = _prep_conv_w(params["final_conv_w"], cout_pad=COUT)
    bf = jnp.pad(params["final_conv_b"].astype(jnp.float32),
                 (0, COUT - params["final_conv_b"].shape[0])).reshape(-1, 1)

    operands = (xc, rowcol, we1, be1, wp1, we2, be2, wp2, wd1, bd1, wp3, wf, bf)

    def _const_spec(arr):
        nd = arr.ndim
        return pl.BlockSpec(arr.shape, lambda n: (0,) * nd)

    in_specs = [pl.BlockSpec((pl.Squeezed(), Cpad, L), lambda n: (n, 0, 0))]
    in_specs += [_const_spec(a) for a in operands[1:]]

    out = pl.pallas_call(
        functools.partial(_filter_sim4_kernel, H=H, W=W, Wp=Wp),
        out_shape=jax.ShapeDtypeStruct((N, COUT, L), jnp.float32),
        grid=(N,),
        in_specs=in_specs,
        out_specs=pl.BlockSpec((pl.Squeezed(), COUT, L), lambda n: (n, 0, 0)),
        compiler_params=pltpu.CompilerParams(
            dimension_semantics=("parallel",),
            vmem_limit_bytes=64 * 1024 * 1024),
    )(*operands)
    return out.reshape(N, COUT, H, Wp)[:, :3, :, :W]


# ----------------------------------------------------------------------------
# Deterministic parameter init (PyTorch-default-style uniform bounds)
# ----------------------------------------------------------------------------
def init_params(key, channel=3):
    ks = iter(jax.random.split(key, 32))

    def conv_p(cout, cin, bias=True):
        bound = 1.0 / np.sqrt(cin * 9)
        w = jax.random.uniform(next(ks), (cout, cin, 3, 3), jnp.float32,
                               -bound, bound)
        if not bias:
            return w
        b = jax.random.uniform(next(ks), (cout,), jnp.float32, -bound, bound)
        return w, b

    p = {}
    p["enc_conv1_w"], p["enc_conv1_b"] = conv_p(32, channel)
    p["enc_pconv1_w"] = conv_p(8, 8, bias=False)           # PConv2d(32): 32//4
    p["enc_conv2_w"], p["enc_conv2_b"] = conv_p(64, 32)
    p["enc_pconv2_w"] = conv_p(16, 16, bias=False)         # PConv2d(64): 64//4
    p["dec_conv1_w"], p["dec_conv1_b"] = conv_p(32, 64)
    p["dec_pconv1_w"] = conv_p(8, 8, bias=False)           # PConv2d(32): 32//4
    p["final_conv_w"], p["final_conv_b"] = conv_p(3, 32)
    return p


# ----------------------------------------------------------------------------
# Pure-JAX reference (for correctness check)
# ----------------------------------------------------------------------------
def _ref_conv3x3(x, w, b=None):
    y = lax.conv_general_dilated(
        x, w, (1, 1), "SAME",
        dimension_numbers=("NCHW", "OIHW", "NCHW"),
        precision=lax.Precision.HIGHEST)
    if b is not None:
        y = y + b.reshape(1, -1, 1, 1)
    return y


def _ref_pconv(x, w, n_div=4):
    cd = x.shape[1] // n_div
    x1 = _ref_conv3x3(x[:, :cd], w)
    return jnp.concatenate([x1, x[:, cd:]], axis=1)


def _ref_upsample2x_axis(x, axis):
    # Exact bilinear x2, align_corners=False: out[2i]=.25*in[i-1]+.75*in[i],
    # out[2i+1]=.75*in[i]+.25*in[i+1] (edge-clamped).
    L = x.shape[axis]
    prev = jnp.concatenate([lax.slice_in_dim(x, 0, 1, axis=axis),
                            lax.slice_in_dim(x, 0, L - 1, axis=axis)], axis=axis)
    nxt = jnp.concatenate([lax.slice_in_dim(x, 1, L, axis=axis),
                           lax.slice_in_dim(x, L - 1, L, axis=axis)], axis=axis)
    even = 0.25 * prev + 0.75 * x
    odd = 0.75 * x + 0.25 * nxt
    out = jnp.stack([even, odd], axis=axis + 1)
    shape = list(x.shape)
    shape[axis] = 2 * L
    return out.reshape(shape)


def filter_simulation4_reference(x, params):
    a = jax.nn.relu(_ref_conv3x3(x, params["enc_conv1_w"], params["enc_conv1_b"]))
    a = jax.nn.relu(_ref_pconv(a, params["enc_pconv1_w"]))
    N, C, H, W = a.shape
    a = a.reshape(N, C, H // 2, 2, W // 2, 2).mean(axis=(3, 5))   # AvgPool2d(2,2)
    a = jax.nn.relu(_ref_conv3x3(a, params["enc_conv2_w"], params["enc_conv2_b"]))
    a = jax.nn.relu(_ref_pconv(a, params["enc_pconv2_w"]))
    a = jax.nn.relu(_ref_conv3x3(a, params["dec_conv1_w"], params["dec_conv1_b"]))
    a = jax.nn.relu(_ref_pconv(a, params["dec_pconv1_w"]))
    a = _ref_upsample2x_axis(_ref_upsample2x_axis(a, 2), 3)       # bilinear x2
    return _ref_conv3x3(a, params["final_conv_w"], params["final_conv_b"])


# ----------------------------------------------------------------------------
if __name__ == "__main__":
    key = jax.random.PRNGKey(0)
    k_params, k_img = jax.random.split(key)

    B, C, H, W = 2, 3, 16, 16            # small NCHW batch; module default channel=3
    params = init_params(k_params, channel=C)
    image = jax.random.normal(k_img, (B, C, H, W), jnp.float32)

    fwd = jax.jit(filter_simulation4_forward)
    out = fwd(image, params)
    jax.block_until_ready(out)

    assert out.shape == (B, 3, H, W), out.shape
    assert bool(jnp.all(jnp.isfinite(out)))

    ref = filter_simulation4_reference(image, params)
    # bf16 MXU operands (f32 accumulation) -> a few percent relative error.
    np.testing.assert_allclose(np.asarray(out), np.asarray(ref),
                               rtol=3e-2, atol=3e-2)

    print("KERNEL_OK")
</pallas_src>

<mosaic_0001>
module attributes {stable_mosaic.version = 11 : i64} {
  func.func @_filter_sim4_kernel(%arg0: i32, %arg1: memref<1x8x384xf32, #tpu.memory_space<vmem>>, %arg2: memref<2x384xi32, #tpu.memory_space<vmem>>, %arg3: memref<32x72xbf16, #tpu.memory_space<vmem>>, %arg4: memref<32x1xf32, #tpu.memory_space<vmem>>, %arg5: memref<8x72xbf16, #tpu.memory_space<vmem>>, %arg6: memref<64x288xbf16, #tpu.memory_space<vmem>>, %arg7: memref<64x1xf32, #tpu.memory_space<vmem>>, %arg8: memref<16x144xbf16, #tpu.memory_space<vmem>>, %arg9: memref<32x576xbf16, #tpu.memory_space<vmem>>, %arg10: memref<32x1xf32, #tpu.memory_space<vmem>>, %arg11: memref<8x72xbf16, #tpu.memory_space<vmem>>, %arg12: memref<8x288xbf16, #tpu.memory_space<vmem>>, %arg13: memref<8x1xf32, #tpu.memory_space<vmem>>, %arg14: memref<1x8x384xf32, #tpu.memory_space<vmem>>) attributes {dimension_semantics = [#tpu.dimension_semantics<parallel>], iteration_bounds = array<i64: 2>, scalar_prefetch = 0 : i64, scratch_operands = 0 : i64, tpu.core_type = #tpu.core_type<tc>, window_params = [{transform_indices = @transform_0, window_bounds = array<i64: 1, 8, 384>}, {pipeline_mode = #tpu.pipeline_mode<synchronous>, transform_indices = @transform_1, window_bounds = array<i64: 2, 384>}, {pipeline_mode = #tpu.pipeline_mode<synchronous>, transform_indices = @transform_2, window_bounds = array<i64: 32, 72>}, {pipeline_mode = #tpu.pipeline_mode<synchronous>, transform_indices = @transform_3, window_bounds = array<i64: 32, 1>}, {pipeline_mode = #tpu.pipeline_mode<synchronous>, transform_indices = @transform_4, window_bounds = array<i64: 8, 72>}, {pipeline_mode = #tpu.pipeline_mode<synchronous>, transform_indices = @transform_5, window_bounds = array<i64: 64, 288>}, {pipeline_mode = #tpu.pipeline_mode<synchronous>, transform_indices = @transform_6, window_bounds = array<i64: 64, 1>}, {pipeline_mode = #tpu.pipeline_mode<synchronous>, transform_indices = @transform_7, window_bounds = array<i64: 16, 144>}, {pipeline_mode = #tpu.pipeline_mode<synchronous>, transform_indices = @transform_8, window_bounds = array<i64: 32, 576>}, {pipeline_mode = #tpu.pipeline_mode<synchronous>, transform_indices = @transform_9, window_bounds = array<i64: 32, 1>}, {pipeline_mode = #tpu.pipeline_mode<synchronous>, transform_indices = @transform_10, window_bounds = array<i64: 8, 72>}, {pipeline_mode = #tpu.pipeline_mode<synchronous>, transform_indices = @transform_11, window_bounds = array<i64: 8, 288>}, {pipeline_mode = #tpu.pipeline_mode<synchronous>, transform_indices = @transform_12, window_bounds = array<i64: 8, 1>}, {transform_indices = @transform_13, window_bounds = array<i64: 1, 8, 384>}]} {
    %c0 = arith.constant 0 : index
    %c0_0 = arith.constant 0 : index
    %0 = vector.load %arg2[%c0, %c0_0] : memref<2x384xi32, #tpu.memory_space<vmem>>, vector<2x384xi32>
    %1 = vector.extract_strided_slice %0 {offsets = [0, 0], sizes = [1, 384], strides = [1, 1]} : vector<2x384xi32> to vector<1x384xi32>
    %2 = vector.extract_strided_slice %0 {offsets = [1, 0], sizes = [1, 384], strides = [1, 1]} : vector<2x384xi32> to vector<1x384xi32>
    %c16_i32 = arith.constant 16 : i32
    %3 = vector.broadcast %c16_i32 : i32 to vector<1x384xi32>
    %4 = arith.cmpi slt, %2, %3 : vector<1x384xi32>
    %5 = arith.extui %4 : vector<1x384xi1> to vector<1x384xi32>
    %6 = arith.sitofp %5 : vector<1x384xi32> to vector<1x384xf32>
    %c2_i32 = arith.constant 2 : i32
    %c0_i32 = arith.constant 0 : i32
    %7 = arith.cmpi eq, %c2_i32, %c0_i32 : i32
    %c1_i32 = arith.constant 1 : i32
    %8 = arith.select %7, %c1_i32, %c2_i32 : i32
    %9 = vector.broadcast %8 : i32 to vector<1x384xi32>
    %10 = arith.remsi %1, %9 : vector<1x384xi32>
    %c0_i32_1 = arith.constant 0 : i32
    %11 = vector.broadcast %c0_i32_1 : i32 to vector<1x384xi32>
    %12 = arith.cmpi ne, %10, %11 : vector<1x384xi32>
    %c0_i32_2 = arith.constant 0 : i32
    %13 = vector.broadcast %c0_i32_2 : i32 to vector<1x384xi32>
    %14 = arith.cmpi slt, %10, %13 : vector<1x384xi32>
    %c0_i32_3 = arith.constant 0 : i32
    %15 = arith.cmpi slt, %8, %c0_i32_3 : i32
    %16 = vector.broadcast %15 : i1 to vector<1x384xi1>
    %17 = vector.broadcast %16 : vector<1x384xi1> to vector<1x384xi1>
    %18 = arith.xori %14, %17 : vector<1x384xi1>
    %19 = arith.andi %18, %12 : vector<1x384xi1>
    %20 = vector.broadcast %8 : i32 to vector<1x384xi32>
    %21 = arith.addi %10, %20 : vector<1x384xi32>
    %22 = arith.select %19, %21, %10 : vector<1x384xi1>, vector<1x384xi32>
    %c0_i32_4 = arith.constant 0 : i32
    %23 = vector.broadcast %c0_i32_4 : i32 to vector<1x384xi32>
    %24 = arith.cmpi eq, %22, %23 : vector<1x384xi32>
    %c2_i32_5 = arith.constant 2 : i32
    %c0_i32_6 = arith.constant 0 : i32
    %25 = arith.cmpi eq, %c2_i32_5, %c0_i32_6 : i32
    %c1_i32_7 = arith.constant 1 : i32
    %26 = arith.select %25, %c1_i32_7, %c2_i32_5 : i32
    %27 = vector.broadcast %26 : i32 to vector<1x384xi32>
    %28 = arith.remsi %2, %27 : vector<1x384xi32>
    %c0_i32_8 = arith.constant 0 : i32
    %29 = vector.broadcast %c0_i32_8 : i32 to vector<1x384xi32>
    %30 = arith.cmpi ne, %28, %29 : vector<1x384xi32>
    %c0_i32_9 = arith.constant 0 : i32
    %31 = vector.broadcast %c0_i32_9 : i32 to vector<1x384xi32>
    %32 = arith.cmpi slt, %28, %31 : vector<1x384xi32>
    %c0_i32_10 = arith.constant 0 : i32
    %33 = arith.cmpi slt, %26, %c0_i32_10 : i32
    %34 = vector.broadcast %33 : i1 to vector<1x384xi1>
    %35 = vector.broadcast %34 : vector<1x384xi1> to vector<1x384xi1>
    %36 = arith.xori %32, %35 : vector<1x384xi1>
    %37 = arith.andi %36, %30 : vector<1x384xi1>
    %38 = vector.broadcast %26 : i32 to vector<1x384xi32>
    %39 = arith.addi %28, %38 : vector<1x384xi32>
    %40 = arith.select %37, %39, %28 : vector<1x384xi1>, vector<1x384xi32>
    %c0_i32_11 = arith.constant 0 : i32
    %41 = vector.broadcast %c0_i32_11 : i32 to vector<1x384xi32>
    %42 = arith.cmpi eq, %40, %41 : vector<1x384xi32>
    %c0_i32_12 = arith.constant 0 : i32
    %43 = vector.broadcast %c0_i32_12 : i32 to vector<1x384xi32>
    %44 = arith.cmpi eq, %1, %43 : vector<1x384xi32>
    %c15_i32 = arith.constant 15 : i32
    %45 = vector.broadcast %c15_i32 : i32 to vector<1x384xi32>
    %46 = arith.cmpi eq, %1, %45 : vector<1x384xi32>
    %c0_i32_13 = arith.constant 0 : i32
    %47 = vector.broadcast %c0_i32_13 : i32 to vector<1x384xi32>
    %48 = arith.cmpi eq, %2, %47 : vector<1x384xi32>
    %c15_i32_14 = arith.constant 15 : i32
    %49 = vector.broadcast %c15_i32_14 : i32 to vector<1x384xi32>
    %50 = arith.cmpi eq, %2, %49 : vector<1x384xi32>
    %c0_15 = arith.constant 0 : index
    %c0_16 = arith.constant 0 : index
    %c0_17 = arith.constant 0 : index
    %51 = vector.load %arg1[%c0_15, %c0_16, %c0_17] : memref<1x8x384xf32, #tpu.memory_space<vmem>>, vector<1x8x384xf32>
    %52 = vector.shape_cast %51 : vector<1x8x384xf32> to vector<8x384xf32>
    %c0_18 = arith.constant 0 : index
    %c0_19 = arith.constant 0 : index
    %53 = vector.load %arg4[%c0_18, %c0_19] : memref<32x1xf32, #tpu.memory_space<vmem>>, vector<32x1xf32>
    %cst = arith.constant 0.000000e+00 : f32
    %54 = vector.broadcast %cst : f32 to vector<8x25xf32>
    %55 = tpu.concatenate %54, %52, %54 in 1 : vector<8x25xf32>, vector<8x384xf32>, vector<8x25xf32> -> vector<8x434xf32>
    %56 = vector.extract_strided_slice %55 {offsets = [0, 0], sizes = [8, 384], strides = [1, 1]} : vector<8x434xf32> to vector<8x384xf32>
    %57 = vector.extract_strided_slice %55 {offsets = [0, 1], sizes = [8, 384], strides = [1, 1]} : vector<8x434xf32> to vector<8x384xf32>
    %58 = vector.extract_strided_slice %55 {offsets = [0, 2], sizes = [8, 384], strides = [1, 1]} : vector<8x434xf32> to vector<8x384xf32>
    %59 = vector.extract_strided_slice %55 {offsets = [0, 24], sizes = [8, 384], strides = [1, 1]} : vector<8x434xf32> to vector<8x384xf32>
    %60 = vector.extract_strided_slice %55 {offsets = [0, 25], sizes = [8, 384], strides = [1, 1]} : vector<8x434xf32> to vector<8x384xf32>
    %61 = vector.extract_strided_slice %55 {offsets = [0, 26], sizes = [8, 384], strides = [1, 1]} : vector<8x434xf32> to vector<8x384xf32>
    %62 = vector.extract_strided_slice %55 {offsets = [0, 48], sizes = [8, 384], strides = [1, 1]} : vector<8x434xf32> to vector<8x384xf32>
    %63 = vector.extract_strided_slice %55 {offsets = [0, 49], sizes = [8, 384], strides = [1, 1]} : vector<8x434xf32> to vector<8x384xf32>
    %64 = vector.extract_strided_slice %55 {offsets = [0, 50], sizes = [8, 384], strides = [1, 1]} : vector<8x434xf32> to vector<8x384xf32>
    %65 = tpu.concatenate %56, %57, %58, %59, %60, %61, %62, %63, %64 in 0 : vector<8x384xf32>, vector<8x384xf32>, vector<8x384xf32>, vector<8x384xf32>, vector<8x384xf32>, vector<8x384xf32>, vector<8x384xf32>, vector<8x384xf32>, vector<8x384xf32> -> vector<72x384xf32>
    %66 = arith.truncf %65 : vector<72x384xf32> to vector<72x384xbf16>
    %c0_20 = arith.constant 0 : index
    %c0_21 = arith.constant 0 : index
    %67 = vector.load %arg3[%c0_20, %c0_21] : memref<32x72xbf16, #tpu.memory_space<vmem>>, vector<32x72xbf16>
    %cst_22 = arith.constant dense<0.000000e+00> : vector<32x384xf32>
    %68 = tpu.matmul %67, %66, %cst_22 {dimension_numbers = #tpu.dot_dimension_numbers<[1], [0], [0], [1], [0, 0, 1, 1], [], []>} : vector<32x72xbf16>, vector<72x384xbf16>, vector<32x384xf32> -> vector<32x384xf32>
    %69 = vector.broadcast %53 : vector<32x1xf32> to vector<32x384xf32>
    %70 = arith.addf %68, %69 : vector<32x384xf32>
    %cst_23 = arith.constant 0.000000e+00 : f32
    %71 = vector.broadcast %cst_23 : f32 to vector<32x384xf32>
    %72 = arith.maximumf %70, %71 : vector<32x384xf32>
    %73 = vector.broadcast %6 : vector<1x384xf32> to vector<32x384xf32>
    %74 = arith.mulf %72, %73 : vector<32x384xf32>
    %75 = vector.extract_strided_slice %74 {offsets = [0, 0], sizes = [8, 384], strides = [1, 1]} : vector<32x384xf32> to vector<8x384xf32>
    %cst_24 = arith.constant 0.000000e+00 : f32
    %76 = vector.broadcast %cst_24 : f32 to vector<8x25xf32>
    %77 = tpu.concatenate %76, %75, %76 in 1 : vector<8x25xf32>, vector<8x384xf32>, vector<8x25xf32> -> vector<8x434xf32>
    %78 = vector.extract_strided_slice %77 {offsets = [0, 0], sizes = [8, 384], strides = [1, 1]} : vector<8x434xf32> to vector<8x384xf32>
    %79 = vector.extract_strided_slice %77 {offsets = [0, 1], sizes = [8, 384], strides = [1, 1]} : vector<8x434xf32> to vector<8x384xf32>
    %80 = vector.extract_strided_slice %77 {offsets = [0, 2], sizes = [8, 384], strides = [1, 1]} : vector<8x434xf32> to vector<8x384xf32>
    %81 = vector.extract_strided_slice %77 {offsets = [0, 24], sizes = [8, 384], strides = [1, 1]} : vector<8x434xf32> to vector<8x384xf32>
    %82 = vector.extract_strided_slice %77 {offsets = [0, 25], sizes = [8, 384], strides = [1, 1]} : vector<8x434xf32> to vector<8x384xf32>
    %83 = vector.extract_strided_slice %77 {offsets = [0, 26], sizes = [8, 384], strides = [1, 1]} : vector<8x434xf32> to vector<8x384xf32>
    %84 = vector.extract_strided_slice %77 {offsets = [0, 48], sizes = [8, 384], strides = [1, 1]} : vector<8x434xf32> to vector<8x384xf32>
    %85 = vector.extract_strided_slice %77 {offsets = [0, 49], sizes = [8, 384], strides = [1, 1]} : vector<8x434xf32> to vector<8x384xf32>
    %86 = vector.extract_strided_slice %77 {offsets = [0, 50], sizes = [8, 384], strides = [1, 1]} : vector<8x434xf32> to vector<8x384xf32>
    %87 = tpu.concatenate %78, %79, %80, %81, %82, %83, %84, %85, %86 in 0 : vector<8x384xf32>, vector<8x384xf32>, vector<8x384xf32>, vector<8x384xf32>, vector<8x384xf32>, vector<8x384xf32>, vector<8x384xf32>, vector<8x384xf32>, vector<8x384xf32> -> vector<72x384xf32>
    %88 = arith.truncf %87 : vector<72x384xf32> to vector<72x384xbf16>
    %c0_25 = arith.constant 0 : index
    %c0_26 = arith.constant 0 : index
    %89 = vector.load %arg5[%c0_25, %c0_26] : memref<8x72xbf16, #tpu.memory_space<vmem>>, vector<8x72xbf16>
    %cst_27 = arith.constant dense<0.000000e+00> : vector<8x384xf32>
    %90 = tpu.matmul %89, %88, %cst_27 {dimension_numbers = #tpu.dot_dimension_numbers<[1], [0], [0], [1], [0, 0, 1, 1], [], []>} : vector<8x72xbf16>, vector<72x384xbf16>, vector<8x384xf32> -> vector<8x384xf32>
    %91 = vector.extract_strided_slice %74 {offsets = [8, 0], sizes = [24, 384], strides = [1, 1]} : vector<32x384xf32> to vector<24x384xf32>
    %92 = tpu.concatenate %90, %91 in 0 : vector<8x384xf32>, vector<24x384xf32> -> vector<32x384xf32>
    %cst_28 = arith.constant 0.000000e+00 : f32
    %93 = vector.broadcast %cst_28 : f32 to vector<32x384xf32>
    %94 = arith.maximumf %92, %93 : vector<32x384xf32>
    %cst_29 = arith.constant 0.000000e+00 : f32
    %95 = vector.broadcast %cst_29 : f32 to vector<32x26xf32>
    %96 = tpu.concatenate %95, %94, %95 in 1 : vector<32x26xf32>, vector<32x384xf32>, vector<32x26xf32> -> vector<32x436xf32>
    %97 = vector.extract_strided_slice %96 {offsets = [0, 27], sizes = [32, 384], strides = [1, 1]} : vector<32x436xf32> to vector<32x384xf32>
    %98 = vector.extract_strided_slice %96 {offsets = [0, 50], sizes = [32, 384], strides = [1, 1]} : vector<32x436xf32> to vector<32x384xf32>
    %99 = vector.extract_strided_slice %96 {offsets = [0, 51], sizes = [32, 384], strides = [1, 1]} : vector<32x436xf32> to vector<32x384xf32>
    %100 = arith.addf %94, %97 : vector<32x384xf32>
    %101 = arith.addf %100, %98 : vector<32x384xf32>
    %102 = arith.addf %101, %99 : vector<32x384xf32>
    %cst_30 = arith.constant 2.500000e-01 : f32
    %103 = vector.broadcast %cst_30 : f32 to vector<32x384xf32>
    %104 = arith.mulf %103, %102 : vector<32x384xf32>
    %c0_31 = arith.constant 0 : index
    %c0_32 = arith.constant 0 : index
    %105 = vector.load %arg7[%c0_31, %c0_32] : memref<64x1xf32, #tpu.memory_space<vmem>>, vector<64x1xf32>
    %cst_33 = arith.constant 0.000000e+00 : f32
    %106 = vector.broadcast %cst_33 : f32 to vector<32x50xf32>
    %107 = tpu.concatenate %106, %104, %106 in 1 : vector<32x50xf32>, vector<32x384xf32>, vector<32x50xf32> -> vector<32x484xf32>
    %108 = vector.extract_strided_slice %107 {offsets = [0, 0], sizes = [32, 384], strides = [1, 1]} : vector<32x484xf32> to vector<32x384xf32>
    %109 = vector.extract_strided_slice %107 {offsets = [0, 2], sizes = [32, 384], strides = [1, 1]} : vector<32x484xf32> to vector<32x384xf32>
    %110 = vector.extract_strided_slice %107 {offsets = [0, 4], sizes = [32, 384], strides = [1, 1]} : vector<32x484xf32> to vector<32x384xf32>
    %111 = vector.extract_strided_slice %107 {offsets = [0, 48], sizes = [32, 384], strides = [1, 1]} : vector<32x484xf32> to vector<32x384xf32>
    %112 = vector.extract_strided_slice %107 {offsets = [0, 50], sizes = [32, 384], strides = [1, 1]} : vector<32x484xf32> to vector<32x384xf32>
    %113 = vector.extract_strided_slice %107 {offsets = [0, 52], sizes = [32, 384], strides = [1, 1]} : vector<32x484xf32> to vector<32x384xf32>
    %114 = vector.extract_strided_slice %107 {offsets = [0, 96], sizes = [32, 384], strides = [1, 1]} : vector<32x484xf32> to vector<32x384xf32>
    %115 = vector.extract_strided_slice %107 {offsets = [0, 98], sizes = [32, 384], strides = [1, 1]} : vector<32x484xf32> to vector<32x384xf32>
    %116 = vector.extract_strided_slice %107 {offsets = [0, 100], sizes = [32, 384], strides = [1, 1]} : vector<32x484xf32> to vector<32x384xf32>
    %117 = tpu.concatenate %108, %109, %110, %111, %112, %113, %114, %115, %116 in 0 : vector<32x384xf32>, vector<32x384xf32>, vector<32x384xf32>, vector<32x384xf32>, vector<32x384xf32>, vector<32x384xf32>, vector<32x384xf32>, vector<32x384xf32>, vector<32x384xf32> -> vector<288x384xf32>
    %118 = arith.truncf %117 : vector<288x384xf32> to vector<288x384xbf16>
    %c0_34 = arith.constant 0 : index
    %c0_35 = arith.constant 0 : index
    %119 = vector.load %arg6[%c0_34, %c0_35] : memref<64x288xbf16, #tpu.memory_space<vmem>>, vector<64x288xbf16>
    %cst_36 = arith.constant dense<0.000000e+00> : vector<64x384xf32>
    %120 = tpu.matmul %119, %118, %cst_36 {dimension_numbers = #tpu.dot_dimension_numbers<[1], [0], [0], [1], [0, 0, 1, 1], [], []>} : vector<64x288xbf16>, vector<288x384xbf16>, vector<64x384xf32> -> vector<64x384xf32>
    %121 = vector.broadcast %105 : vector<64x1xf32> to vector<64x384xf32>
    %122 = arith.addf %120, %121 : vector<64x384xf32>
    %cst_37 = arith.constant 0.000000e+00 : f32
    %123 = vector.broadcast %cst_37 : f32 to vector<64x384xf32>
    %124 = arith.maximumf %122, %123 : vector<64x384xf32>
    %125 = vector.broadcast %6 : vector<1x384xf32> to vector<64x384xf32>
    %126 = arith.mulf %124, %125 : vector<64x384xf32>
    %127 = vector.extract_strided_slice %126 {offsets = [0, 0], sizes = [16, 384], strides = [1, 1]} : vector<64x384xf32> to vector<16x384xf32>
    %cst_38 = arith.constant 0.000000e+00 : f32
    %128 = vector.broadcast %cst_38 : f32 to vector<16x50xf32>
    %129 = tpu.concatenate %128, %127, %128 in 1 : vector<16x50xf32>, vector<16x384xf32>, vector<16x50xf32> -> vector<16x484xf32>
    %130 = vector.extract_strided_slice %129 {offsets = [0, 0], sizes = [16, 384], strides = [1, 1]} : vector<16x484xf32> to vector<16x384xf32>
    %131 = vector.extract_strided_slice %129 {offsets = [0, 2], sizes = [16, 384], strides = [1, 1]} : vector<16x484xf32> to vector<16x384xf32>
    %132 = vector.extract_strided_slice %129 {offsets = [0, 4], sizes = [16, 384], strides = [1, 1]} : vector<16x484xf32> to vector<16x384xf32>
    %133 = vector.extract_strided_slice %129 {offsets = [0, 48], sizes = [16, 384], strides = [1, 1]} : vector<16x484xf32> to vector<16x384xf32>
    %134 = vector.extract_strided_slice %129 {offsets = [0, 50], sizes = [16, 384], strides = [1, 1]} : vector<16x484xf32> to vector<16x384xf32>
    %135 = vector.extract_strided_slice %129 {offsets = [0, 52], sizes = [16, 384], strides = [1, 1]} : vector<16x484xf32> to vector<16x384xf32>
    %136 = vector.extract_strided_slice %129 {offsets = [0, 96], sizes = [16, 384], strides = [1, 1]} : vector<16x484xf32> to vector<16x384xf32>
    %137 = vector.extract_strided_slice %129 {offsets = [0, 98], sizes = [16, 384], strides = [1, 1]} : vector<16x484xf32> to vector<16x384xf32>
    %138 = vector.extract_strided_slice %129 {offsets = [0, 100], sizes = [16, 384], strides = [1, 1]} : vector<16x484xf32> to vector<16x384xf32>
    %139 = tpu.concatenate %130, %131, %132, %133, %134, %135, %136, %137, %138 in 0 : vector<16x384xf32>, vector<16x384xf32>, vector<16x384xf32>, vector<16x384xf32>, vector<16x384xf32>, vector<16x384xf32>, vector<16x384xf32>, vector<16x384xf32>, vector<16x384xf32> -> vector<144x384xf32>
    %140 = arith.truncf %139 : vector<144x384xf32> to vector<144x384xbf16>
    %c0_39 = arith.constant 0 : index
    %c0_40 = arith.constant 0 : index
    %141 = vector.load %arg8[%c0_39, %c0_40] : memref<16x144xbf16, #tpu.memory_space<vmem>>, vector<16x144xbf16>
    %cst_41 = arith.constant dense<0.000000e+00> : vector<16x384xf32>
    %142 = tpu.matmul %141, %140, %cst_41 {dimension_numbers = #tpu.dot_dimension_numbers<[1], [0], [0], [1], [0, 0, 1, 1], [], []>} : vector<16x144xbf16>, vector<144x384xbf16>, vector<16x384xf32> -> vector<16x384xf32>
    %143 = vector.extract_strided_slice %126 {offsets = [16, 0], sizes = [48, 384], strides = [1, 1]} : vector<64x384xf32> to vector<48x384xf32>
    %144 = tpu.concatenate %142, %143 in 0 : vector<16x384xf32>, vector<48x384xf32> -> vector<64x384xf32>
    %cst_42 = arith.constant 0.000000e+00 : f32
    %145 = vector.broadcast %cst_42 : f32 to vector<64x384xf32>
    %146 = arith.maximumf %144, %145 : vector<64x384xf32>
    %c0_43 = arith.constant 0 : index
    %c0_44 = arith.constant 0 : index
    %147 = vector.load %arg10[%c0_43, %c0_44] : memref<32x1xf32, #tpu.memory_space<vmem>>, vector<32x1xf32>
    %cst_45 = arith.constant 0.000000e+00 : f32
    %148 = vector.broadcast %cst_45 : f32 to vector<64x50xf32>
    %149 = tpu.concatenate %148, %146, %148 in 1 : vector<64x50xf32>, vector<64x384xf32>, vector<64x50xf32> -> vector<64x484xf32>
    %150 = vector.extract_strided_slice %149 {offsets = [0, 0], sizes = [64, 384], strides = [1, 1]} : vector<64x484xf32> to vector<64x384xf32>
    %151 = vector.extract_strided_slice %149 {offsets = [0, 2], sizes = [64, 384], strides = [1, 1]} : vector<64x484xf32> to vector<64x384xf32>
    %152 = vector.extract_strided_slice %149 {offsets = [0, 4], sizes = [64, 384], strides = [1, 1]} : vector<64x484xf32> to vector<64x384xf32>
    %153 = vector.extract_strided_slice %149 {offsets = [0, 48], sizes = [64, 384], strides = [1, 1]} : vector<64x484xf32> to vector<64x384xf32>
    %154 = vector.extract_strided_slice %149 {offsets = [0, 50], sizes = [64, 384], strides = [1, 1]} : vector<64x484xf32> to vector<64x384xf32>
    %155 = vector.extract_strided_slice %149 {offsets = [0, 52], sizes = [64, 384], strides = [1, 1]} : vector<64x484xf32> to vector<64x384xf32>
    %156 = vector.extract_strided_slice %149 {offsets = [0, 96], sizes = [64, 384], strides = [1, 1]} : vector<64x484xf32> to vector<64x384xf32>
    %157 = vector.extract_strided_slice %149 {offsets = [0, 98], sizes = [64, 384], strides = [1, 1]} : vector<64x484xf32> to vector<64x384xf32>
    %158 = vector.extract_strided_slice %149 {offsets = [0, 100], sizes = [64, 384], strides = [1, 1]} : vector<64x484xf32> to vector<64x384xf32>
    %159 = tpu.concatenate %150, %151, %152, %153, %154, %155, %156, %157, %158 in 0 : vector<64x384xf32>, vector<64x384xf32>, vector<64x384xf32>, vector<64x384xf32>, vector<64x384xf32>, vector<64x384xf32>, vector<64x384xf32>, vector<64x384xf32>, vector<64x384xf32> -> vector<576x384xf32>
    %160 = arith.truncf %159 : vector<576x384xf32> to vector<576x384xbf16>
    %c0_46 = arith.constant 0 : index
    %c0_47 = arith.constant 0 : index
    %161 = vector.load %arg9[%c0_46, %c0_47] : memref<32x576xbf16, #tpu.memory_space<vmem>>, vector<32x576xbf16>
    %cst_48 = arith.constant dense<0.000000e+00> : vector<32x384xf32>
    %162 = tpu.matmul %161, %160, %cst_48 {dimension_numbers = #tpu.dot_dimension_numbers<[1], [0], [0], [1], [0, 0, 1, 1], [], []>} : vector<32x576xbf16>, vector<576x384xbf16>, vector<32x384xf32> -> vector<32x384xf32>
    %163 = vector.broadcast %147 : vector<32x1xf32> to vector<32x384xf32>
    %164 = arith.addf %162, %163 : vector<32x384xf32>
    %cst_49 = arith.constant 0.000000e+00 : f32
    %165 = vector.broadcast %cst_49 : f32 to vector<32x384xf32>
    %166 = arith.maximumf %164, %165 : vector<32x384xf32>
    %167 = vector.broadcast %6 : vector<1x384xf32> to vector<32x384xf32>
    %168 = arith.mulf %166, %167 : vector<32x384xf32>
    %169 = vector.extract_strided_slice %168 {offsets = [0, 0], sizes = [8, 384], strides = [1, 1]} : vector<32x384xf32> to vector<8x384xf32>
    %cst_50 = arith.constant 0.000000e+00 : f32
    %170 = vector.broadcast %cst_50 : f32 to vector<8x50xf32>
    %171 = tpu.concatenate %170, %169, %170 in 1 : vector<8x50xf32>, vector<8x384xf32>, vector<8x50xf32> -> vector<8x484xf32>
    %172 = vector.extract_strided_slice %171 {offsets = [0, 0], sizes = [8, 384], strides = [1, 1]} : vector<8x484xf32> to vector<8x384xf32>
    %173 = vector.extract_strided_slice %171 {offsets = [0, 2], sizes = [8, 384], strides = [1, 1]} : vector<8x484xf32> to vector<8x384xf32>
    %174 = vector.extract_strided_slice %171 {offsets = [0, 4], sizes = [8, 384], strides = [1, 1]} : vector<8x484xf32> to vector<8x384xf32>
    %175 = vector.extract_strided_slice %171 {offsets = [0, 48], sizes = [8, 384], strides = [1, 1]} : vector<8x484xf32> to vector<8x384xf32>
    %176 = vector.extract_strided_slice %171 {offsets = [0, 50], sizes = [8, 384], strides = [1, 1]} : vector<8x484xf32> to vector<8x384xf32>
    %177 = vector.extract_strided_slice %171 {offsets = [0, 52], sizes = [8, 384], strides = [1, 1]} : vector<8x484xf32> to vector<8x384xf32>
    %178 = vector.extract_strided_slice %171 {offsets = [0, 96], sizes = [8, 384], strides = [1, 1]} : vector<8x484xf32> to vector<8x384xf32>
    %179 = vector.extract_strided_slice %171 {offsets = [0, 98], sizes = [8, 384], strides = [1, 1]} : vector<8x484xf32> to vector<8x384xf32>
    %180 = vector.extract_strided_slice %171 {offsets = [0, 100], sizes = [8, 384], strides = [1, 1]} : vector<8x484xf32> to vector<8x384xf32>
    %181 = tpu.concatenate %172, %173, %174, %175, %176, %177, %178, %179, %180 in 0 : vector<8x384xf32>, vector<8x384xf32>, vector<8x384xf32>, vector<8x384xf32>, vector<8x384xf32>, vector<8x384xf32>, vector<8x384xf32>, vector<8x384xf32>, vector<8x384xf32> -> vector<72x384xf32>
    %182 = arith.truncf %181 : vector<72x384xf32> to vector<72x384xbf16>
    %c0_51 = arith.constant 0 : index
    %c0_52 = arith.constant 0 : index
    %183 = vector.load %arg11[%c0_51, %c0_52] : memref<8x72xbf16, #tpu.memory_space<vmem>>, vector<8x72xbf16>
    %cst_53 = arith.constant dense<0.000000e+00> : vector<8x384xf32>
    %184 = tpu.matmul %183, %182, %cst_53 {dimension_numbers = #tpu.dot_dimension_numbers<[1], [0], [0], [1], [0, 0, 1, 1], [], []>} : vector<8x72xbf16>, vector<72x384xbf16>, vector<8x384xf32> -> vector<8x384xf32>
    %185 = vector.extract_strided_slice %168 {offsets = [8, 0], sizes = [24, 384], strides = [1, 1]} : vector<32x384xf32> to vector<24x384xf32>
    %186 = tpu.concatenate %184, %185 in 0 : vector<8x384xf32>, vector<24x384xf32> -> vector<32x384xf32>
    %cst_54 = arith.constant 0.000000e+00 : f32
    %187 = vector.broadcast %cst_54 : f32 to vector<32x384xf32>
    %188 = arith.maximumf %186, %187 : vector<32x384xf32>
    %cst_55 = arith.constant 0.000000e+00 : f32
    %189 = vector.broadcast %cst_55 : f32 to vector<32x48xf32>
    %190 = tpu.concatenate %189, %188, %189 in 1 : vector<32x48xf32>, vector<32x384xf32>, vector<32x48xf32> -> vector<32x480xf32>
    %191 = vector.extract_strided_slice %190 {offsets = [0, 0], sizes = [32, 384], strides = [1, 1]} : vector<32x480xf32> to vector<32x384xf32>
    %192 = vector.extract_strided_slice %190 {offsets = [0, 24], sizes = [32, 384], strides = [1, 1]} : vector<32x480xf32> to vector<32x384xf32>
    %193 = vector.extract_strided_slice %190 {offsets = [0, 72], sizes = [32, 384], strides = [1, 1]} : vector<32x480xf32> to vector<32x384xf32>
    %cst_56 = arith.constant 7.500000e-01 : f32
    %194 = vector.broadcast %cst_56 : f32 to vector<32x384xf32>
    %195 = arith.mulf %194, %188 : vector<32x384xf32>
    %196 = vector.shape_cast %44 : vector<1x384xi1> to vector<1x384xi1>
    %197 = vector.broadcast %196 : vector<1x384xi1> to vector<32x384xi1>
    %198 = arith.select %197, %188, %191 : vector<32x384xi1>, vector<32x384xf32>
    %cst_57 = arith.constant 2.500000e-01 : f32
    %199 = vector.broadcast %cst_57 : f32 to vector<32x384xf32>
    %200 = arith.mulf %199, %198 : vector<32x384xf32>
    %201 = arith.addf %195, %200 : vector<32x384xf32>
    %cst_58 = arith.constant 7.500000e-01 : f32
    %202 = vector.broadcast %cst_58 : f32 to vector<32x384xf32>
    %203 = arith.mulf %202, %192 : vector<32x384xf32>
    %204 = vector.shape_cast %46 : vector<1x384xi1> to vector<1x384xi1>
    %205 = vector.broadcast %204 : vector<1x384xi1> to vector<32x384xi1>
    %206 = arith.select %205, %192, %193 : vector<32x384xi1>, vector<32x384xf32>
    %cst_59 = arith.constant 2.500000e-01 : f32
    %207 = vector.broadcast %cst_59 : f32 to vector<32x384xf32>
    %208 = arith.mulf %207, %206 : vector<32x384xf32>
    %209 = arith.addf %203, %208 : vector<32x384xf32>
    %210 = vector.shape_cast %24 : vector<1x384xi1> to vector<1x384xi1>
    %211 = vector.broadcast %210 : vector<1x384xi1> to vector<32x384xi1>
    %212 = arith.select %211, %201, %209 : vector<32x384xi1>, vector<32x384xf32>
    %cst_60 = arith.constant 0.000000e+00 : f32
    %213 = vector.broadcast %cst_60 : f32 to vector<32x2xf32>
    %214 = tpu.concatenate %213, %212, %213 in 1 : vector<32x2xf32>, vector<32x384xf32>, vector<32x2xf32> -> vector<32x388xf32>
    %215 = vector.extract_strided_slice %214 {offsets = [0, 0], sizes = [32, 384], strides = [1, 1]} : vector<32x388xf32> to vector<32x384xf32>
    %216 = vector.extract_strided_slice %214 {offsets = [0, 1], sizes = [32, 384], strides = [1, 1]} : vector<32x388xf32> to vector<32x384xf32>
    %217 = vector.extract_strided_slice %214 {offsets = [0, 3], sizes = [32, 384], strides = [1, 1]} : vector<32x388xf32> to vector<32x384xf32>
    %cst_61 = arith.constant 7.500000e-01 : f32
    %218 = vector.broadcast %cst_61 : f32 to vector<32x384xf32>
    %219 = arith.mulf %218, %212 : vector<32x384xf32>
    %220 = vector.shape_cast %48 : vector<1x384xi1> to vector<1x384xi1>
    %221 = vector.broadcast %220 : vector<1x384xi1> to vector<32x384xi1>
    %222 = arith.select %221, %212, %215 : vector<32x384xi1>, vector<32x384xf32>
    %cst_62 = arith.constant 2.500000e-01 : f32
    %223 = vector.broadcast %cst_62 : f32 to vector<32x384xf32>
    %224 = arith.mulf %223, %222 : vector<32x384xf32>
    %225 = arith.addf %219, %224 : vector<32x384xf32>
    %cst_63 = arith.constant 7.500000e-01 : f32
    %226 = vector.broadcast %cst_63 : f32 to vector<32x384xf32>
    %227 = arith.mulf %226, %216 : vector<32x384xf32>
    %228 = vector.shape_cast %50 : vector<1x384xi1> to vector<1x384xi1>
    %229 = vector.broadcast %228 : vector<1x384xi1> to vector<32x384xi1>
    %230 = arith.select %229, %216, %217 : vector<32x384xi1>, vector<32x384xf32>
    %cst_64 = arith.constant 2.500000e-01 : f32
    %231 = vector.broadcast %cst_64 : f32 to vector<32x384xf32>
    %232 = arith.mulf %231, %230 : vector<32x384xf32>
    %233 = arith.addf %227, %232 : vector<32x384xf32>
    %234 = vector.shape_cast %42 : vector<1x384xi1> to vector<1x384xi1>
    %235 = vector.broadcast %234 : vector<1x384xi1> to vector<32x384xi1>
    %236 = arith.select %235, %225, %233 : vector<32x384xi1>, vector<32x384xf32>
    %237 = vector.broadcast %6 : vector<1x384xf32> to vector<32x384xf32>
    %238 = arith.mulf %236, %237 : vector<32x384xf32>
    %c0_65 = arith.constant 0 : index
    %c0_66 = arith.constant 0 : index
    %239 = vector.load %arg13[%c0_65, %c0_66] : memref<8x1xf32, #tpu.memory_space<vmem>>, vector<8x1xf32>
    %cst_67 = arith.constant 0.000000e+00 : f32
    %240 = vector.broadcast %cst_67 : f32 to vector<32x25xf32>
    %241 = tpu.concatenate %240, %238, %240 in 1 : vector<32x25xf32>, vector<32x384xf32>, vector<32x25xf32> -> vector<32x434xf32>
    %242 = vector.extract_strided_slice %241 {offsets = [0, 0], sizes = [32, 384], strides = [1, 1]} : vector<32x434xf32> to vector<32x384xf32>
    %243 = vector.extract_strided_slice %241 {offsets = [0, 1], sizes = [32, 384], strides = [1, 1]} : vector<32x434xf32> to vector<32x384xf32>
    %244 = vector.extract_strided_slice %241 {offsets = [0, 2], sizes = [32, 384], strides = [1, 1]} : vector<32x434xf32> to vector<32x384xf32>
    %245 = vector.extract_strided_slice %241 {offsets = [0, 24], sizes = [32, 384], strides = [1, 1]} : vector<32x434xf32> to vector<32x384xf32>
    %246 = vector.extract_strided_slice %241 {offsets = [0, 25], sizes = [32, 384], strides = [1, 1]} : vector<32x434xf32> to vector<32x384xf32>
    %247 = vector.extract_strided_slice %241 {offsets = [0, 26], sizes = [32, 384], strides = [1, 1]} : vector<32x434xf32> to vector<32x384xf32>
    %248 = vector.extract_strided_slice %241 {offsets = [0, 48], sizes = [32, 384], strides = [1, 1]} : vector<32x434xf32> to vector<32x384xf32>
    %249 = vector.extract_strided_slice %241 {offsets = [0, 49], sizes = [32, 384], strides = [1, 1]} : vector<32x434xf32> to vector<32x384xf32>
    %250 = vector.extract_strided_slice %241 {offsets = [0, 50], sizes = [32, 384], strides = [1, 1]} : vector<32x434xf32> to vector<32x384xf32>
    %251 = tpu.concatenate %242, %243, %244, %245, %246, %247, %248, %249, %250 in 0 : vector<32x384xf32>, vector<32x384xf32>, vector<32x384xf32>, vector<32x384xf32>, vector<32x384xf32>, vector<32x384xf32>, vector<32x384xf32>, vector<32x384xf32>, vector<32x384xf32> -> vector<288x384xf32>
    %252 = arith.truncf %251 : vector<288x384xf32> to vector<288x384xbf16>
    %c0_68 = arith.constant 0 : index
    %c0_69 = arith.constant 0 : index
    %253 = vector.load %arg12[%c0_68, %c0_69] : memref<8x288xbf16, #tpu.memory_space<vmem>>, vector<8x288xbf16>
    %cst_70 = arith.constant dense<0.000000e+00> : vector<8x384xf32>
    %254 = tpu.matmul %253, %252, %cst_70 {dimension_numbers = #tpu.dot_dimension_numbers<[1], [0], [0], [1], [0, 0, 1, 1], [], []>} : vector<8x288xbf16>, vector<288x384xbf16>, vector<8x384xf32> -> vector<8x384xf32>
    %255 = vector.broadcast %239 : vector<8x1xf32> to vector<8x384xf32>
    %256 = arith.addf %254, %255 : vector<8x384xf32>
    %c0_71 = arith.constant 0 : index
    %c0_72 = arith.constant 0 : index
    %c0_73 = arith.constant 0 : index
    %257 = vector.load %arg14[%c0_71, %c0_72, %c0_73] : memref<1x8x384xf32, #tpu.memory_space<vmem>>, vector<1x8x384xf32>
    %258 = vector.shape_cast %257 : vector<1x8x384xf32> to vector<8x384xf32>
    %259 = vector.shape_cast %256 : vector<8x384xf32> to vector<1x8x384xf32>
    tpu.vector_store %arg14[%c0_71, %c0_72, %c0_73], %259 {strides = array<i32>} : memref<1x8x384xf32, #tpu.memory_space<vmem>>, vector<1x8x384xf32>,
    return
  }
  func.func @transform_0(%arg0: i32) -> (i32, i32, i32) {
    %c0_i32 = arith.constant 0 : i32
    %c0_i32_0 = arith.constant 0 : i32
    %c0_i32_1 = arith.constant 0 : i32
    return %arg0, %c0_i32, %c0_i32_0 : i32, i32, i32
  }
  func.func @transform_1(%arg0: i32) -> (i32, i32) {
    %c0_i32 = arith.constant 0 : i32
    %c0_i32_0 = arith.constant 0 : i32
    %c0_i32_1 = arith.constant 0 : i32
    return %c0_i32, %c0_i32_0 : i32, i32
  }
  func.func @transform_2(%arg0: i32) -> (i32, i32) {
    %c0_i32 = arith.constant 0 : i32
    %c0_i32_0 = arith.constant 0 : i32
    %c0_i32_1 = arith.constant 0 : i32
    return %c0_i32, %c0_i32_0 : i32, i32
  }
  func.func @transform_3(%arg0: i32) -> (i32, i32) {
    %c0_i32 = arith.constant 0 : i32
    %c0_i32_0 = arith.constant 0 : i32
    %c0_i32_1 = arith.constant 0 : i32
    return %c0_i32, %c0_i32_0 : i32, i32
  }
  func.func @transform_4(%arg0: i32) -> (i32, i32) {
    %c0_i32 = arith.constant 0 : i32
    %c0_i32_0 = arith.constant 0 : i32
    %c0_i32_1 = arith.constant 0 : i32
    return %c0_i32, %c0_i32_0 : i32, i32
  }
  func.func @transform_5(%arg0: i32) -> (i32, i32) {
    %c0_i32 = arith.constant 0 : i32
    %c0_i32_0 = arith.constant 0 : i32
    %c0_i32_1 = arith.constant 0 : i32
    return %c0_i32, %c0_i32_0 : i32, i32
  }
  func.func @transform_6(%arg0: i32) -> (i32, i32) {
    %c0_i32 = arith.constant 0 : i32
    %c0_i32_0 = arith.constant 0 : i32
    %c0_i32_1 = arith.constant 0 : i32
    return %c0_i32, %c0_i32_0 : i32, i32
  }
  func.func @transform_7(%arg0: i32) -> (i32, i32) {
    %c0_i32 = arith.constant 0 : i32
    %c0_i32_0 = arith.constant 0 : i32
    %c0_i32_1 = arith.constant 0 : i32
    return %c0_i32, %c0_i32_0 : i32, i32
  }
  func.func @transform_8(%arg0: i32) -> (i32, i32) {
    %c0_i32 = arith.constant 0 : i32
    %c0_i32_0 = arith.constant 0 : i32
    %c0_i32_1 = arith.constant 0 : i32
    return %c0_i32, %c0_i32_0 : i32, i32
  }
  func.func @transform_9(%arg0: i32) -> (i32, i32) {
    %c0_i32 = arith.constant 0 : i32
    %c0_i32_0 = arith.constant 0 : i32
    %c0_i32_1 = arith.constant 0 : i32
    return %c0_i32, %c0_i32_0 : i32, i32
  }
  func.func @transform_10(%arg0: i32) -> (i32, i32) {
    %c0_i32 = arith.constant 0 : i32
    %c0_i32_0 = arith.constant 0 : i32
    %c0_i32_1 = arith.constant 0 : i32
    return %c0_i32, %c0_i32_0 : i32, i32
  }
  func.func @transform_11(%arg0: i32) -> (i32, i32) {
    %c0_i32 = arith.constant 0 : i32
    %c0_i32_0 = arith.constant 0 : i32
    %c0_i32_1 = arith.constant 0 : i32
    return %c0_i32, %c0_i32_0 : i32, i32
  }
  func.func @transform_12(%arg0: i32) -> (i32, i32) {
    %c0_i32 = arith.constant 0 : i32
    %c0_i32_0 = arith.constant 0 : i32
    %c0_i32_1 = arith.constant 0 : i32
    return %c0_i32, %c0_i32_0 : i32, i32
  }
  func.func @transform_13(%arg0: i32) -> (i32, i32, i32) {
    %c0_i32 = arith.constant 0 : i32
    %c0_i32_0 = arith.constant 0 : i32
    %c0_i32_1 = arith.constant 0 : i32
    return %arg0, %c0_i32, %c0_i32_0 : i32, i32, i32
  }
}

</mosaic_0001>

<bundles_post_ra>
// kernel: filter_simulation4_forward.1
= control target key start
LH: loop header
LB: loop body
LE: loop exit
PB: predicated region body
PF: predicated region fallthrough
CT: control target
= control target key end

     0   :  { %s8885_s25 = smov 0   ;;  %s13891_s0 = inlined_call_operand.vmem [shape: f32[2,8,384], index: 0, kind: input, shape index: {}]   ;;  %s13892_s1 = inlined_call_operand.vmem [shape: s32[2,384], index: 1, kind: input, shape index: {}]   ;;  %s13893_s2 = inlined_call_operand.vmem [shape: bf16[32,72], index: 2, kind: input, shape index: {}]   ;;  %s13894_s3 = inlined_call_operand.vmem [shape: f32[32,1], index: 3, kind: input, shape index: {}]   ;;  %s13895_s4 = inlined_call_operand.vmem [shape: bf16[8,72], index: 4, kind: input, shape index: {}]   ;;  %s13896_s5 = inlined_call_operand.vmem [shape: bf16[64,288], index: 5, kind: input, shape index: {}]   ;;  %s13897_s6 = inlined_call_operand.vmem [shape: f32[64,1], index: 6, kind: input, shape index: {}]   ;;  %s13898_s7 = inlined_call_operand.vmem [shape: bf16[16,144], index: 7, kind: input, shape index: {}]   ;;  %s13899_s8 = inlined_call_operand.vmem [shape: bf16[32,576], index: 8, kind: input, shape index: {}]   ;;  %s13900_s9 = inlined_call_operand.vmem [shape: f32[32,1], index: 9, kind: input, shape index: {}]   ;;  %s13901_s10 = inlined_call_operand.vmem [shape: bf16[8,72], index: 10, kind: input, shape index: {}]   ;;  %s13902_s11 = inlined_call_operand.vmem [shape: bf16[8,288], index: 11, kind: input, shape index: {}]   ;;  %s13903_s12 = inlined_call_operand.vmem [shape: f32[8,1], index: 12, kind: input, shape index: {}]   ;;  %s13904_s13 = inlined_call_operand.vmem [shape: f32[2,8,384], index: 13, kind: output, shape index: {}]  }
   0x1 LB: > { %s6528_s26 = sadd.s32 4294967295, %s8785_s25   ;;  %p6532_p0 = scmp.ge.s32.totalorder %s8785_s25, 1  ;;  %s8785_s25 = sphi %s8885_s25, %s23_s25  }
   0x2   : > { %p387_p1 = scmp.lt.s32.totalorder %s8785_s25, 3 }
   0x4   : > { %p388_p2 = pnand %p6532_p0, %p387_p1 }
   0x6   : > { %391 = sbr.rel (%p388_p2) target bundleno = 5009 (0x1391), region = 72 }
   0xb   : > { %p431_p3 = scmp.lt.s32.totalorder %s6528_s26, 1  ;;  %s13959_s14 = smov 25   ;;  %vm13919_vm0 = vcmask 203776   ;;  %vm13905_vm1 = vcmask 408576   ;;  %v8935_v16 = vld [vmem:[%s13893_s2] sm:$0xff]   ;;  %vm13962_vm2 = vcmask 588800  }
   0xc   : > { %s8788_s15 = smov 78   ;;  %s8789_s16 = smov 80   ;;  %vm8939_vm3 = vmneg %vm13905_vm1  ;;  %v13910_v18 = vmov 0   ;;  %vm8797_vm4 = vmmov 1   ;;  %v14130_v19 = vmov 0  ;;  %6814 = vmatprep.mubr.msk.bf16.mxu1 %vm13962_vm2, %v8935_v16  ;;  %v464_v20 = vld [vmem:[%s13894_s3] sm:$0xff] }
   0xd   : > { %s14925_s26 = smov (!%p431_p3, %s6528_s26), 1  ;;  %s13924_s17 = smov 79   ;;  %706 = vmatprep.mubr.bf16.mxu0 %v13910_v18  ;;  %vm8947_vm5 = vmpackc.low %vm8797_vm4, %vm8939_vm3  ;;  %7001 = vset.pattern.permute.xlu0 %v13910_v18  ;;  %vm601_vm6 = vcmask 637952   ;;  %vm13963_vm7 = vcmask 1043456   ;;  %vm571_vm8 = vcmask 654336   ;;  %vm13918_vm9 = vcmask 646144  }
   0xe   : > { %s13906_s27 = smul.u32 24, %s14925_s26  ;;  %s13920_s18 = smov 103   ;;  %v14131_v19 = vsel %vm8947_vm5, 4294967295, %v14130_v19  ;;  %7082 = vset.pattern.permute.xlu1 %v13910_v18  ;;  %vm13907_vm10 = vcmask 842752   ;;  %vm13913_vm11 = vcmask 834560   ;;  %vm511_vm12 = vcmask 1031168   ;;  %vm8987_vm15 = vmneg %vm13919_vm0 }
   0xf   : > { %s13922_s19 = smov 102   ;;  %s8793_s20 = smov 126   ;;  %14132 = vst [vmem:[#allocation2_spill] sm:$0xff] %v14131_v19  ;;  %vm13961_vm13 = vcmask 850944   ;;  %vm13958_vm14 = vcmask 1039360   ;;  %vm8996_vm1 = vmpackc.low %vm8797_vm4, %vm8987_vm15 }
  0x10   : > { %s435_s30 = scalar_lea.vmem %s13891_s0, %s13906_s27  ;;  %s13966_s21 = smov 104  }
  0x11   : > { %v461_v0 = vld [vmem:[%s435_s30] sm:$0xff]  ;;  %v462_v1 = vld [vmem:[%s435_s30 + $0x8] sm:$0xff]  ;;  %v463_v3 = vld [vmem:[%s435_s30 + $0x10] sm:$0xff]  ;;  %s13964_s24 = smov 127   ;;  %s8800_s30 = smov 26  }
  0x12   : > { %v6916_v2 = vpack.i.bf16 %v462_v1, %v461_v0  ;;  %s8801_s22 = smov 101   ;;  %s8802_s23 = smov 77  }
  0x13   : > { %s8803_s28 = smov 50   ;;  %s13974_s27 = smov 28  }
  0x14   : > { %6917 = vrot.lane.b32.xlu0 %v6916_v2, %s13959_s14  ;;  %s13972_s29 = smov 30  }
  0x18   : > { %475 = vrot.lane.b32.xlu0 %v463_v3, %s13959_s14 }
  0x86   : > { %v6918_v4 = vpop.permute.xlu0 %6917 }
  0x87   : > { %v6920_v5 = vunpack.i.h.bf16 %v6918_v4  ;;  %v8903_v6 = vunpack.i.l.bf16 %v6918_v4 }
  0x89   : > { %v8907_v7 = vsel %vm13919_vm0, %v8903_v6, %v6920_v5  ;;  %v484_v8 = vsel %vm13919_vm0, 0.0, %v8903_v6 }
  0x8a   : > { %v476_v9 = vpop.permute.xlu0 %475  ;;  %v6921_v10 = vpack.i.bf16 %v8907_v7, %v484_v8 }
  0x8b   : > { %v8913_v11 = vsel %vm13919_vm0, %v6920_v5, %v476_v9  ;;  %v485_v12 = vsel %vm13919_vm0, %v476_v9, 0.0 }
  0x8c   : > { %6922 = vrot.lane.b32.xlu1 %v6921_v10, %s8788_s15  ;;  %v6931_v13 = vpack.i.bf16 %v8913_v11, %v8907_v7  ;;  %v6926_v14 = vpack.i.bf16 %v485_v12, %v8913_v11  ;;  %v6936_v15 = vpack.i.bf16 %v484_v8, %v485_v12 }
  0x8e   : > { %6932 = vrot.lane.b32.xlu0 %v6931_v13, %s8789_s16 }
  0x90   : > { %6927 = vrot.lane.b32.xlu1 %v6926_v14, %s8788_s15 }
  0x92   : > { %6942 = vrot.lane.b32.xlu0 %v6931_v13, %s13924_s17 }
  0x94   : > { %6937 = vrot.lane.b32.xlu1 %v6936_v15, %s8789_s16 }
  0x96   : > { %6952 = vrot.lane.b32.xlu0 %v6931_v13, %s13920_s18 }
  0x98   : > { %6947 = vrot.lane.b32.xlu1 %v6936_v15, %s13924_s17 }
  0x9a   : > { %6962 = vrot.lane.b32.xlu0 %v6931_v13, %s13922_s19 }
  0x9c   : > { %6957 = vrot.lane.b32.xlu1 %v6936_v15, %s13920_s18 }
  0x9e   : > { %6972 = vrot.lane.b32.xlu0 %v6931_v13, %s8793_s20 }
  0xa0   : > { %6967 = vrot.lane.b32.xlu1 %v6936_v15, %s13922_s19 }
  0xa2   : > { %6982 = vrot.lane.b32.xlu0 %v6931_v13, %s13966_s21 }
  0xa4   : > { %6977 = vrot.lane.b32.xlu1 %v6936_v15, %s8793_s20 }
  0xa6   : > { %6992 = vrot.lane.b32.xlu0 %v6931_v13, %s13964_s24 }
  0xa8   : > { %6987 = vrot.lane.b32.xlu1 %v6936_v15, %s13966_s21 }
  0xaa   : > { %629 = vperm.xlu0 %7001, %v464_v20  }
  0xac   : > { %6997 = vrot.lane.b32.xlu1 %v6936_v15, %s13964_s24 }
  0xfe   : > { %v6923_v21 = vpop.permute.xlu1 %6922 }
  0xff   : > { %v6925_v22 = vunpack.i.h.bf16 %v6923_v21  ;;  %v6924_v23 = vunpack.i.l.bf16 %v6923_v21 }
 0x100   : > { %v6933_v24 = vpop.permute.xlu0 %6932 }
 0x101   : > { %v602_v25 = vsel %vm601_vm6, %v6924_v23, %v6925_v22  ;;  %v6935_v26 = vunpack.i.h.bf16 %v6933_v24  ;;  %v6934_v28 = vunpack.i.l.bf16 %v6933_v24 }
 0x102   : > { %v6928_v27 = vpop.permute.xlu1 %6927  ;;  %v620_v31 = vpack.c.bf16 %v602_v25, %v602_v25 }
 0x103   : > { %v6930_v29 = vunpack.i.h.bf16 %v6928_v27  ;;  %v6929_v30 = vunpack.i.l.bf16 %v6928_v27  ;;  %v573_v41 = vsel %vm571_vm8, %v6934_v28, %v6935_v26 }
 0x104   : > { %v6943_v32 = vpop.permute.xlu0 %6942  ;;  %v666_v40 = vsel %vm13963_vm7, %v620_v31, 0 }
 0x105   : > { %v6945_v33 = vunpack.i.h.bf16 %v6943_v32  ;;  %v6944_v34 = vunpack.i.l.bf16 %v6943_v32  ;;  %v603_v35 = vsel %vm601_vm6, %v6925_v22, %v6929_v30  ;;  %v604_v36 = vsel %vm601_vm6, %v6929_v30, %v6930_v29 }
 0x106   : > { %v6938_v37 = vpop.permute.xlu1 %6937  ;;  %v621_v38 = vpack.c.bf16 %v603_v35, %v603_v35  ;;  %v622_v39 = vpack.c.bf16 %v604_v36, %v604_v36 }
 0x107   : > { %v588_v42 = vsel %vm13918_vm9, %v6944_v34, %v6945_v33  ;;  %v6940_v43 = vunpack.i.h.bf16 %v6938_v37  ;;  %v6939_v44 = vunpack.i.l.bf16 %v6938_v37 }
 0x108   : > { %v6953_v45 = vpop.permute.xlu0 %6952  ;;  %6539 = vmatprep.subr.msk.bf16.mxu0 %vm13963_vm7, %v621_v38  ;;  %6878 = vmatprep.subr.msk.bf16.mxu1 %vm13963_vm7, %v622_v39  ;;  %v672_v46 = vsel %vm13963_vm7, %v622_v39, 0  ;;  %v618_v47 = vpack.c.bf16 %v588_v42, %v573_v41 }
 0x109   : > { %681 = vmatpush1.bf16.msra.mxu0 %v666_v40  ;;  %6805 = vmatpush3.bf16.msra.mxu1 %v672_v46  ;;  %v6955_v49 = vunpack.i.h.bf16 %v6953_v45  ;;  %v6954_v50 = vunpack.i.l.bf16 %v6953_v45  ;;  %v572_v54 = vsel %vm571_vm8, %v6940_v43, %v6934_v28  ;;  %v574_v55 = vsel %vm571_vm8, %v6935_v26, %v6939_v44 }
 0x10a   : > { %v6948_v48 = vpop.permute.xlu1 %6947  ;;  %682 = vmatprep.subr.bf16.mxu0 %v618_v47  ;;  %v14133_v46 = vmov 0 }
 0x10b   : > { %v6950_v51 = vunpack.i.h.bf16 %v6948_v48  ;;  %v6949_v52 = vunpack.i.l.bf16 %v6948_v48  ;;  %v543_v63 = vsel %vm13907_vm10, %v6954_v50, %v6955_v49  ;;  %v14134_v46 = vsel %vm8987_vm15, 4294967295, %v14133_v46 }
 0x10c   : > { %v6963_v53 = vpop.permute.xlu0 %6962  ;;  %14135 = vst [vmem:[#allocation3_spill] sm:$0xff] %v14134_v46 }
 0x10d   : > { %v6965_v56 = vunpack.i.h.bf16 %v6963_v53  ;;  %v6964_v57 = vunpack.i.l.bf16 %v6963_v53  ;;  %v587_v58 = vsel %vm13918_vm9, %v6950_v51, %v6944_v34  ;;  %v589_v59 = vsel %vm13918_vm9, %v6945_v33, %v6949_v52 }
 0x10e   : > { %v6958_v60 = vpop.permute.xlu1 %6957  ;;  %v617_v61 = vpack.c.bf16 %v587_v58, %v572_v54  ;;  %v619_v62 = vpack.c.bf16 %v589_v59, %v574_v55  ;;  %v13908_v55 = vmov 0.0  }
 0x10f   : > { %v558_v0 = vsel %vm13913_vm11, %v6964_v57, %v6965_v56  ;;  %v6960_v1 = vunpack.i.h.bf16 %v6958_v60  ;;  %v6959_v2 = vunpack.i.l.bf16 %v6958_v60 }
 0x110   : > { %v6973_v3 = vpop.permute.xlu0 %6972  ;;  %683 = vmatpush1.bf16.msra.mxu0 %v617_v61  ;;  %6806 = vmatprep.subr.bf16.mxu1 %v619_v62  ;;  %v615_v4 = vpack.c.bf16 %v558_v0, %v543_v63 }
 0x111   : > { %6807 = vmatpush3.bf16.msra.mxu1 %v619_v62  ;;  %v6975_v8 = vunpack.i.h.bf16 %v6973_v3  ;;  %v6974_v9 = vunpack.i.l.bf16 %v6973_v3  ;;  %v542_v14 = vsel %vm13907_vm10, %v6960_v1, %v6954_v50  ;;  %v544_v15 = vsel %vm13907_vm10, %v6955_v49, %v6959_v2 }
 0x112   : > { %v6968_v5 = vpop.permute.xlu1 %6967  ;;  %684 = vmatprep.subr.bf16.mxu0 %v615_v4 }
 0x113   : > { %v6970_v10 = vunpack.i.h.bf16 %v6968_v5  ;;  %v6969_v12 = vunpack.i.l.bf16 %v6968_v5  ;;  %v513_v27 = vsel %vm511_vm12, %v6974_v9, %v6975_v8 }
 0x114   : > { %v6983_v13 = vpop.permute.xlu0 %6982 }
 0x115   : > { %v6985_v20 = vunpack.i.h.bf16 %v6983_v13  ;;  %v6984_v21 = vunpack.i.l.bf16 %v6983_v13  ;;  %v557_v22 = vsel %vm13913_vm11, %v6970_v10, %v6964_v57  ;;  %v559_v23 = vsel %vm13913_vm11, %v6965_v56, %v6969_v12 }
 0x116   : > { %v6978_v24 = vpop.permute.xlu1 %6977  ;;  %v614_v25 = vpack.c.bf16 %v557_v22, %v542_v14  ;;  %v616_v26 = vpack.c.bf16 %v559_v23, %v544_v15 }
 0x117   : > { %v528_v28 = vsel %vm13961_vm13, %v6984_v21, %v6985_v20  ;;  %v6980_v31 = vunpack.i.h.bf16 %v6978_v24  ;;  %v6979_v32 = vunpack.i.l.bf16 %v6978_v24 }
 0x118   : > { %v6993_v29 = vpop.permute.xlu0 %6992  ;;  %685 = vmatpush1.bf16.msra.mxu0 %v614_v25  ;;  %6808 = vmatprep.subr.bf16.mxu1 %v616_v26  ;;  %v612_v30 = vpack.c.bf16 %v528_v28, %v513_v27 }
 0x119   : > { %v6995_v33 = vunpack.i.h.bf16 %v6993_v29  ;;  %v6994_v34 = vunpack.i.l.bf16 %v6993_v29  ;;  %6809 = vmatpush3.bf16.msra.mxu1 %v616_v26  ;;  %v512_v39 = vsel %vm511_vm12, %v6980_v31, %v6974_v9  ;;  %v514_v41 = vsel %vm511_vm12, %v6975_v8, %v6979_v32 }
 0x11a   : > { %v6988_v35 = vpop.permute.xlu1 %6987  ;;  %686 = vmatprep.subr.bf16.mxu0 %v612_v30 }
 0x11b   : > { %v6990_v36 = vunpack.i.h.bf16 %v6988_v35  ;;  %v6989_v37 = vunpack.i.l.bf16 %v6988_v35  ;;  %v498_v38 = vsel %vm13958_vm14, %v6994_v34, %v6995_v33 }
 0x11c   : > { %v609_v49 = vpack.c.bf16 %v498_v38, %v8907_v7  ;;  %v8739_v7 = vld [vmem:[%s13893_s2 + $0x8] sm:$0xff]  }
 0x11d   : > { %v527_v40 = vsel %vm13961_vm13, %v6990_v36, %v6984_v21  ;;  %v529_v42 = vsel %vm13961_vm13, %v6985_v20, %v6989_v37  ;;  %v466_v36 = vld [vmem:[%s13894_s3 + $0x10] sm:$0xff]  ;;  %v467_v37 = vld [vmem:[%s13894_s3 + $0x18] sm:$0xff]  ;;  %v465_v38 = vld [vmem:[%s13894_s3 + $0x8] sm:$0xff] }
 0x11e   : > { %v6998_v43 = vpop.permute.xlu1 %6997  ;;  %v611_v44 = vpack.c.bf16 %v527_v40, %v512_v39  ;;  %v613_v45 = vpack.c.bf16 %v529_v42, %v514_v41 }
 0x11f   : > { %v7000_v47 = vunpack.i.h.bf16 %v6998_v43  ;;  %v6999_v48 = vunpack.i.l.bf16 %v6998_v43 }
 0x120   : > { %687 = vmatpush1.bf16.msra.mxu0 %v611_v44  ;;  %6810 = vmatprep.subr.bf16.mxu1 %v613_v45 }
 0x121   : > { %v497_v50 = vsel %vm13958_vm14, %v7000_v47, %v6994_v34  ;;  %688 = vmatprep.subr.bf16.mxu0 %v609_v49  ;;  %6811 = vmatpush3.bf16.msra.mxu1 %v613_v45  ;;  %v499_v52 = vsel %vm13958_vm14, %v6995_v33, %v6999_v48 }
 0x122   : > { %v6542_v53 = vpack.c.bf16 %v497_v50, %v8903_v6  ;;  %v610_v54 = vpack.c.bf16 %v499_v52, %v8913_v11  ;;  %v789_v6 = vlaneseq  ;;  %v442_v11 = vld [vmem:[%s13892_s1] sm:$0x3f] }
 0x123   : > { %vm443_vm4 = vcmp.lt.s32.totalorder %v442_v11, 16 }
 0x124   : > { %6543 = vmatpush1.bf16.msk.msra.mxu0 %vm8996_vm1, %v6542_v53  ;;  %6812 = vmatprep.subr.bf16.mxu1 %v610_v54  ;;  %v9018_v56 = vshrl.u32 %v789_v6, 7  ;;  %v6535_v58 = vsel %vm443_vm4, 1.0, %v13908_v55  ;;  %vm13976_vm4 = vmmov 0  }
 0x125   : > { %6813 = vmatpush3.bf16.msra.mxu1 %v610_v54  ;;  %v630_v59 = vpop.permute.xlu0 %629 }
 0x126   : > { %6818 = vmatprep.subr.bf16.mxu1 %v13908_v55  ;;  %14138 = vst [vmem:[#allocation4_spill] sm:$0xff] %v9018_v56  ;;  %v9021_v57 = vsub.s32 1, %v9018_v56  ;;  %v9032_v1 = vsub.s32 5, %v9018_v56 }
 0x127   : > { %6544 = vmatmul.mubr.msk.bf16.vlgmr.msra.gmra.mxu0 %vm13962_vm2, %v8935_v16  ;;  %v9024_v16 = vsub.s32 3, %v9018_v56 }
 0x128   : > { %6815 = vmatmul.mubr.msk.bf16.vlgmr.msra.gmra.mxu1 %vm13962_vm2, %v8739_v7  ;;  %716 = vmatprep.mubr.bf16.mxu0 %v13910_v18  ;;  %14139 = vst [vmem:[#allocation5_spill] sm:$0xff] %v9021_v57  ;;  %v792_v60 = vrot.slane %v6535_v58, %v9021_v57  ;;  %14141 = vst [vmem:[#allocation7_spill] sm:$0xff] %v9032_v1  ;;  %v800_v13 = vrot.slane %v6535_v58, %v9032_v1 }
 0x129   : > { %14140 = vst [vmem:[#allocation6_spill] sm:$0xff] %v9024_v16  ;;  %v796_v61 = vrot.slane %v6535_v58, %v9024_v16  ;;  %6828 = vmatprep.mubr.msk.bf16.mxu1 %vm13976_vm4, %v13908_v55 }
 0x12a   : > { %v9035_v4 = vrot.slane %v792_v60, %v9021_v57  ;;  %v9044_v21 = vrot.slane %v800_v13, %v9021_v57 }
 0x12b   : > { %v9038_v8 = vrot.slane %v796_v61, %v9021_v57 }
 0x12c   : > { %14142 = vst [vmem:[#allocation8_spill] sm:$0xff] %v9035_v4  ;;  %14144 = vst [vmem:[#allocation10_spill] sm:$0xff] %v9044_v21 }
 0x12d   : > { %14143 = vst [vmem:[#allocation9_spill] sm:$0xff] %v9038_v8 }
 0x12f   : > { %6545 = vmatmul.mubr.msk.bf16.gmra.mxu0 %vm13962_vm2, %v8739_v7 }
 0x130   : > { %1019 = vmatprep.mubr.bf16.mxu0 %v13910_v18 }
 0x1e7   : > { %v708_v62 = vpop.f32.mrf.mxu0 }
 0x1e8   : > { %v709_v63 = vadd.f32 %v708_v62, %v630_v59  ;;  %v9029_v0 = vpop.f32.mrf.mxu1 }
 0x1e9   : > { %v710_v2 = vpop.f32.mrf.mxu0 }
 0x1ea   : > { %v776_v3 = vmax.f32 %v709_v63, 0.0  ;;  %v711_v5 = vadd.f32 %v710_v2, %v630_v59  ;;  %v761_v9 = vpop.f32.mrf.mxu1 }
 0x1eb   : > { %v762_v12 = vadd.f32 %v761_v9, %v630_v59 }
 0x1ec   : > { %v777_v10 = vmax.f32 %v711_v5, 0.0  ;;  %v816_v14 = vmul.f32 %v9035_v4, %v776_v3 }
 0x1ed   : > { %v778_v20 = vmax.f32 %v762_v12, 0.0 }
 0x1ee   : > { %v817_v15 = vmul.f32 %v9038_v8, %v777_v10 }
 0x1ef   : > { %v818_v23 = vmul.f32 %v9044_v21, %v778_v20 }
 0x1f0   : > { %v7002_v22 = vpack.i.bf16 %v817_v15, %v816_v14 }
 0x1f2   : > { %7003 = vrot.lane.b32.xlu1 %v7002_v22, %s13959_s14 }
 0x1f6   : > { %835 = vrot.lane.b32.xlu1 %v818_v23, %s13959_s14  ;;  %s14791_s14 = smov 25  }
 0x264   : > { %v7004_v24 = vpop.permute.xlu1 %7003 }
 0x265   : > { %v7006_v25 = vunpack.i.h.bf16 %v7004_v24  ;;  %v9049_v26 = vunpack.i.l.bf16 %v7004_v24 }
 0x267   : > { %v9053_v27 = vsel %vm13919_vm0, %v9049_v26, %v7006_v25  ;;  %v843_v28 = vsel %vm13919_vm0, 0.0, %v9049_v26 }
 0x268   : > { %v836_v29 = vpop.permute.xlu1 %835  ;;  %v7007_v30 = vpack.i.bf16 %v9053_v27, %v843_v28 }
 0x269   : > { %v9059_v31 = vsel %vm13919_vm0, %v7006_v25, %v836_v29  ;;  %v844_v32 = vsel %vm13919_vm0, %v836_v29, 0.0 }
 0x26a   : > { %7008 = vrot.lane.b32.xlu0 %v7007_v30, %s8788_s15  ;;  %v7012_v33 = vpack.i.bf16 %v844_v32, %v9059_v31  ;;  %v7017_v34 = vpack.i.bf16 %v9059_v31, %v9053_v27  ;;  %v7027_v35 = vpack.i.bf16 %v844_v32, %v843_v28 }
 0x26c   : > { %7013 = vrot.lane.b32.xlu1 %v7012_v33, %s8788_s15 }
 0x26e   : > { %7018 = vrot.lane.b32.xlu0 %v7017_v34, %s8789_s16 }
 0x270   : > { %7023 = vrot.lane.b32.xlu1 %v7017_v34, %s13924_s17 }
 0x272   : > { %7028 = vrot.lane.b32.xlu0 %v7027_v35, %s8789_s16 }
 0x274   : > { %7033 = vrot.lane.b32.xlu1 %v7027_v35, %s13924_s17  ;;  %s8810_s17 = smov 56  }
 0x276   : > { %7038 = vrot.lane.b32.xlu0 %v7017_v34, %s13920_s18 }
 0x278   : > { %7043 = vrot.lane.b32.xlu1 %v7017_v34, %s13922_s19 }
 0x27a   : > { %7048 = vrot.lane.b32.xlu0 %v7027_v35, %s13920_s18  ;;  %s14291_s18 = smov 28  }
 0x27c   : > { %7053 = vrot.lane.b32.xlu1 %v7027_v35, %s13922_s19 }
 0x27e   : > { %7058 = vrot.lane.b32.xlu0 %v7017_v34, %s8793_s20 }
 0x280   : > { %7063 = vrot.lane.b32.xlu1 %v7017_v34, %s13966_s21 }
 0x282   : > { %7068 = vrot.lane.b32.xlu0 %v7027_v35, %s8793_s20 }
 0x284   : > { %7073 = vrot.lane.b32.xlu1 %v7027_v35, %s13966_s21  ;;  %s14817_s21 = smov 79  }
 0x286   : > { %7078 = vrot.lane.b32.xlu0 %v7017_v34, %s13964_s24 }
 0x288   : > { %847 = vrot.lane.b32.xlu1 %v843_v28, %s13964_s24 }
 0x28a   : > { %853 = vrot.lane.b32.xlu0 %v844_v32, %s13964_s24  ;;  %s8809_s24 = smov 48  }
 0x28c   : > { %639 = vperm.xlu1 %7082, %v466_v36  }
 0x28e   : > { %644 = vperm.xlu0 %7001, %v467_v37  }
 0x290   : > { %634 = vperm.xlu1 %7082, %v465_v38  }
 0x2dc   : > { %v7009_v39 = vpop.permute.xlu0 %7008 }
 0x2dd   : > { %v7011_v40 = vunpack.i.h.bf16 %v7009_v39  ;;  %v7010_v41 = vunpack.i.l.bf16 %v7009_v39 }
 0x2de   : > { %v7014_v42 = vpop.permute.xlu1 %7013 }
 0x2df   : > { %v7016_v43 = vunpack.i.h.bf16 %v7014_v42  ;;  %v7015_v44 = vunpack.i.l.bf16 %v7014_v42  ;;  %v953_v45 = vsel %vm601_vm6, %v7010_v41, %v7011_v40 }
 0x2e0   : > { %v7019_v47 = vpop.permute.xlu0 %7018  ;;  %v971_v48 = vpack.c.bf16 %v953_v45, %v953_v45 }
 0x2e1   : > { %v7021_v49 = vunpack.i.h.bf16 %v7019_v47  ;;  %v7020_v50 = vunpack.i.l.bf16 %v7019_v47  ;;  %v954_v52 = vsel %vm601_vm6, %v7011_v40, %v7015_v44  ;;  %v955_v53 = vsel %vm601_vm6, %v7015_v44, %v7016_v43 }
 0x2e2   : > { %v7024_v54 = vpop.permute.xlu1 %7023  ;;  %v972_v7 = vpack.c.bf16 %v954_v52, %v954_v52  ;;  %v973_v6 = vpack.c.bf16 %v955_v53, %v955_v53  ;;  %v979_v60 = vsel %vm13963_vm7, %v971_v48, 0 }
 0x2e3   : > { %v7026_v11 = vunpack.i.h.bf16 %v7024_v54  ;;  %v7025_v58 = vunpack.i.l.bf16 %v7024_v54  ;;  %v926_v2 = vsel %vm571_vm8, %v7020_v50, %v7021_v49 }
 0x2e4   : > { %v7029_v59 = vpop.permute.xlu0 %7028  ;;  %6548 = vmatprep.subr.msk.bf16.mxu0 %vm13963_vm7, %v972_v7  ;;  %v985_v61 = vsel %vm13963_vm7, %v973_v6, 0 }
 0x2e5   : > { %v7031_v62 = vunpack.i.h.bf16 %v7029_v59  ;;  %v7030_v63 = vunpack.i.l.bf16 %v7029_v59  ;;  %994 = vmatpush1.bf16.msra.mxu0 %v979_v60  ;;  %6819 = vmatpush3.bf16.msra.mxu1 %v985_v61  ;;  %v940_v3 = vsel %vm13918_vm9, %v7025_v58, %v7026_v11  ;;  %v712_v61 = vpop.f32.mrf.mxu0 }
 0x2e6   : > { %v7034_v5 = vpop.permute.xlu1 %7033  ;;  %v969_v9 = vpack.c.bf16 %v940_v3, %v926_v2  ;;  %6820 = vmatprep.subr.bf16.mxu1 %v13908_v55 }
 0x2e7   : > { %v7036_v10 = vunpack.i.h.bf16 %v7034_v5  ;;  %v7035_v12 = vunpack.i.l.bf16 %v7034_v5  ;;  %v925_v13 = vsel %vm571_vm8, %v7030_v63, %v7020_v50  ;;  %v927_v14 = vsel %vm571_vm8, %v7021_v49, %v7031_v62 }
 0x2e8   : > { %v7039_v15 = vpop.permute.xlu0 %7038  ;;  %995 = vmatprep.subr.bf16.mxu0 %v969_v9 }
 0x2e9   : > { %v939_v20 = vsel %vm13918_vm9, %v7035_v12, %v7025_v58  ;;  %v941_v22 = vsel %vm13918_vm9, %v7026_v11, %v7036_v10  ;;  %v7041_v23 = vunpack.i.h.bf16 %v7039_v15  ;;  %v7040_v24 = vunpack.i.l.bf16 %v7039_v15 }
 0x2ea   : > { %v7044_v25 = vpop.permute.xlu1 %7043  ;;  %v968_v28 = vpack.c.bf16 %v939_v20, %v925_v13  ;;  %v970_v29 = vpack.c.bf16 %v941_v22, %v927_v14  ;;  %v714_v20 = vpop.f32.mrf.mxu0 }
 0x2eb   : > { %v7046_v30 = vunpack.i.h.bf16 %v7044_v25  ;;  %v7045_v32 = vunpack.i.l.bf16 %v7044_v25  ;;  %v898_v36 = vsel %vm13907_vm10, %v7040_v24, %v7041_v23 }
 0x2ec   : > { %v7049_v33 = vpop.permute.xlu0 %7048  ;;  %996 = vmatpush1.bf16.msra.mxu0 %v968_v28  ;;  %6821 = vmatpush3.bf16.msra.mxu1 %v970_v29 }
 0x2ed   : > { %v7051_v34 = vunpack.i.h.bf16 %v7049_v33  ;;  %v7050_v35 = vunpack.i.l.bf16 %v7049_v33  ;;  %v912_v37 = vsel %vm13913_vm11, %v7045_v32, %v7046_v30  ;;  %6822 = vmatprep.subr.bf16.mxu1 %v13908_v55 }
 0x2ee   : > { %v7054_v38 = vpop.permute.xlu1 %7053  ;;  %v966_v39 = vpack.c.bf16 %v912_v37, %v898_v36  ;;  %v974_v36 = vld [vmem:[%s13895_s4] sm:$0xf] }
 0x2ef   : > { %v7056_v40 = vunpack.i.h.bf16 %v7054_v38  ;;  %v7055_v41 = vunpack.i.l.bf16 %v7054_v38  ;;  %v897_v42 = vsel %vm13907_vm10, %v7050_v35, %v7040_v24  ;;  %v899_v43 = vsel %vm13907_vm10, %v7041_v23, %v7051_v34 }
 0x2f0   : > { %v7059_v44 = vpop.permute.xlu0 %7058  ;;  %997 = vmatprep.subr.bf16.mxu0 %v966_v39  ;;  %vm1181_vm10 = vcmask 826368  }
 0x2f1   : > { %v911_v45 = vsel %vm13913_vm11, %v7055_v41, %v7045_v32  ;;  %v913_v47 = vsel %vm13913_vm11, %v7046_v30, %v7056_v40  ;;  %v7061_v48 = vunpack.i.h.bf16 %v7059_v44  ;;  %v7060_v49 = vunpack.i.l.bf16 %v7059_v44  ;;  %v718_v32 = vpop.f32.mrf.mxu0  ;;  %v6817_v41 = vpop.f32.mrf.mxu1 }
 0x2f2   : > { %v7064_v50 = vpop.permute.xlu1 %7063  ;;  %v965_v52 = vpack.c.bf16 %v911_v45, %v897_v42  ;;  %v967_v53 = vpack.c.bf16 %v913_v47, %v899_v43  ;;  %vm1318_vm11 = vcmask 629760  }
 0x2f3   : > { %v7066_v54 = vunpack.i.h.bf16 %v7064_v50  ;;  %v7065_v7 = vunpack.i.l.bf16 %v7064_v50  ;;  %v870_v59 = vsel %vm511_vm12, %v7060_v49, %v7061_v48  ;;  %v720_v37 = vpop.f32.mrf.mxu0 }
 0x2f4   : > { %v7069_v6 = vpop.permute.xlu0 %7068  ;;  %998 = vmatpush1.bf16.msra.mxu0 %v965_v52  ;;  %6823 = vmatpush3.bf16.msra.mxu1 %v967_v53 }
 0x2f5   : > { %v7071_v11 = vunpack.i.h.bf16 %v7069_v6  ;;  %v7070_v58 = vunpack.i.l.bf16 %v7069_v6  ;;  %v884_v60 = vsel %vm13961_vm13, %v7065_v7, %v7066_v54  ;;  %6824 = vmatprep.subr.bf16.mxu1 %v13908_v55 }
 0x2f6   : > { %v7074_v62 = vpop.permute.xlu1 %7073  ;;  %v963_v63 = vpack.c.bf16 %v884_v60, %v870_v59 }
 0x2f7   : > { %v7076_v2 = vunpack.i.h.bf16 %v7074_v62  ;;  %v7075_v3 = vunpack.i.l.bf16 %v7074_v62  ;;  %v869_v5 = vsel %vm511_vm12, %v7070_v58, %v7060_v49  ;;  %v871_v9 = vsel %vm511_vm12, %v7061_v48, %v7071_v11  ;;  %v764_v62 = vpop.f32.mrf.mxu1 }
 0x2f8   : > { %v7079_v10 = vpop.permute.xlu0 %7078  ;;  %999 = vmatprep.subr.bf16.mxu0 %v963_v63 }
 0x2f9   : > { %v883_v12 = vsel %vm13961_vm13, %v7075_v3, %v7065_v7  ;;  %v885_v13 = vsel %vm13961_vm13, %v7066_v54, %v7076_v2  ;;  %v7081_v14 = vunpack.i.h.bf16 %v7079_v10  ;;  %v7080_v15 = vunpack.i.l.bf16 %v7079_v10 }
 0x2fa   : > { %v848_v22 = vpop.permute.xlu1 %847  ;;  %v962_v23 = vpack.c.bf16 %v883_v12, %v869_v5  ;;  %v964_v24 = vpack.c.bf16 %v885_v13, %v871_v9 }
 0x2fb   : > { %v855_v25 = vsel %vm13958_vm14, %v848_v22, %v7080_v15  ;;  %v856_v28 = vsel %vm13958_vm14, %v7080_v15, %v7081_v14 }
 0x2fc   : > { %v854_v29 = vpop.permute.xlu0 %853  ;;  %1000 = vmatpush1.bf16.msra.mxu0 %v962_v23  ;;  %6825 = vmatpush3.bf16.msra.mxu1 %v964_v24  ;;  %v960_v30 = vpack.c.bf16 %v856_v28, %v9053_v27  ;;  %v6551_v34 = vpack.c.bf16 %v855_v25, %v9049_v26  ;;  %v722_v27 = vpop.f32.mrf.mxu0 }
 0x2fd   : > { %v857_v33 = vsel %vm13958_vm14, %v7081_v14, %v854_v29  ;;  %6826 = vmatprep.subr.bf16.mxu1 %v13908_v55  ;;  %vm9910_vm14 = vmpackc.low %vm8939_vm3, %vm8939_vm3  ;;  %vm14233_vm3 = vcmask 408576  }
 0x2fe   : > { %v961_v35 = vpack.c.bf16 %v857_v33, %v9059_v31  ;;  %1001 = vmatprep.subr.bf16.mxu0 %v960_v30  ;;  %v724_v51 = vpop.f32.mrf.mxu0  ;;  %vm14234_vm13 = vmmov %vm14233_vm3 }
 0x300   : > { %6552 = vmatpush1.bf16.msk.msra.mxu0 %vm8996_vm1, %v6551_v34  ;;  %6827 = vmatpush3.bf16.msra.mxu1 %v961_v35  ;;  %vm1116_vm1 = vcmask 211968  }
 0x303   : > { %6553 = vmatmul.mubr.msk.bf16.vlgmr.msra.gmra.mxu0 %vm13962_vm2, %v974_v36  ;;  %6829 = vmatmul.mubr.msk.bf16.vlgmr.msra.gmra.mxu1 %vm13962_vm2, %v974_v36  ;;  %vm14235_vm2 = vmmov %vm14233_vm3 }
 0x304   : > { %2192 = vmatprep.mubr.bf16.mxu1 %v13910_v18  ;;  %vm14236_vm7 = vmmov %vm14235_vm2 }
 0x305   : > { %vm14262_vm4 = vmmov %vm14235_vm2 }
 0x307   : > { %v640_v26 = vpop.permute.xlu1 %639 }
 0x308   : > { %v719_v38 = vadd.f32 %v718_v32, %v640_v26  ;;  %v721_v31 = vadd.f32 %v720_v37, %v640_v26  ;;  %v770_v39 = vadd.f32 %v9029_v0, %v640_v26 }
 0x309   : > { %v645_v40 = vpop.permute.xlu0 %644 }
 0x30a   : > { %v782_v42 = vmax.f32 %v719_v38, 0.0  ;;  %v783_v43 = vmax.f32 %v721_v31, 0.0  ;;  %v723_v44 = vadd.f32 %v722_v27, %v645_v40  ;;  %v784_v45 = vmax.f32 %v770_v39, 0.0 }
 0x30b   : > { %v725_v47 = vadd.f32 %v724_v51, %v645_v40  ;;  %v773_v48 = vadd.f32 %v6817_v41, %v645_v40  ;;  %v635_v49 = vpop.permute.xlu1 %634 }
 0x30c   : > { %v785_v50 = vmax.f32 %v723_v44, 0.0  ;;  %v9137_v52 = vmul.f32 %v9038_v8, %v783_v43  ;;  %v9140_v53 = vmul.f32 %v9035_v4, %v782_v42  ;;  %v713_v0 = vadd.f32 %v712_v61, %v635_v49 }
 0x30d   : > { %v786_v54 = vmax.f32 %v725_v47, 0.0  ;;  %v787_v7 = vmax.f32 %v773_v48, 0.0  ;;  %v715_v6 = vadd.f32 %v714_v20, %v635_v49  ;;  %v9145_v59 = vmul.f32 %v9044_v21, %v784_v45 }
 0x30e   : > { %v1075_v11 = vmax.f32 %v9137_v52, 0.0  ;;  %v1074_v58 = vmax.f32 %v9140_v53, 0.0  ;;  %v9148_v60 = vmul.f32 %v9035_v4, %v785_v50  ;;  %v765_v61 = vadd.f32 %v764_v62, %v635_v49 }
 0x30f   : > { %v779_v63 = vmax.f32 %v713_v0, 0.0  ;;  %v780_v2 = vmax.f32 %v715_v6, 0.0  ;;  %v1076_v3 = vmax.f32 %v9145_v59, 0.0  ;;  %v9159_v9 = vmul.f32 %v9038_v8, %v786_v54 }
 0x310   : > { %1106 = vrot.lane.b32.xlu1 %v1075_v11, %s8800_s30  ;;  %1104 = vrot.lane.b32.xlu0 %v1074_v58, %s8800_s30  ;;  %v1077_v5 = vmax.f32 %v9148_v60, 0.0  ;;  %v9162_v10 = vmul.f32 %v9044_v21, %v787_v7  ;;  %v781_v12 = vmax.f32 %v765_v61, 0.0 }
 0x311   : > { %v1078_v13 = vmax.f32 %v9159_v9, 0.0  ;;  %v9173_v15 = vmul.f32 %v9038_v8, %v780_v2  ;;  %v9176_v20 = vmul.f32 %v9035_v4, %v779_v63 }
 0x312   : > { %v1079_v14 = vmax.f32 %v9162_v10, 0.0  ;;  %v9187_v24 = vmul.f32 %v9044_v21, %v781_v12 }
 0x313   : > { %v1072_v22 = vmax.f32 %v9173_v15, 0.0  ;;  %v13917_v23 = vmax.f32 %v9176_v20, 0.0 }
 0x314   : > { %1108 = vrot.lane.b32.xlu0 %v1076_v3, %s8800_s30  ;;  %1110 = vrot.lane.b32.xlu1 %v1077_v5, %s8800_s30  ;;  %v13916_v25 = vmax.f32 %v9187_v24, 0.0 }
 0x318   : > { %1112 = vrot.lane.b32.xlu0 %v1078_v13, %s8800_s30  ;;  %1114 = vrot.lane.b32.xlu1 %v1079_v14, %s8800_s30 }
 0x31c   : > { %1100 = vrot.lane.b32.xlu0 %v1072_v22, %s8800_s30  ;;  %1098 = vrot.lane.b32.xlu1 %v13917_v23, %s8800_s30 }
 0x320   : > { %1102 = vrot.lane.b32.xlu1 %v13916_v25, %s8800_s30 }
 0x382   : > { %v1107_v28 = vpop.permute.xlu1 %1106  ;;  %v1105_v29 = vpop.permute.xlu0 %1104 }
 0x383   : > { %v1135_v30 = vsel %vm1116_vm1, 0.0, %v1105_v29  ;;  %v1121_v26 = vsel %vm1116_vm1, %v1105_v29, %v1107_v28 }
 0x384   : > { %1165 = vrot.lane.b32.xlu0 %v1135_v30, %s8801_s22 }
 0x386   : > { %v1111_v32 = vpop.permute.xlu1 %1110  ;;  %v1109_v33 = vpop.permute.xlu0 %1108 }
 0x387   : > { %v1139_v34 = vsel %vm1116_vm1, %v1109_v33, 0.0  ;;  %v1122_v35 = vsel %vm1116_vm1, %v1107_v28, %v1109_v33  ;;  %v1136_v27 = vsel %vm1116_vm1, 0.0, %v1111_v32 }
 0x388   : > { %1234 = vrot.lane.b32.xlu0 %v1135_v30, %s8788_s15  ;;  %1171 = vrot.lane.b32.xlu1 %v1139_v34, %s8801_s22 }
 0x38a   : > { %v1115_v36 = vpop.permute.xlu1 %1114  ;;  %v1113_v38 = vpop.permute.xlu0 %1112 }
 0x38b   : > { %v1140_v37 = vsel %vm1116_vm1, %v1115_v36, 0.0  ;;  %v1124_v31 = vsel %vm1116_vm1, %v1113_v38, %v1115_v36  ;;  %v1123_v39 = vsel %vm1116_vm1, %v1111_v32, %v1113_v38 }
 0x38c   : > { %1240 = vrot.lane.b32.xlu1 %v1139_v34, %s8788_s15  ;;  %1169 = vrot.lane.b32.xlu0 %v1122_v35, %s8801_s22 }
 0x38e   : > { %v1099_v44 = vpop.permute.xlu1 %1098  ;;  %v1101_v50 = vpop.permute.xlu0 %1100 }
 0x38f   : > { %v1119_v0 = vsel %vm1116_vm1, %v1099_v44, %v1101_v50  ;;  %v1134_v62 = vsel %vm1116_vm1, 0.0, %v1099_v44 }
 0x390   : > { %1179 = vrot.lane.b32.xlu1 %v1140_v37, %s8801_s22  ;;  %1238 = vrot.lane.b32.xlu0 %v1122_v35, %s8788_s15 }
 0x392   : > { %v1103_v6 = vpop.permute.xlu1 %1102 }
 0x393   : > { %v9246_v61 = vsel %vm1116_vm1, %v1103_v6, 0.0  ;;  %v9251_v63 = vsel %vm1116_vm1, %v1101_v50, %v1103_v6 }
 0x394   : > { %1248 = vrot.lane.b32.xlu1 %v1140_v37, %s8788_s15  ;;  %1173 = vrot.lane.b32.xlu0 %v1136_v27, %s8801_s22 }
 0x398   : > { %1167 = vrot.lane.b32.xlu1 %v1121_v26, %s8801_s22  ;;  %1242 = vrot.lane.b32.xlu0 %v1136_v27, %s8788_s15 }
 0x39c   : > { %1236 = vrot.lane.b32.xlu1 %v1121_v26, %s8788_s15  ;;  %1177 = vrot.lane.b32.xlu0 %v1124_v31, %s8801_s22 }
 0x3a0   : > { %1246 = vrot.lane.b32.xlu0 %v1124_v31, %s8788_s15  ;;  %1175 = vrot.lane.b32.xlu1 %v1123_v39, %s8801_s22 }
 0x3a4   : > { %1244 = vrot.lane.b32.xlu1 %v1123_v39, %s8788_s15 }
 0x3c3   : > { %v9223_v51 = vpop.f32.mrf.mxu0  ;;  %v9225_v40 = vpop.f32.mrf.mxu1 }
 0x3c4   : > { %v13914_v41 = vmax.f32 %v9223_v51, 0.0  ;;  %v13915_v45 = vmax.f32 %v9225_v40, 0.0 }
 0x3c5   : > { %v9228_v42 = vpop.f32.mrf.mxu0  ;;  %v6830_v43 = vpop.f32.mrf.mxu1 }
 0x3c6   : > { %v13912_v47 = vmax.f32 %v9228_v42, 0.0  ;;  %1092 = vrot.lane.b32.xlu0 %v13914_v41, %s8800_s30 }
 0x3c7   : > { %v1025_v48 = vpop.f32.mrf.mxu0  ;;  %v1065_v49 = vpop.f32.mrf.mxu1 }
 0x3c8   : > { %1094 = vrot.lane.b32.xlu1 %v13912_v47, %s8800_s30 }
 0x3c9   : > { %v1026_v54 = vpop.f32.mrf.mxu0  ;;  %v6831_v7 = vpop.f32.mrf.mxu1 }
 0x3ca   : > { %1096 = vrot.lane.b32.xlu0 %v13915_v45, %s8800_s30  ;;  %s13970_s30 = smov 124  }
 0x3cc   : > { %1159 = vrot.lane.b32.xlu1 %v1119_v0, %s8801_s22 }
 0x3ce   : > { %1157 = vrot.lane.b32.xlu0 %v1134_v62, %s8801_s22 }
 0x3d0   : > { %1163 = vrot.lane.b32.xlu1 %v9246_v61, %s8801_s22 }
 0x3d2   : > { %1161 = vrot.lane.b32.xlu0 %v9251_v63, %s8801_s22 }
 0x3d4   : > { %1304 = vrot.lane.b32.xlu1 %v1121_v26, %s8802_s23 }
 0x3d6   : > { %1302 = vrot.lane.b32.xlu0 %v1135_v30, %s8802_s23 }
 0x3d8   : > { %1308 = vrot.lane.b32.xlu1 %v1139_v34, %s8802_s23 }
 0x3da   : > { %1306 = vrot.lane.b32.xlu0 %v1122_v35, %s8802_s23 }
 0x3dc   : > { %1312 = vrot.lane.b32.xlu1 %v1123_v39, %s8802_s23 }
 0x3de   : > { %1310 = vrot.lane.b32.xlu0 %v1136_v27, %s8802_s23 }
 0x3e0   : > { %1316 = vrot.lane.b32.xlu1 %v1140_v37, %s8802_s23 }
 0x3e2   : > { %1314 = vrot.lane.b32.xlu0 %v1124_v31, %s8802_s23 }
 0x3e4   : > { %1228 = vrot.lane.b32.xlu1 %v1119_v0, %s8788_s15 }
 0x3e6   : > { %1226 = vrot.lane.b32.xlu0 %v1134_v62, %s8788_s15 }
 0x3e8   : > { %1232 = vrot.lane.b32.xlu1 %v9246_v61, %s8788_s15 }
 0x3ea   : > { %1230 = vrot.lane.b32.xlu0 %v9251_v63, %s8788_s15 }
 0x3ec   : > { %1296 = vrot.lane.b32.xlu1 %v1119_v0, %s8802_s23 }
 0x3ee   : > { %1294 = vrot.lane.b32.xlu0 %v1134_v62, %s8802_s23 }
 0x3f6   : > { %v1166_v2 = vpop.permute.xlu0 %1165 }
 0x3fa   : > { %v1172_v12 = vpop.permute.xlu1 %1171  ;;  %v1235_v28 = vpop.permute.xlu0 %1234 }
 0x3fe   : > { %v1241_v29 = vpop.permute.xlu1 %1240  ;;  %v1170_v30 = vpop.permute.xlu0 %1169 }
 0x3ff   : > { %v1190_v41 = vsel %vm1181_vm10, %v1170_v30, %v1172_v12 }
 0x402   : > { %v1180_v32 = vpop.permute.xlu1 %1179  ;;  %v1239_v33 = vpop.permute.xlu0 %1238 }
 0x406   : > { %v9271_v34 = vpop.permute.xlu1 %1248  ;;  %v1174_v35 = vpop.permute.xlu0 %1173 }
 0x40a   : > { %v1168_v36 = vpop.permute.xlu1 %1167  ;;  %v1243_v37 = vpop.permute.xlu0 %1242 }
 0x40b   : > { %v1188_v18 = vsel %vm1181_vm10, %v1166_v2, %v1168_v36  ;;  %v1189_v47 = vsel %vm1181_vm10, %v1168_v36, %v1170_v30 }
 0x40c   : > { %v1213_v23 = vadd.f32 %v1189_v47, %v1075_v11 }
 0x40e   : > { %v1237_v27 = vpop.permute.xlu1 %1236  ;;  %v1178_v26 = vpop.permute.xlu0 %1177 }
 0x40f   : > { %v1256_v45 = vsel %vm601_vm6, %v1235_v28, %v1237_v27  ;;  %v1257_v25 = vsel %vm601_vm6, %v1237_v27, %v1239_v33  ;;  %v1214_v28 = vadd.f32 %v1190_v41, %v1076_v3  ;;  %v1193_v52 = vsel %vm1181_vm10, %v1178_v26, %v1180_v32 }
 0x410   : > { %v1281_v27 = vadd.f32 %v1257_v25, %v1213_v23 }
 0x412   : > { %v1176_v38 = vpop.permute.xlu1 %1175  ;;  %v1247_v31 = vpop.permute.xlu0 %1246 }
 0x413   : > { %v1191_v36 = vsel %vm1181_vm10, %v1174_v35, %v1176_v38  ;;  %v1192_v3 = vsel %vm1181_vm10, %v1176_v38, %v1178_v26  ;;  %v1261_v60 = vsel %vm601_vm6, %v1247_v31, %v9271_v34 }
 0x416   : > { %v1245_v39 = vpop.permute.xlu1 %1244 }
 0x417   : > { %v1259_v53 = vsel %vm601_vm6, %v1243_v37, %v1245_v39 }
 0x438   : > { %v1093_v43 = vpop.permute.xlu0 %1092 }
 0x439   : > { %v1133_v44 = vsel %vm1116_vm1, 0.0, %v1093_v43 }
 0x43a   : > { %1149 = vrot.lane.b32.xlu0 %v1133_v44, %s8801_s22  ;;  %v1095_v48 = vpop.permute.xlu1 %1094 }
 0x43c   : > { %v1097_v49 = vpop.permute.xlu0 %1096 }
 0x43d   : > { %v1137_v50 = vsel %vm1116_vm1, %v1097_v49, 0.0  ;;  %v1118_v62 = vsel %vm1116_vm1, %v1095_v48, %v1097_v49  ;;  %v1117_v49 = vsel %vm1116_vm1, %v1093_v43, %v1095_v48 }
 0x43e   : > { %1218 = vrot.lane.b32.xlu0 %v1133_v44, %s8788_s15  ;;  %1155 = vrot.lane.b32.xlu1 %v1137_v50, %s8801_s22  ;;  %v9278_v54 = vpop.permute.xlu1 %1159 }
 0x440   : > { %v9280_v7 = vpop.permute.xlu0 %1157 }
 0x442   : > { %1286 = vrot.lane.b32.xlu0 %v1133_v44, %s8802_s23  ;;  %1224 = vrot.lane.b32.xlu1 %v1137_v50, %s8788_s15  ;;  %v9284_v0 = vpop.permute.xlu1 %1163 }
 0x444   : > { %v9286_v6 = vpop.permute.xlu0 %1161 }
 0x446   : > { %1292 = vrot.lane.b32.xlu1 %v1137_v50, %s8802_s23  ;;  %1153 = vrot.lane.b32.xlu0 %v1118_v62, %s8801_s22  ;;  %v1305_v55 = vpop.permute.xlu1 %1304  ;;  %v1212_v50 = vadd.f32 %v1188_v18, %v1074_v58  ;;  %v1258_v18 = vsel %vm601_vm6, %v1239_v33, %v1241_v29  ;;  %v1215_v58 = vadd.f32 %v1191_v36, %v1077_v5 }
 0x447   : > { %v1282_v25 = vadd.f32 %v1258_v18, %v1214_v28  ;;  %v1260_v5 = vsel %vm601_vm6, %v1245_v39, %v1247_v31  ;;  %v1216_v33 = vadd.f32 %v1192_v3, %v1078_v13 }
 0x448   : > { %v1303_v44 = vpop.permute.xlu0 %1302  ;;  %v1280_v30 = vadd.f32 %v1256_v45, %v1212_v50  ;;  %v1283_v41 = vadd.f32 %v1259_v53, %v1215_v58 }
 0x449   : > { %v1325_v12 = vsel %vm1318_vm11, %v1303_v44, %v1305_v55 }
 0x44a   : > { %1222 = vrot.lane.b32.xlu0 %v1118_v62, %s8788_s15  ;;  %1151 = vrot.lane.b32.xlu1 %v1117_v49, %s8801_s22  ;;  %v1309_v2 = vpop.permute.xlu1 %1308  ;;  %v1349_v47 = vadd.f32 %v1325_v12, %v1280_v30  ;;  %s13968_s22 = smov 32  }
 0x44c   : > { %v1307_v43 = vpop.permute.xlu0 %1306  ;;  %v1361_v37 = vmul.f32 0.25, %v1349_v47 }
 0x44d   : > { %v1326_v11 = vsel %vm1318_vm11, %v1305_v55, %v1307_v43  ;;  %v1327_v23 = vsel %vm1318_vm11, %v1307_v43, %v1309_v2  ;;  %v1217_v55 = vadd.f32 %v1193_v52, %v1079_v14  ;;  %v1284_v14 = vadd.f32 %v1260_v5, %v1216_v33 }
 0x44e   : > { %v1350_v35 = vadd.f32 %v1326_v11, %v1281_v27  ;;  %1290 = vrot.lane.b32.xlu0 %v1118_v62, %s8802_s23  ;;  %1220 = vrot.lane.b32.xlu1 %v1117_v49, %s8788_s15  ;;  %v1313_v59 = vpop.permute.xlu1 %1312  ;;  %v1351_v26 = vadd.f32 %v1327_v23, %v1282_v25  ;;  %v1186_v23 = vsel %vm1181_vm10, %v9278_v54, %v9286_v6  ;;  %v14145_v33 = vmax.f32 %v9176_v20, 0.0 }
 0x44f   : > { %v1285_v10 = vadd.f32 %v1261_v60, %v1217_v55  ;;  %v1185_v25 = vsel %vm1181_vm10, %v9280_v7, %v9278_v54  ;;  %v1210_v60 = vadd.f32 %v1186_v23, %v1072_v22  ;;  %v14146_v54 = vmax.f32 %v9187_v24, 0.0 }
 0x450   : > { %v1362_v45 = vmul.f32 0.25, %v1350_v35  ;;  %v1311_v29 = vpop.permute.xlu0 %1310  ;;  %v1363_v9 = vmul.f32 0.25, %v1351_v26 }
 0x451   : > { %v1328_v32 = vsel %vm1318_vm11, %v1311_v29, %v1313_v59 }
 0x452   : > { %v1352_v38 = vadd.f32 %v1328_v32, %v1283_v41  ;;  %1298 = vrot.lane.b32.xlu0 %v9251_v63, %s8802_s23  ;;  %1288 = vrot.lane.b32.xlu1 %v1117_v49, %s8802_s23  ;;  %v7083_v48 = vpack.i.bf16 %v1362_v45, %v1361_v37  ;;  %v1317_v34 = vpop.permute.xlu1 %1316  ;;  %v1187_v41 = vsel %vm1181_vm10, %v9286_v6, %v9284_v0 }
 0x453   : > { %v1209_v37 = vadd.f32 %v1185_v25, %v14145_v33  ;;  %v1211_v7 = vadd.f32 %v1187_v41, %v14146_v54 }
 0x454   : > { %v1364_v62 = vmul.f32 0.25, %v1352_v38  ;;  %v1315_v44 = vpop.permute.xlu0 %1314 }
 0x455   : > { %v1329_v31 = vsel %vm1318_vm11, %v1313_v59, %v1315_v44  ;;  %v1330_v39 = vsel %vm1318_vm11, %v1315_v44, %v1317_v34 }
 0x456   : > { %v1353_v13 = vadd.f32 %v1329_v31, %v1284_v14  ;;  %v1354_v50 = vadd.f32 %v1330_v39, %v1285_v10  ;;  %1300 = vrot.lane.b32.xlu1 %v9246_v61, %s8802_s23  ;;  %7084 = vrot.lane.b32.xlu0 %v7083_v48, %s8803_s28  ;;  %v7088_v63 = vpack.i.bf16 %v1364_v62, %v1363_v9  ;;  %v1229_v28 = vpop.permute.xlu1 %1228  ;;  %v14147_v48 = vmax.f32 %v9225_v40, 0.0  ;;  %s8808_s23 = smov 76  }
 0x457   : > { %v14148_v62 = vmax.f32 %v9223_v51, 0.0  ;;  %v14149_v39 = vmax.f32 %v9228_v42, 0.0 }
 0x458   : > { %v1365_v49 = vmul.f32 0.25, %v1353_v13  ;;  %v1366_v2 = vmul.f32 0.25, %v1354_v50  ;;  %v1227_v12 = vpop.permute.xlu0 %1226 }
 0x459   : > { %v1253_v26 = vsel %vm601_vm6, %v1227_v12, %v1229_v28 }
 0x45a   : > { %v7093_v36 = vpack.i.bf16 %v1366_v2, %v1365_v49  ;;  %7089 = vrot.lane.b32.xlu1 %v7088_v63, %s8803_s28  ;;  %v1233_v27 = vpop.permute.xlu1 %1232  ;;  %v1277_v63 = vadd.f32 %v1253_v26, %v1209_v37 }
 0x45c   : > { %7094 = vrot.lane.b32.xlu0 %v7093_v36, %s8803_s28  ;;  %v1231_v30 = vpop.permute.xlu0 %1230 }
 0x45d   : > { %v1254_v55 = vsel %vm601_vm6, %v1229_v28, %v1231_v30  ;;  %v1255_v6 = vsel %vm601_vm6, %v1231_v30, %v1233_v27 }
 0x45e   : > { %v1297_v18 = vpop.permute.xlu1 %1296  ;;  %v1278_v38 = vadd.f32 %v1254_v55, %v1210_v60  ;;  %v1279_v51 = vadd.f32 %v1255_v6, %v1211_v7 }
 0x460   : > { %v1295_v43 = vpop.permute.xlu0 %1294 }
 0x461   : > { %v1322_v31 = vsel %vm1318_vm11, %v1295_v43, %v1297_v18 }
 0x462   : > { %v1346_v27 = vadd.f32 %v1322_v31, %v1277_v63 }
 0x4ac   : > { %v1150_v52 = vpop.permute.xlu0 %1149 }
 0x4b0   : > { %v1219_v53 = vpop.permute.xlu0 %1218  ;;  %v1156_v61 = vpop.permute.xlu1 %1155 }
 0x4b4   : > { %v1287_v11 = vpop.permute.xlu0 %1286  ;;  %v1225_v58 = vpop.permute.xlu1 %1224 }
 0x4b8   : > { %v1154_v47 = vpop.permute.xlu0 %1153  ;;  %v1293_v35 = vpop.permute.xlu1 %1292 }
 0x4b9   : > { %v1184_v5 = vsel %vm1181_vm10, %v1154_v47, %v1156_v61 }
 0x4ba   : > { %v1208_v20 = vadd.f32 %v1184_v5, %v14147_v48 }
 0x4bc   : > { %v1223_v59 = vpop.permute.xlu0 %1222  ;;  %v1152_v3 = vpop.permute.xlu1 %1151 }
 0x4bd   : > { %v1182_v32 = vsel %vm1181_vm10, %v1150_v52, %v1152_v3  ;;  %v1183_v0 = vsel %vm1181_vm10, %v1152_v3, %v1154_v47  ;;  %v1252_v15 = vsel %vm601_vm6, %v1223_v59, %v1225_v58  ;;  %vm14150_vm10 = vcmask 408576  }
 0x4be   : > { %v1206_v24 = vadd.f32 %v1182_v32, %v14148_v62  ;;  %v1207_v9 = vadd.f32 %v1183_v0, %v14149_v39  ;;  %v1276_v49 = vadd.f32 %v1252_v15, %v1208_v20  ;;  %vm14152_vm1 = vmmov %vm14150_vm10 }
 0x4bf   : > { %vm14153_vm9 = vmmov %vm14152_vm1 }
 0x4c0   : > { %v1291_v45 = vpop.permute.xlu0 %1290  ;;  %v1221_v29 = vpop.permute.xlu1 %1220  ;;  %vm14154_vm0 = vmmov %vm14152_vm1 }
 0x4c1   : > { %v1250_v22 = vsel %vm601_vm6, %v1219_v53, %v1221_v29  ;;  %v1251_v34 = vsel %vm601_vm6, %v1221_v29, %v1223_v59  ;;  %v1321_v13 = vsel %vm1318_vm11, %v1291_v45, %v1293_v35  ;;  %v1358_v59 = vmul.f32 0.25, %v1346_v27 }
 0x4c2   : > { %v1274_v40 = vadd.f32 %v1250_v22, %v1206_v24  ;;  %v1275_v36 = vadd.f32 %v1251_v34, %v1207_v9  ;;  %v1345_v52 = vadd.f32 %v1321_v13, %v1276_v49 }
 0x4c4   : > { %v1299_v10 = vpop.permute.xlu0 %1298  ;;  %v1289_v14 = vpop.permute.xlu1 %1288  ;;  %v1357_v3 = vmul.f32 0.25, %v1345_v52 }
 0x4c5   : > { %v1323_v44 = vsel %vm1318_vm11, %v1297_v18, %v1299_v10  ;;  %v1319_v50 = vsel %vm1318_vm11, %v1287_v11, %v1289_v14  ;;  %v1320_v2 = vsel %vm1318_vm11, %v1289_v14, %v1291_v45 }
 0x4c6   : > { %v1347_v12 = vadd.f32 %v1323_v44, %v1278_v38  ;;  %v1343_v43 = vadd.f32 %v1319_v50, %v1274_v40  ;;  %v1344_v18 = vadd.f32 %v1320_v2, %v1275_v36  ;;  %v7118_v6 = vpack.i.bf16 %v1358_v59, %v1357_v3 }
 0x4c8   : > { %v7085_v28 = vpop.permute.xlu0 %7084  ;;  %v1301_v30 = vpop.permute.xlu1 %1300  ;;  %v1359_v58 = vmul.f32 0.25, %v1347_v12  ;;  %v1355_v41 = vmul.f32 0.25, %v1343_v43  ;;  %v1356_v45 = vmul.f32 0.25, %v1344_v18 }
 0x4c9   : > { %v1324_v42 = vsel %vm1318_vm11, %v1299_v10, %v1301_v30  ;;  %v7087_v53 = vunpack.i.h.bf16 %v7085_v28  ;;  %v9371_v61 = vunpack.i.l.bf16 %v7085_v28  ;;  %vm14151_vm11 = vmmov %vm14150_vm10 }
 0x4ca   : > { %v1348_v11 = vadd.f32 %v1324_v42, %v1279_v51  ;;  %v7113_v48 = vpack.i.bf16 %v1356_v45, %v1355_v41 }
 0x4cb   : > { %v9377_v29 = vsel %vm14150_vm10, %v9371_v61, %v7087_v53  ;;  %v1438_v54 = vsel %vm14154_vm0, 0.0, %v9371_v61  ;;  %vm14155_vm10 = vmmov %vm14154_vm0 }
 0x4cc   : > { %v1360_v47 = vmul.f32 0.25, %v1348_v11  ;;  %v7090_v35 = vpop.permute.xlu1 %7089 }
 0x4cd   : > { %v9373_v23 = vunpack.i.h.bf16 %v7090_v35  ;;  %v7091_v25 = vunpack.i.l.bf16 %v7090_v35 }
 0x4ce   : > { %v7098_v55 = vpack.i.bf16 %v1360_v47, %v1359_v58  ;;  %v7095_v60 = vpop.permute.xlu0 %7094 }
 0x4cf   : > { %v1439_v5 = vsel %vm14151_vm11, 0.0, %v9373_v23  ;;  %v9384_v33 = vsel %vm14152_vm1, %v7087_v53, %v7091_v25  ;;  %v1442_v37 = vsel %vm14153_vm9, %v7091_v25, 0.0  ;;  %v7097_v7 = vunpack.i.h.bf16 %v7095_v60  ;;  %vm14156_vm9 = vmmov %vm14154_vm0 }
 0x4d0   : > { %v7096_v26 = vunpack.i.l.bf16 %v7095_v60  ;;  %7099 = vrot.lane.b32.xlu1 %v7098_v55, %s8803_s28  ;;  %v9392_v0 = vpack.i.bf16 %v9384_v33, %v9377_v29  ;;  %v9395_v38 = vpack.i.bf16 %v1442_v37, %v9384_v33  ;;  %v9397_v15 = vpack.i.bf16 %v1439_v5, %v1438_v54  ;;  %vm14159_vm1 = vmmov %vm14154_vm0 }
 0x4d1   : > { %v1443_v22 = vsel %vm14155_vm10, %v7097_v7, 0.0  ;;  %vm13978_vm11 = vcmask 228352   ;;  %vm14160_vm10 = vmmov %vm14154_vm0 }
 0x4d2   : > { %v9402_v10 = vsel %vm14156_vm9, %v9373_v23, %v7096_v26  ;;  %v9405_v14 = vsel %vm14154_vm0, %v7096_v26, %v7097_v7  ;;  %7104 = vrot.lane.b32.xlu0 %v9392_v0, %s13974_s27  ;;  %v9413_v62 = vpack.i.bf16 %v1443_v22, %v1442_v37  ;;  %vm14161_vm9 = vmmov %vm14154_vm0 }
 0x4d3   : > { %v9411_v20 = vpack.i.bf16 %v9405_v14, %v9402_v10  ;;  %v9416_v24 = vpack.i.bf16 %v1443_v22, %v9405_v14  ;;  %v9423_v34 = vpack.i.bf16 %v9402_v10, %v9377_v29 }
 0x4d5   : > { %7109 = vrot.lane.b32.xlu1 %v9411_v20, %s13974_s27 }
 0x4d6   : > { %7119 = vrot.lane.b32.xlu0 %v7118_v6, %s8803_s28 }
 0x4d9   : > { %7114 = vrot.lane.b32.xlu1 %v7113_v48, %s8803_s28 }
 0x4da   : > { %7124 = vrot.lane.b32.xlu0 %v9397_v15, %s13974_s27 }
 0x4dd   : > { %7139 = vrot.lane.b32.xlu1 %v9411_v20, %s8789_s16 }
 0x4e1   : > { %7149 = vrot.lane.b32.xlu1 %v9395_v38, %s13972_s29 }
 0x4e5   : > { %7159 = vrot.lane.b32.xlu1 %v9413_v62, %s8789_s16 }
 0x542   : > { %v7100_v39 = vpop.permute.xlu1 %7099 }
 0x543   : > { %v7102_v63 = vunpack.i.h.bf16 %v7100_v39  ;;  %v7101_v49 = vunpack.i.l.bf16 %v7100_v39 }
 0x544   : > { %v9438_v9 = vpop.permute.xlu0 %7104 }
 0x545   : > { %14157 = vst [vmem:[#allocation11_spill] sm:$0xff] %v9438_v9  ;;  %v13927_v13 = vunpack.i.h.bf16 %v9438_v9  ;;  %v7106_v50 = vunpack.i.l.bf16 %v9438_v9  ;;  %v9455_v27 = vsel %vm14159_vm1, %v7101_v49, %v7102_v63  ;;  %vm14162_vm1 = vmmov %vm14154_vm0 }
 0x547   : > { %v9442_v40 = vpop.permute.xlu1 %7109  ;;  %v1888_v28 = vsel %vm13978_vm11, %v7106_v50, %v13927_v13 }
 0x548   : > { %14158 = vst [vmem:[#allocation12_spill] sm:$0xff] %v9442_v40  ;;  %v13926_v2 = vunpack.i.h.bf16 %v9442_v40  ;;  %v7111_v51 = vunpack.i.l.bf16 %v9442_v40  ;;  %v7120_v36 = vpop.permute.xlu0 %7119 }
 0x549   : > { %v9446_v12 = vunpack.i.h.bf16 %v7120_v36  ;;  %v7121_v45 = vunpack.i.l.bf16 %v7120_v36 }
 0x54a   : > { %v1891_v30 = vsel %vm13978_vm11, %v7111_v51, %v13926_v2 }
 0x54b   : > { %v9459_v52 = vsel %vm14160_vm10, %v9446_v12, %v7101_v49  ;;  %v7115_v43 = vpop.permute.xlu1 %7114  ;;  %v1957_v42 = vpack.c.bf16 %v1891_v30, %v1888_v28  ;;  %vm14163_vm10 = vmmov %vm14154_vm0  ;;  %v1440_v39 = vsel %vm14154_vm0, %v7121_v45, 0.0  ;;  %v1368_v49 = vld [vmem:[%s13897_s6 + $0x8] sm:$0xff]  ;;  %v1367_v30 = vld [vmem:[%s13897_s6] sm:$0xff] }
 0x54c   : > { %v9461_v18 = vunpack.i.l.bf16 %v7115_v43  ;;  %v7125_v53 = vpop.permute.xlu0 %7124  ;;  %v7163_v11 = vpack.i.bf16 %v9455_v27, %v9459_v52  ;;  %v7117_v59 = vunpack.i.h.bf16 %v7115_v43  ;;  %v1437_v37 = vsel %vm14163_vm10, 0.0, %v9446_v12 }
 0x54d   : > { %v7127_v58 = vunpack.i.h.bf16 %v7125_v53  ;;  %v7126_v47 = vunpack.i.l.bf16 %v7125_v53  ;;  %2172 = vmatprep.subr.bf16.mxu1 %v1957_v42  ;;  %vm1540_vm10 = vcmask 1014784  }
 0x54e   : > { %7164 = vrot.lane.b32.xlu1 %v7163_v11, %s8789_s16  ;;  %7129 = vrot.lane.b32.xlu0 %v7163_v11, %s13974_s27  ;;  %v9477_v55 = vsel %vm14161_vm9, %v9461_v18, %v7117_v59  ;;  %v1436_v60 = vsel %vm14154_vm0, 0.0, %v9461_v18  ;;  %v9482_v5 = vsel %vm14162_vm1, %v7117_v59, %v7121_v45  ;;  %vm14164_vm9 = vmmov %vm14154_vm0  ;;  %vm1823_vm1 = vcmask 244736  }
 0x54f   : > { %v1890_v3 = vsel %vm13978_vm11, %v7127_v58, %v7111_v51  ;;  %v1887_v25 = vsel %vm13978_vm11, %v7126_v47, %v7106_v50  ;;  %v7393_v54 = vpack.i.bf16 %v9459_v52, %v9477_v55  ;;  %v9492_v7 = vpack.i.bf16 %v1437_v37, %v1436_v60 }
 0x550   : > { %v1956_v41 = vpack.c.bf16 %v1890_v3, %v1887_v25  ;;  %v1441_v22 = vsel %vm14164_vm9, %v7102_v63, 0.0  ;;  %v7283_v50 = vpack.i.bf16 %v1440_v39, %v9482_v5  ;;  %vm13979_vm9 = vcmask 261120  }
 0x551   : > { %v7168_v48 = vpack.i.bf16 %v1441_v22, %v9455_v27  ;;  %vm1709_vm0 = vcmask 621568  }
 0x552   : > { %7179 = vrot.lane.b32.xlu1 %v9411_v20, %s13970_s30  ;;  %7134 = vrot.lane.b32.xlu0 %v9392_v0, %s8789_s16 }
 0x553   : > { %2173 = vmatpush1.bf16.msra.mxu1 %v1956_v41 }
 0x556   : > { %7189 = vrot.lane.b32.xlu1 %v9395_v38, %s13968_s22  ;;  %7144 = vrot.lane.b32.xlu0 %v9397_v15, %s8789_s16 }
 0x55a   : > { %7199 = vrot.lane.b32.xlu1 %v9413_v62, %s13970_s30  ;;  %7154 = vrot.lane.b32.xlu0 %v9416_v24, %s13972_s29 }
 0x55e   : > { %7204 = vrot.lane.b32.xlu1 %v7163_v11, %s13970_s30  ;;  %7169 = vrot.lane.b32.xlu0 %v7168_v48, %s13972_s29 }
 0x562   : > { %7219 = vrot.lane.b32.xlu1 %v9411_v20, %s8793_s20  ;;  %7174 = vrot.lane.b32.xlu0 %v9392_v0, %s13970_s30  ;;  %v7263_v20 = vpack.i.bf16 %v9482_v5, %v9477_v55 }
 0x566   : > { %7229 = vrot.lane.b32.xlu1 %v9395_v38, %s8808_s23  ;;  %7184 = vrot.lane.b32.xlu0 %v9397_v15, %s13970_s30 }
 0x56a   : > { %7239 = vrot.lane.b32.xlu1 %v9413_v62, %s8793_s20  ;;  %7194 = vrot.lane.b32.xlu0 %v9416_v24, %s13968_s22 }
 0x56e   : > { %7244 = vrot.lane.b32.xlu1 %v7163_v11, %s8793_s20  ;;  %7209 = vrot.lane.b32.xlu0 %v7168_v48, %s13968_s22 }
 0x572   : > { %7259 = vrot.lane.b32.xlu1 %v9416_v24, %s8788_s15  ;;  %7214 = vrot.lane.b32.xlu0 %v9392_v0, %s8793_s20  ;;  %v7288_v0 = vpack.i.bf16 %v1441_v22, %v1440_v39 }
 0x576   : > { %7224 = vrot.lane.b32.xlu0 %v9397_v15, %s8793_s20  ;;  %7264 = vrot.lane.b32.xlu1 %v7263_v20, %s13974_s27 }
 0x57a   : > { %7234 = vrot.lane.b32.xlu0 %v9416_v24, %s8808_s23  ;;  %7269 = vrot.lane.b32.xlu1 %v9492_v7, %s13974_s27  ;;  %v9579_v24 = vpop.permute.xlu1 %7139 }
 0x57b   : > { %v7141_v28 = vunpack.i.l.bf16 %v9579_v24 }
 0x57e   : > { %7249 = vrot.lane.b32.xlu0 %v7168_v48, %s8808_s23  ;;  %7284 = vrot.lane.b32.xlu1 %v7283_v50, %s13972_s29  ;;  %v9585_v63 = vpop.permute.xlu1 %7149 }
 0x57f   : > { %v14170_v1 = vunpack.i.l.bf16 %v9585_v63 }
 0x582   : > { %7254 = vrot.lane.b32.xlu0 %v9395_v38, %s8788_s15  ;;  %7289 = vrot.lane.b32.xlu1 %v7288_v0, %s8789_s16  ;;  %v9563_v38 = vld [vmem:[%s13896_s5 + $0x4] ss:$12 sps:$4 sm:$0xff]   ;;  %v9595_v51 = vpop.permute.xlu1 %7159 }
 0x583   : > { %2119 = vmatprep.mubr.bf16.mxu0 %v9563_v38 }
 0x586   : > { %7274 = vrot.lane.b32.xlu0 %v7263_v20, %s8789_s16  ;;  %7304 = vrot.lane.b32.xlu1 %v7283_v50, %s13968_s22 }
 0x58a   : > { %7279 = vrot.lane.b32.xlu0 %v9492_v7, %s8789_s16  ;;  %7309 = vrot.lane.b32.xlu1 %v7288_v0, %s13970_s30 }
 0x58e   : > { %7294 = vrot.lane.b32.xlu0 %v7263_v20, %s13970_s30  ;;  %7324 = vrot.lane.b32.xlu1 %v7283_v50, %s8808_s23 }
 0x592   : > { %7299 = vrot.lane.b32.xlu0 %v9492_v7, %s13970_s30  ;;  %7329 = vrot.lane.b32.xlu1 %v7288_v0, %s8793_s20 }
 0x596   : > { %7314 = vrot.lane.b32.xlu0 %v7263_v20, %s8793_s20  ;;  %7334 = vrot.lane.b32.xlu1 %v7168_v48, %s8788_s15 }
 0x59a   : > { %7319 = vrot.lane.b32.xlu0 %v9492_v7, %s8793_s20  ;;  %7344 = vrot.lane.b32.xlu1 %v9397_v15, %s13972_s29 }
 0x59e   : > { %7339 = vrot.lane.b32.xlu0 %v9423_v34, %s13972_s29  ;;  %7364 = vrot.lane.b32.xlu1 %v9492_v7, %s13972_s29 }
 0x5a2   : > { %7349 = vrot.lane.b32.xlu0 %v7283_v50, %s8788_s15  ;;  %7369 = vrot.lane.b32.xlu1 %v9397_v15, %s13968_s22 }
 0x5a6   : > { %7354 = vrot.lane.b32.xlu0 %v7393_v54, %s13972_s29  ;;  %7384 = vrot.lane.b32.xlu1 %v9492_v7, %s13968_s22 }
 0x5aa   : > { %7359 = vrot.lane.b32.xlu0 %v9423_v34, %s13968_s22  ;;  %7389 = vrot.lane.b32.xlu1 %v9397_v15, %s8808_s23 }
 0x5ae   : > { %7374 = vrot.lane.b32.xlu0 %v7393_v54, %s13968_s22  ;;  %7404 = vrot.lane.b32.xlu1 %v9492_v7, %s8808_s23 }
 0x5b2   : > { %7379 = vrot.lane.b32.xlu0 %v9423_v34, %s8808_s23  ;;  %7409 = vrot.lane.b32.xlu1 %v9397_v15, %s8788_s15 }
 0x5b6   : > { %7394 = vrot.lane.b32.xlu0 %v7393_v54, %s8808_s23  ;;  %7419 = vrot.lane.b32.xlu1 %v7393_v54, %s8788_s15 }
 0x5ba   : > { %7399 = vrot.lane.b32.xlu0 %v9423_v34, %s8788_s15  ;;  %7429 = vrot.lane.b32.xlu1 %v7288_v0, %s13974_s27  ;;  %v7142_v34 = vunpack.i.h.bf16 %v9579_v24 }
 0x5bc   : > { %v1607_v58 = vsel %vm571_vm8, %v7141_v28, %v7142_v34 }
 0x5be   : > { %7414 = vrot.lane.b32.xlu0 %v9413_v62, %s13974_s27  ;;  %1982 = vperm.xlu1 %7082, %v1368_v49  }
 0x5c0   : > { %v9599_v15 = vpop.permute.xlu1 %7164  ;;  %v9601_v36 = vpop.permute.xlu0 %7129 }
 0x5c1   : > { %14165 = vst [vmem:[#allocation13_spill] sm:$0xff] %v9601_v36  ;;  %v14172_v57 = vunpack.i.h.bf16 %v9599_v15 }
 0x5c2   : > { %7424 = vrot.lane.b32.xlu0 %v9492_v7, %s8788_s15 }
 0x5c4   : > { %v9610_v43 = vpop.permute.xlu1 %7179  ;;  %v7135_v42 = vpop.permute.xlu0 %7134 }
 0x5c5   : > { %v7137_v62 = vunpack.i.h.bf16 %v7135_v42  ;;  %v7136_v53 = vunpack.i.l.bf16 %v7135_v42  ;;  %v7182_v32 = vunpack.i.h.bf16 %v9610_v43 }
 0x5c6   : > { %1977 = vperm.xlu0 %7001, %v1367_v30  }
 0x5c7   : > { %v1604_v11 = vsel %vm571_vm8, %v7136_v53, %v7137_v62 }
 0x5c8   : > { %v9614_v47 = vpop.permute.xlu1 %7189  ;;  %v7145_v59 = vpop.permute.xlu0 %7144  ;;  %v1927_v3 = vpack.c.bf16 %v1607_v58, %v1604_v11  ;;  %v7152_v11 = vunpack.i.h.bf16 %v9585_v63 }
 0x5c9   : > { %14166 = vst [vmem:[#allocation14_spill] sm:$0xff] %v9614_v47  ;;  %v7147_v25 = vunpack.i.h.bf16 %v7145_v59  ;;  %v7146_v41 = vunpack.i.l.bf16 %v7145_v59  ;;  %v13937_v59 = vunpack.i.h.bf16 %v9601_v36 }
 0x5ca   : > { %2087 = vmatprep.subr.bf16.mxu0 %v1927_v3  ;;  %v7131_v3 = vunpack.i.l.bf16 %v9601_v36 }
 0x5cb   : > { %v1606_v45 = vsel %vm571_vm8, %v7147_v25, %v7141_v28  ;;  %v1603_v60 = vsel %vm571_vm8, %v7146_v41, %v7136_v53  ;;  %v7162_v25 = vunpack.i.h.bf16 %v9595_v51  ;;  %v7161_v41 = vunpack.i.l.bf16 %v9595_v51 }
 0x5cc   : > { %v9618_v37 = vpop.permute.xlu1 %7199  ;;  %v9620_v54 = vpop.permute.xlu0 %7154  ;;  %v1926_v7 = vpack.c.bf16 %v1606_v45, %v1603_v60  ;;  %v7181_v51 = vunpack.i.l.bf16 %v9610_v43  ;;  %v1885_v60 = vsel %vm13978_vm11, %v7131_v3, %v13937_v59  ;;  %v1832_v43 = vsel %vm1823_vm1, %v14170_v1, %v7152_v11 }
 0x5cd   : > { %v7157_v13 = vunpack.i.h.bf16 %v9620_v54  ;;  %v1605_v31 = vsel %vm571_vm8, %v7137_v62, %v7161_v41  ;;  %v1608_v45 = vsel %vm571_vm8, %v7142_v34, %v7162_v25  ;;  %v14171_v16 = vunpack.i.l.bf16 %v9620_v54 }
 0x5ce   : > { %2088 = vmatpush1.bf16.msra.mxu0 %v1926_v7  ;;  %v14173_v59 = vunpack.i.l.bf16 %v9599_v15  ;;  %v1928_v1 = vpack.c.bf16 %v1608_v45, %v1605_v31  ;;  %v9690_v11 = vsel %vm1540_vm10, %v7181_v51, %v7182_v32 }
 0x5d0   : > { %v9622_v22 = vpop.permute.xlu1 %7204  ;;  %v9624_v48 = vpop.permute.xlu0 %7169  ;;  %v9685_v34 = vsel %vm571_vm8, %v14173_v59, %v14172_v57 }
 0x5d4   : > { %v9626_v20 = vpop.permute.xlu1 %7219  ;;  %v9628_v39 = vpop.permute.xlu0 %7174 }
 0x5d5   : > { %v7177_v57 = vunpack.i.h.bf16 %v9628_v39  ;;  %v7176_v59 = vunpack.i.l.bf16 %v9628_v39  ;;  %v7202_v39 = vunpack.i.h.bf16 %v9618_v37 }
 0x5d8   : > { %v9630_v50 = vpop.permute.xlu1 %7229  ;;  %v9632_v0 = vpop.permute.xlu0 %7184 }
 0x5d9   : > { %14167 = vst [vmem:[#allocation15_spill] sm:$0xff] %v9630_v50  ;;  %v7187_v45 = vunpack.i.h.bf16 %v9632_v0  ;;  %v7186_v19 = vunpack.i.l.bf16 %v9632_v0  ;;  %v7222_v0 = vunpack.i.h.bf16 %v9626_v20 }
 0x5dc   : > { %v9634_v24 = vpop.permute.xlu1 %7239  ;;  %v9636_v49 = vpop.permute.xlu0 %7194 }
 0x5dd   : > { %14168 = vst [vmem:[#allocation16_spill] sm:$0xff] %v9636_v49 }
 0x5e0   : > { %v9638_v28 = vpop.permute.xlu1 %7244  ;;  %v9640_v30 = vpop.permute.xlu0 %7209 }
 0x5e4   : > { %v9642_v42 = vpop.permute.xlu1 %7259  ;;  %v9644_v53 = vpop.permute.xlu0 %7214 }
 0x5e5   : > { %v13957_v40 = vunpack.i.l.bf16 %v9644_v53 }
 0x5e8   : > { %v9654_v7 = vpop.permute.xlu0 %7224  ;;  %v9656_v2 = vpop.permute.xlu1 %7264 }
 0x5e9   : > { %14169 = vst [vmem:[#allocation17_spill] sm:$0xff] %v9656_v2  ;;  %v13934_v35 = vunpack.i.h.bf16 %v9656_v2  ;;  %v7266_v26 = vunpack.i.l.bf16 %v9656_v2  ;;  %v7217_v2 = vunpack.i.h.bf16 %v9644_v53 }
 0x5eb   : > { %v1882_v44 = vsel %vm13978_vm11, %v7266_v26, %v13934_v35  ;;  %v1835_v35 = vsel %vm1823_vm1, %v14171_v16, %v7157_v13 }
 0x5ec   : > { %v9672_v6 = vpop.permute.xlu0 %7234  ;;  %v7270_v58 = vpop.permute.xlu1 %7269  ;;  %v1954_v46 = vpack.c.bf16 %v1885_v60, %v1882_v44  ;;  %v7192_v44 = vunpack.i.h.bf16 %v9614_v47  ;;  %v1952_v31 = vpack.c.bf16 %v1835_v35, %v1832_v43 }
 0x5ed   : > { %v7272_v62 = vunpack.i.h.bf16 %v7270_v58  ;;  %v7271_v41 = vunpack.i.l.bf16 %v7270_v58  ;;  %v7172_v58 = vunpack.i.h.bf16 %v9624_v48 }
 0x5ee   : > { %2174 = vmatprep.subr.bf16.mxu1 %v1954_v46 }
 0x5ef   : > { %v1884_v13 = vsel %vm13978_vm11, %v7272_v62, %v7131_v3  ;;  %v1881_v60 = vsel %vm13978_vm11, %v7271_v41, %v7266_v26  ;;  %v9709_v26 = vld [vmem:[%s13896_s5 + $0x8] ss:$12 sps:$4 sm:$0xff]   ;;  %v7201_v62 = vunpack.i.l.bf16 %v9618_v37  ;;  %v7232_v41 = vunpack.i.h.bf16 %v9630_v50 }
 0x5f0   : > { %v9698_v56 = vpop.permute.xlu0 %7249  ;;  %v9700_v25 = vpop.permute.xlu1 %7284  ;;  %v1953_v46 = vpack.c.bf16 %v1884_v13, %v1881_v60  ;;  %14174 = vst [vmem:[#allocation18_spill] sm:$0xff] %v9709_v26  ;;  %v14175_v60 = vunpack.i.l.bf16 %v9624_v48 }
 0x5f1   : > { %v7287_v16 = vunpack.i.h.bf16 %v9700_v25  ;;  %v13945_v3 = vunpack.i.l.bf16 %v9700_v25  ;;  %v9724_v37 = vsel %vm1540_vm10, %v7177_v57, %v7201_v62  ;;  %v9743_v62 = vsel %vm1540_vm10, %v7182_v32, %v7202_v39 }
 0x5f2   : > { %2175 = vmatpush1.bf16.msra.mxu1 %v1953_v46  ;;  %v1829_v21 = vsel %vm1823_vm1, %v14175_v60, %v7172_v58  ;;  %v9740_v58 = vsel %vm1540_vm10, %v7176_v59, %v7177_v57  ;;  %v7197_v60 = vunpack.i.h.bf16 %v9636_v49  ;;  %v1922_v57 = vpack.c.bf16 %v9743_v62, %v9724_v37 }
 0x5f3   : > { %6665 = vmatprep.subr.bf16.mxu1 %v1952_v31  ;;  %v1826_v13 = vsel %vm1823_vm1, %v13945_v3, %v7287_v16  ;;  %v9731_v31 = vsel %vm1540_vm10, %v7187_v45, %v7181_v51  ;;  %v9734_v16 = vsel %vm1540_vm10, %v7186_v19, %v7176_v59  ;;  %v7242_v3 = vunpack.i.h.bf16 %v9634_v24 }
 0x5f4   : > { %v9728_v35 = vpop.permute.xlu0 %7254  ;;  %v7290_v8 = vpop.permute.xlu1 %7289  ;;  %v1949_v43 = vpack.c.bf16 %v1829_v21, %v1826_v13  ;;  %v14176_v51 = vunpack.i.l.bf16 %v9614_v47  ;;  %v14177_v45 = vmov 0   ;;  %v14178_v59 = vunpack.i.h.bf16 %v9622_v22 }
 0x5f5   : > { %6577 = vmatmul.mubr.msk.bf16.vlgmr.msra.gmra.mxu1 %vm13979_vm9, %v9709_v26  ;;  %v7292_v13 = vunpack.i.h.bf16 %v7290_v8  ;;  %v14179_v32 = vunpack.i.l.bf16 %v9622_v22  ;;  %v14181_v62 = vunpack.i.l.bf16 %v9630_v50  ;;  %v9783_v26 = vld [vmem:[%s13896_s5 + $0x20] ss:$12 sps:$4 sm:$0xff]  }
 0x5f6   : > { %6666 = vmatpush3.bf16.msra.mxu1 %v1928_v1  ;;  %v1775_v19 = vsel %vm13979_vm9, %v14176_v51, %v7192_v44  ;;  %2202 = vmatprep.mubr.bf16.mxu1 %v14177_v45  ;;  %v14180_v1 = vunpack.i.l.bf16 %v9626_v20  ;;  %v7241_v44 = vunpack.i.l.bf16 %v9634_v24 }
 0x5f7   : > { %6667 = vmatprep.subr.bf16.mxu1 %v1949_v43  ;;  %v9758_v39 = vsel %vm1540_vm10, %v14179_v32, %v14178_v59  ;;  %v1921_v43 = vpack.c.bf16 %v9690_v11, %v9740_v58  ;;  %v9775_v59 = vsel %vm1709_vm0, %v14181_v62, %v7232_v41  ;;  %v9778_v32 = vsel %vm511_vm12, %v7222_v0, %v7242_v3 }
 0x5f8   : > { %v9763_v21 = vsel %vm511_vm12, %v14180_v1, %v7222_v0  ;;  %v7275_v51 = vpop.permute.xlu0 %7274  ;;  %v9766_v46 = vpop.permute.xlu1 %7304  ;;  %v7291_v1 = vunpack.i.l.bf16 %v7290_v8  ;;  %v7212_v11 = vunpack.i.h.bf16 %v9640_v30  ;;  %v14182_v41 = vunpack.i.l.bf16 %v9636_v49 }
 0x5f9   : > { %v7277_v4 = vunpack.i.h.bf16 %v7275_v51  ;;  %v7276_v24 = vunpack.i.l.bf16 %v7275_v51  ;;  %v7307_v58 = vunpack.i.h.bf16 %v9766_v46  ;;  %v14183_v8 = vunpack.i.h.bf16 %v9599_v15 }
 0x5fa   : > { %v1778_v62 = vsel %vm13979_vm9, %v14182_v41, %v7197_v60 }
 0x5fb   : > { %v1602_v0 = vsel %vm571_vm8, %v14183_v8, %v7292_v13  ;;  %v1599_v51 = vsel %vm571_vm8, %v7277_v4, %v7291_v1  ;;  %v1598_v36 = vsel %vm571_vm8, %v7276_v24, %v7277_v4  ;;  %v1946_v47 = vpack.c.bf16 %v1778_v62, %v1775_v19 }
 0x5fc   : > { %v7280_v9 = vpop.permute.xlu0 %7279  ;;  %v7310_v37 = vpop.permute.xlu1 %7309  ;;  %v1924_v50 = vpack.c.bf16 %v9685_v34, %v1598_v36  ;;  %v1925_v49 = vpack.c.bf16 %v1602_v0, %v1599_v51  ;;  %v7237_v4 = vunpack.i.h.bf16 %v9672_v6  ;;  %v13956_v1 = vunpack.i.l.bf16 %v9672_v6 }
 0x5fd   : > { %v7282_v41 = vunpack.i.h.bf16 %v7280_v9  ;;  %v7281_v3 = vunpack.i.l.bf16 %v7280_v9  ;;  %6578 = vmatmul.mubr.msk.bf16.gmra.mxu1 %vm13979_vm9, %v9783_v26  ;;  %v14184_v8 = vunpack.i.l.bf16 %v9766_v46  ;;  %v14185_v34 = vunpack.i.l.bf16 %v9599_v15 }
 0x5fe   : > { %2089 = vmatprep.subr.bf16.mxu0 %v1924_v50  ;;  %6668 = vmatpush3.bf16.msra.mxu1 %v1925_v49  ;;  %v7312_v62 = vunpack.i.h.bf16 %v7310_v37  ;;  %v14186_v0 = vunpack.i.l.bf16 %v9640_v30  ;;  %v1492_v49 = vsel %vm511_vm12, %v7217_v2, %v7241_v44 }
 0x5ff   : > { %v1769_v36 = vsel %vm13979_vm9, %v14184_v8, %v7307_v58  ;;  %v1600_v9 = vsel %vm571_vm8, %v7282_v41, %v14185_v34  ;;  %v1597_v19 = vsel %vm571_vm8, %v7281_v3, %v7276_v24  ;;  %6669 = vmatprep.subr.bf16.mxu1 %v1946_v47  ;;  %2212 = vmatprep.mubr.bf16.mxu1 %v14177_v45  ;;  %v7311_v3 = vunpack.i.l.bf16 %v7310_v37 }
 0x600   : > { %v1772_v51 = vsel %vm13979_vm9, %v14186_v0, %v7212_v11  ;;  %v7295_v13 = vpop.permute.xlu0 %7294  ;;  %v9819_v58 = vpop.permute.xlu1 %7324  ;;  %v1923_v15 = vpack.c.bf16 %v1600_v9, %v1597_v19  ;;  %v1491_v24 = vsel %vm511_vm12, %v13957_v40, %v7217_v2  ;;  %v9827_v11 = vld [vmem:[%s13896_s5 + $0x38] ss:$12 sps:$4 sm:$0xff]   ;;  %v7227_v34 = vunpack.i.h.bf16 %v9654_v7 }
 0x601   : > { %v7297_v47 = vunpack.i.h.bf16 %v7295_v13  ;;  %v7296_v41 = vunpack.i.l.bf16 %v7295_v13  ;;  %v1943_v8 = vpack.c.bf16 %v1772_v51, %v1769_v36  ;;  %v7327_v44 = vunpack.i.h.bf16 %v9819_v58 }
 0x602   : > { %v7326_v0 = vunpack.i.l.bf16 %v9819_v58  ;;  %2090 = vmatpush1.bf16.msra.mxu0 %v1923_v15  ;;  %6670 = vmatpush3.bf16.msra.mxu1 %v1922_v57  ;;  %v1721_v2 = vsel %vm1709_vm0, %v13956_v1, %v7237_v4  ;;  %v7226_v37 = vunpack.i.l.bf16 %v9654_v7  ;;  %v14187_v13 = vunpack.i.h.bf16 %v9622_v22 }
 0x603   : > { %v1543_v9 = vsel %vm1540_vm10, %v7297_v47, %v7311_v3  ;;  %2091 = vmatprep.subr.bf16.mxu0 %v1921_v43  ;;  %6671 = vmatprep.subr.bf16.mxu1 %v1943_v8  ;;  %v1542_v19 = vsel %vm1540_vm10, %v7296_v41, %v7297_v47  ;;  %v7252_v51 = vunpack.i.h.bf16 %v9698_v56  ;;  %v7251_v57 = vunpack.i.l.bf16 %v9698_v56 }
 0x604   : > { %v1546_v36 = vsel %vm1540_vm10, %v14187_v13, %v7312_v62  ;;  %v7300_v15 = vpop.permute.xlu0 %7299  ;;  %v7330_v50 = vpop.permute.xlu1 %7329  ;;  %v1918_v4 = vpack.c.bf16 %v9758_v39, %v1542_v19  ;;  %v7261_v7 = vunpack.i.l.bf16 %v9642_v42  ;;  %v1940_v62 = vpack.c.bf16 %v1721_v2, %v9775_v59 }
 0x605   : > { %v1919_v60 = vpack.c.bf16 %v1546_v36, %v1543_v9  ;;  %v7302_v1 = vunpack.i.h.bf16 %v7300_v15  ;;  %v7301_v40 = vunpack.i.l.bf16 %v7300_v15  ;;  %6579 = vmatmul.mubr.msk.bf16.gmra.mxu1 %vm13979_vm9, %v9827_v11  ;;  %v7257_v43 = vunpack.i.h.bf16 %v9728_v35 }
 0x606   : > { %v7256_v3 = vunpack.i.l.bf16 %v9728_v35  ;;  %v14188_v47 = vpack.c.bf16 %v9731_v31, %v9734_v16  ;;  %v1916_v39 = vpack.c.bf16 %v9778_v32, %v1492_v49  ;;  %v1712_v8 = vsel %vm1709_vm0, %v7326_v0, %v7327_v44  ;;  %2222 = vmatprep.mubr.bf16.mxu1 %v14177_v45  ;;  %v8755_v35 = vld [vmem:[%s13896_s5 + $0x48] ss:$12 sps:$4 sm:$0xff]  }
 0x607   : > { %6672 = vmatpush3.bf16.msra.mxu1 %v1919_v60  ;;  %v14189_v59 = vunpack.i.l.bf16 %v9622_v22  ;;  %v1541_v13 = vsel %vm1540_vm10, %v7301_v40, %v7296_v41  ;;  %v7332_v36 = vunpack.i.h.bf16 %v7330_v50  ;;  %v1915_v9 = vpack.c.bf16 %v9763_v21, %v1491_v24 }
 0x608   : > { %2092 = vmatpush1.bf16.msra.mxu0 %v14188_v47  ;;  %6673 = vmatprep.subr.bf16.mxu1 %v1940_v62  ;;  %v14190_v31 = vunpack.i.l.bf16 %v9626_v20  ;;  %v14191_v32 = vunpack.i.l.bf16 %v9644_v53  ;;  %v7315_v49 = vpop.permute.xlu0 %7314  ;;  %v9868_v44 = vpop.permute.xlu1 %7334  ;;  %v1715_v40 = vsel %vm1709_vm0, %v7251_v57, %v7252_v51  ;;  %v9877_v53 = vld [vmem:[%s13896_s5 + $0x50] ss:$12 sps:$4 sm:$0xff]   ;;  %v14192_v41 = vunpack.i.h.bf16 %v9638_v28 }
 0x609   : > { %v1544_v2 = vsel %vm1540_vm10, %v7302_v1, %v14189_v59  ;;  %2093 = vmatprep.subr.bf16.mxu0 %v1918_v4  ;;  %v7331_v1 = vunpack.i.l.bf16 %v7330_v50  ;;  %v7317_v21 = vunpack.i.h.bf16 %v7315_v49  ;;  %v7316_v24 = vunpack.i.l.bf16 %v7315_v49 }
 0x60a   : > { %v1493_v16 = vsel %vm511_vm12, %v7227_v34, %v14190_v31  ;;  %v1490_v60 = vsel %vm511_vm12, %v7226_v37, %v14191_v32  ;;  %v1917_v22 = vpack.c.bf16 %v1544_v2, %v1541_v13  ;;  %v1937_v20 = vpack.c.bf16 %v1715_v40, %v1712_v8 }
 0x60b   : > { %6674 = vmatpush3.bf16.msra.mxu1 %v1916_v39  ;;  %v14193_v34 = vunpack.i.l.bf16 %v9638_v28  ;;  %v1661_v50 = vsel %vm601_vm6, %v7256_v3, %v7257_v43  ;;  %v14194_v19 = vmov %v14192_v41  ;;  %v1486_v15 = vsel %vm511_vm12, %v7317_v21, %v7331_v1 }
 0x60c   : > { %2094 = vmatpush1.bf16.msra.mxu0 %v1917_v22  ;;  %v1489_v51 = vsel %vm511_vm12, %v14194_v19, %v7332_v36  ;;  %6675 = vmatprep.subr.bf16.mxu1 %v1937_v20  ;;  %v1485_v4 = vsel %vm511_vm12, %v7316_v24, %v7317_v21  ;;  %v7320_v62 = vpop.permute.xlu0 %7319  ;;  %v7345_v47 = vpop.permute.xlu1 %7344  ;;  %v1914_v39 = vpack.c.bf16 %v1493_v16, %v1490_v60  ;;  %v14195_v2 = vunpack.i.h.bf16 %v9642_v42 }
 0x60d   : > { %v1488_v37 = vsel %vm511_vm12, %v14193_v34, %v14192_v41  ;;  %2095 = vmatprep.subr.bf16.mxu0 %v1915_v9  ;;  %v1913_v8 = vpack.c.bf16 %v1489_v51, %v1486_v15  ;;  %v7322_v13 = vunpack.i.h.bf16 %v7320_v62  ;;  %v7321_v31 = vunpack.i.l.bf16 %v7320_v62  ;;  %6580 = vmatmul.mubr.msk.bf16.gmra.mxu1 %vm13979_vm9, %v9877_v53 }
 0x60e   : > { %v1912_v59 = vpack.c.bf16 %v1488_v37, %v1485_v4  ;;  %v1664_v43 = vsel %vm601_vm6, %v7261_v7, %v14195_v2  ;;  %v14196_v9 = vmov %v14193_v34  ;;  %2265 = vmatprep.mubr.bf16.mxu1 %v9563_v38  ;;  %v14197_v21 = vpack.c.bf16 %v9405_v14, %v9384_v33 }
 0x60f   : > { %v1934_v36 = vpack.c.bf16 %v1664_v43, %v1661_v50  ;;  %6676 = vmatpush3.bf16.msra.mxu1 %v1913_v8  ;;  %v1487_v16 = vsel %vm511_vm12, %v7322_v13, %v14196_v9  ;;  %v1484_v32 = vsel %vm511_vm12, %v7321_v31, %v7316_v24  ;;  %v14198_v28 = vmov 0 }
 0x610   : > { %2096 = vmatpush1.bf16.msra.mxu0 %v1914_v39  ;;  %v7340_v60 = vpop.permute.xlu0 %7339  ;;  %v7365_v49 = vpop.permute.xlu1 %7364  ;;  %v1911_v22 = vpack.c.bf16 %v1487_v16, %v1484_v32  ;;  %v14199_v28 = vsel %vm9910_vm14, 4294967295, %v14198_v28  ;;  %v7337_v24 = vunpack.i.h.bf16 %v9868_v44  ;;  %v7336_v20 = vunpack.i.l.bf16 %v9868_v44 }
 0x611   : > { %2097 = vmatprep.subr.bf16.mxu0 %v1912_v59  ;;  %6677 = vmatprep.subr.bf16.mxu1 %v1934_v36  ;;  %v7342_v40 = vunpack.i.h.bf16 %v7340_v60  ;;  %v7341_v1 = vunpack.i.l.bf16 %v7340_v60  ;;  %14200 = vst [vmem:[#allocation19_spill] sm:$0xff] %v14199_v28  ;;  %v14201_v38 = vpack.c.bf16 %v9402_v10, %v9377_v29  ;;  %v7346_v14 = vunpack.i.l.bf16 %v7345_v47 }
 0x612   : > { %v14202_v37 = vpack.c.bf16 %v9373_v23, %v9371_v61  ;;  %v14203_v50 = vunpack.i.l.bf16 %v9585_v63  ;;  %v14204_v29 = vunpack.i.l.bf16 %v9620_v54  ;;  %v7347_v51 = vunpack.i.h.bf16 %v7345_v47 }
 0x613   : > { %6678 = vmatpush3.bf16.msra.mxu1 %v14197_v21  ;;  %v14205_v15 = vpack.c.bf16 %v9459_v52, %v9477_v55  ;;  %v1658_v23 = vsel %vm601_vm6, %v7336_v20, %v7337_v24  ;;  %v1830_v63 = vsel %vm1823_vm1, %v7346_v14, %v7341_v1  ;;  %v14206_v52 = vpack.c.bf16 %v9446_v12, %v9461_v18  ;;  %v9953_v55 = vld [vmem:[%s13896_s5] ss:$12 sps:$4 sm:$0xff]   ;;  %v9964_v18 = vld [vmem:[%s13896_s5 + $0x1c] ss:$12 sps:$4 sm:$0xff]  }
 0x614   : > { %2098 = vmatpush1.bf16.msra.mxu0 %v1911_v22  ;;  %v9919_v41 = vpop.permute.xlu0 %7349  ;;  %v7370_v34 = vpop.permute.xlu1 %7369  ;;  %v1831_v19 = vsel %vm1823_vm1, %v7341_v1, %v14203_v50  ;;  %v1834_v10 = vsel %vm1823_vm1, %v7342_v40, %v14204_v29  ;;  %v1833_v39 = vsel %vm1823_vm1, %v7347_v51, %v7342_v40  ;;  %v7367_v2 = vunpack.i.h.bf16 %v7365_v49  ;;  %v14210_v21 = vld [vmem:[#allocation14_spill] sm:$0xff] }
 0x615   : > { %2099 = vmatprep.subr.bf16.mxu0 %v14201_v38  ;;  %v7352_v33 = vunpack.i.h.bf16 %v9919_v41  ;;  %v7351_v17 = vunpack.i.l.bf16 %v9919_v41  ;;  %v1951_v59 = vpack.c.bf16 %v1834_v10, %v1831_v19  ;;  %v7366_v43 = vunpack.i.l.bf16 %v7365_v49 }
 0x616   : > { %v14207_v13 = vpack.c.bf16 %v9455_v27, %v9482_v5  ;;  %v14208_v31 = vunpack.i.l.bf16 %v9700_v25  ;;  %v1950_v16 = vpack.c.bf16 %v1833_v39, %v1830_v63  ;;  %v14209_v32 = vunpack.i.l.bf16 %v9624_v48 }
 0x617   : > { %v1655_v61 = vsel %vm601_vm6, %v7351_v17, %v7352_v33  ;;  %v7372_v40 = vunpack.i.h.bf16 %v7370_v34  ;;  %v7371_v1 = vunpack.i.l.bf16 %v7370_v34  ;;  %v14211_v24 = vunpack.i.l.bf16 %v14210_v21  ;;  %v14212_v33 = vld [vmem:[#allocation16_spill] sm:$0xff] }
 0x618   : > { %6571 = vmatpush1.bf16.msk.msra.mxu0 %vm9910_vm14, %v14202_v37  ;;  %v7355_v4 = vpop.permute.xlu0 %7354  ;;  %v7385_v62 = vpop.permute.xlu1 %7384  ;;  %v1931_v54 = vpack.c.bf16 %v1658_v23, %v1655_v61  ;;  %v14213_v48 = vunpack.i.l.bf16 %v14212_v33  ;;  %v9984_v61 = vld [vmem:[%s13896_s5 + $0x18] ss:$12 sps:$4 sm:$0xff]   ;;  %v14215_v39 = vunpack.i.l.bf16 %v9640_v30 }
 0x619   : > { %2101 = vmatprep.subr.bf16.mxu0 %v14205_v15  ;;  %v7357_v47 = vunpack.i.h.bf16 %v7355_v4  ;;  %v7356_v8 = vunpack.i.l.bf16 %v7355_v4  ;;  %v7387_v23 = vunpack.i.h.bf16 %v7385_v62  ;;  %v7386_v63 = vunpack.i.l.bf16 %v7385_v62 }
 0x61a   : > { %6679 = vmatprep.subr.bf16.mxu1 %v1931_v54  ;;  %v14214_v4 = vunpack.i.l.bf16 %v9766_v46 }
 0x61b   : > { %6680 = vmatpush3.bf16.msra.mxu1 %v14207_v13  ;;  %v1825_v12 = vsel %vm1823_vm1, %v7356_v8, %v14208_v31  ;;  %v1828_v60 = vsel %vm1823_vm1, %v7357_v47, %v14209_v32  ;;  %v1824_v49 = vsel %vm1823_vm1, %v7366_v43, %v7356_v8  ;;  %v1827_v27 = vsel %vm1823_vm1, %v7367_v2, %v7357_v47  ;;  %v9995_v43 = vld [vmem:[%s13896_s5 + $0x34] ss:$12 sps:$4 sm:$0xff]  }
 0x61c   : > { %6576 = vmatpush1.bf16.msk.msra.mxu0 %vm9910_vm14, %v14206_v52  ;;  %v7360_v36 = vpop.permute.xlu0 %7359  ;;  %v7390_v9 = vpop.permute.xlu1 %7389  ;;  %v1948_v22 = vpack.c.bf16 %v1828_v60, %v1825_v12  ;;  %v1947_v19 = vpack.c.bf16 %v1827_v27, %v1824_v49  ;;  %v14218_v60 = vunpack.i.l.bf16 %v9672_v6  ;;  %v10014_v6 = vld [vmem:[%s13896_s5 + $0x30] ss:$12 sps:$4 sm:$0xff]  }
 0x61d   : > { %2103 = vmatprep.subr.bf16.mxu0 %v1951_v59  ;;  %v7362_v5 = vunpack.i.h.bf16 %v7360_v36  ;;  %v7361_v25 = vunpack.i.l.bf16 %v7360_v36  ;;  %v7392_v30 = vunpack.i.h.bf16 %v7390_v9  ;;  %v7391_v12 = vunpack.i.l.bf16 %v7390_v9  ;;  %v14216_v36 = vld [vmem:[#allocation15_spill] sm:$0xff] }
 0x61e   : > { %2266 = vmatmul.mubr.bf16.vlgmr.msra.gmra.mxu1 %v9953_v55 }
 0x61f   : > { %v1774_v38 = vsel %vm13979_vm9, %v7361_v25, %v14211_v24  ;;  %v1777_v14 = vsel %vm13979_vm9, %v7362_v5, %v14213_v48  ;;  %2273 = vmatprep.mubr.bf16.mxu1 %v9964_v18  ;;  %v1773_v10 = vsel %vm13979_vm9, %v7371_v1, %v7361_v25  ;;  %v1776_v51 = vsel %vm13979_vm9, %v7372_v40, %v7362_v5 }
 0x620   : > { %2104 = vmatpush2.bf16.msra.mxu0 %v1950_v16  ;;  %v7375_v37 = vpop.permute.xlu0 %7374  ;;  %v7405_v50 = vpop.permute.xlu1 %7404  ;;  %v1945_v29 = vpack.c.bf16 %v1777_v14, %v1774_v38  ;;  %v1944_v52 = vpack.c.bf16 %v1776_v51, %v1773_v10  ;;  %v14217_v16 = vunpack.i.l.bf16 %v14216_v36 }
 0x621   : > { %2105 = vmatprep.subr.bf16.mxu0 %v1948_v22  ;;  %v7377_v34 = vunpack.i.h.bf16 %v7375_v37  ;;  %v7376_v15 = vunpack.i.l.bf16 %v7375_v37  ;;  %v7407_v24 = vunpack.i.h.bf16 %v7405_v50  ;;  %v7406_v38 = vunpack.i.l.bf16 %v7405_v50 }
 0x623   : > { %v1768_v54 = vsel %vm13979_vm9, %v7376_v15, %v14214_v4  ;;  %v1771_v47 = vsel %vm13979_vm9, %v7377_v34, %v14215_v39  ;;  %v1767_v62 = vsel %vm13979_vm9, %v7386_v63, %v7376_v15  ;;  %v1770_v13 = vsel %vm13979_vm9, %v7387_v23, %v7377_v34 }
 0x624   : > { %2106 = vmatpush2.bf16.msra.mxu0 %v1947_v19  ;;  %v7380_v8 = vpop.permute.xlu0 %7379  ;;  %v7410_v59 = vpop.permute.xlu1 %7409  ;;  %v1942_v2 = vpack.c.bf16 %v1771_v47, %v1768_v54  ;;  %v1941_v25 = vpack.c.bf16 %v1770_v13, %v1767_v62 }
 0x625   : > { %2107 = vmatprep.subr.bf16.mxu0 %v1945_v29  ;;  %v7382_v46 = vunpack.i.h.bf16 %v7380_v8  ;;  %v7381_v31 = vunpack.i.l.bf16 %v7380_v8  ;;  %v8753_v29 = vld [vmem:[%s13896_s5 + $0x4c] ss:$12 sps:$4 sm:$0xff]   ;;  %v7411_v15 = vunpack.i.l.bf16 %v7410_v59 }
 0x626   : > { %2274 = vmatmul.mubr.bf16.gmra.mxu1 %v9984_v61 }
 0x627   : > { %v1717_v32 = vsel %vm1709_vm0, %v7381_v31, %v14217_v16  ;;  %v1720_v49 = vsel %vm1709_vm0, %v7382_v46, %v14218_v60  ;;  %2281 = vmatprep.mubr.bf16.mxu1 %v9995_v43  ;;  %v1716_v40 = vsel %vm1709_vm0, %v7391_v12, %v7381_v31  ;;  %v1719_v9 = vsel %vm1709_vm0, %v7392_v30, %v7382_v46  ;;  %v14221_v31 = vld [vmem:[#allocation12_spill] sm:$0xff]  ;;  %v14223_v60 = vld [vmem:[#allocation17_spill] sm:$0xff] }
 0x628   : > { %2108 = vmatpush2.bf16.msra.mxu0 %v1944_v52  ;;  %v7395_v27 = vpop.permute.xlu0 %7394  ;;  %v10006_v5 = vpop.permute.xlu1 %7419  ;;  %v1939_v22 = vpack.c.bf16 %v1720_v49, %v1717_v32  ;;  %v1938_v37 = vpack.c.bf16 %v1719_v9, %v1716_v40  ;;  %v14222_v30 = vunpack.i.h.bf16 %v14221_v31  ;;  %v14224_v41 = vunpack.i.h.bf16 %v14223_v60  ;;  %v14225_v49 = vld [vmem:[#allocation13_spill] sm:$0xff] }
 0x629   : > { %2109 = vmatprep.subr.bf16.mxu0 %v1942_v2  ;;  %v7397_v1 = vunpack.i.h.bf16 %v7395_v27  ;;  %v7396_v21 = vunpack.i.l.bf16 %v7395_v27  ;;  %v7421_v56 = vunpack.i.l.bf16 %v10006_v5  ;;  %v14226_v44 = vunpack.i.h.bf16 %v14225_v49 }
 0x62b   : > { %v1711_v33 = vsel %vm1709_vm0, %v7396_v21, %v7326_v0  ;;  %v1714_v48 = vsel %vm1709_vm0, %v7397_v1, %v7251_v57  ;;  %v1710_v10 = vsel %vm1709_vm0, %v7406_v38, %v7396_v21  ;;  %v1713_v50 = vsel %vm1709_vm0, %v7407_v24, %v7397_v1  ;;  %v14227_v21 = vld [vmem:[#allocation18_spill] sm:$0xff] }
 0x62c   : > { %2110 = vmatpush2.bf16.msra.mxu0 %v1941_v25  ;;  %v7400_v14 = vpop.permute.xlu0 %7399  ;;  %v1936_v19 = vpack.c.bf16 %v1714_v48, %v1711_v33  ;;  %v7430_v58 = vpop.permute.xlu1 %7429  ;;  %v7422_v0 = vunpack.i.h.bf16 %v10006_v5  ;;  %v7412_v57 = vunpack.i.h.bf16 %v7410_v59  ;;  %v1935_v47 = vpack.c.bf16 %v1713_v50, %v1710_v10 }
 0x62d   : > { %2111 = vmatprep.subr.bf16.mxu0 %v1939_v22  ;;  %v7402_v51 = vunpack.i.h.bf16 %v7400_v14  ;;  %v7401_v34 = vunpack.i.l.bf16 %v7400_v14  ;;  %v7432_v4 = vunpack.i.h.bf16 %v7430_v58  ;;  %v7431_v54 = vunpack.i.l.bf16 %v7430_v58 }
 0x62e   : > { %2282 = vmatmul.mubr.bf16.gmra.mxu1 %v10014_v6  ;;  %v1654_v42 = vsel %vm601_vm6, %v7421_v56, %v7351_v17 }
 0x62f   : > { %v1660_v23 = vsel %vm601_vm6, %v7401_v34, %v7256_v3  ;;  %v1663_v63 = vsel %vm601_vm6, %v7402_v51, %v7261_v7  ;;  %2289 = vmatprep.mubr.bf16.mxu1 %v8753_v29  ;;  %v1659_v52 = vsel %vm601_vm6, %v7411_v15, %v7401_v34  ;;  %v1662_v2 = vsel %vm601_vm6, %v7412_v57, %v7402_v51  ;;  %v14219_v3 = vld [vmem:[#allocation11_spill] sm:$0xff] }
 0x630   : > { %2112 = vmatpush2.bf16.msra.mxu0 %v1938_v37  ;;  %v7415_v39 = vpop.permute.xlu0 %7414  ;;  %v1933_v8 = vpack.c.bf16 %v1663_v63, %v1660_v23  ;;  %v1657_v7 = vsel %vm601_vm6, %v7422_v0, %v7336_v20  ;;  %v14220_v13 = vunpack.i.h.bf16 %v14219_v3  ;;  %v1932_v16 = vpack.c.bf16 %v1662_v2, %v1659_v52 }
 0x631   : > { %2113 = vmatprep.subr.bf16.mxu0 %v1936_v19  ;;  %v7417_v59 = vunpack.i.h.bf16 %v7415_v39  ;;  %v7416_v62 = vunpack.i.l.bf16 %v7415_v39  ;;  %v1883_v17 = vsel %vm13978_vm11, %v14224_v41, %v7431_v54  ;;  %v1886_v20 = vsel %vm13978_vm11, %v14226_v44, %v7432_v4 }
 0x632   : > { %v1930_v25 = vpack.c.bf16 %v1657_v7, %v1654_v42  ;;  %v1955_v9 = vpack.c.bf16 %v1886_v20, %v1883_v17 }
 0x633   : > { %v1889_v46 = vsel %vm13978_vm11, %v14220_v13, %v7416_v62  ;;  %v1892_v12 = vsel %vm13978_vm11, %v14222_v30, %v7417_v59 }
 0x634   : > { %2114 = vmatpush2.bf16.msra.mxu0 %v1935_v47  ;;  %v7425_v36 = vpop.permute.xlu0 %7424  ;;  %v1958_v32 = vpack.c.bf16 %v1892_v12, %v1889_v46 }
 0x635   : > { %2115 = vmatprep.subr.bf16.mxu0 %v1933_v8  ;;  %v7427_v27 = vunpack.i.h.bf16 %v7425_v36  ;;  %v7426_v5 = vunpack.i.l.bf16 %v7425_v36 }
 0x636   : > { %2290 = vmatmul.mubr.bf16.gmra.mxu1 %v8755_v35  ;;  %6832 = vmatprep.subr.bf16.mxu1 %v1958_v32 }
 0x637   : > { %v1653_v22 = vsel %vm601_vm6, %v7426_v5, %v7421_v56  ;;  %v1656_v40 = vsel %vm601_vm6, %v7427_v27, %v7422_v0  ;;  %6833 = vmatpush3.bf16.msra.mxu1 %v1958_v32  ;;  %6836 = vmatprep.mubr.msk.bf16.mxu1 %vm13979_vm9, %v14227_v21 }
 0x638   : > { %2116 = vmatpush2.bf16.msra.mxu0 %v1932_v16  ;;  %v1929_v1 = vpack.c.bf16 %v1656_v40, %v1653_v22  ;;  %6834 = vmatprep.subr.bf16.mxu1 %v1955_v9 }
 0x639   : > { %2117 = vmatprep.subr.bf16.mxu0 %v1930_v25  ;;  %v1983_v12 = vpop.permute.xlu1 %1982 }
 0x63b   : > { %6835 = vmatpush3.bf16.msra.mxu1 %v1955_v9 }
 0x63c   : > { %2118 = vmatpush2.bf16.msra.mxu0 %v1929_v1  ;;  %2758 = vmatprep.subr.bf16.mxu1 %v14177_v45 }
 0x63e   : > { %6837 = vmatmul.mubr.msk.bf16.vlgmr.msra.gmra.mxu1 %vm13979_vm9, %v9783_v26 }
 0x63f   : > { %2120 = vmatmul.mubr.bf16.vlgmr.msra.gmra.mxu0 %v9953_v55  ;;  %6840 = vmatprep.mubr.msk.bf16.mxu1 %vm13979_vm9, %v9827_v11 }
 0x640   : > { %2129 = vmatprep.mubr.bf16.mxu0 %v9964_v18 }
 0x641   : > { %v1978_v7 = vpop.permute.xlu0 %1977 }
 0x646   : > { %6841 = vmatmul.mubr.msk.bf16.gmra.mxu1 %vm13979_vm9, %v9877_v53 }
 0x647   : > { %2130 = vmatmul.mubr.bf16.gmra.mxu0 %v9984_v61 }
 0x648   : > { %2139 = vmatprep.mubr.bf16.mxu0 %v9995_v43 }
 0x64f   : > { %2140 = vmatmul.mubr.bf16.gmra.mxu0 %v10014_v6 }
 0x650   : > { %2149 = vmatprep.mubr.bf16.mxu0 %v8753_v29 }
 0x657   : > { %2150 = vmatmul.mubr.bf16.gmra.mxu0 %v8755_v35 }
 0x6b5   : > { %v2194_v55 = vpop.f32.mrf.mxu1 }
 0x6b7   : > { %v2196_v24 = vpop.f32.mrf.mxu1 }
 0x6b9   : > { %v2198_v18 = vpop.f32.mrf.mxu1 }
 0x6bb   : > { %v10075_v38 = vpop.f32.mrf.mxu1 }
 0x6bd   : > { %v10077_v26 = vpop.f32.mrf.mxu1 }
 0x6bf   : > { %v10079_v33 = vpop.f32.mrf.mxu1 }
 0x6c1   : > { %v10081_v11 = vpop.f32.mrf.mxu1 }
 0x6c3   : > { %v10083_v61 = vpop.f32.mrf.mxu1 }
 0x6c5   : > { %v10085_v43 = vpop.f32.mrf.mxu1 }
 0x6c7   : > { %v10087_v53 = vpop.f32.mrf.mxu1 }
 0x6c9   : > { %v10089_v6 = vpop.f32.mrf.mxu1 }
 0x6cb   : > { %v10091_v48 = vpop.f32.mrf.mxu1 }
 0x6cd   : > { %v10093_v14 = vpop.f32.mrf.mxu1 }
 0x6cf   : > { %v10095_v37 = vpop.f32.mrf.mxu1 }
 0x6d1   : > { %v10097_v19 = vpop.f32.mrf.mxu1 }
 0x6d3   : > { %v10099_v29 = vpop.f32.mrf.mxu1 }
 0x6de   : > { %v6681_v10 = vpop.f32.mrf.mxu1 }
 0x6e0   : > { %v6682_v50 = vpop.f32.mrf.mxu1 }
 0x6e1   : > { %v6683_v35 = vadd.f32 %v6682_v50, %v6681_v10  ;;  %v14230_v50 = vld [vmem:[#allocation8_spill] sm:$0xff] }
 0x6e2   : > { %v6684_v51 = vpop.f32.mrf.mxu1 }
 0x6e3   : > { %v2268_v60 = vadd.f32 %v6683_v35, %v1978_v7 }
 0x6e4   : > { %v6685_v34 = vpop.f32.mrf.mxu1 }
 0x6e5   : > { %v6686_v36 = vadd.f32 %v6685_v34, %v6684_v51 }
 0x6e6   : > { %v6687_v58 = vpop.f32.mrf.mxu1 }
 0x6e7   : > { %v2271_v1 = vadd.f32 %v6686_v36, %v1983_v12 }
 0x6e8   : > { %v6688_v0 = vpop.f32.mrf.mxu1 }
 0x6e9   : > { %v10101_v56 = vadd.f32 %v6688_v0, %v6687_v58 }
 0x6ea   : > { %v6690_v57 = vpop.f32.mrf.mxu1 }
 0x6ec   : > { %v6691_v15 = vpop.f32.mrf.mxu1 }
 0x6ed   : > { %v10103_v23 = vadd.f32 %v6691_v15, %v6690_v57  ;;  %v14232_v15 = vld [vmem:[#allocation10_spill] sm:$0xff] }
 0x6ee   : > { %v6693_v63 = vpop.f32.mrf.mxu1 }
 0x6f0   : > { %v6694_v4 = vpop.f32.mrf.mxu1 }
 0x6f1   : > { %v10105_v54 = vadd.f32 %v6694_v4, %v6693_v63 }
 0x6f2   : > { %v6696_v39 = vpop.f32.mrf.mxu1 }
 0x6f4   : > { %v6697_v47 = vpop.f32.mrf.mxu1 }
 0x6f5   : > { %v10107_v8 = vadd.f32 %v6697_v47, %v6696_v39 }
 0x6f6   : > { %v6699_v52 = vpop.f32.mrf.mxu1 }
 0x6f8   : > { %v6700_v2 = vpop.f32.mrf.mxu1 }
 0x6f9   : > { %v10109_v59 = vadd.f32 %v6700_v2, %v6699_v52 }
 0x6fa   : > { %v6702_v62 = vpop.f32.mrf.mxu1 }
 0x6fc   : > { %v6703_v42 = vpop.f32.mrf.mxu1 }
 0x6fd   : > { %v10111_v3 = vadd.f32 %v6703_v42, %v6702_v62 }
 0x6fe   : > { %v10113_v31 = vpop.f32.mrf.mxu1 }
 0x6ff   : > { %v2121_v13 = vpop.f32.mrf.mxu0  ;;  %14228 = vst [vmem:[#allocation14_spill] sm:$0xff] %v10113_v31 }
 0x700   : > { %v2122_v46 = vadd.f32 %v2121_v13, %v1978_v7  ;;  %v2332_v41 = vpop.f32.mrf.mxu1 }
 0x701   : > { %v2123_v30 = vpop.f32.mrf.mxu0  ;;  %v2333_v20 = vadd.f32 %v2332_v41, %v2268_v60 }
 0x702   : > { %v2195_v16 = vadd.f32 %v2194_v55, %v2122_v46  ;;  %v2124_v32 = vadd.f32 %v2123_v30, %v1978_v7  ;;  %v10115_v5 = vpop.f32.mrf.mxu1  ;;  %v14231_v55 = vld [vmem:[#allocation9_spill] sm:$0xff] }
 0x703   : > { %v2125_v17 = vpop.f32.mrf.mxu0  ;;  %14229 = vst [vmem:[#allocation16_spill] sm:$0xff] %v10115_v5  ;;  %v2365_v40 = vmax.f32 %v2333_v20, 0.0 }
 0x704   : > { %v2363_v49 = vmax.f32 %v2195_v16, 0.0  ;;  %v2197_v44 = vadd.f32 %v2196_v24, %v2124_v32  ;;  %v2126_v27 = vadd.f32 %v2125_v17, %v1983_v12  ;;  %v2335_v10 = vpop.f32.mrf.mxu1 }
 0x705   : > { %v2127_v25 = vpop.f32.mrf.mxu0  ;;  %v2336_v0 = vadd.f32 %v2335_v10, %v2271_v1  ;;  %v2389_v63 = vmul.f32 %v2365_v40, %v14232_v15  ;;  %v1373_v10 = vld [vmem:[%s13897_s6 + $0x30] sm:$0xff] }
 0x706   : > { %v2364_v22 = vmax.f32 %v2197_v44, 0.0  ;;  %v2199_v9 = vadd.f32 %v2198_v18, %v2126_v27  ;;  %v2128_v21 = vadd.f32 %v2127_v25, %v1983_v12  ;;  %v2387_v51 = vmul.f32 %v2363_v49, %v14230_v50 }
 0x707   : > { %v2368_v39 = vmax.f32 %v2336_v0, 0.0  ;;  %v1369_v0 = vld [vmem:[%s13897_s6 + $0x10] sm:$0xff] }
 0x708   : > { %v2388_v34 = vmul.f32 %v2364_v22, %v14231_v55  ;;  %v2366_v58 = vmax.f32 %v2199_v9, 0.0  ;;  %v2201_v57 = vadd.f32 %v10075_v38, %v2128_v21 }
 0x709   : > { %v2392_v18 = vmul.f32 %v2368_v39, %v14232_v15 }
 0x70a   : > { %v7433_v24 = vpack.i.bf16 %v2388_v34, %v2387_v51  ;;  %v2390_v4 = vmul.f32 %v2366_v58, %v14230_v50  ;;  %v2367_v47 = vmax.f32 %v2201_v57, 0.0  ;;  %v1374_v51 = vld [vmem:[%s13897_s6 + $0x38] sm:$0xff]  ;;  %v1371_v34 = vld [vmem:[%s13897_s6 + $0x20] sm:$0xff]  ;;  %v1372_v58 = vld [vmem:[%s13897_s6 + $0x28] sm:$0xff] }
 0x70b   : > { %v1370_v57 = vld [vmem:[%s13897_s6 + $0x18] sm:$0xff] }
 0x70c   : > { %v7438_v52 = vpack.i.bf16 %v2390_v4, %v2389_v63  ;;  %7434 = vrot.lane.b32.xlu0 %v7433_v24, %s8803_s28  ;;  %v2391_v2 = vmul.f32 %v2367_v47, %v14231_v55  ;;  %v8758_v24 = vld [vmem:[%s13898_s7 + $0x4] ss:$8 sps:$4 sm:$0xff]  }
 0x70e   : > { %7439 = vrot.lane.b32.xlu1 %v7438_v52, %s8803_s28  ;;  %v7443_v62 = vpack.i.bf16 %v2392_v18, %v2391_v2 }
 0x710   : > { %7444 = vrot.lane.b32.xlu0 %v7443_v62, %s8803_s28 }
 0x77e   : > { %v7435_v38 = vpop.permute.xlu0 %7434 }
 0x77f   : > { %v10127_v35 = vunpack.i.l.bf16 %v7435_v38  ;;  %v7437_v44 = vunpack.i.h.bf16 %v7435_v38 }
 0x780   : > { %v7440_v42 = vpop.permute.xlu1 %7439 }
 0x781   : > { %v10129_v7 = vunpack.i.h.bf16 %v7440_v42  ;;  %v2441_v13 = vsel %vm14233_vm3, 0.0, %v10127_v35  ;;  %v7441_v60 = vunpack.i.l.bf16 %v7440_v42  ;;  %vm14238_vm3 = vmmov %vm14235_vm2  ;;  %v10153_v22 = vsel %vm14235_vm2, %v10127_v35, %v7437_v44 }
 0x782   : > { %v7445_v12 = vpop.permute.xlu0 %7444 }
 0x783   : > { %v2442_v46 = vsel %vm14234_vm13, 0.0, %v10129_v7  ;;  %v7447_v36 = vunpack.i.h.bf16 %v7445_v12  ;;  %v7446_v16 = vunpack.i.l.bf16 %v7445_v12  ;;  %vm14237_vm13 = vmmov %vm14235_vm2  ;;  %v2443_v27 = vsel %vm14238_vm3, %v7441_v60, 0.0 }
 0x784   : > { %v7448_v32 = vpack.i.bf16 %v2442_v46, %v2441_v13  ;;  %vm14251_vm3 = vmmov %vm14235_vm2 }
 0x785   : > { %v10139_v41 = vsel %vm14235_vm2, %v10129_v7, %v7446_v16  ;;  %v10142_v17 = vsel %vm14236_vm7, %v7446_v16, %v7447_v36  ;;  %v2444_v20 = vsel %vm14237_vm13, %v7447_v36, 0.0  ;;  %vm14239_vm7 = vmmov %vm14235_vm2  ;;  %vm2711_vm13 = vcmask 130048  }
 0x786   : > { %7449 = vrot.lane.b32.xlu1 %v7448_v32, %s13972_s29  ;;  %v7528_v49 = vpack.i.bf16 %v10142_v17, %v10139_v41  ;;  %v7533_v25 = vpack.i.bf16 %v2444_v20, %v2443_v27  ;;  %v10156_v40 = vsel %vm14239_vm7, %v7437_v44, %v7441_v60  ;;  %6592 = vmatprep.mubr.msk.bf16.mxu0 %vm2711_vm13, %v8758_v24  ;;  %vm14254_vm7 = vmmov %vm14235_vm2 }
 0x787   : > { %v7478_v21 = vpack.i.bf16 %v10156_v40, %v10153_v22  ;;  %6593 = vmatprep.mubr.msk.bf16.mxu1 %vm2711_vm13, %v8758_v24  ;;  %vm14256_vm13 = vmmov %vm14235_vm2 }
 0x788   : > { %7529 = vrot.lane.b32.xlu0 %v7528_v49, %s13972_s29 }
 0x78a   : > { %7454 = vrot.lane.b32.xlu1 %v7448_v32, %s13968_s22 }
 0x78c   : > { %7534 = vrot.lane.b32.xlu0 %v7533_v25, %s13972_s29 }
 0x78e   : > { %7459 = vrot.lane.b32.xlu1 %v7448_v32, %s8808_s23 }
 0x790   : > { %7539 = vrot.lane.b32.xlu0 %v7528_v49, %s13968_s22 }
 0x792   : > { %7464 = vrot.lane.b32.xlu1 %v7448_v32, %s8788_s15 }
 0x794   : > { %7544 = vrot.lane.b32.xlu0 %v7533_v25, %s13968_s22 }
 0x796   : > { %7469 = vrot.lane.b32.xlu1 %v7448_v32, %s8789_s16 }
 0x798   : > { %7549 = vrot.lane.b32.xlu0 %v7528_v49, %s8808_s23 }
 0x79a   : > { %7474 = vrot.lane.b32.xlu1 %v7448_v32, %s13970_s30 }
 0x79c   : > { %7554 = vrot.lane.b32.xlu0 %v7533_v25, %s8808_s23 }
 0x79e   : > { %7479 = vrot.lane.b32.xlu1 %v7478_v21, %s13972_s29  ;;  %s14283_s29 = smov 30  }
 0x7a0   : > { %7559 = vrot.lane.b32.xlu0 %v7528_v49, %s8788_s15 }
 0x7a2   : > { %7484 = vrot.lane.b32.xlu1 %v7478_v21, %s13968_s22  ;;  %s14285_s22 = smov 32  }
 0x7a4   : > { %7564 = vrot.lane.b32.xlu0 %v7533_v25, %s8788_s15 }
 0x7a6   : > { %7489 = vrot.lane.b32.xlu1 %v7478_v21, %s8808_s23 }
 0x7a8   : > { %7569 = vrot.lane.b32.xlu0 %v7528_v49, %s8789_s16 }
 0x7aa   : > { %7494 = vrot.lane.b32.xlu1 %v7478_v21, %s8788_s15 }
 0x7ac   : > { %7574 = vrot.lane.b32.xlu0 %v7533_v25, %s8789_s16 }
 0x7ae   : > { %7499 = vrot.lane.b32.xlu1 %v7478_v21, %s8789_s16 }
 0x7b0   : > { %7579 = vrot.lane.b32.xlu0 %v7528_v49, %s13970_s30 }
 0x7b2   : > { %7504 = vrot.lane.b32.xlu1 %v7478_v21, %s13970_s30 }
 0x7b4   : > { %7584 = vrot.lane.b32.xlu0 %v7533_v25, %s13970_s30  ;;  %s14284_s30 = smov 124  }
 0x7b6   : > { %7509 = vrot.lane.b32.xlu1 %v7478_v21, %s8793_s20 }
 0x7b8   : > { %7589 = vrot.lane.b32.xlu0 %v7528_v49, %s8793_s20 }
 0x7ba   : > { %7514 = vrot.lane.b32.xlu1 %v7448_v32, %s8793_s20 }
 0x7bc   : > { %7594 = vrot.lane.b32.xlu0 %v7533_v25, %s8793_s20 }
 0x7be   : > { %7519 = vrot.lane.b32.xlu1 %v7478_v21, %s13974_s27 }
 0x7c0   : > { %7599 = vrot.lane.b32.xlu0 %v7528_v49, %s13974_s27 }
 0x7c2   : > { %7524 = vrot.lane.b32.xlu1 %v7448_v32, %s13974_s27 }
 0x7c4   : > { %7604 = vrot.lane.b32.xlu0 %v7533_v25, %s13974_s27  ;;  %s14747_s27 = smov 104  }
 0x7c6   : > { %2007 = vperm.xlu1 %7082, %v1373_v10  }
 0x7c8   : > { %2012 = vperm.xlu0 %7001, %v1374_v51  }
 0x7ca   : > { %1997 = vperm.xlu1 %7082, %v1371_v34  }
 0x7cc   : > { %2002 = vperm.xlu0 %7001, %v1372_v58  }
 0x7ce   : > { %1987 = vperm.xlu1 %7082, %v1369_v0  }
 0x7d0   : > { %1992 = vperm.xlu0 %7001, %v1370_v57  }
 0x7f8   : > { %v7450_v63 = vpop.permute.xlu1 %7449 }
 0x7f9   : > { %v7452_v36 = vunpack.i.h.bf16 %v7450_v63  ;;  %v7451_v60 = vunpack.i.l.bf16 %v7450_v63 }
 0x7fa   : > { %v7530_v4 = vpop.permute.xlu0 %7529 }
 0x7fb   : > { %v7531_v13 = vunpack.i.l.bf16 %v7530_v4  ;;  %v7532_v12 = vunpack.i.h.bf16 %v7530_v4 }
 0x7fc   : > { %v7455_v39 = vpop.permute.xlu1 %7454 }
 0x7fd   : > { %v2636_v49 = vsel %vm1823_vm1, %v7452_v36, %v7531_v13  ;;  %v7457_v44 = vunpack.i.h.bf16 %v7455_v39  ;;  %v7456_v20 = vunpack.i.l.bf16 %v7455_v39  ;;  %v2637_v51 = vsel %vm1823_vm1, %v7531_v13, %v7532_v12 }
 0x7fe   : > { %v7535_v47 = vpop.permute.xlu0 %7534 }
 0x7ff   : > { %v7537_v16 = vunpack.i.h.bf16 %v7535_v47  ;;  %v7536_v25 = vunpack.i.l.bf16 %v7535_v47 }
 0x800   : > { %v10214_v52 = vpop.permute.xlu1 %7459 }
 0x801   : > { %v7462_v34 = vunpack.i.h.bf16 %v10214_v52  ;;  %v2638_v24 = vsel %vm1823_vm1, %v7532_v12, %v7537_v16  ;;  %v7461_v12 = vunpack.i.l.bf16 %v10214_v52 }
 0x802   : > { %v7540_v18 = vpop.permute.xlu0 %7539 }
 0x803   : > { %v7542_v58 = vunpack.i.h.bf16 %v7540_v18  ;;  %v7541_v0 = vunpack.i.l.bf16 %v7540_v18 }
 0x804   : > { %v10216_v2 = vpop.permute.xlu1 %7464 }
 0x805   : > { %v2608_v52 = vsel %vm13979_vm9, %v7457_v44, %v7541_v0  ;;  %v7466_v44 = vunpack.i.l.bf16 %v10216_v2 }
 0x806   : > { %v7545_v62 = vpop.permute.xlu0 %7544 }
 0x807   : > { %v7547_v57 = vunpack.i.h.bf16 %v7545_v62  ;;  %v7546_v9 = vunpack.i.l.bf16 %v7545_v62 }
 0x808   : > { %v10218_v38 = vpop.permute.xlu1 %7469 }
 0x809   : > { %v2610_v16 = vsel %vm13979_vm9, %v7542_v58, %v7547_v57 }
 0x80a   : > { %v10220_v42 = vpop.permute.xlu0 %7549 }
 0x80b   : > { %v7552_v47 = vunpack.i.h.bf16 %v10220_v42 }
 0x80c   : > { %v10222_v46 = vpop.permute.xlu1 %7474 }
 0x80e   : > { %v7555_v32 = vpop.permute.xlu0 %7554 }
 0x810   : > { %v7480_v27 = vpop.permute.xlu1 %7479 }
 0x811   : > { %v7482_v21 = vunpack.i.h.bf16 %v7480_v27  ;;  %v7481_v10 = vunpack.i.l.bf16 %v7480_v27  ;;  %v7551_v27 = vunpack.i.l.bf16 %v10220_v42 }
 0x812   : > { %v10230_v36 = vpop.permute.xlu0 %7559 }
 0x813   : > { %v2635_v4 = vsel %vm1823_vm1, %v7482_v21, %v7536_v25  ;;  %v2633_v63 = vsel %vm1823_vm1, %v7451_v60, %v7481_v10  ;;  %v2634_v39 = vsel %vm1823_vm1, %v7481_v10, %v7482_v21  ;;  %v7557_v60 = vunpack.i.h.bf16 %v7555_v32 }
 0x814   : > { %v7485_v13 = vpop.permute.xlu1 %7484  ;;  %v2695_v1 = vpack.c.bf16 %v2637_v51, %v2634_v39  ;;  %v2696_v30 = vpack.c.bf16 %v2638_v24, %v2635_v4  ;;  %v2694_v5 = vpack.c.bf16 %v2636_v49, %v2633_v63  ;;  %v2609_v25 = vsel %vm13979_vm9, %v7541_v0, %v7542_v58  ;;  %v10245_v58 = vpop.f32.mrf.mxu0 }
 0x815   : > { %v7487_v18 = vunpack.i.h.bf16 %v7485_v13  ;;  %v7486_v31 = vunpack.i.l.bf16 %v7485_v13  ;;  %v7467_v21 = vunpack.i.h.bf16 %v10216_v2  ;;  %v7556_v24 = vunpack.i.l.bf16 %v7555_v32 }
 0x816   : > { %2715 = vmatprep.subr.bf16.mxu0 %v2695_v1  ;;  %2759 = vmatpush1.bf16.msra.mxu1 %v2696_v30  ;;  %v7565_v51 = vpop.permute.xlu0 %7564  ;;  %v2581_v30 = vsel %vm1709_vm0, %v7551_v27, %v7552_v47  ;;  %v7561_v39 = vunpack.i.l.bf16 %v10230_v36 }
 0x817   : > { %v2607_v42 = vsel %vm13979_vm9, %v7487_v18, %v7546_v9  ;;  %v2605_v10 = vsel %vm13979_vm9, %v7456_v20, %v7486_v31  ;;  %2716 = vmatpush1.bf16.msra.mxu0 %v2694_v5  ;;  %2760 = vmatprep.subr.bf16.mxu1 %v14177_v45  ;;  %v2606_v62 = vsel %vm13979_vm9, %v7486_v31, %v7487_v18  ;;  %v7562_v5 = vunpack.i.h.bf16 %v10230_v36  ;;  %vm14276_vm9 = vmmov %vm14235_vm2 }
 0x818   : > { %v7490_v49 = vpop.permute.xlu1 %7489  ;;  %v2692_v57 = vpack.c.bf16 %v2609_v25, %v2606_v62  ;;  %v2693_v1 = vpack.c.bf16 %v2610_v16, %v2607_v42  ;;  %v2691_v63 = vpack.c.bf16 %v2608_v52, %v2605_v10  ;;  %v2582_v20 = vsel %vm1709_vm0, %v7552_v47, %v7557_v60  ;;  %v10257_v42 = vpop.f32.mrf.mxu0 }
 0x819   : > { %v7492_v4 = vunpack.i.h.bf16 %v7490_v49  ;;  %v7491_v9 = vunpack.i.l.bf16 %v7490_v49  ;;  %v7567_v31 = vunpack.i.h.bf16 %v7565_v51  ;;  %v7472_v47 = vunpack.i.h.bf16 %v10218_v38 }
 0x81a   : > { %2717 = vmatprep.subr.bf16.mxu0 %v2692_v57  ;;  %2761 = vmatpush1.bf16.msra.mxu1 %v2693_v1  ;;  %v7570_v18 = vpop.permute.xlu0 %7569  ;;  %v2580_v16 = vsel %vm1709_vm0, %v7462_v34, %v7551_v27  ;;  %v7566_v2 = vunpack.i.l.bf16 %v7565_v51  ;;  %v2553_v1 = vsel %vm601_vm6, %v7561_v39, %v7562_v5 }
 0x81b   : > { %v2579_v0 = vsel %vm1709_vm0, %v7492_v4, %v7556_v24  ;;  %v2577_v13 = vsel %vm1709_vm0, %v7461_v12, %v7491_v9  ;;  %2718 = vmatpush1.bf16.msra.mxu0 %v2691_v63  ;;  %2762 = vmatprep.subr.bf16.mxu1 %v14177_v45  ;;  %v2578_v32 = vsel %vm1709_vm0, %v7491_v9, %v7492_v4  ;;  %v7572_v49 = vunpack.i.h.bf16 %v7570_v18 }
 0x81c   : > { %v7495_v36 = vpop.permute.xlu1 %7494  ;;  %v2689_v60 = vpack.c.bf16 %v2581_v30, %v2578_v32  ;;  %v2690_v25 = vpack.c.bf16 %v2582_v20, %v2579_v0  ;;  %v2688_v52 = vpack.c.bf16 %v2580_v16, %v2577_v13  ;;  %v2554_v12 = vsel %vm601_vm6, %v7562_v5, %v7567_v31  ;;  %v10267_v0 = vpop.f32.mrf.mxu0 }
 0x81d   : > { %v7497_v10 = vunpack.i.h.bf16 %v7495_v36  ;;  %v7496_v62 = vunpack.i.l.bf16 %v7495_v36  ;;  %v7571_v57 = vunpack.i.l.bf16 %v7570_v18  ;;  %v7471_v24 = vunpack.i.l.bf16 %v10218_v38 }
 0x81e   : > { %2719 = vmatprep.subr.bf16.mxu0 %v2689_v60  ;;  %2763 = vmatpush1.bf16.msra.mxu1 %v2690_v25  ;;  %v7575_v30 = vpop.permute.xlu0 %7574  ;;  %v2552_v4 = vsel %vm601_vm6, %v7467_v21, %v7561_v39  ;;  %v7477_v21 = vunpack.i.h.bf16 %v10222_v46 }
 0x81f   : > { %v2551_v34 = vsel %vm601_vm6, %v7497_v10, %v7566_v2  ;;  %v2549_v27 = vsel %vm601_vm6, %v7466_v44, %v7496_v62  ;;  %2720 = vmatpush1.bf16.msra.mxu0 %v2688_v52  ;;  %2764 = vmatprep.subr.bf16.mxu1 %v14177_v45  ;;  %v2550_v51 = vsel %vm601_vm6, %v7496_v62, %v7497_v10  ;;  %v7577_v9 = vunpack.i.h.bf16 %v7575_v30 }
 0x820   : > { %v7500_v63 = vpop.permute.xlu1 %7499  ;;  %v2686_v20 = vpack.c.bf16 %v2553_v1, %v2550_v51  ;;  %v2687_v31 = vpack.c.bf16 %v2554_v12, %v2551_v34  ;;  %v7576_v5 = vunpack.i.l.bf16 %v7575_v30  ;;  %v2685_v18 = vpack.c.bf16 %v2552_v4, %v2549_v27  ;;  %v10277_v12 = vpop.f32.mrf.mxu0 }
 0x821   : > { %v7502_v38 = vunpack.i.h.bf16 %v7500_v63  ;;  %v7501_v13 = vunpack.i.l.bf16 %v7500_v63  ;;  %v2524_v44 = vsel %vm571_vm8, %v7472_v47, %v7571_v57  ;;  %v2526_v32 = vsel %vm571_vm8, %v7572_v49, %v7577_v9 }
 0x822   : > { %2721 = vmatprep.subr.bf16.mxu0 %v2686_v20  ;;  %2765 = vmatpush1.bf16.msra.mxu1 %v2687_v31  ;;  %v2525_v16 = vsel %vm571_vm8, %v7571_v57, %v7572_v49  ;;  %v7580_v60 = vpop.permute.xlu0 %7579  ;;  %v7476_v49 = vunpack.i.l.bf16 %v10222_v46 }
 0x823   : > { %v2523_v39 = vsel %vm571_vm8, %v7502_v38, %v7576_v5  ;;  %v2521_v36 = vsel %vm571_vm8, %v7471_v24, %v7501_v13  ;;  %2722 = vmatpush1.bf16.msra.mxu0 %v2685_v18  ;;  %2766 = vmatprep.subr.bf16.mxu1 %v14177_v45  ;;  %v2522_v25 = vsel %vm571_vm8, %v7501_v13, %v7502_v38  ;;  %v7582_v2 = vunpack.i.h.bf16 %v7580_v60  ;;  %v10285_v5 = vpop.f32.mrf.mxu0 }
 0x824   : > { %v7581_v47 = vunpack.i.l.bf16 %v7580_v60  ;;  %v7505_v10 = vpop.permute.xlu1 %7504  ;;  %v2683_v62 = vpack.c.bf16 %v2525_v16, %v2522_v25  ;;  %v2684_v52 = vpack.c.bf16 %v2526_v32, %v2523_v39  ;;  %v2682_v34 = vpack.c.bf16 %v2524_v44, %v2521_v36 }
 0x825   : > { %v7507_v57 = vunpack.i.h.bf16 %v7505_v10  ;;  %v7506_v1 = vunpack.i.l.bf16 %v7505_v10  ;;  %v10289_v60 = vpop.f32.mrf.mxu0 }
 0x826   : > { %v2496_v24 = vsel %vm1540_vm10, %v7477_v21, %v7581_v47  ;;  %2723 = vmatprep.subr.bf16.mxu0 %v2683_v62  ;;  %2767 = vmatpush1.bf16.msra.mxu1 %v2684_v52  ;;  %v7585_v30 = vpop.permute.xlu0 %7584  ;;  %v2497_v4 = vsel %vm1540_vm10, %v7581_v47, %v7582_v2 }
 0x827   : > { %v2493_v27 = vsel %vm1540_vm10, %v7476_v49, %v7506_v1  ;;  %2724 = vmatpush1.bf16.msra.mxu0 %v2682_v34  ;;  %v2494_v51 = vsel %vm1540_vm10, %v7506_v1, %v7507_v57  ;;  %2768 = vmatprep.subr.bf16.mxu1 %v14177_v45  ;;  %v7587_v9 = vunpack.i.h.bf16 %v7585_v30  ;;  %v7586_v63 = vunpack.i.l.bf16 %v7585_v30  ;;  %v10296_v30 = vpop.f32.mrf.mxu0 }
 0x828   : > { %v7510_v46 = vpop.permute.xlu1 %7509  ;;  %v2680_v20 = vpack.c.bf16 %v2497_v4, %v2494_v51  ;;  %v2679_v31 = vpack.c.bf16 %v2496_v24, %v2493_v27 }
 0x829   : > { %v2495_v38 = vsel %vm1540_vm10, %v7507_v57, %v7586_v63  ;;  %v2498_v13 = vsel %vm1540_vm10, %v7582_v2, %v7587_v9  ;;  %v7512_v18 = vunpack.i.h.bf16 %v7510_v46  ;;  %v7511_v44 = vunpack.i.l.bf16 %v7510_v46 }
 0x82a   : > { %2725 = vmatprep.subr.bf16.mxu0 %v2680_v20  ;;  %v7590_v32 = vpop.permute.xlu0 %7589  ;;  %v2681_v16 = vpack.c.bf16 %v2498_v13, %v2495_v38  ;;  %v14240_v20 = vpack.c.bf16 %v10139_v41, %v10153_v22 }
 0x82b   : > { %2726 = vmatpush1.bf16.msra.mxu0 %v2679_v31  ;;  %v7592_v21 = vunpack.i.h.bf16 %v7590_v32  ;;  %v7591_v39 = vunpack.i.l.bf16 %v7590_v32  ;;  %v2466_v10 = vsel %vm511_vm12, %v7511_v44, %v7512_v18  ;;  %v2147_v32 = vpop.f32.mrf.mxu0 }
 0x82c   : > { %v7515_v36 = vpop.permute.xlu1 %7514  ;;  %2769 = vmatpush1.bf16.msra.mxu1 %v2681_v16 }
 0x82d   : > { %v7517_v25 = vunpack.i.h.bf16 %v7515_v36  ;;  %v7516_v47 = vunpack.i.l.bf16 %v7515_v36  ;;  %v2469_v62 = vsel %vm511_vm12, %v7591_v39, %v7592_v21  ;;  %2770 = vmatprep.subr.bf16.mxu1 %v14177_v45 }
 0x82e   : > { %v7595_v49 = vpop.permute.xlu0 %7594  ;;  %v2677_v57 = vpack.c.bf16 %v2469_v62, %v2466_v10 }
 0x82f   : > { %v2468_v2 = vsel %vm511_vm12, %v7517_v25, %v7591_v39  ;;  %v2465_v52 = vsel %vm511_vm12, %v7516_v47, %v7511_v44  ;;  %v7597_v1 = vunpack.i.h.bf16 %v7595_v49  ;;  %v7596_v34 = vunpack.i.l.bf16 %v7595_v49 }
 0x830   : > { %v7520_v24 = vpop.permute.xlu1 %7519  ;;  %v2676_v27 = vpack.c.bf16 %v2468_v2, %v2465_v52  ;;  %2727 = vmatprep.subr.bf16.mxu0 %v2677_v57  ;;  %v2151_v52 = vpop.f32.mrf.mxu0 }
 0x831   : > { %v2467_v51 = vsel %vm511_vm12, %v7512_v18, %v7596_v34  ;;  %v2470_v4 = vsel %vm511_vm12, %v7592_v21, %v7597_v1  ;;  %v7522_v9 = vunpack.i.h.bf16 %v7520_v24  ;;  %v7521_v63 = vunpack.i.l.bf16 %v7520_v24  ;;  %v6842_v24 = vpop.f32.mrf.mxu1 }
 0x832   : > { %2728 = vmatpush1.bf16.msra.mxu0 %v2676_v27  ;;  %v7600_v46 = vpop.permute.xlu0 %7599  ;;  %v2678_v31 = vpack.c.bf16 %v2470_v4, %v2467_v51  ;;  %v14241_v18 = vpack.c.bf16 %v10129_v7, %v10127_v35  ;;  %v14242_v35 = vpack.c.bf16 %v10142_v17, %v10156_v40  ;;  %v8756_v7 = vld [vmem:[%s13898_s7] ss:$8 sps:$4 sm:$0xff]   ;;  %v2153_v34 = vpop.f32.mrf.mxu0 }
 0x833   : > { %2729 = vmatprep.subr.bf16.mxu0 %v14240_v20  ;;  %v7602_v38 = vunpack.i.h.bf16 %v7600_v46  ;;  %v7601_v13 = vunpack.i.l.bf16 %v7600_v46  ;;  %v2662_v21 = vsel %vm13978_vm11, %v7521_v63, %v7522_v9  ;;  %v2348_v51 = vpop.f32.mrf.mxu1 }
 0x834   : > { %v7525_v44 = vpop.permute.xlu1 %7524  ;;  %2771 = vmatpush1.bf16.msra.mxu1 %v2678_v31  ;;  %v2155_v27 = vpop.f32.mrf.mxu0 }
 0x835   : > { %v7527_v16 = vunpack.i.h.bf16 %v7525_v44  ;;  %v7526_v39 = vunpack.i.l.bf16 %v7525_v44  ;;  %2772 = vmatprep.subr.bf16.mxu1 %v14177_v45  ;;  %v2665_v41 = vsel %vm13978_vm11, %v7601_v13, %v7602_v38  ;;  %v6843_v44 = vpop.f32.mrf.mxu1 }
 0x836   : > { %6591 = vmatpush1.bf16.msk.msra.mxu0 %vm9910_vm14, %v14241_v18  ;;  %v7605_v25 = vpop.permute.xlu0 %7604  ;;  %v2698_v47 = vpack.c.bf16 %v2665_v41, %v2662_v21 }
 0x837   : > { %v2664_v22 = vsel %vm13978_vm11, %v7527_v16, %v7601_v13  ;;  %v2661_v36 = vsel %vm13978_vm11, %v7526_v39, %v7521_v63  ;;  %v7607_v10 = vunpack.i.h.bf16 %v7605_v25  ;;  %v7606_v62 = vunpack.i.l.bf16 %v7605_v25  ;;  %v2157_v63 = vpop.f32.mrf.mxu0 }
 0x838   : > { %v2697_v2 = vpack.c.bf16 %v2664_v22, %v2661_v36  ;;  %2745 = vmatprep.subr.bf16.mxu0 %v2698_v47  ;;  %2773 = vmatpush1.bf16.msra.mxu1 %v14242_v35 }
 0x839   : > { %v2663_v49 = vsel %vm13978_vm11, %v7522_v9, %v7606_v62  ;;  %v2666_v57 = vsel %vm13978_vm11, %v7602_v38, %v7607_v10  ;;  %2788 = vmatprep.subr.bf16.mxu1 %v14177_v45  ;;  %vm14264_vm11 = vmmov %vm14235_vm2 }
 0x83a   : > { %2746 = vmatpush2.bf16.msra.mxu0 %v2697_v2  ;;  %v2699_v1 = vpack.c.bf16 %v2666_v57, %v2663_v49 }
 0x83c   : > { %2789 = vmatpush2.bf16.msra.mxu1 %v2699_v1 }
 0x83d   : > { %2748 = vmatmul.mubr.bf16.vlgmr.msra.gmra.mxu0 %v8756_v7 }
 0x83f   : > { %2791 = vmatmul.mubr.bf16.vlgmr.msra.gmra.mxu1 %v8756_v7 }
 0x841   : > { %v2008_v17 = vpop.permute.xlu1 %2007 }
 0x842   : > { %v2152_v40 = vadd.f32 %v2151_v52, %v2008_v17  ;;  %v2154_v4 = vadd.f32 %v2153_v34, %v2008_v17  ;;  %v2292_v9 = vadd.f32 %v10109_v59, %v2008_v17 }
 0x843   : > { %v2013_v46 = vpop.permute.xlu0 %2012 }
 0x844   : > { %v2158_v20 = vadd.f32 %v2157_v63, %v2013_v46  ;;  %v2295_v31 = vadd.f32 %v10111_v3, %v2013_v46  ;;  %v2225_v13 = vadd.f32 %v10093_v14, %v2152_v40  ;;  %v2227_v16 = vadd.f32 %v10095_v37, %v2154_v4 }
 0x845   : > { %v1998_v38 = vpop.permute.xlu1 %1997  ;;  %v2156_v21 = vadd.f32 %v2155_v27, %v2013_v46  ;;  %v2357_v25 = vadd.f32 %v6842_v24, %v2292_v9 }
 0x846   : > { %v2231_v39 = vadd.f32 %v10099_v29, %v2158_v20  ;;  %v2360_v18 = vadd.f32 %v6843_v44, %v2295_v31  ;;  %v2142_v41 = vadd.f32 %v10285_v5, %v1998_v38  ;;  %v2144_v22 = vadd.f32 %v10289_v60, %v1998_v38 }
 0x847   : > { %v2003_v36 = vpop.permute.xlu0 %2002  ;;  %v2284_v3 = vadd.f32 %v10105_v54, %v1998_v38  ;;  %v2381_v62 = vmax.f32 %v2225_v13, 0.0  ;;  %v2382_v37 = vmax.f32 %v2227_v16, 0.0  ;;  %v2229_v60 = vadd.f32 %v10097_v19, %v2156_v21 }
 0x848   : > { %v2385_v59 = vmax.f32 %v2231_v39, 0.0  ;;  %v2386_v47 = vmax.f32 %v2360_v18, 0.0  ;;  %v2146_v14 = vadd.f32 %v10296_v30, %v2003_v36  ;;  %v2148_v2 = vadd.f32 %v2147_v32, %v2003_v36 }
 0x849   : > { %v1988_v10 = vpop.permute.xlu1 %1987  ;;  %v2287_v5 = vadd.f32 %v10107_v8, %v2003_v36  ;;  %v2215_v35 = vadd.f32 %v10085_v43, %v2142_v41  ;;  %v2217_v7 = vadd.f32 %v10087_v53, %v2144_v22  ;;  %v2383_v57 = vmax.f32 %v2357_v25, 0.0  ;;  %v2351_v8 = vpop.f32.mrf.mxu1  ;;  %v14244_v36 = vld [vmem:[#allocation14_spill] sm:$0xff] }
 0x84a   : > { %v2409_v29 = vmul.f32 %v2385_v59, %v14231_v55  ;;  %v2410_v52 = vmul.f32 %v2386_v47, %v14232_v15  ;;  %v2132_v54 = vadd.f32 %v10245_v58, %v1988_v10  ;;  %v2349_v1 = vadd.f32 %v2348_v51, %v2284_v3 }
 0x84b   : > { %v1993_v49 = vpop.permute.xlu0 %1992  ;;  %v2219_v30 = vadd.f32 %v10089_v6, %v2146_v14  ;;  %v2134_v32 = vadd.f32 %v10257_v42, %v1988_v10  ;;  %v2221_v27 = vadd.f32 %v10091_v48, %v2148_v2  ;;  %v2405_v19 = vmul.f32 %v2381_v62, %v14230_v50 }
 0x84c   : > { %v2821_v34 = vmax.f32 %v2409_v29, 0.0  ;;  %v2822_v24 = vmax.f32 %v2410_v52, 0.0  ;;  %v2352_v17 = vadd.f32 %v2351_v8, %v2287_v5  ;;  %v2205_v43 = vadd.f32 %v10077_v26, %v2132_v54 }
 0x84d   : > { %v2136_v53 = vadd.f32 %v10267_v0, %v1993_v49  ;;  %v2406_v58 = vmul.f32 %v2382_v37, %v14231_v55  ;;  %v2384_v40 = vmax.f32 %v2229_v60, 0.0  ;;  %v2375_v51 = vmax.f32 %v2215_v35, 0.0 }
 0x84e   : > { %v2376_v4 = vmax.f32 %v2217_v7, 0.0  ;;  %v2207_v6 = vadd.f32 %v10079_v33, %v2134_v32  ;;  %v2377_v42 = vmax.f32 %v2349_v1, 0.0  ;;  %v2378_v63 = vmax.f32 %v2219_v30, 0.0 }
 0x84f   : > { %v2138_v46 = vadd.f32 %v10277_v12, %v1993_v49  ;;  %v2279_v48 = vadd.f32 %v10103_v23, %v1993_v49  ;;  %v7618_v9 = vpack.i.bf16 %v2822_v24, %v2821_v34  ;;  %v2379_v20 = vmax.f32 %v2221_v27, 0.0  ;;  %v14243_v23 = vld [vmem:[#allocation16_spill] sm:$0xff] }
 0x850   : > { %v2276_v31 = vadd.f32 %v10101_v56, %v1988_v10  ;;  %v2817_v26 = vmax.f32 %v2405_v19, 0.0  ;;  %v2380_v38 = vmax.f32 %v2352_v17, 0.0  ;;  %v2369_v0 = vmax.f32 %v2205_v43, 0.0 }
 0x851   : > { %v2209_v13 = vadd.f32 %v10081_v11, %v2136_v53  ;;  %v2818_v44 = vmax.f32 %v2406_v58, 0.0  ;;  %v2370_v16 = vmax.f32 %v2207_v6, 0.0  ;;  %v2407_v39 = vmul.f32 %v2383_v57, %v14232_v15 }
 0x852   : > { %v2408_v33 = vmul.f32 %v2384_v40, %v14230_v50  ;;  %v2399_v18 = vmul.f32 %v2375_v51, %v14230_v50  ;;  %v2211_v12 = vadd.f32 %v10083_v61, %v2138_v46  ;;  %v2344_v21 = vadd.f32 %v14243_v23, %v2279_v48 }
 0x853   : > { %v7608_v41 = vpack.i.bf16 %v2818_v44, %v2817_v26  ;;  %v2400_v56 = vmul.f32 %v2376_v4, %v14231_v55  ;;  %v2403_v22 = vmul.f32 %v2379_v20, %v14231_v55  ;;  %v2341_v25 = vadd.f32 %v14244_v36, %v2276_v31 }
 0x854   : > { %v2819_v11 = vmax.f32 %v2407_v39, 0.0  ;;  %v2820_v59 = vmax.f32 %v2408_v33, 0.0  ;;  %v2404_v47 = vmul.f32 %v2380_v38, %v14232_v15  ;;  %v2372_v3 = vmax.f32 %v2209_v13, 0.0 }
 0x855   : > { %7609 = vrot.lane.b32.xlu1 %v7608_v41, %s8803_s28  ;;  %v2401_v10 = vmul.f32 %v2377_v42, %v14232_v15  ;;  %v2402_v61 = vmul.f32 %v2378_v63, %v14230_v50  ;;  %v2811_v14 = vmax.f32 %v2399_v18, 0.0  ;;  %v2812_v2 = vmax.f32 %v2400_v56, 0.0 }
 0x856   : > { %v7613_v62 = vpack.i.bf16 %v2820_v59, %v2819_v11  ;;  %v2393_v37 = vmul.f32 %v2369_v0, %v14230_v50  ;;  %v2373_v29 = vmax.f32 %v2211_v12, 0.0  ;;  %v2374_v52 = vmax.f32 %v2344_v21, 0.0 }
 0x857   : > { %v2814_v5 = vmax.f32 %v2402_v61, 0.0  ;;  %v2394_v60 = vmul.f32 %v2370_v16, %v14231_v55  ;;  %v2371_v35 = vmax.f32 %v2341_v25, 0.0  ;;  %v2815_v7 = vmax.f32 %v2403_v22, 0.0 }
 0x858   : > { %7614 = vrot.lane.b32.xlu0 %v7613_v62, %s8803_s28  ;;  %v2813_v54 = vmax.f32 %v2401_v10, 0.0  ;;  %v2816_v49 = vmax.f32 %v2404_v47, 0.0  ;;  %v7623_v57 = vpack.i.bf16 %v2812_v2, %v2811_v14  ;;  %v2805_v1 = vmax.f32 %v2393_v37, 0.0 }
 0x859   : > { %7619 = vrot.lane.b32.xlu1 %v7618_v9, %s8803_s28  ;;  %v2396_v30 = vmul.f32 %v2372_v3, %v14230_v50  ;;  %v2806_v34 = vmax.f32 %v2394_v60, 0.0  ;;  %v2397_v24 = vmul.f32 %v2373_v29, %v14231_v55  ;;  %v2398_v27 = vmul.f32 %v2374_v52, %v14232_v15 }
 0x85a   : > { %v7628_v32 = vpack.i.bf16 %v2814_v5, %v2813_v54  ;;  %v2395_v8 = vmul.f32 %v2371_v35, %v14232_v15  ;;  %v7633_v19 = vpack.i.bf16 %v2816_v49, %v2815_v7 }
 0x85b   : > { %v2808_v17 = vmax.f32 %v2396_v30, 0.0  ;;  %v7638_v43 = vpack.i.bf16 %v2806_v34, %v2805_v1  ;;  %v2809_v53 = vmax.f32 %v2397_v24, 0.0  ;;  %v2810_v58 = vmax.f32 %v2398_v27, 0.0 }
 0x85c   : > { %7624 = vrot.lane.b32.xlu0 %v7623_v57, %s8803_s28  ;;  %v2807_v40 = vmax.f32 %v2395_v8, 0.0 }
 0x85d   : > { %7629 = vrot.lane.b32.xlu1 %v7628_v32, %s8803_s28  ;;  %v7648_v4 = vpack.i.bf16 %v2810_v58, %v2809_v53 }
 0x85e   : > { %v7643_v51 = vpack.i.bf16 %v2808_v17, %v2807_v40 }
 0x860   : > { %7634 = vrot.lane.b32.xlu0 %v7633_v19, %s8803_s28 }
 0x861   : > { %7639 = vrot.lane.b32.xlu1 %v7638_v43, %s8803_s28 }
 0x864   : > { %7644 = vrot.lane.b32.xlu0 %v7643_v51, %s8803_s28 }
 0x865   : > { %7649 = vrot.lane.b32.xlu1 %v7648_v4, %s8803_s28 }
 0x8c7   : > { %v7610_v6 = vpop.permute.xlu1 %7609 }
 0x8c8   : > { %v10376_v63 = vunpack.i.l.bf16 %v7610_v6  ;;  %v7612_v16 = vunpack.i.h.bf16 %v7610_v6 }
 0x8ca   : > { %v7615_v42 = vpop.permute.xlu0 %7614  ;;  %14245 = vst [vmem:[#allocation15_spill] sm:$0xff] %v10376_v63  ;;  %v10394_v21 = vsel %vm14251_vm3, %v10376_v63, %v7612_v16  ;;  %v2953_v47 = vsel %vm14256_vm13, 0.0, %v10376_v63  ;;  %vm14257_vm3 = vmmov %vm14235_vm2 }
 0x8cb   : > { %v10378_v46 = vunpack.i.h.bf16 %v7615_v42  ;;  %v7620_v48 = vpop.permute.xlu1 %7619  ;;  %14252 = vst [vmem:[#allocation16_spill] sm:$0xff] %v10394_v21  ;;  %v7616_v41 = vunpack.i.l.bf16 %v7615_v42  ;;  %vm14260_vm13 = vmmov %vm14235_vm2 }
 0x8cc   : > { %v7622_v56 = vunpack.i.h.bf16 %v7620_v48  ;;  %v7621_v22 = vunpack.i.l.bf16 %v7620_v48 }
 0x8cd   : > { %14246 = vst [vmem:[#allocation11_spill] sm:$0xff] %v10378_v46  ;;  %v2954_v3 = vsel %vm14257_vm3, 0.0, %v10378_v46  ;;  %v2961_v60 = vsel %vm14260_vm13, %v7616_v41, 0.0  ;;  %vm14261_vm3 = vmmov %vm14235_vm2 }
 0x8ce   : > { %v7625_v20 = vpop.permute.xlu0 %7624  ;;  %v2962_v35 = vsel %vm14261_vm3, %v7622_v56, 0.0  ;;  %v10424_v7 = vsel %vm14262_vm4, %v10378_v46, %v7621_v22  ;;  %v10431_v49 = vsel %vm14235_vm2, %v7621_v22, %v7622_v56  ;;  %vm14268_vm13 = vmmov %vm14235_vm2  ;;  %v10490_v48 = vpack.i.bf16 %v2954_v3, %v2953_v47 }
 0x8cf   : > { %v7630_v31 = vpop.permute.xlu1 %7629  ;;  %v10382_v26 = vunpack.i.l.bf16 %v7625_v20  ;;  %v7627_v10 = vunpack.i.h.bf16 %v7625_v20  ;;  %14263 = vst [vmem:[#allocation22_spill] sm:$0xff] %v10424_v7  ;;  %14265 = vst [vmem:[#allocation23_spill] sm:$0xff] %v10431_v49  ;;  %v10492_v20 = vpack.i.bf16 %v2962_v35, %v2961_v60 }
 0x8d0   : > { %v10384_v38 = vunpack.i.h.bf16 %v7630_v31  ;;  %v7631_v29 = vunpack.i.l.bf16 %v7630_v31  ;;  %vm14269_vm4 = vmmov %vm14235_vm2 }
 0x8d1   : > { %14247 = vst [vmem:[#allocation12_spill] sm:$0xff] %v10382_v26  ;;  %v2951_v1 = vsel %vm14268_vm13, 0.0, %v10382_v26  ;;  %vm14272_vm3 = vmmov %vm14235_vm2 }
 0x8d2   : > { %14248 = vst [vmem:[#allocation17_spill] sm:$0xff] %v10384_v38  ;;  %v7635_v13 = vpop.permute.xlu0 %7634  ;;  %v2952_v32 = vsel %vm14269_vm4, 0.0, %v10384_v38  ;;  %v10451_v27 = vsel %vm14235_vm2, %v7627_v10, %v7631_v29  ;;  %vm14278_vm13 = vmmov %vm14235_vm2 }
 0x8d3   : > { %v7640_v44 = vpop.permute.xlu1 %7639  ;;  %v7637_v62 = vunpack.i.h.bf16 %v7635_v13  ;;  %v7636_v14 = vunpack.i.l.bf16 %v7635_v13  ;;  %14274 = vst [vmem:[#allocation27_spill] sm:$0xff] %v10451_v27  ;;  %vm14280_vm4 = vmmov %vm14235_vm2  ;;  %v10476_v4 = vpack.i.bf16 %v2952_v32, %v2951_v1 }
 0x8d4   : > { %v7642_v39 = vunpack.i.h.bf16 %v7640_v44  ;;  %v10388_v33 = vunpack.i.l.bf16 %v7640_v44 }
 0x8d5   : > { %v10448_v24 = vsel %vm14272_vm3, %v7636_v14, %v7637_v62  ;;  %v2960_v43 = vsel %vm14280_vm4, %v7637_v62, 0.0  ;;  %vm14282_vm3 = vmmov %vm14235_vm2 }
 0x8d6   : > { %14249 = vst [vmem:[#allocation13_spill] sm:$0xff] %v10388_v33  ;;  %v7645_v18 = vpop.permute.xlu0 %7644  ;;  %v10398_v36 = vsel %vm14235_vm2, %v10388_v33, %v7642_v39  ;;  %v2949_v54 = vsel %vm14264_vm11, 0.0, %v10388_v33  ;;  %vm14270_vm11 = vmmov %vm14235_vm2 }
 0x8d7   : > { %v10390_v12 = vunpack.i.h.bf16 %v7645_v18  ;;  %v7646_v23 = vunpack.i.l.bf16 %v7645_v18  ;;  %14253 = vst [vmem:[#allocation14_spill] sm:$0xff] %v10398_v36  ;;  %v7650_v59 = vpop.permute.xlu1 %7649  ;;  %v10445_v34 = vsel %vm14270_vm11, %v10384_v38, %v7636_v14  ;;  %14273 = vst [vmem:[#allocation26_spill] sm:$0xff] %v10448_v24 }
 0x8d8   : > { %v7652_v52 = vunpack.i.h.bf16 %v7650_v59  ;;  %v7651_v5 = vunpack.i.l.bf16 %v7650_v59  ;;  %14271 = vst [vmem:[#allocation25_spill] sm:$0xff] %v10445_v34  ;;  %vm14281_vm11 = vmmov %vm14235_vm2  ;;  %v10470_v40 = vpack.i.bf16 %v10448_v24, %v10445_v34 }
 0x8d9   : > { %14250 = vst [vmem:[#allocation18_spill] sm:$0xff] %v10390_v12  ;;  %v10401_v25 = vsel %vm14254_vm7, %v7642_v39, %v7646_v23  ;;  %v2950_v2 = vsel %vm14235_vm2, 0.0, %v10390_v12  ;;  %vm14258_vm7 = vmmov %vm14235_vm2  ;;  %v2957_v53 = vsel %vm14281_vm11, %v7646_v23, 0.0 }
 0x8da   : > { %14255 = vst [vmem:[#allocation20_spill] sm:$0xff] %v10401_v25  ;;  %v10411_v61 = vpack.i.bf16 %v10401_v25, %v10398_v36  ;;  %v10416_v37 = vsel %vm14258_vm7, %v7612_v16, %v7616_v41  ;;  %vm14266_vm7 = vmmov %vm14235_vm2  ;;  %v10439_v30 = vpack.i.bf16 %v2950_v2, %v2949_v54  ;;  %v10456_v19 = vsel %vm14276_vm9, %v10390_v12, %v7651_v5 }
 0x8db   : > { %14259 = vst [vmem:[#allocation21_spill] sm:$0xff] %v10416_v37  ;;  %v10435_v57 = vsel %vm14266_vm7, %v10382_v26, %v7627_v10  ;;  %vm14275_vm7 = vmmov %vm14235_vm2  ;;  %v10459_v17 = vsel %vm14278_vm13, %v7651_v5, %v7652_v52  ;;  %v2958_v58 = vsel %vm14282_vm3, %v7652_v52, 0.0  ;;  %v10488_v42 = vpack.i.bf16 %v10416_v37, %v10394_v21 }
 0x8dc   : > { %7664 = vrot.lane.b32.xlu1 %v10411_v61, %s8788_s15  ;;  %7654 = vrot.lane.b32.xlu0 %v10411_v61, %s8793_s20  ;;  %14267 = vst [vmem:[#allocation24_spill] sm:$0xff] %v10435_v57  ;;  %v2959_v8 = vsel %vm14275_vm7, %v7631_v29, 0.0  ;;  %14277 = vst [vmem:[#allocation28_spill] sm:$0xff] %v10456_v19  ;;  %v10474_v51 = vpack.i.bf16 %v10459_v17, %v10456_v19  ;;  %v10482_v6 = vpack.i.bf16 %v10451_v27, %v10435_v57 }
 0x8dd   : > { %14279 = vst [vmem:[#allocation29_spill] sm:$0xff] %v10459_v17  ;;  %v10494_v31 = vpack.i.bf16 %v2960_v43, %v2959_v8  ;;  %v10498_v13 = vpack.i.bf16 %v2958_v58, %v2957_v53  ;;  %v7873_v10 = vpack.i.bf16 %v10431_v49, %v10424_v7  ;;  %vm14344_vm9 = vmmov %vm14235_vm2 }
 0x8de   : > { %vm14345_vm7 = vmmov %vm14235_vm2 }
 0x8df   : > { %vm14347_vm13 = vmmov %vm14235_vm2 }
 0x8e0   : > { %7684 = vrot.lane.b32.xlu1 %v10439_v30, %s8808_s23  ;;  %7659 = vrot.lane.b32.xlu0 %v10411_v61, %s8808_s23  ;;  %vm14348_vm4 = vmmov %vm14235_vm2 }
 0x8e1   : > { %vm14349_vm11 = vmmov %vm14235_vm2 }
 0x8e2   : > { %vm14351_vm3 = vmmov %vm14235_vm2 }
 0x8e4   : > { %7689 = vrot.lane.b32.xlu1 %v10439_v30, %s8788_s15  ;;  %7669 = vrot.lane.b32.xlu0 %v10411_v61, %s8789_s16 }
 0x8e8   : > { %7699 = vrot.lane.b32.xlu1 %v10439_v30, %s14283_s29  ;;  %7674 = vrot.lane.b32.xlu0 %v10411_v61, %s14283_s29 }
 0x8ec   : > { %7704 = vrot.lane.b32.xlu1 %v10474_v51, %s8793_s20  ;;  %7679 = vrot.lane.b32.xlu0 %v10439_v30, %s8793_s20 }
 0x8f0   : > { %7709 = vrot.lane.b32.xlu1 %v10474_v51, %s8808_s23  ;;  %7694 = vrot.lane.b32.xlu0 %v10439_v30, %s8789_s16 }
 0x8f4   : > { %7719 = vrot.lane.b32.xlu1 %v10474_v51, %s8789_s16  ;;  %7714 = vrot.lane.b32.xlu0 %v10474_v51, %s8788_s15 }
 0x8f8   : > { %7724 = vrot.lane.b32.xlu1 %v10474_v51, %s14283_s29  ;;  %7729 = vrot.lane.b32.xlu0 %v10482_v6, %s8793_s20 }
 0x8fc   : > { %7764 = vrot.lane.b32.xlu1 %v10476_v4, %s8808_s23  ;;  %7734 = vrot.lane.b32.xlu0 %v10482_v6, %s8808_s23 }
 0x8fd   : > { %v2749_v3 = vpop.f32.mrf.mxu0 }
 0x8fe   : > { %v2799_v2 = vmax.f32 %v2749_v3, 0.0 }
 0x8ff   : > { %v2792_v56 = vpop.f32.mrf.mxu1  ;;  %v2751_v62 = vpop.f32.mrf.mxu0 }
 0x900   : > { %7779 = vrot.lane.b32.xlu1 %v10476_v4, %s14283_s29  ;;  %7739 = vrot.lane.b32.xlu0 %v10482_v6, %s8788_s15  ;;  %v2800_v29 = vmax.f32 %v2751_v62, 0.0  ;;  %v2801_v60 = vmax.f32 %v2792_v56, 0.0 }
 0x901   : > { %v2794_v22 = vpop.f32.mrf.mxu1  ;;  %v2753_v14 = vpop.f32.mrf.mxu0 }
 0x902   : > { %v7898_v5 = vpack.i.bf16 %v2800_v29, %v2799_v2  ;;  %v2802_v35 = vmax.f32 %v2753_v14, 0.0 }
 0x903   : > { %v2795_v59 = vpop.f32.mrf.mxu1  ;;  %v2755_v52 = vpop.f32.mrf.mxu0 }
 0x904   : > { %7784 = vrot.lane.b32.xlu1 %v10470_v40, %s8793_s20  ;;  %7744 = vrot.lane.b32.xlu0 %v10482_v6, %s8789_s16  ;;  %v2803_v54 = vmax.f32 %v2755_v52, 0.0  ;;  %v2804_v1 = vmax.f32 %v2795_v59, 0.0  ;;  %v7903_v32 = vpack.i.bf16 %v2802_v35, %v2801_v60 }
 0x905   : > { %v2797_v47 = vpop.f32.mrf.mxu1 }
 0x906   : > { %v7913_v8 = vpack.i.bf16 %v2804_v1, %v2803_v54 }
 0x908   : > { %7789 = vrot.lane.b32.xlu1 %v10470_v40, %s8808_s23  ;;  %7749 = vrot.lane.b32.xlu0 %v10482_v6, %s14283_s29 }
 0x90c   : > { %7794 = vrot.lane.b32.xlu1 %v10470_v40, %s8788_s15  ;;  %7754 = vrot.lane.b32.xlu0 %v10482_v6, %s14284_s30 }
 0x910   : > { %7799 = vrot.lane.b32.xlu1 %v10470_v40, %s8789_s16  ;;  %7759 = vrot.lane.b32.xlu0 %v10476_v4, %s8793_s20 }
 0x914   : > { %7804 = vrot.lane.b32.xlu1 %v10470_v40, %s14283_s29  ;;  %7769 = vrot.lane.b32.xlu0 %v10476_v4, %s8788_s15 }
 0x918   : > { %7809 = vrot.lane.b32.xlu1 %v10488_v42, %s8793_s20  ;;  %7774 = vrot.lane.b32.xlu0 %v10476_v4, %s8789_s16 }
 0x91c   : > { %7819 = vrot.lane.b32.xlu1 %v10488_v42, %s8788_s15  ;;  %7814 = vrot.lane.b32.xlu0 %v10488_v42, %s8808_s23 }
 0x920   : > { %7839 = vrot.lane.b32.xlu1 %v10490_v48, %s8793_s20  ;;  %7824 = vrot.lane.b32.xlu0 %v10488_v42, %s8789_s16 }
 0x924   : > { %7844 = vrot.lane.b32.xlu1 %v10490_v48, %s8808_s23  ;;  %7829 = vrot.lane.b32.xlu0 %v10488_v42, %s14283_s29 }
 0x928   : > { %7849 = vrot.lane.b32.xlu1 %v10490_v48, %s8788_s15  ;;  %7834 = vrot.lane.b32.xlu0 %v10488_v42, %s14284_s30 }
 0x92c   : > { %7859 = vrot.lane.b32.xlu1 %v10490_v48, %s14283_s29  ;;  %7854 = vrot.lane.b32.xlu0 %v10490_v48, %s8789_s16 }
 0x930   : > { %7874 = vrot.lane.b32.xlu1 %v7873_v10, %s8808_s23  ;;  %7864 = vrot.lane.b32.xlu0 %v10490_v48, %s14284_s30 }
 0x934   : > { %7884 = vrot.lane.b32.xlu1 %v7873_v10, %s8789_s16  ;;  %7869 = vrot.lane.b32.xlu0 %v7873_v10, %s8793_s20 }
 0x938   : > { %7889 = vrot.lane.b32.xlu1 %v7873_v10, %s14283_s29  ;;  %7879 = vrot.lane.b32.xlu0 %v7873_v10, %s8788_s15 }
 0x93c   : > { %7894 = vrot.lane.b32.xlu1 %v7873_v10, %s14284_s30  ;;  %7899 = vrot.lane.b32.xlu0 %v7898_v5, %s8803_s28 }
 0x940   : > { %7904 = vrot.lane.b32.xlu1 %v7903_v32, %s8803_s28  ;;  %7914 = vrot.lane.b32.xlu0 %v7913_v8, %s8803_s28 }
 0x944   : > { %7909 = vrot.lane.b32.xlu1 %v10470_v40, %s14284_s30  ;;  %7919 = vrot.lane.b32.xlu0 %v10488_v42, %s14285_s22 }
 0x948   : > { %7924 = vrot.lane.b32.xlu1 %v7873_v10, %s14285_s22  ;;  %7929 = vrot.lane.b32.xlu0 %v10476_v4, %s14284_s30 }
 0x94c   : > { %7934 = vrot.lane.b32.xlu1 %v10490_v48, %s14285_s22  ;;  %7939 = vrot.lane.b32.xlu0 %v10411_v61, %s14284_s30 }
 0x94e   : > { %v10606_v43 = vpop.permute.xlu1 %7664  ;;  %v10608_v53 = vpop.permute.xlu0 %7654 }
 0x94f   : > { %14286 = vst [vmem:[#allocation30_spill] sm:$0xff] %v10606_v43  ;;  %14287 = vst [vmem:[#allocation31_spill] sm:$0xff] %v10608_v53 }
 0x950   : > { %7944 = vrot.lane.b32.xlu1 %v10474_v51, %s14284_s30  ;;  %7949 = vrot.lane.b32.xlu0 %v10482_v6, %s14285_s22 }
 0x952   : > { %v10614_v58 = vpop.permute.xlu1 %7684  ;;  %v10616_v56 = vpop.permute.xlu0 %7659 }
 0x953   : > { %14288 = vst [vmem:[#allocation32_spill] sm:$0xff] %v10616_v56 }
 0x954   : > { %7954 = vrot.lane.b32.xlu1 %v10470_v40, %s14285_s22  ;;  %7959 = vrot.lane.b32.xlu0 %v10439_v30, %s14284_s30 }
 0x956   : > { %v10622_v22 = vpop.permute.xlu1 %7689  ;;  %v10624_v59 = vpop.permute.xlu0 %7669 }
 0x957   : > { %14289 = vst [vmem:[#allocation33_spill] sm:$0xff] %v10624_v59 }
 0x958   : > { %7964 = vrot.lane.b32.xlu1 %v10476_v4, %s14285_s22  ;;  %7969 = vrot.lane.b32.xlu0 %v10411_v61, %s14285_s22 }
 0x95a   : > { %v10630_v47 = vpop.permute.xlu1 %7699  ;;  %v10632_v3 = vpop.permute.xlu0 %7674 }
 0x95b   : > { %14290 = vst [vmem:[#allocation34_spill] sm:$0xff] %v10632_v3 }
 0x95c   : > { %7974 = vrot.lane.b32.xlu1 %v10474_v51, %s14285_s22  ;;  %7984 = vrot.lane.b32.xlu0 %v10488_v42, %s14291_s18 }
 0x95e   : > { %v10638_v62 = vpop.permute.xlu1 %7704  ;;  %v10640_v14 = vpop.permute.xlu0 %7679 }
 0x95f   : > { %14292 = vst [vmem:[#allocation35_spill] sm:$0xff] %v10638_v62 }
 0x960   : > { %7979 = vrot.lane.b32.xlu1 %v10439_v30, %s14285_s22 }
 0x962   : > { %v10644_v2 = vpop.permute.xlu1 %7709  ;;  %v10646_v29 = vpop.permute.xlu0 %7694 }
 0x963   : > { %14293 = vst [vmem:[#allocation36_spill] sm:$0xff] %v10644_v2  ;;  %v14318_v37 = vunpack.i.h.bf16 %v10644_v2  ;;  %v14319_v49 = vunpack.i.l.bf16 %v10644_v2 }
 0x964   : > { %7989 = vrot.lane.b32.xlu1 %v7873_v10, %s14291_s18 }
 0x965   : > { %v3501_v46 = vsel %vm1709_vm0, %v14319_v49, %v14318_v37 }
 0x966   : > { %v10649_v52 = vpop.permute.xlu1 %7719  ;;  %v10651_v5 = vpop.permute.xlu0 %7714 }
 0x967   : > { %14294 = vst [vmem:[#allocation37_spill] sm:$0xff] %v10649_v52  ;;  %14295 = vst [vmem:[#allocation38_spill] sm:$0xff] %v10651_v5 }
 0x968   : > { %7994 = vrot.lane.b32.xlu1 %v10490_v48, %s14291_s18 }
 0x96a   : > { %v10655_v42 = vpop.permute.xlu1 %7724  ;;  %v10657_v60 = vpop.permute.xlu0 %7729 }
 0x96b   : > { %14296 = vst [vmem:[#allocation39_spill] sm:$0xff] %v10655_v42  ;;  %14297 = vst [vmem:[#allocation40_spill] sm:$0xff] %v10657_v60 }
 0x96c   : > { %8049 = vrot.lane.b32.xlu1 %v10482_v6, %s14291_s18 }
 0x96e   : > { %v10661_v35 = vpop.permute.xlu1 %7764  ;;  %v10663_v54 = vpop.permute.xlu0 %7734 }
 0x96f   : > { %14298 = vst [vmem:[#allocation41_spill] sm:$0xff] %v10663_v54  ;;  %v7767_v19 = vunpack.i.h.bf16 %v10661_v35  ;;  %v7766_v26 = vunpack.i.l.bf16 %v10661_v35  ;;  %v7736_v34 = vunpack.i.l.bf16 %v10663_v54 }
 0x972   : > { %v10665_v1 = vpop.permute.xlu1 %7779  ;;  %v10667_v10 = vpop.permute.xlu0 %7739 }
 0x973   : > { %14299 = vst [vmem:[#allocation42_spill] sm:$0xff] %v10667_v10 }
 0x976   : > { %v10669_v32 = vpop.permute.xlu1 %7784  ;;  %v10671_v8 = vpop.permute.xlu0 %7744 }
 0x977   : > { %14300 = vst [vmem:[#allocation43_spill] sm:$0xff] %v10669_v32  ;;  %14301 = vst [vmem:[#allocation44_spill] sm:$0xff] %v10671_v8  ;;  %v7786_v63 = vunpack.i.l.bf16 %v10669_v32 }
 0x97a   : > { %v10673_v48 = vpop.permute.xlu1 %7789  ;;  %v10675_v41 = vpop.permute.xlu0 %7749 }
 0x97b   : > { %14302 = vst [vmem:[#allocation45_spill] sm:$0xff] %v10673_v48  ;;  %14303 = vst [vmem:[#allocation46_spill] sm:$0xff] %v10675_v41  ;;  %v7791_v45 = vunpack.i.l.bf16 %v10673_v48 }
 0x97e   : > { %v10677_v23 = vpop.permute.xlu1 %7794  ;;  %v10679_v18 = vpop.permute.xlu0 %7754 }
 0x97f   : > { %14304 = vst [vmem:[#allocation47_spill] sm:$0xff] %v10677_v23  ;;  %14305 = vst [vmem:[#allocation48_spill] sm:$0xff] %v10679_v18 }
 0x982   : > { %v10681_v6 = vpop.permute.xlu1 %7799  ;;  %v10683_v11 = vpop.permute.xlu0 %7759 }
 0x983   : > { %14306 = vst [vmem:[#allocation49_spill] sm:$0xff] %v10681_v6 }
 0x986   : > { %v10685_v39 = vpop.permute.xlu1 %7804  ;;  %v10687_v0 = vpop.permute.xlu0 %7769 }
 0x987   : > { %14307 = vst [vmem:[#allocation50_spill] sm:$0xff] %v10685_v39 }
 0x98a   : > { %v10689_v16 = vpop.permute.xlu1 %7809  ;;  %v10691_v9 = vpop.permute.xlu0 %7774 }
 0x98b   : > { %14308 = vst [vmem:[#allocation51_spill] sm:$0xff] %v10689_v16 }
 0x98e   : > { %v10693_v44 = vpop.permute.xlu1 %7819  ;;  %v10695_v15 = vpop.permute.xlu0 %7814 }
 0x98f   : > { %14309 = vst [vmem:[#allocation52_spill] sm:$0xff] %v10693_v44  ;;  %14310 = vst [vmem:[#allocation53_spill] sm:$0xff] %v10695_v15  ;;  %v7816_v36 = vunpack.i.l.bf16 %v10695_v15  ;;  %v14322_v49 = vunpack.i.h.bf16 %v10695_v15  ;;  %v3506_v15 = vsel %vm1709_vm0, %v7767_v19, %v7791_v45  ;;  %v14326_v19 = vunpack.i.h.bf16 %v10669_v32 }
 0x990   : > { %v7701_v32 = vunpack.i.l.bf16 %v10630_v47 }
 0x991   : > { %v3510_v7 = vsel %vm1709_vm0, %v7816_v36, %v14322_v49 }
 0x992   : > { %v10697_v55 = vpop.permute.xlu1 %7839  ;;  %v10699_v50 = vpop.permute.xlu0 %7824 }
 0x993   : > { %14311 = vst [vmem:[#allocation54_spill] sm:$0xff] %v10699_v50 }
 0x996   : > { %v7845_v25 = vpop.permute.xlu1 %7844  ;;  %v10701_v17 = vpop.permute.xlu0 %7829 }
 0x997   : > { %14312 = vst [vmem:[#allocation55_spill] sm:$0xff] %v10701_v17  ;;  %v7846_v28 = vunpack.i.l.bf16 %v7845_v25  ;;  %v7847_v12 = vunpack.i.h.bf16 %v7845_v25  ;;  %v7811_v17 = vunpack.i.l.bf16 %v10689_v16 }
 0x999   : > { %v3509_v37 = vsel %vm1709_vm0, %v7846_v28, %v7816_v36  ;;  %v14325_v36 = vunpack.i.h.bf16 %v10663_v54  ;;  %v14332_v54 = vunpack.i.l.bf16 %v10644_v2 }
 0x99a   : > { %v10703_v27 = vpop.permute.xlu1 %7849  ;;  %v10705_v24 = vpop.permute.xlu0 %7834 }
 0x99b   : > { %14313 = vst [vmem:[#allocation56_spill] sm:$0xff] %v10703_v27  ;;  %14314 = vst [vmem:[#allocation57_spill] sm:$0xff] %v10705_v24  ;;  %v14321_v24 = vunpack.i.h.bf16 %v10673_v48 }
 0x99d   : > { %v3507_v27 = vsel %vm1709_vm0, %v7791_v45, %v14321_v24  ;;  %v7761_v45 = vunpack.i.l.bf16 %v10683_v11 }
 0x99e   : > { %v10710_v33 = vpop.permute.xlu1 %7859  ;;  %v10716_v38 = vpop.permute.xlu0 %7854 }
 0x99f   : > { %14315 = vst [vmem:[#allocation58_spill] sm:$0xff] %v10710_v33  ;;  %14316 = vst [vmem:[#allocation59_spill] sm:$0xff] %v10716_v38  ;;  %v7841_v33 = vunpack.i.l.bf16 %v10697_v55 }
 0x9a2   : > { %v10728_v57 = vpop.permute.xlu1 %7874  ;;  %v10736_v21 = vpop.permute.xlu0 %7864 }
 0x9a3   : > { %14317 = vst [vmem:[#allocation60_spill] sm:$0xff] %v10728_v57  ;;  %14320 = vst [vmem:[#allocation61_spill] sm:$0xff] %v10736_v21  ;;  %v7876_v38 = vunpack.i.l.bf16 %v10728_v57  ;;  %v14323_v21 = vunpack.i.h.bf16 %v10728_v57 }
 0x9a5   : > { %v3512_v25 = vsel %vm1709_vm0, %v7847_v12, %v7876_v38  ;;  %v3513_v35 = vsel %vm1709_vm0, %v7876_v38, %v14323_v21  ;;  %v7731_v12 = vunpack.i.l.bf16 %v10657_v60  ;;  %v3504_v38 = vsel %vm1709_vm0, %v7736_v34, %v14325_v36 }
 0x9a6   : > { %v10756_v50 = vpop.permute.xlu1 %7884  ;;  %v3945_v48 = vpack.c.bf16 %v3513_v35, %v3510_v7  ;;  %v3944_v24 = vpack.c.bf16 %v3512_v25, %v3509_v37  ;;  %v10761_v44 = vpop.permute.xlu0 %7869  ;;  %v7842_v21 = vunpack.i.h.bf16 %v10697_v55  ;;  %v3942_v7 = vpack.c.bf16 %v3507_v27, %v3504_v38 }
 0x9a7   : > { %14324 = vst [vmem:[#allocation62_spill] sm:$0xff] %v10761_v44  ;;  %v14016_v49 = vunpack.i.h.bf16 %v10761_v44  ;;  %v7871_v57 = vunpack.i.l.bf16 %v10761_v44  ;;  %v3503_v35 = vsel %vm1709_vm0, %v7766_v26, %v7736_v34  ;;  %v7762_v37 = vunpack.i.h.bf16 %v10683_v11 }
 0x9a8   : > { %4125 = vmatprep.subr.bf16.mxu1 %v3945_v48  ;;  %v3059_v25 = vsel %vm511_vm12, %v7786_v63, %v14326_v19  ;;  %v3061_v36 = vsel %vm511_vm12, %v7841_v33, %v7811_v17  ;;  %v14328_v27 = vunpack.i.h.bf16 %v10689_v16  ;;  %v3941_v38 = vpack.c.bf16 %v3506_v15, %v3503_v35 }
 0x9a9   : > { %4126 = vmatpush1.bf16.msra.mxu1 %v3944_v24  ;;  %v3064_v55 = vsel %vm511_vm12, %v7842_v21, %v7871_v57  ;;  %v3065_v11 = vsel %vm511_vm12, %v7871_v57, %v14016_v49  ;;  %v14330_v33 = vunpack.i.h.bf16 %v10616_v56  ;;  %v14331_v21 = vunpack.i.l.bf16 %v10616_v56 }
 0x9aa   : > { %v10777_v28 = vpop.permute.xlu1 %7889  ;;  %4127 = vmatprep.subr.bf16.mxu1 %v3942_v7  ;;  %v3062_v26 = vsel %vm511_vm12, %v7811_v17, %v14328_v27  ;;  %v10785_v34 = vpop.permute.xlu0 %7879  ;;  %v3896_v24 = vpack.c.bf16 %v3064_v55, %v3061_v36  ;;  %v7682_v7 = vunpack.i.h.bf16 %v10640_v14  ;;  %v14333_v17 = vunpack.i.h.bf16 %v10614_v58 }
 0x9ab   : > { %14327 = vst [vmem:[#allocation63_spill] sm:$0xff] %v10777_v28  ;;  %14329 = vst [vmem:[#allocation64_spill] sm:$0xff] %v10785_v34  ;;  %v3897_v48 = vpack.c.bf16 %v3065_v11, %v3062_v26  ;;  %v3498_v19 = vsel %vm1709_vm0, %v14331_v21, %v14330_v33  ;;  %v14334_v57 = vunpack.i.h.bf16 %v10657_v60  ;;  %v7681_v15 = vunpack.i.l.bf16 %v10640_v14 }
 0x9ac   : > { %v3500_v27 = vsel %vm1709_vm0, %v14333_v17, %v14332_v54  ;;  %v3939_v36 = vpack.c.bf16 %v3501_v46, %v3498_v19  ;;  %v3058_v35 = vsel %vm511_vm12, %v7762_v37, %v7786_v63  ;;  %v3055_v55 = vsel %vm511_vm12, %v7761_v45, %v7731_v12 }
 0x9ad   : > { %v3056_v26 = vsel %vm511_vm12, %v7731_v12, %v14334_v57  ;;  %4072 = vmatprep.subr.bf16.mxu0 %v3897_v48  ;;  %4128 = vmatpush1.bf16.msra.mxu1 %v3941_v38  ;;  %v14335_v33 = vmov %v14331_v21  ;;  %v14336_v21 = vunpack.i.l.bf16 %v10614_v58  ;;  %v14338_v46 = vunpack.i.h.bf16 %v10638_v62 }
 0x9ae   : > { %v3894_v11 = vpack.c.bf16 %v3059_v25, %v3056_v26  ;;  %4073 = vmatpush1.bf16.msra.mxu0 %v3896_v24  ;;  %v10809_v17 = vpop.permute.xlu1 %7894  ;;  %4129 = vmatprep.subr.bf16.mxu1 %v3939_v36  ;;  %v14339_v14 = vunpack.i.l.bf16 %v10638_v62  ;;  %v7900_v12 = vpop.permute.xlu0 %7899  ;;  %v3893_v45 = vpack.c.bf16 %v3058_v35, %v3055_v55  ;;  %v14340_v25 = vunpack.i.h.bf16 %v10608_v53 }
 0x9af   : > { %v3497_v54 = vsel %vm1709_vm0, %v14336_v21, %v14335_v33  ;;  %14337 = vst [vmem:[#allocation65_spill] sm:$0xff] %v10809_v17  ;;  %v14341_v58 = vunpack.i.l.bf16 %v10608_v53  ;;  %v10827_v26 = vunpack.i.l.bf16 %v7900_v12  ;;  %v14026_v49 = vunpack.i.h.bf16 %v10606_v43 }
 0x9b0   : > { %v3053_v63 = vsel %vm511_vm12, %v14339_v14, %v14338_v46  ;;  %4074 = vmatprep.subr.bf16.mxu0 %v3894_v11  ;;  %v3938_v37 = vpack.c.bf16 %v3500_v27, %v3497_v54  ;;  %v14342_v24 = vmov %v14339_v14  ;;  %v7902_v27 = vunpack.i.h.bf16 %v7900_v12 }
 0x9b1   : > { %v3050_v48 = vsel %vm511_vm12, %v14341_v58, %v14340_v25  ;;  %v3052_v38 = vsel %vm511_vm12, %v7682_v7, %v14342_v24  ;;  %v14343_v19 = vmov %v14341_v58  ;;  %v2947_v7 = vsel %vm14344_vm9, 0.0, %v10827_v26  ;;  %vm14352_vm9 = vmmov %vm14235_vm2 }
 0x9b2   : > { %v3049_v57 = vsel %vm511_vm12, %v7681_v15, %v14343_v19  ;;  %4130 = vmatpush1.bf16.msra.mxu1 %v3938_v37  ;;  %v3891_v36 = vpack.c.bf16 %v3053_v63, %v3050_v48  ;;  %4075 = vmatpush1.bf16.msra.mxu0 %v3893_v45  ;;  %v7905_v35 = vpop.permute.xlu1 %7904  ;;  %v7915_v33 = vpop.permute.xlu0 %7914  ;;  %v10842_v14 = vsel %vm14347_vm13, %v10827_v26, %v7902_v27  ;;  %v7666_v15 = vunpack.i.l.bf16 %v10606_v43 }
 0x9b3   : > { %v10829_v55 = vunpack.i.h.bf16 %v7905_v35  ;;  %v7906_v11 = vunpack.i.l.bf16 %v7905_v35  ;;  %v3890_v21 = vpack.c.bf16 %v3052_v38, %v3049_v57  ;;  %v7917_v12 = vunpack.i.h.bf16 %v7915_v33  ;;  %v8764_v35 = vld [vmem:[%s13899_s8 + $0xc] ss:$20 sps:$4 sm:$0xff]  }
 0x9b4   : > { %4076 = vmatprep.subr.bf16.mxu0 %v3891_v36  ;;  %v7916_v37 = vunpack.i.l.bf16 %v7915_v33  ;;  %4157 = vmatprep.mubr.bf16.mxu1 %v8764_v35  ;;  %v7691_v57 = vunpack.i.l.bf16 %v10622_v22  ;;  %v7671_v56 = vunpack.i.l.bf16 %v10624_v59  ;;  %v11027_v2 = vsel %vm601_vm6, %v7666_v15, %v14026_v49 }
 0x9b5   : > { %v2948_v54 = vsel %vm14235_vm2, 0.0, %v10829_v55  ;;  %v10838_v46 = vsel %vm14345_vm7, %v7902_v27, %v7906_v11  ;;  %v2955_v24 = vsel %vm14351_vm3, %v7906_v11, 0.0  ;;  %v2956_v38 = vsel %vm14352_vm9, %v7917_v12, 0.0 }
 0x9b6   : > { %14346 = vst [vmem:[#allocation66_spill] sm:$0xff] %v10838_v46  ;;  %4077 = vmatpush1.bf16.msra.mxu0 %v3890_v21  ;;  %v8058_v63 = vpack.i.bf16 %v2948_v54, %v2947_v7  ;;  %v7998_v45 = vpack.i.bf16 %v10838_v46, %v10842_v14  ;;  %v10850_v25 = vsel %vm14348_vm4, %v10829_v55, %v7916_v37  ;;  %v10941_v11 = vpop.permute.xlu0 %7919  ;;  %v7721_v49 = vunpack.i.l.bf16 %v10649_v52 }
 0x9b7   : > { %v10853_v58 = vsel %vm14349_vm11, %v7916_v37, %v7917_v12  ;;  %v10866_v19 = vpack.i.bf16 %v2956_v38, %v2955_v24  ;;  %14357 = vst [vmem:[#allocation72_spill] sm:$0xff] %v10941_v11  ;;  %v11030_v60 = vsel %vm601_vm6, %v7691_v57, %v7666_v15  ;;  %v7716_v57 = vunpack.i.l.bf16 %v10651_v5 }
 0x9b8   : > { %8059 = vrot.lane.b32.xlu1 %v8058_v63, %s8788_s15  ;;  %7999 = vrot.lane.b32.xlu0 %v7998_v45, %s8793_s20  ;;  %14350 = vst [vmem:[#allocation67_spill] sm:$0xff] %v10853_v58  ;;  %v10859_v48 = vpack.i.bf16 %v10853_v58, %v10850_v25  ;;  %vm14463_vm2 = vcmask 261120  }
 0x9b9   : > { %vm14464_vm7 = vmmov %vm14463_vm2 }
 0x9ba   : > { %v10951_v21 = vpop.permute.xlu0 %7929  ;;  %vm14474_vm13 = vmmov %vm14463_vm2 }
 0x9bb   : > { %vm14480_vm4 = vmmov %vm14463_vm2 }
 0x9bc   : > { %8069 = vrot.lane.b32.xlu1 %v8058_v63, %s14283_s29  ;;  %8004 = vrot.lane.b32.xlu0 %v7998_v45, %s8808_s23  ;;  %vm14490_vm11 = vmmov %vm14463_vm2 }
 0x9bd   : > { %vm14491_vm3 = vmmov %vm14463_vm2 }
 0x9be   : > { %v10961_v54 = vpop.permute.xlu0 %7939  ;;  %vm14499_vm9 = vmmov %vm14463_vm2 }
 0x9bf   : > { %14360 = vst [vmem:[#allocation75_spill] sm:$0xff] %v10961_v54 }
 0x9c0   : > { %8084 = vrot.lane.b32.xlu1 %v10859_v48, %s8793_s20  ;;  %8009 = vrot.lane.b32.xlu0 %v7998_v45, %s8788_s15 }
 0x9c2   : > { %v10971_v12 = vpop.permute.xlu0 %7949 }
 0x9c3   : > { %14362 = vst [vmem:[#allocation77_spill] sm:$0xff] %v10971_v12 }
 0x9c4   : > { %8089 = vrot.lane.b32.xlu1 %v10859_v48, %s8808_s23  ;;  %8014 = vrot.lane.b32.xlu0 %v7998_v45, %s8789_s16 }
 0x9c8   : > { %8094 = vrot.lane.b32.xlu1 %v10492_v20, %s8793_s20  ;;  %8019 = vrot.lane.b32.xlu0 %v7998_v45, %s14283_s29 }
 0x9cc   : > { %8104 = vrot.lane.b32.xlu1 %v10494_v31, %s8789_s16  ;;  %8024 = vrot.lane.b32.xlu0 %v7998_v45, %s14284_s30 }
 0x9d0   : > { %8114 = vrot.lane.b32.xlu1 %v10474_v51, %s14291_s18  ;;  %8029 = vrot.lane.b32.xlu0 %v7998_v45, %s14285_s22 }
 0x9d4   : > { %8124 = vrot.lane.b32.xlu1 %v10859_v48, %s8788_s15  ;;  %8034 = vrot.lane.b32.xlu0 %v8058_v63, %s8793_s20 }
 0x9d8   : > { %8129 = vrot.lane.b32.xlu1 %v10439_v30, %s14291_s18  ;;  %8039 = vrot.lane.b32.xlu0 %v8058_v63, %s8808_s23  ;;  %v10903_v30 = vpop.permute.xlu1 %7909 }
 0x9d9   : > { %14353 = vst [vmem:[#allocation68_spill] sm:$0xff] %v10903_v30 }
 0x9dc   : > { %8139 = vrot.lane.b32.xlu1 %v7998_v45, %s14291_s18  ;;  %8044 = vrot.lane.b32.xlu0 %v10492_v20, %s8789_s16  ;;  %v10908_v51 = vpop.permute.xlu1 %7924  ;;  %v10981_v45 = vpop.permute.xlu0 %7959 }
 0x9dd   : > { %14354 = vst [vmem:[#allocation69_spill] sm:$0xff] %v10908_v51 }
 0x9e0   : > { %8144 = vrot.lane.b32.xlu1 %v10859_v48, %s8789_s16  ;;  %8054 = vrot.lane.b32.xlu0 %v10470_v40, %s14291_s18  ;;  %v10918_v40 = vpop.permute.xlu1 %7934 }
 0x9e4   : > { %8149 = vrot.lane.b32.xlu1 %v10859_v48, %s14283_s29  ;;  %8064 = vrot.lane.b32.xlu0 %v8058_v63, %s8789_s16  ;;  %v10924_v27 = vpop.permute.xlu1 %7944 }
 0x9e5   : > { %14355 = vst [vmem:[#allocation70_spill] sm:$0xff] %v10924_v27 }
 0x9e8   : > { %8154 = vrot.lane.b32.xlu1 %v10498_v13, %s8793_s20  ;;  %8074 = vrot.lane.b32.xlu0 %v8058_v63, %s14284_s30 }
 0x9ec   : > { %8164 = vrot.lane.b32.xlu1 %v10866_v19, %s8789_s16  ;;  %8079 = vrot.lane.b32.xlu0 %v8058_v63, %s14285_s22 }
 0x9f0   : > { %8174 = vrot.lane.b32.xlu1 %v10859_v48, %s14284_s30  ;;  %8099 = vrot.lane.b32.xlu0 %v10476_v4, %s14291_s18  ;;  %v10936_v4 = vpop.permute.xlu1 %7954 }
 0x9f1   : > { %14356 = vst [vmem:[#allocation71_spill] sm:$0xff] %v10936_v4 }
 0x9f4   : > { %8179 = vrot.lane.b32.xlu1 %v10859_v48, %s14285_s22  ;;  %8109 = vrot.lane.b32.xlu0 %v10411_v61, %s14291_s18  ;;  %v8761_v61 = vld [vmem:[%s13899_s8 + $0x4] ss:$20 sps:$4 sm:$0xff]   ;;  %v10947_v33 = vpop.permute.xlu1 %7964 }
 0x9f5   : > { %4104 = vmatprep.mubr.bf16.mxu0 %v8761_v61  ;;  %14358 = vst [vmem:[#allocation73_spill] sm:$0xff] %v10947_v33  ;;  %v14440_v33 = vld [vmem:[#allocation16_spill] sm:$0xff] }
 0x9f8   : > { %8184 = vrot.lane.b32.xlu1 %v10866_v19, %s8793_s20  ;;  %8119 = vrot.lane.b32.xlu0 %v10494_v31, %s8793_s20  ;;  %v10959_v7 = vpop.permute.xlu1 %7974 }
 0x9f9   : > { %14359 = vst [vmem:[#allocation74_spill] sm:$0xff] %v10959_v7 }
 0x9fc   : > { %8194 = vrot.lane.b32.xlu1 %v10492_v20, %s14284_s30  ;;  %8134 = vrot.lane.b32.xlu0 %v10498_v13, %s8789_s16 }
 0xa00   : > { %8204 = vrot.lane.b32.xlu1 %v10494_v31, %s8808_s23  ;;  %8159 = vrot.lane.b32.xlu0 %v8058_v63, %s14291_s18  ;;  %v10967_v63 = vpop.permute.xlu1 %7979 }
 0xa01   : > { %14361 = vst [vmem:[#allocation76_spill] sm:$0xff] %v10967_v63 }
 0xa04   : > { %8214 = vrot.lane.b32.xlu1 %v10498_v13, %s14283_s29  ;;  %8169 = vrot.lane.b32.xlu0 %v10492_v20, %s14283_s29  ;;  %v10979_v37 = vpop.permute.xlu1 %7989 }
 0xa05   : > { %14363 = vst [vmem:[#allocation78_spill] sm:$0xff] %v10979_v37 }
 0xa08   : > { %8229 = vrot.lane.b32.xlu1 %v10498_v13, %s14284_s30  ;;  %8189 = vrot.lane.b32.xlu0 %v10492_v20, %s8808_s23  ;;  %v10987_v24 = vpop.permute.xlu1 %7994 }
 0xa09   : > { %14364 = vst [vmem:[#allocation79_spill] sm:$0xff] %v10987_v24 }
 0xa0c   : > { %8239 = vrot.lane.b32.xlu1 %v10866_v19, %s8808_s23  ;;  %8199 = vrot.lane.b32.xlu0 %v10494_v31, %s14283_s29  ;;  %v11002_v38 = vpop.permute.xlu1 %8049 }
 0xa0d   : > { %14366 = vst [vmem:[#allocation81_spill] sm:$0xff] %v11002_v38  ;;  %v7696_v38 = vunpack.i.l.bf16 %v10646_v29 }
 0xa10   : > { %8249 = vrot.lane.b32.xlu1 %v10492_v20, %s14285_s22  ;;  %8209 = vrot.lane.b32.xlu0 %v10494_v31, %s14284_s30 }
 0xa14   : > { %8259 = vrot.lane.b32.xlu1 %v10494_v31, %s14285_s22  ;;  %8219 = vrot.lane.b32.xlu0 %v10859_v48, %s14291_s18  ;;  %v10991_v48 = vpop.permute.xlu0 %7969 }
 0xa15   : > { %14365 = vst [vmem:[#allocation80_spill] sm:$0xff] %v10991_v48  ;;  %v14381_v48 = vunpack.i.h.bf16 %v10649_v52 }
 0xa18   : > { %8269 = vrot.lane.b32.xlu1 %v10494_v31, %s8788_s15  ;;  %8224 = vrot.lane.b32.xlu0 %v10498_v13, %s8808_s23  ;;  %v11004_v61 = vpop.permute.xlu0 %7984 }
 0xa19   : > { %14367 = vst [vmem:[#allocation82_spill] sm:$0xff] %v11004_v61 }
 0xa1c   : > { %8279 = vrot.lane.b32.xlu1 %v10494_v31, %s14291_s18  ;;  %8234 = vrot.lane.b32.xlu0 %v10866_v19, %s14283_s29  ;;  %v2823_v31 = vld [vmem:[%s13900_s9] sm:$0xff] }
 0xa20   : > { %8289 = vrot.lane.b32.xlu1 %v10866_v19, %s14285_s22  ;;  %8244 = vrot.lane.b32.xlu0 %v10866_v19, %s14284_s30 }
 0xa24   : > { %8299 = vrot.lane.b32.xlu1 %v10866_v19, %s8788_s15  ;;  %8254 = vrot.lane.b32.xlu0 %v10492_v20, %s8788_s15 }
 0xa28   : > { %3997 = vperm.xlu1 %7082, %v2823_v31   ;;  %8264 = vrot.lane.b32.xlu0 %v10492_v20, %s14291_s18  ;;  %v7692_v31 = vunpack.i.h.bf16 %v10622_v22  ;;  %v7676_v20 = vunpack.i.l.bf16 %v10632_v3  ;;  %v7697_v22 = vunpack.i.h.bf16 %v10646_v29 }
 0xa2a   : > { %v11008_v35 = vpop.permute.xlu1 %8059  ;;  %v11010_v36 = vpop.permute.xlu0 %7999  ;;  %v11068_v61 = vsel %vm571_vm8, %v7697_v22, %v7721_v49  ;;  %v11096_v52 = vsel %vm1823_vm1, %v7701_v32, %v7676_v20  ;;  %v11109_v22 = vsel %vm571_vm8, %v7696_v38, %v7671_v56 }
 0xa2b   : > { %14368 = vst [vmem:[#allocation83_spill] sm:$0xff] %v11010_v36  ;;  %v14373_v37 = vunpack.i.h.bf16 %v11010_v36  ;;  %v14374_v62 = vunpack.i.l.bf16 %v11010_v36  ;;  %14377 = vst [vmem:[#allocation88_spill] sm:$0xff] %v11068_v61 }
 0xa2c   : > { %8274 = vrot.lane.b32.xlu0 %v10498_v13, %s14285_s22  ;;  %14385 = vst [vmem:[#allocation93_spill] sm:$0xff] %v11096_v52  ;;  %14390 = vst [vmem:[#allocation96_spill] sm:$0xff] %v11109_v22  ;;  %v14423_v52 = vld [vmem:[#allocation57_spill] sm:$0xff] }
 0xa2d   : > { %v3044_v44 = vsel %vm511_vm12, %v14374_v62, %v14373_v37  ;;  %v11080_v62 = vsel %vm571_vm8, %v7721_v49, %v14381_v48  ;;  %v11083_v37 = vsel %vm601_vm6, %v7692_v31, %v7716_v57  ;;  %v14386_v49 = vunpack.i.h.bf16 %v10632_v3 }
 0xa2e   : > { %v11017_v46 = vpop.permute.xlu1 %8069  ;;  %v11019_v58 = vpop.permute.xlu0 %8004  ;;  %14382 = vst [vmem:[#allocation91_spill] sm:$0xff] %v11080_v62  ;;  %v14388_v31 = vunpack.i.h.bf16 %v10655_v42  ;;  %v7772_v3 = vunpack.i.h.bf16 %v10687_v0 }
 0xa2f   : > { %14369 = vst [vmem:[#allocation84_spill] sm:$0xff] %v11017_v46  ;;  %14370 = vst [vmem:[#allocation85_spill] sm:$0xff] %v11019_v58  ;;  %v7726_v46 = vunpack.i.l.bf16 %v10655_v42  ;;  %v11101_v48 = vsel %vm1823_vm1, %v7676_v20, %v14386_v49  ;;  %v14392_v32 = vunpack.i.l.bf16 %v11019_v58 }
 0xa30   : > { %8284 = vrot.lane.b32.xlu0 %v10498_v13, %s8788_s15  ;;  %14387 = vst [vmem:[#allocation94_spill] sm:$0xff] %v11101_v48 }
 0xa32   : > { %v11041_v16 = vpop.permute.xlu1 %8084  ;;  %v11045_v53 = vpop.permute.xlu0 %8009 }
 0xa33   : > { %14371 = vst [vmem:[#allocation86_spill] sm:$0xff] %v11041_v16  ;;  %14372 = vst [vmem:[#allocation87_spill] sm:$0xff] %v11045_v53  ;;  %v14375_v63 = vunpack.i.h.bf16 %v11041_v16  ;;  %v14376_v29 = vunpack.i.l.bf16 %v11041_v16 }
 0xa34   : > { %8294 = vrot.lane.b32.xlu0 %v10498_v13, %s14291_s18  ;;  %v14379_v13 = vunpack.i.h.bf16 %v10624_v59 }
 0xa35   : > { %v3047_v43 = vsel %vm511_vm12, %v14376_v29, %v14375_v63  ;;  %v11106_v29 = vsel %vm1823_vm1, %v7726_v46, %v14388_v31  ;;  %v7746_v31 = vunpack.i.l.bf16 %v10671_v8 }
 0xa36   : > { %v11070_v24 = vpop.permute.xlu1 %8089  ;;  %v3888_v15 = vpack.c.bf16 %v3047_v43, %v3044_v44  ;;  %v11075_v7 = vsel %vm571_vm8, %v7671_v56, %v14379_v13  ;;  %v11085_v63 = vpop.permute.xlu0 %8014  ;;  %v14384_v44 = vunpack.i.h.bf16 %v10651_v5  ;;  %v7702_v13 = vunpack.i.h.bf16 %v10630_v47  ;;  %14389 = vst [vmem:[#allocation95_spill] sm:$0xff] %v11106_v29 }
 0xa37   : > { %14378 = vst [vmem:[#allocation89_spill] sm:$0xff] %v11070_v24  ;;  %14380 = vst [vmem:[#allocation90_spill] sm:$0xff] %v11075_v7  ;;  %v14391_v47 = vunpack.i.h.bf16 %v11019_v58  ;;  %v14393_v20 = vunpack.i.h.bf16 %v11070_v24  ;;  %v7801_v5 = vunpack.i.l.bf16 %v10681_v6 }
 0xa38   : > { %14383 = vst [vmem:[#allocation92_spill] sm:$0xff] %v11085_v63  ;;  %v11092_v43 = vsel %vm601_vm6, %v7716_v57, %v14384_v44  ;;  %4078 = vmatprep.subr.bf16.mxu0 %v3888_v15  ;;  %8304 = vrot.lane.b32.xlu0 %v10866_v19, %s14291_s18  ;;  %v14394_v57 = vunpack.i.l.bf16 %v11070_v24  ;;  %v7771_v19 = vunpack.i.l.bf16 %v10687_v0  ;;  %v14401_v0 = vunpack.i.h.bf16 %v10667_v10 }
 0xa39   : > { %v3492_v15 = vsel %vm1709_vm0, %v14392_v32, %v14391_v47  ;;  %v11134_v32 = vsel %vm1823_vm1, %v7702_v13, %v7726_v46  ;;  %v7751_v47 = vunpack.i.l.bf16 %v10675_v41  ;;  %v7796_v13 = vunpack.i.l.bf16 %v10677_v23 }
 0xa3a   : > { %v3495_v44 = vsel %vm1709_vm0, %v14394_v57, %v14393_v20  ;;  %v11125_v56 = vpop.permute.xlu1 %8094  ;;  %14396 = vst [vmem:[#allocation98_spill] sm:$0xff] %v11134_v32  ;;  %v7781_v20 = vunpack.i.l.bf16 %v10665_v1  ;;  %v11138_v49 = vpop.permute.xlu0 %8019  ;;  %v7777_v46 = vunpack.i.h.bf16 %v10691_v9  ;;  %v14404_v57 = vunpack.i.h.bf16 %v10677_v23 }
 0xa3b   : > { %14395 = vst [vmem:[#allocation97_spill] sm:$0xff] %v11125_v56  ;;  %v3936_v38 = vpack.c.bf16 %v3495_v44, %v3492_v15  ;;  %14397 = vst [vmem:[#allocation99_spill] sm:$0xff] %v11138_v49  ;;  %v7741_v44 = vunpack.i.l.bf16 %v10667_v10  ;;  %v7806_v15 = vunpack.i.l.bf16 %v10685_v39  ;;  %v7776_v56 = vunpack.i.l.bf16 %v10691_v9 }
 0xa3c   : > { %v11165_v29 = vsel %vm1823_vm1, %v7781_v20, %v7751_v47  ;;  %v11182_v42 = vsel %vm601_vm6, %v7796_v13, %v14404_v57  ;;  %v14405_v20 = vunpack.i.h.bf16 %v10681_v6  ;;  %v14409_v23 = vunpack.i.h.bf16 %v10685_v39  ;;  %v14416_v39 = vld [vmem:[#allocation55_spill] sm:$0xff] }
 0xa3d   : > { %4131 = vmatprep.subr.bf16.mxu1 %v3936_v38  ;;  %v7782_v38 = vunpack.i.h.bf16 %v10665_v1  ;;  %14400 = vst [vmem:[#allocation102_spill] sm:$0xff] %v11165_v29  ;;  %v14402_v1 = vunpack.i.h.bf16 %v10671_v8  ;;  %v11196_v9 = vsel %vm601_vm6, %v7771_v19, %v7741_v44  ;;  %v11206_v6 = vsel %vm571_vm8, %v7777_v46, %v7801_v5  ;;  %v14415_v19 = vld [vmem:[#allocation54_spill] sm:$0xff] }
 0xa3e   : > { %v11154_v59 = vpop.permute.xlu1 %8104  ;;  %v11159_v48 = vpop.permute.xlu0 %8024  ;;  %v11187_v10 = vsel %vm571_vm8, %v7801_v5, %v14405_v20  ;;  %v11203_v57 = vsel %vm1823_vm1, %v7806_v15, %v14409_v23  ;;  %14411 = vst [vmem:[#allocation108_spill] sm:$0xff] %v11206_v6  ;;  %v11209_v20 = vsel %vm571_vm8, %v7776_v56, %v7746_v31  ;;  %v7831_v23 = vunpack.i.l.bf16 %v14416_v39  ;;  %v14429_v29 = vld [vmem:[#allocation58_spill] sm:$0xff] }
 0xa3f   : > { %14398 = vst [vmem:[#allocation100_spill] sm:$0xff] %v11154_v59  ;;  %14399 = vst [vmem:[#allocation101_spill] sm:$0xff] %v11159_v48  ;;  %v11170_v59 = vsel %vm601_vm6, %v7741_v44, %v14401_v0  ;;  %v11175_v22 = vsel %vm571_vm8, %v7746_v31, %v14402_v1  ;;  %v11190_v0 = vsel %vm1823_vm1, %v7782_v38, %v7806_v15  ;;  %v14413_v38 = vld [vmem:[#allocation52_spill] sm:$0xff]  ;;  %v14418_v31 = vunpack.i.h.bf16 %v10675_v41 }
 0xa40   : > { %14403 = vst [vmem:[#allocation103_spill] sm:$0xff] %v11175_v22  ;;  %14406 = vst [vmem:[#allocation104_spill] sm:$0xff] %v11187_v10  ;;  %v11193_v1 = vsel %vm601_vm6, %v7772_v3, %v7796_v13  ;;  %v7821_v3 = vunpack.i.l.bf16 %v14413_v38  ;;  %v14417_v15 = vld [vmem:[#allocation56_spill] sm:$0xff]  ;;  %v14420_v8 = vunpack.i.h.bf16 %v10679_v18  ;;  %v14421_v44 = vunpack.i.l.bf16 %v10679_v18 }
 0xa41   : > { %14407 = vst [vmem:[#allocation105_spill] sm:$0xff] %v11190_v0  ;;  %14410 = vst [vmem:[#allocation107_spill] sm:$0xff] %v11203_v57  ;;  %v7851_v5 = vunpack.i.l.bf16 %v14417_v15  ;;  %v11225_v46 = vsel %vm1823_vm1, %v7751_v47, %v14418_v31  ;;  %v7836_v32 = vunpack.i.l.bf16 %v14423_v52  ;;  %v14425_v41 = vunpack.i.h.bf16 %v14413_v38 }
 0xa42   : > { %v11198_v48 = vpop.permute.xlu1 %8114  ;;  %14412 = vst [vmem:[#allocation109_spill] sm:$0xff] %v11209_v20  ;;  %v11213_v13 = vpop.permute.xlu0 %8029  ;;  %14419 = vst [vmem:[#allocation54_spill] sm:$0xff] %v11225_v46  ;;  %v14426_v56 = vunpack.i.h.bf16 %v14415_v19  ;;  %v14427_v47 = vunpack.i.l.bf16 %v14415_v19  ;;  %v7862_v0 = vunpack.i.h.bf16 %v14429_v29  ;;  %v14430_v57 = vunpack.i.l.bf16 %v11010_v36 }
 0xa43   : > { %14408 = vst [vmem:[#allocation106_spill] sm:$0xff] %v11198_v48  ;;  %14414 = vst [vmem:[#allocation110_spill] sm:$0xff] %v11213_v13  ;;  %v11232_v48 = vsel %vm1540_vm10, %v14421_v44, %v14420_v8  ;;  %v3398_v49 = vsel %vm601_vm6, %v7821_v3, %v14425_v41  ;;  %v14428_v41 = vunpack.i.h.bf16 %v14416_v39  ;;  %v7852_v8 = vunpack.i.h.bf16 %v14417_v15 }
 0xa44   : > { %14422 = vst [vmem:[#allocation56_spill] sm:$0xff] %v11232_v48  ;;  %v11256_v46 = vsel %vm571_vm8, %v14427_v47, %v14426_v56  ;;  %v3397_v44 = vsel %vm601_vm6, %v7851_v5, %v7821_v3  ;;  %v14431_v47 = vunpack.i.l.bf16 %v11041_v16  ;;  %v14433_v15 = vunpack.i.h.bf16 %v14423_v52  ;;  %v14439_v52 = vld [vmem:[#allocation22_spill] sm:$0xff] }
 0xa45   : > { %v11261_v38 = vsel %vm1823_vm1, %v7831_v23, %v14428_v41  ;;  %v7861_v5 = vunpack.i.l.bf16 %v14429_v29  ;;  %v7886_v20 = vunpack.i.l.bf16 %v10756_v50  ;;  %v14435_v29 = vunpack.i.h.bf16 %v10785_v34 }
 0xa46   : > { %v11236_v61 = vpop.permute.xlu1 %8124  ;;  %v8035_v31 = vpop.permute.xlu0 %8034  ;;  %v11279_v3 = vsel %vm1540_vm10, %v7836_v32, %v14433_v15  ;;  %v7896_v15 = vunpack.i.l.bf16 %v10809_v17  ;;  %v14441_v48 = vpack.c.bf16 %v14439_v52, %v14440_v33 }
 0xa47   : > { %14424 = vst [vmem:[#allocation111_spill] sm:$0xff] %v11236_v61  ;;  %v8037_v7 = vunpack.i.h.bf16 %v8035_v31  ;;  %v8036_v62 = vunpack.i.l.bf16 %v8035_v31  ;;  %v7881_v31 = vunpack.i.l.bf16 %v10785_v34 }
 0xa49   : > { %v3043_v56 = vsel %vm511_vm12, %v8036_v62, %v14430_v57  ;;  %v3046_v39 = vsel %vm511_vm12, %v8037_v7, %v14431_v47  ;;  %v7891_v57 = vunpack.i.l.bf16 %v10777_v28  ;;  %v3401_v13 = vsel %vm601_vm6, %v7881_v31, %v14435_v29 }
 0xa4a   : > { %v11274_v41 = vpop.permute.xlu1 %8129  ;;  %v8040_v36 = vpop.permute.xlu0 %8039  ;;  %v3887_v6 = vpack.c.bf16 %v3046_v39, %v3043_v56  ;;  %v14436_v39 = vld [vmem:[#allocation61_spill] sm:$0xff]  ;;  %v14437_v62 = vunpack.i.l.bf16 %v11019_v58  ;;  %v3933_v33 = vpack.c.bf16 %v3401_v13, %v3398_v49  ;;  %v14448_v49 = vunpack.i.h.bf16 %v10809_v17 }
 0xa4b   : > { %14432 = vst [vmem:[#allocation58_spill] sm:$0xff] %v11274_v41  ;;  %v8042_v7 = vunpack.i.h.bf16 %v8040_v36  ;;  %v8041_v47 = vunpack.i.l.bf16 %v8040_v36  ;;  %v14434_v41 = vld [vmem:[#allocation59_spill] sm:$0xff]  ;;  %v7866_v56 = vunpack.i.l.bf16 %v14436_v39  ;;  %v14438_v36 = vunpack.i.l.bf16 %v11070_v24 }
 0xa4c   : > { %v7857_v16 = vunpack.i.h.bf16 %v14434_v41  ;;  %4079 = vmatpush1.bf16.msra.mxu0 %v3887_v6  ;;  %v7856_v63 = vunpack.i.l.bf16 %v14434_v41  ;;  %v7867_v29 = vunpack.i.h.bf16 %v14436_v39  ;;  %v11318_v52 = vsel %vm1823_vm1, %v7862_v0, %v7891_v57 }
 0xa4d   : > { %v3491_v22 = vsel %vm1709_vm0, %v8041_v47, %v14437_v62  ;;  %v3494_v10 = vsel %vm1709_vm0, %v8042_v7, %v14438_v36  ;;  %4080 = vmatprep.subr.bf16.mxu0 %v14441_v48  ;;  %v14442_v62 = vunpack.i.h.bf16 %v10756_v50  ;;  %v3400_v7 = vsel %vm601_vm6, %v7852_v8, %v7881_v31  ;;  %v14450_v31 = vld [vmem:[#allocation25_spill] sm:$0xff] }
 0xa4e   : > { %v11303_v6 = vpop.permute.xlu1 %8139  ;;  %v11307_v41 = vsel %vm571_vm8, %v7857_v16, %v7886_v20  ;;  %v11309_v34 = vpop.permute.xlu0 %8044  ;;  %v3935_v58 = vpack.c.bf16 %v3494_v10, %v3491_v22  ;;  %v14443_v48 = vunpack.i.h.bf16 %v10777_v28  ;;  %v11326_v16 = vsel %vm1823_vm1, %v7861_v5, %v7831_v23  ;;  %v14444_v22 = vld [vmem:[#allocation11_spill] sm:$0xff]  ;;  %v14451_v5 = vld [vmem:[#allocation24_spill] sm:$0xff] }
 0xa4f   : > { %v11314_v47 = vsel %vm571_vm8, %v7886_v20, %v14442_v62  ;;  %v11329_v10 = vsel %vm1540_vm10, %v7867_v29, %v7896_v15  ;;  %v14445_v20 = vld [vmem:[#allocation15_spill] sm:$0xff]  ;;  %v11339_v0 = vsel %vm1540_vm10, %v7896_v15, %v14448_v49  ;;  %v14449_v13 = vunpack.i.l.bf16 %v14415_v19  ;;  %v14521_v28 = vld [vmem:[#allocation96_spill] sm:$0xff] }
 0xa50   : > { %v11323_v39 = vsel %vm1823_vm1, %v7891_v57, %v14443_v48  ;;  %v14446_v36 = vpack.c.bf16 %v14444_v22, %v14445_v20  ;;  %4132 = vmatpush1.bf16.msra.mxu1 %v3935_v58  ;;  %v11347_v8 = vsel %vm1540_vm10, %v7866_v56, %v7836_v32  ;;  %v14452_v57 = vpack.c.bf16 %v14450_v31, %v14451_v5  ;;  %v14454_v31 = vld [vmem:[#allocation17_spill] sm:$0xff]  ;;  %v14455_v5 = vld [vmem:[#allocation12_spill] sm:$0xff]  ;;  %v14458_v32 = vld [vmem:[#allocation14_spill] sm:$0xff] }
 0xa51   : > { %v11344_v23 = vsel %vm571_vm8, %v7856_v63, %v14449_v13  ;;  %4133 = vmatprep.subr.bf16.mxu1 %v3933_v33  ;;  %v3932_v48 = vpack.c.bf16 %v3400_v7, %v3397_v44  ;;  %v7932_v22 = vunpack.i.h.bf16 %v10951_v21  ;;  %v7931_v33 = vunpack.i.l.bf16 %v10951_v21 }
 0xa52   : > { %6608 = vmatpush1.bf16.msk.msra.mxu0 %vm9910_vm14, %v14446_v36  ;;  %v11352_v29 = vpop.permute.xlu1 %8144  ;;  %v11356_v15 = vpop.permute.xlu0 %8054  ;;  %v7937_v44 = vunpack.i.h.bf16 %v10918_v40  ;;  %v7936_v7 = vunpack.i.l.bf16 %v10918_v40  ;;  %v8126_v13 = vunpack.i.l.bf16 %v11236_v61  ;;  %v7911_v20 = vunpack.i.l.bf16 %v10903_v30  ;;  %v14457_v40 = vld [vmem:[#allocation28_spill] sm:$0xff] }
 0xa53   : > { %4082 = vmatprep.subr.bf16.mxu0 %v14452_v57  ;;  %14453 = vst [vmem:[#allocation59_spill] sm:$0xff] %v11352_v29  ;;  %v14456_v57 = vpack.c.bf16 %v14454_v31, %v14455_v5  ;;  %v7926_v56 = vunpack.i.l.bf16 %v10908_v51  ;;  %v14459_v63 = vpack.c.bf16 %v14457_v40, %v14458_v32  ;;  %v14460_v58 = vpack.c.bf16 %v11182_v42, %v11170_v59 }
 0xa54   : > { %4134 = vmatpush1.bf16.msra.mxu1 %v3932_v48  ;;  %v7921_v5 = vunpack.i.l.bf16 %v10941_v11  ;;  %v8011_v36 = vunpack.i.l.bf16 %v11045_v53  ;;  %v11398_v49 = vsel %vm1540_vm10, %v7932_v22, %v7911_v20  ;;  %v14466_v22 = vld [vmem:[#allocation13_spill] sm:$0xff]  ;;  %v7946_v42 = vunpack.i.l.bf16 %v10924_v27 }
 0xa55   : > { %4135 = vmatprep.subr.bf16.mxu1 %v14460_v58  ;;  %v7941_v58 = vunpack.i.l.bf16 %v10961_v54  ;;  %v11411_v40 = vsel %vm14464_vm7, %v7937_v44, %v7926_v56  ;;  %v8062_v44 = vunpack.i.h.bf16 %v11008_v35  ;;  %v14470_v48 = vpack.c.bf16 %v10850_v25, %v10842_v14  ;;  %vm14515_vm7 = vmmov %vm14463_vm2 }
 0xa56   : > { %6613 = vmatpush1.bf16.msk.msra.mxu0 %vm9910_vm14, %v14456_v57  ;;  %v11389_v31 = vpop.permute.xlu1 %8149  ;;  %v11395_v21 = vpop.permute.xlu0 %8064  ;;  %v11408_v32 = vsel %vm14463_vm2, %v7936_v7, %v7921_v5  ;;  %v14465_v57 = vld [vmem:[#allocation18_spill] sm:$0xff]  ;;  %v7956_v14 = vunpack.i.l.bf16 %v10936_v4  ;;  %v7962_v25 = vunpack.i.h.bf16 %v10981_v45 }
 0xa57   : > { %4084 = vmatprep.subr.bf16.mxu0 %v14459_v63  ;;  %14461 = vst [vmem:[#allocation61_spill] sm:$0xff] %v11389_v31  ;;  %v14462_v63 = vunpack.i.l.bf16 %v10679_v18  ;;  %v14467_v24 = vpack.c.bf16 %v14465_v57, %v14466_v22  ;;  %v14471_v57 = vpack.c.bf16 %v11092_v43, %v11027_v2  ;;  %v14473_v22 = vunpack.i.h.bf16 %v10908_v51  ;;  %v14507_v51 = vld [vmem:[#allocation91_spill] sm:$0xff] }
 0xa58   : > { %v14475_v43 = vunpack.i.h.bf16 %v11045_v53 }
 0xa59   : > { %v11403_v59 = vsel %vm1540_vm10, %v7931_v33, %v14462_v63  ;;  %v14468_v33 = vpack.c.bf16 %v11193_v1, %v11196_v9  ;;  %v14469_v63 = vunpack.i.h.bf16 %v11236_v61  ;;  %v14472_v9 = vunpack.i.h.bf16 %v10903_v30 }
 0xa5a   : > { %6618 = vmatpush1.bf16.msk.msra.mxu0 %vm9910_vm14, %v14467_v24  ;;  %v11433_v24 = vpop.permute.xlu1 %8154  ;;  %v11448_v2 = vpop.permute.xlu0 %8074  ;;  %v14476_v61 = vpack.c.bf16 %v10829_v55, %v10827_v26  ;;  %v14482_v55 = vpack.c.bf16 %v11314_v47, %v11256_v46  ;;  %v11495_v47 = vsel %vm1540_vm10, %v7962_v25, %v7946_v42  ;;  %v14496_v25 = vpack.c.bf16 %v11323_v39, %v11261_v38 }
 0xa5b   : > { %4136 = vmatpush1.bf16.msra.mxu1 %v14468_v33  ;;  %v3383_v7 = vsel %vm601_vm6, %v8126_v13, %v14469_v63  ;;  %4086 = vmatprep.subr.bf16.mxu0 %v14470_v48  ;;  %v11438_v1 = vsel %vm1540_vm10, %v7911_v20, %v14472_v9  ;;  %v11443_v33 = vsel %vm14474_vm13, %v7926_v56, %v14473_v22  ;;  %v7961_v20 = vunpack.i.l.bf16 %v10981_v45  ;;  %v14478_v45 = vld [vmem:[#allocation56_spill] sm:$0xff]  ;;  %vm14527_vm13 = vmmov %vm14463_vm2 }
 0xa5c   : > { %4137 = vmatprep.subr.bf16.mxu1 %v14471_v57  ;;  %v3380_v48 = vsel %vm601_vm6, %v8011_v36, %v14475_v43  ;;  %v8061_v57 = vunpack.i.l.bf16 %v11008_v35  ;;  %v3382_v9 = vsel %vm601_vm6, %v8062_v44, %v8126_v13  ;;  %v7951_v63 = vunpack.i.l.bf16 %v10971_v12  ;;  %v14481_v44 = vld [vmem:[#allocation73_spill] sm:$0xff]  ;;  %v14494_v35 = vld [vmem:[#allocation103_spill] sm:$0xff] }
 0xa5d   : > { %v3924_v56 = vpack.c.bf16 %v3383_v7, %v3380_v48  ;;  %v14477_v43 = vpack.c.bf16 %v11083_v37, %v11030_v60  ;;  %v14479_v13 = vunpack.i.h.bf16 %v10941_v11  ;;  %v7967_v48 = vunpack.i.h.bf16 %v14481_v44  ;;  %v14508_v11 = vld [vmem:[#allocation90_spill] sm:$0xff] }
 0xa5e   : > { %6623 = vmatpush1.bf16.msk.msra.mxu0 %vm9910_vm14, %v14476_v61  ;;  %v7966_v22 = vunpack.i.l.bf16 %v14481_v44  ;;  %v3379_v26 = vsel %vm601_vm6, %v8061_v57, %v8011_v36  ;;  %v11479_v60 = vpop.permute.xlu1 %8164  ;;  %v11483_v37 = vpop.permute.xlu0 %8079  ;;  %v14484_v36 = vunpack.i.h.bf16 %v10961_v54  ;;  %v11498_v57 = vsel %vm1540_vm10, %v7961_v20, %v7941_v58  ;;  %vm14487_vm14 = vmmov %vm14463_vm2  ;;  %v14493_v61 = vld [vmem:[#allocation104_spill] sm:$0xff]  ;;  %v14519_v54 = vld [vmem:[#allocation78_spill] sm:$0xff] }
 0xa5f   : > { %4138 = vmatpush1.bf16.msra.mxu1 %v14477_v43  ;;  %v11471_v7 = vsel %vm14480_vm4, %v7921_v5, %v14479_v13  ;;  %4088 = vmatprep.subr.bf16.mxu0 %v14482_v55  ;;  %14483 = vst [vmem:[#allocation22_spill] sm:$0xff] %v11479_v60  ;;  %v3923_v62 = vpack.c.bf16 %v3382_v9, %v3379_v26  ;;  %v14486_v13 = vunpack.i.h.bf16 %v10936_v4  ;;  %v14488_v26 = vld [vmem:[#allocation80_spill] sm:$0xff]  ;;  %v8146_v43 = vunpack.i.l.bf16 %v11352_v29  ;;  %v14524_v60 = vld [vmem:[#allocation102_spill] sm:$0xff]  ;;  %vm14535_vm4 = vmmov %vm14463_vm2 }
 0xa60   : > { %4139 = vmatprep.subr.bf16.mxu1 %v3924_v56  ;;  %v11492_v46 = vsel %vm1540_vm10, %v7941_v58, %v14484_v36  ;;  %v14485_v56 = vunpack.i.h.bf16 %v10924_v27  ;;  %v7971_v36 = vunpack.i.l.bf16 %v14488_v26  ;;  %v14489_v58 = vpack.c.bf16 %v11307_v41, %v11344_v23  ;;  %v14497_v23 = vld [vmem:[#allocation92_spill] sm:$0xff] }
 0xa61   : > { %v11508_v44 = vsel %vm14487_vm14, %v7956_v14, %v14486_v13  ;;  %v11521_v20 = vsel %vm14491_vm3, %v7967_v48, %v7956_v14  ;;  %v14495_v55 = vpack.c.bf16 %v14493_v61, %v14494_v35  ;;  %v8067_v61 = vunpack.i.h.bf16 %v11395_v21  ;;  %v14500_v48 = vld [vmem:[#allocation108_spill] sm:$0xff]  ;;  %v14501_v13 = vld [vmem:[#allocation109_spill] sm:$0xff] }
 0xa62   : > { %v11503_v9 = vsel %vm1540_vm10, %v7946_v42, %v14485_v56  ;;  %4089 = vmatpush2.bf16.msra.mxu0 %v14489_v58  ;;  %v11518_v42 = vsel %vm14490_vm11, %v7966_v22, %v7951_v63  ;;  %v14492_v56 = vld [vmem:[#allocation74_spill] sm:$0xff]  ;;  %v11531_v41 = vpop.permute.xlu1 %8174  ;;  %v11535_v14 = vpop.permute.xlu0 %8099  ;;  %v14498_v58 = vunpack.i.h.bf16 %v10971_v12  ;;  %v8066_v38 = vunpack.i.l.bf16 %v11395_v21 }
 0xa63   : > { %4140 = vmatpush1.bf16.msra.mxu1 %v3923_v62  ;;  %v7976_v5 = vunpack.i.l.bf16 %v14492_v56  ;;  %4090 = vmatprep.subr.bf16.mxu0 %v14495_v55  ;;  %v8016_v62 = vunpack.i.l.bf16 %v14497_v23  ;;  %v8151_v22 = vunpack.i.l.bf16 %v11389_v31  ;;  %v14502_v53 = vpack.c.bf16 %v14500_v48, %v14501_v13  ;;  %v14505_v55 = vld [vmem:[#allocation82_spill] sm:$0xff] }
 0xa64   : > { %4141 = vmatprep.subr.bf16.mxu1 %v14496_v25  ;;  %v11542_v35 = vsel %vm14499_vm9, %v7951_v63, %v14498_v58  ;;  %v14503_v63 = vpack.c.bf16 %v11318_v52, %v11326_v16  ;;  %v14504_v21 = vunpack.i.h.bf16 %v11352_v29  ;;  %v14506_v25 = vld [vmem:[#allocation76_spill] sm:$0xff]  ;;  %v14509_v27 = vpack.c.bf16 %v14507_v51, %v14508_v11  ;;  %v14511_v13 = vld [vmem:[#allocation54_spill] sm:$0xff]  ;;  %v14516_v51 = vld [vmem:[#allocation99_spill] sm:$0xff] }
 0xa65   : > { %v7981_v12 = vunpack.i.l.bf16 %v14506_v25  ;;  %v14513_v16 = vunpack.i.h.bf16 %v14488_v26  ;;  %v7986_v4 = vunpack.i.l.bf16 %v14505_v55  ;;  %v8021_v11 = vunpack.i.l.bf16 %v14516_v51  ;;  %v14523_v29 = vld [vmem:[#allocation105_spill] sm:$0xff] }
 0xa66   : > { %4091 = vmatpush2.bf16.msra.mxu0 %v14502_v53  ;;  %v3271_v58 = vsel %vm571_vm8, %v8146_v43, %v14504_v21  ;;  %v14510_v53 = vld [vmem:[#allocation107_spill] sm:$0xff]  ;;  %v11571_v52 = vpop.permute.xlu1 %8179  ;;  %v14514_v21 = vunpack.i.h.bf16 %v14492_v56  ;;  %v3267_v26 = vsel %vm571_vm8, %v8066_v38, %v8016_v62  ;;  %v3270_v56 = vsel %vm571_vm8, %v8067_v61, %v8146_v43 }
 0xa67   : > { %4142 = vmatpush2.bf16.msra.mxu1 %v14503_v63  ;;  %4092 = vmatprep.subr.bf16.mxu0 %v14509_v27  ;;  %v14512_v48 = vpack.c.bf16 %v14510_v53, %v14511_v13  ;;  %v11576_v63 = vsel %vm14463_vm2, %v7971_v36, %v14513_v16  ;;  %v11586_v53 = vpop.permute.xlu0 %8109  ;;  %v14518_v13 = vunpack.i.h.bf16 %v14497_v23  ;;  %v7982_v16 = vunpack.i.h.bf16 %v14506_v25  ;;  %v14520_v27 = vld [vmem:[#allocation88_spill] sm:$0xff]  ;;  %v14528_v61 = vld [vmem:[#allocation79_spill] sm:$0xff] }
 0xa68   : > { %v11581_v39 = vsel %vm14515_vm7, %v7976_v5, %v14514_v21  ;;  %14517 = vst [vmem:[#allocation16_spill] sm:$0xff] %v11586_v53  ;;  %v7991_v18 = vunpack.i.l.bf16 %v14519_v54  ;;  %v14522_v17 = vpack.c.bf16 %v14520_v27, %v14521_v28  ;;  %v14525_v23 = vpack.c.bf16 %v14523_v29, %v14524_v60  ;;  %v14529_v28 = vld [vmem:[#allocation84_spill] sm:$0xff]  ;;  %v14530_v27 = vld [vmem:[#allocation95_spill] sm:$0xff]  ;;  %v14531_v29 = vld [vmem:[#allocation94_spill] sm:$0xff] }
 0xa69   : > { %4143 = vmatprep.subr.bf16.mxu1 %v14512_v48  ;;  %v3268_v48 = vsel %vm571_vm8, %v8016_v62, %v14518_v13  ;;  %v14526_v13 = vunpack.i.h.bf16 %v11389_v31  ;;  %v11608_v62 = vsel %vm14527_vm13, %v7981_v12, %v7971_v36  ;;  %v7997_v38 = vunpack.i.h.bf16 %v14528_v61  ;;  %vm14578_vm13 = vmmov %vm14535_vm4 }
 0xa6a   : > { %v3912_v21 = vpack.c.bf16 %v3271_v58, %v3268_v48  ;;  %4093 = vmatpush2.bf16.msra.mxu0 %v14522_v17  ;;  %v7996_v58 = vunpack.i.l.bf16 %v14528_v61  ;;  %v8072_v17 = vunpack.i.h.bf16 %v14529_v28  ;;  %v14532_v60 = vpack.c.bf16 %v14530_v27, %v14531_v29  ;;  %v14536_v27 = vld [vmem:[#allocation83_spill] sm:$0xff] }
 0xa6b   : > { %4144 = vmatpush2.bf16.msra.mxu1 %v14525_v23  ;;  %v3719_v25 = vsel %vm1823_vm1, %v8151_v22, %v14526_v13  ;;  %v8185_v23 = vpop.permute.xlu1 %8184  ;;  %v11616_v48 = vpop.permute.xlu0 %8119  ;;  %v3911_v43 = vpack.c.bf16 %v3270_v56, %v3267_v26  ;;  %v14534_v12 = vunpack.i.h.bf16 %v14516_v51  ;;  %v11622_v31 = vsel %vm14535_vm4, %v7982_v16, %v7976_v5  ;;  %v14540_v56 = vld [vmem:[#allocation98_spill] sm:$0xff] }
 0xa6c   : > { %4094 = vmatprep.subr.bf16.mxu0 %v3912_v21  ;;  %4145 = vmatprep.subr.bf16.mxu1 %v14532_v60  ;;  %14533 = vst [vmem:[#allocation11_spill] sm:$0xff] %v11616_v48  ;;  %v8187_v13 = vunpack.i.h.bf16 %v8185_v23  ;;  %v8186_v30 = vunpack.i.l.bf16 %v8185_v23  ;;  %v8071_v61 = vunpack.i.l.bf16 %v14529_v28  ;;  %v3718_v21 = vsel %vm1823_vm1, %v8072_v17, %v8151_v22  ;;  %v14538_v48 = vld [vmem:[#allocation86_spill] sm:$0xff]  ;;  %v14559_v17 = vld [vmem:[#allocation51_spill] sm:$0xff] }
 0xa6d   : > { %v3716_v36 = vsel %vm1823_vm1, %v8021_v11, %v14534_v12  ;;  %v14537_v29 = vunpack.i.h.bf16 %v14536_v27  ;;  %v14539_v23 = vunpack.i.h.bf16 %v14538_v48  ;;  %v14541_v12 = vld [vmem:[#allocation93_spill] sm:$0xff]  ;;  %v14543_v16 = vunpack.i.h.bf16 %v14519_v54 }
 0xa6e   : > { %v3960_v53 = vpack.c.bf16 %v3719_v25, %v3716_v36  ;;  %4095 = vmatpush2.bf16.msra.mxu0 %v3911_v43  ;;  %v14542_v5 = vpack.c.bf16 %v14540_v56, %v14541_v12  ;;  %vm14544_vm14 = vcmask 228352   ;;  %v14546_v28 = vpack.c.bf16 %v11339_v0, %v11279_v3 }
 0xa6f   : > { %v11629_v60 = vsel %vm511_vm12, %v14537_v29, %v8186_v30  ;;  %v11634_v26 = vsel %vm511_vm12, %v14539_v23, %v8187_v13  ;;  %v11642_v22 = vsel %vm14544_vm14, %v7991_v18, %v14543_v16  ;;  %vm14545_vm11 = vmmov %vm14544_vm14  ;;  %v3715_v30 = vsel %vm1823_vm1, %v8071_v61, %v8021_v11  ;;  %v11651_v43 = vpop.permute.xlu1 %8194  ;;  %v14548_v13 = vld [vmem:[#allocation97_spill] sm:$0xff]  ;;  %v11660_v27 = vpop.permute.xlu0 %8134  ;;  %v14549_v61 = vld [vmem:[#allocation100_spill] sm:$0xff] }
 0xa70   : > { %4146 = vmatpush2.bf16.msra.mxu1 %v14542_v5  ;;  %v11645_v25 = vsel %vm14545_vm11, %v7996_v58, %v7986_v4  ;;  %4096 = vmatprep.subr.bf16.mxu0 %v14546_v28  ;;  %vm14547_vm3 = vmmov %vm14545_vm11  ;;  %v8097_v36 = vunpack.i.h.bf16 %v14548_v13  ;;  %v8096_v58 = vunpack.i.l.bf16 %v14548_v13  ;;  %v3959_v11 = vpack.c.bf16 %v3718_v21, %v3715_v30  ;;  %v14554_v16 = vld [vmem:[#allocation101_spill] sm:$0xff]  ;;  %v14563_v30 = vld [vmem:[#allocation44_spill] sm:$0xff] }
 0xa71   : > { %4147 = vmatprep.subr.bf16.mxu1 %v3960_v53  ;;  %v11656_v48 = vsel %vm14547_vm3, %v7997_v38, %v7991_v18  ;;  %v8107_v29 = vunpack.i.h.bf16 %v14549_v61  ;;  %v8106_v3 = vunpack.i.l.bf16 %v14549_v61  ;;  %v14550_v53 = vunpack.i.h.bf16 %v14505_v55  ;;  %vm14551_vm9 = vmmov %vm14547_vm3  ;;  %v14552_v18 = vld [vmem:[#allocation81_spill] sm:$0xff] }
 0xa72   : > { %v14102_v38 = vunpack.i.h.bf16 %v14552_v18  ;;  %v14104_v56 = vunpack.i.l.bf16 %v14552_v18  ;;  %v14103_v12 = vunpack.i.h.bf16 %v11531_v41  ;;  %v8176_v21 = vunpack.i.l.bf16 %v11531_v41  ;;  %vm14569_vm2 = vmmov %vm14547_vm3 }
 0xa73   : > { %v11669_v23 = vsel %vm14551_vm9, %v7986_v4, %v14550_v53  ;;  %v14553_v5 = vpack.c.bf16 %v11329_v10, %v11347_v8  ;;  %v8026_v28 = vunpack.i.l.bf16 %v14554_v16  ;;  %v14555_v4 = vpack.c.bf16 %v11438_v1, %v14478_v45  ;;  %v11686_v61 = vpop.permute.xlu1 %8204  ;;  %v14557_v8 = vld [vmem:[#allocation62_spill] sm:$0xff]  ;;  %vm14575_vm7 = vmmov %vm14569_vm2 }
 0xa74   : > { %4148 = vmatpush2.bf16.msra.mxu1 %v3959_v11  ;;  %v14556_v13 = vpack.c.bf16 %v11443_v33, %v11471_v7  ;;  %v14558_v11 = vunpack.i.h.bf16 %v14557_v8  ;;  %v14560_v1 = vunpack.i.h.bf16 %v14559_v17  ;;  %v14561_v33 = vld [vmem:[#allocation106_spill] sm:$0xff]  ;;  %v14564_v8 = vunpack.i.h.bf16 %v14563_v30  ;;  %vm14585_vm14 = vmmov %vm14535_vm4 }
 0xa75   : > { %4097 = vmatpush2.bf16.msra.mxu0 %v14553_v5  ;;  %v14562_v53 = vld [vmem:[#allocation110_spill] sm:$0xff]  ;;  %v14567_v7 = vpack.c.bf16 %v11398_v49, %v11403_v59  ;;  %v14568_v0 = vpack.c.bf16 %v11411_v40, %v11408_v32  ;;  %v8077_v30 = vunpack.i.h.bf16 %v11448_v2  ;;  %v8076_v49 = vunpack.i.l.bf16 %v11448_v2  ;;  %vm14588_vm11 = vmmov %vm14569_vm2 }
 0xa76   : > { %4098 = vmatprep.subr.bf16.mxu0 %v14555_v4  ;;  %4149 = vmatprep.subr.bf16.mxu1 %v14556_v13  ;;  %v11695_v5 = vsel %vm511_vm12, %v14558_v11, %v8097_v36  ;;  %v11700_v45 = vsel %vm511_vm12, %v14560_v1, %v8096_v58  ;;  %v11704_v13 = vpop.permute.xlu0 %8159  ;;  %v8031_v10 = vunpack.i.l.bf16 %v14562_v53  ;;  %v11711_v36 = vsel %vm571_vm8, %v14564_v8, %v8106_v3  ;;  %v14565_v11 = vld [vmem:[#allocation49_spill] sm:$0xff]  ;;  %vm14589_vm3 = vmmov %vm14535_vm4 }
 0xa77   : > { %v14566_v17 = vunpack.i.h.bf16 %v14565_v11  ;;  %v8181_v4 = vunpack.i.l.bf16 %v11571_v52  ;;  %v3159_v3 = vsel %vm1540_vm10, %v8176_v21, %v14103_v12  ;;  %v14570_v59 = vpack.c.bf16 %v11503_v9, %v11492_v46  ;;  %v11744_v40 = vpop.permute.xlu1 %8214  ;;  %vm14591_vm9 = vmmov %vm14569_vm2 }
 0xa78   : > { %4150 = vmatpush2.bf16.msra.mxu1 %v14568_v0  ;;  %v14571_v32 = vpack.c.bf16 %v11508_v44, %v11542_v35  ;;  %v14572_v0 = vunpack.i.h.bf16 %v14554_v16  ;;  %v8047_v11 = vunpack.i.h.bf16 %v11309_v34  ;;  %v8046_v2 = vunpack.i.l.bf16 %v11309_v34 }
 0xa79   : > { %v11716_v58 = vsel %vm571_vm8, %v14566_v17, %v8107_v29  ;;  %4099 = vmatpush2.bf16.msra.mxu0 %v14567_v7  ;;  %v11734_v29 = vsel %vm14569_vm2, %v14104_v56, %v14102_v38  ;;  %v14573_v46 = vunpack.i.h.bf16 %v14561_v33  ;;  %v14574_v9 = vunpack.i.l.bf16 %v14561_v33 }
 0xa7a   : > { %4100 = vmatprep.subr.bf16.mxu0 %v14570_v59  ;;  %4151 = vmatprep.subr.bf16.mxu1 %v14571_v32  ;;  %v3156_v7 = vsel %vm1540_vm10, %v8026_v28, %v14572_v0  ;;  %v11753_v17 = vpop.permute.xlu0 %8169  ;;  %v3919_v35 = vpack.c.bf16 %v11716_v58, %v11711_v36  ;;  %v14576_v59 = vld [vmem:[#allocation58_spill] sm:$0xff]  ;;  %v3158_v0 = vsel %vm1540_vm10, %v8077_v30, %v8176_v21  ;;  %v14577_v12 = vunpack.i.h.bf16 %v14562_v53 }
 0xa7b   : > { %v11760_v44 = vsel %vm14575_vm7, %v14574_v9, %v14573_v46  ;;  %v8132_v32 = vunpack.i.h.bf16 %v14576_v59  ;;  %v3900_v38 = vpack.c.bf16 %v3159_v3, %v3156_v7  ;;  %v8131_v8 = vunpack.i.l.bf16 %v14576_v59  ;;  %vm14600_vm7 = vmmov %vm14569_vm2 }
 0xa7c   : > { %v3604_v34 = vsel %vm14578_vm13, %v8031_v10, %v14577_v12  ;;  %v8057_v56 = vunpack.i.h.bf16 %v11356_v15  ;;  %v8056_v1 = vunpack.i.l.bf16 %v11356_v15  ;;  %v14579_v46 = vpack.c.bf16 %v11495_v47, %v11498_v57  ;;  %v11788_v57 = vpop.permute.xlu1 %8229  ;;  %vm14602_vm13 = vmmov %vm14569_vm2 }
 0xa7d   : > { %v14580_v9 = vpack.c.bf16 %v11521_v20, %v11518_v42  ;;  %v14581_v21 = vunpack.i.h.bf16 %v11571_v52  ;;  %v3155_v12 = vsel %vm1540_vm10, %v8076_v49, %v8026_v28  ;;  %v8082_v30 = vunpack.i.h.bf16 %v11483_v37 }
 0xa7e   : > { %4101 = vmatpush2.bf16.msra.mxu0 %v14579_v46  ;;  %v8081_v7 = vunpack.i.l.bf16 %v11483_v37  ;;  %v8101_v59 = vunpack.i.l.bf16 %v11535_v14  ;;  %v14582_v47 = vpack.c.bf16 %v11581_v39, %v11576_v63  ;;  %v8102_v42 = vunpack.i.h.bf16 %v11535_v14  ;;  %v11791_v20 = vpop.permute.xlu0 %8189  ;;  %v11805_v14 = vld [vmem:[%s13899_s8] ss:$20 sps:$4 sm:$0xff]  }
 0xa7f   : > { %4152 = vmatpush2.bf16.msra.mxu1 %v14580_v9  ;;  %v3607_v3 = vsel %vm14535_vm4, %v8181_v4, %v14581_v21  ;;  %4102 = vmatprep.subr.bf16.mxu0 %v3900_v38  ;;  %v3899_v46 = vpack.c.bf16 %v3158_v0, %v3155_v12  ;;  %v14583_v28 = vunpack.i.h.bf16 %v14415_v19  ;;  %v14584_v37 = vunpack.i.h.bf16 %v10756_v50  ;;  %v14586_v0 = vld [vmem:[#allocation16_spill] sm:$0xff]  ;;  %vm14603_vm4 = vmmov %vm14569_vm2 }
 0xa80   : > { %4153 = vmatprep.subr.bf16.mxu1 %v14582_v47  ;;  %v8142_v38 = vunpack.i.h.bf16 %v11303_v6  ;;  %v8157_v39 = vunpack.i.h.bf16 %v11433_v24  ;;  %v3606_v63 = vsel %vm14585_vm14, %v8082_v30, %v8181_v4  ;;  %v3948_v21 = vpack.c.bf16 %v3607_v3, %v3604_v34  ;;  %v11824_v47 = vpop.permute.xlu1 %8239  ;;  %vm14604_vm14 = vmmov %vm14569_vm2 }
 0xa81   : > { %v3287_v49 = vsel %vm571_vm8, %v14583_v28, %v8046_v2  ;;  %v3290_v9 = vsel %vm571_vm8, %v14584_v37, %v8047_v11  ;;  %v8156_v19 = vunpack.i.l.bf16 %v11433_v24  ;;  %v8112_v2 = vunpack.i.h.bf16 %v14586_v0 }
 0xa82   : > { %v8111_v50 = vunpack.i.l.bf16 %v14586_v0  ;;  %4103 = vmatpush2.bf16.msra.mxu0 %v3899_v46  ;;  %v14587_v11 = vpack.c.bf16 %v11622_v31, %v11608_v62  ;;  %v3843_v4 = vsel %vm14588_vm11, %v8056_v1, %v8057_v56  ;;  %v8141_v34 = vunpack.i.l.bf16 %v11303_v6  ;;  %v14593_v46 = vld [vmem:[#allocation11_spill] sm:$0xff]  ;;  %vm14626_vm11 = vmmov %vm14569_vm2 }
 0xa83   : > { %v3603_v3 = vsel %vm14589_vm3, %v8081_v7, %v8031_v10  ;;  %v14590_v12 = vunpack.i.l.bf16 %v14552_v18  ;;  %v14592_v30 = vpack.c.bf16 %v11642_v22, %v11669_v23  ;;  %v3922_v31 = vpack.c.bf16 %v3290_v9, %v3287_v49  ;;  %v11834_v7 = vld [vmem:[%s13899_s8 + $0x2c] ss:$20 sps:$4 sm:$0xff]   ;;  %v11848_v9 = vld [vmem:[%s13899_s8 + $0x8] ss:$20 sps:$4 sm:$0xff]   ;;  %vm14627_vm3 = vmmov %vm14569_vm2 }
 0xa84   : > { %4154 = vmatpush2.bf16.msra.mxu1 %v14587_v11  ;;  %v3842_v62 = vsel %vm14569_vm2, %v8102_v42, %v8056_v1  ;;  %v8122_v28 = vunpack.i.h.bf16 %v14593_v46  ;;  %v8121_v37 = vunpack.i.l.bf16 %v14593_v46  ;;  %v11829_v11 = vpop.permute.xlu0 %8199  ;;  %v3947_v10 = vpack.c.bf16 %v3606_v63, %v3603_v3  ;;  %v14596_v63 = vld [vmem:[#allocation31_spill] sm:$0xff] }
 0xa85   : > { %v3839_v24 = vsel %vm14591_vm9, %v8101_v59, %v14590_v12  ;;  %4155 = vmatprep.subr.bf16.mxu1 %v3948_v21  ;;  %4186 = vmatprep.subr.bf16.mxu0 %v14592_v30  ;;  %v14594_v59 = vld [vmem:[#allocation35_spill] sm:$0xff]  ;;  %v8137_v49 = vunpack.i.h.bf16 %v11660_v27  ;;  %v8136_v1 = vunpack.i.l.bf16 %v11660_v27  ;;  %v3978_v42 = vpack.c.bf16 %v3843_v4, %v11734_v29  ;;  %vm14628_vm9 = vmmov %vm14569_vm2 }
 0xa86   : > { %v14595_v22 = vunpack.i.h.bf16 %v14594_v59  ;;  %4105 = vmatmul.mubr.bf16.vlgmr.msra.gmra.mxu0 %v11805_v14  ;;  %v14597_v21 = vunpack.i.h.bf16 %v14596_v63  ;;  %v14599_v27 = vpack.c.bf16 %v11656_v48, %v11645_v25  ;;  %v3834_v29 = vsel %vm14600_vm7, %v8111_v50, %v8112_v2 }
 0xa87   : > { %v14601_v4 = vunpack.i.l.bf16 %v14561_v33  ;;  %v3977_v59 = vpack.c.bf16 %v3842_v62, %v3839_v24  ;;  %v11872_v25 = vsel %vm14603_vm4, %v8141_v34, %v8142_v38  ;;  %v3833_v48 = vsel %vm14604_vm14, %v8131_v8, %v8111_v50  ;;  %4114 = vmatprep.mubr.bf16.mxu0 %v11834_v7  ;;  %v11888_v62 = vld [vmem:[%s13899_s8 + $0x34] ss:$20 sps:$4 sm:$0xff]   ;;  %v11890_v8 = vpop.permute.xlu1 %8249 }
 0xa88   : > { %v11839_v23 = vsel %vm511_vm12, %v14595_v22, %v8157_v39  ;;  %v11853_v3 = vsel %vm511_vm12, %v14597_v21, %v8156_v19  ;;  %v14598_v39 = vld [vmem:[#allocation22_spill] sm:$0xff]  ;;  %4156 = vmatpush2.bf16.msra.mxu1 %v3947_v10  ;;  %4187 = vmatpush1.bf16.msra.mxu0 %v14599_v27  ;;  %v8196_v19 = vunpack.i.l.bf16 %v11651_v43  ;;  %v14605_v10 = vld [vmem:[#allocation43_spill] sm:$0xff]  ;;  %v14607_v21 = vld [vmem:[#allocation40_spill] sm:$0xff]  ;;  %v11882_v24 = vpop.permute.xlu0 %8209  ;;  %v3975_v50 = vpack.c.bf16 %v11760_v44, %v3834_v29 }
 0xa89   : > { %v8167_v12 = vunpack.i.h.bf16 %v14598_v39  ;;  %v8166_v30 = vunpack.i.l.bf16 %v14598_v39  ;;  %v3836_v46 = vsel %vm14602_vm13, %v8132_v32, %v14601_v4  ;;  %4188 = vmatprep.subr.bf16.mxu0 %v3978_v42  ;;  %6711 = vmatprep.subr.bf16.mxu1 %v3922_v31  ;;  %v14606_v22 = vunpack.i.h.bf16 %v14605_v10  ;;  %v14611_v27 = vld [vmem:[#allocation37_spill] sm:$0xff] }
 0xa8a   : > { %v14608_v32 = vunpack.i.h.bf16 %v14607_v21  ;;  %v8197_v31 = vunpack.i.h.bf16 %v11651_v43  ;;  %v14609_v43 = vld [vmem:[#allocation33_spill] sm:$0xff]  ;;  %v14612_v4 = vunpack.i.h.bf16 %v14611_v27  ;;  %v8172_v21 = vunpack.i.h.bf16 %v11753_v17 }
 0xa8b   : > { %v3060_v63 = vsel %vm511_vm12, %v14606_v22, %v8122_v28  ;;  %4158 = vmatmul.mubr.bf16.vlgmr.msra.gmra.mxu1 %v11848_v9  ;;  %v11897_v28 = vld [vmem:[%s13899_s8 + $0x28] ss:$20 sps:$4 sm:$0xff]   ;;  %v3892_v22 = vpack.c.bf16 %v11839_v23, %v11853_v3  ;;  %v8171_v44 = vunpack.i.l.bf16 %v11753_v17  ;;  %v14613_v29 = vpack.c.bf16 %v11695_v5, %v11700_v45 }
 0xa8c   : > { %v3057_v39 = vsel %vm511_vm12, %v14608_v32, %v8121_v37  ;;  %v14610_v37 = vunpack.i.h.bf16 %v14609_v43  ;;  %v3278_v10 = vsel %vm571_vm8, %v14612_v4, %v8137_v49  ;;  %4189 = vmatpush1.bf16.msra.mxu0 %v3977_v59  ;;  %v14614_v32 = vld [vmem:[#allocation92_spill] sm:$0xff]  ;;  %v8161_v4 = vunpack.i.l.bf16 %v11704_v13  ;;  %v14618_v3 = vld [vmem:[#allocation57_spill] sm:$0xff]  ;;  %4167 = vmatprep.mubr.bf16.mxu1 %v11888_v62 }
 0xa8d   : > { %6712 = vmatpush3.bf16.msra.mxu1 %v14613_v29  ;;  %v14615_v43 = vunpack.i.h.bf16 %v14614_v32  ;;  %4190 = vmatprep.subr.bf16.mxu0 %v3975_v50  ;;  %v3974_v17 = vpack.c.bf16 %v3836_v46, %v3833_v48  ;;  %v3895_v23 = vpack.c.bf16 %v3060_v63, %v3057_v39  ;;  %v14619_v5 = vunpack.i.h.bf16 %v14618_v3  ;;  %v11929_v29 = vpop.permute.xlu0 %8219  ;;  %v14620_v32 = vld [vmem:[#allocation65_spill] sm:$0xff]  ;;  %v11945_v46 = vld [vmem:[%s13899_s8 + $0x30] ss:$20 sps:$4 sm:$0xff]   ;;  %v14622_v63 = vld [vmem:[#allocation55_spill] sm:$0xff] }
 0xa8e   : > { %v3275_v42 = vsel %vm571_vm8, %v14610_v37, %v8136_v1  ;;  %v14616_v37 = vld [vmem:[#allocation59_spill] sm:$0xff]  ;;  %6713 = vmatprep.subr.bf16.mxu1 %v3919_v35  ;;  %v8207_v59 = vunpack.i.h.bf16 %v11686_v61  ;;  %v14621_v50 = vunpack.i.h.bf16 %v14620_v32  ;;  %v8192_v36 = vunpack.i.h.bf16 %v11791_v20  ;;  %4115 = vmatmul.mubr.bf16.gmra.mxu0 %v11897_v28 }
 0xa8f   : > { %v3269_v1 = vsel %vm571_vm8, %v14615_v43, %v8166_v30  ;;  %v14617_v27 = vunpack.i.h.bf16 %v14616_v37  ;;  %v11925_v45 = vsel %vm1540_vm10, %v14619_v5, %v8196_v19  ;;  %v8162_v30 = vunpack.i.h.bf16 %v11704_v13  ;;  %v11960_v5 = vpop.permute.xlu1 %8259 }
 0xa90   : > { %v11934_v43 = vsel %vm1540_vm10, %v14621_v50, %v8197_v31  ;;  %v8191_v58 = vunpack.i.l.bf16 %v11791_v20  ;;  %v8222_v35 = vunpack.i.h.bf16 %v11929_v29  ;;  %v8221_v13 = vunpack.i.l.bf16 %v11929_v29  ;;  %4191 = vmatpush1.bf16.msra.mxu0 %v3974_v17  ;;  %v14624_v31 = vld [vmem:[#allocation63_spill] sm:$0xff]  ;;  %v14632_v50 = vld [vmem:[#allocation53_spill] sm:$0xff] }
 0xa91   : > { %v3272_v49 = vsel %vm571_vm8, %v14617_v27, %v8167_v12  ;;  %v3916_v12 = vpack.c.bf16 %v3278_v10, %v3275_v42  ;;  %v8202_v19 = vunpack.i.h.bf16 %v11829_v11  ;;  %v8201_v48 = vunpack.i.l.bf16 %v11829_v11  ;;  %6714 = vmatpush3.bf16.msra.mxu1 %v3895_v23  ;;  %v8225_v23 = vpop.permute.xlu0 %8224 }
 0xa92   : > { %v14623_v39 = vunpack.i.h.bf16 %v14622_v63  ;;  %v14625_v42 = vunpack.i.h.bf16 %v14624_v31  ;;  %v3827_v37 = vsel %vm14626_vm11, %v8161_v4, %v8141_v34  ;;  %v8206_v27 = vunpack.i.l.bf16 %v11686_v61  ;;  %v14630_v61 = vld [vmem:[#allocation60_spill] sm:$0xff]  ;;  %vm14694_vm11 = vmmov %vm14627_vm3 }
 0xa93   : > { %v3830_v3 = vsel %vm14627_vm3, %v8162_v30, %v8221_v13  ;;  %6715 = vmatprep.subr.bf16.mxu1 %v3916_v12  ;;  %v3831_v11 = vsel %vm14628_vm9, %v8221_v13, %v8222_v35  ;;  %v8217_v17 = vunpack.i.h.bf16 %v11744_v40  ;;  %v14631_v32 = vunpack.i.h.bf16 %v14630_v61  ;;  %4168 = vmatmul.mubr.bf16.gmra.mxu1 %v11945_v46  ;;  %vm14704_vm9 = vmmov %vm14627_vm3 }
 0xa94   : > { %v3735_v20 = vsel %vm1823_vm1, %v14623_v39, %v8171_v44  ;;  %v3738_v10 = vsel %vm1823_vm1, %v14625_v42, %v8172_v21  ;;  %v14629_v44 = vmov 0   ;;  %v8216_v21 = vunpack.i.l.bf16 %v11744_v40 }
 0xa95   : > { %4210 = vmatprep.mubr.bf16.mxu0 %v14629_v44  ;;  %v3972_v34 = vpack.c.bf16 %v3831_v11, %v11872_v25  ;;  %v3971_v4 = vpack.c.bf16 %v3830_v3, %v3827_v37  ;;  %v3514_v30 = vsel %vm1709_vm0, %v14631_v32, %v8192_v36  ;;  %v14633_v12 = vunpack.i.h.bf16 %v14632_v50  ;;  %6716 = vmatpush3.bf16.msra.mxu1 %v3892_v22  ;;  %v11981_v25 = vld [vmem:[%s13899_s8 + $0x10] ss:$20 sps:$4 sm:$0xff]   ;;  %v14640_v11 = vld [vmem:[#allocation41_spill] sm:$0xff]  ;;  %v8235_v32 = vpop.permute.xlu0 %8234 }
 0xa96   : > { %v3913_v39 = vpack.c.bf16 %v3272_v49, %v3269_v1  ;;  %v3970_v13 = vpack.c.bf16 %v3738_v10, %v3735_v20  ;;  %v8212_v31 = vunpack.i.h.bf16 %v11882_v24  ;;  %v8211_v40 = vunpack.i.l.bf16 %v11882_v24  ;;  %v14634_v36 = vld [vmem:[#allocation46_spill] sm:$0xff]  ;;  %v14638_v20 = vld [vmem:[#allocation45_spill] sm:$0xff] }
 0xa97   : > { %v3511_v63 = vsel %vm1709_vm0, %v14633_v12, %v8191_v58  ;;  %4192 = vmatprep.subr.bf16.mxu0 %v3972_v34  ;;  %v14635_v42 = vunpack.i.h.bf16 %v14634_v36  ;;  %v14636_v58 = vld [vmem:[#allocation50_spill] sm:$0xff]  ;;  %v14639_v10 = vunpack.i.h.bf16 %v14638_v20  ;;  %v8231_v24 = vunpack.i.l.bf16 %v11788_v57  ;;  %v14644_v12 = vld [vmem:[#allocation39_spill] sm:$0xff] }
 0xa98   : > { %v14637_v1 = vunpack.i.h.bf16 %v14636_v58  ;;  %4193 = vmatpush1.bf16.msra.mxu0 %v3971_v4  ;;  %6717 = vmatprep.subr.bf16.mxu1 %v3913_v39  ;;  %vm4065_vm2 = vcmask 523264   ;;  %v3910_v22 = vpack.c.bf16 %v11934_v43, %v11925_v45  ;;  %v14641_v34 = vunpack.i.h.bf16 %v14640_v11  ;;  %v8776_v45 = vld [vmem:[%s13899_s8 + $0x4] ss:$20 sps:$4 sm:$0xff]  }
 0xa99   : > { %v3729_v37 = vsel %vm1823_vm1, %v14635_v42, %v8201_v48  ;;  %v3508_v3 = vsel %vm1709_vm0, %v14639_v10, %v8207_v59  ;;  %v8232_v61 = vunpack.i.h.bf16 %v11788_v57  ;;  %6739 = vmatprep.subr.bf16.mxu0 %v3970_v13  ;;  %v14645_v36 = vunpack.i.h.bf16 %v14644_v12  ;;  %4263 = vmatprep.mubr.bf16.mxu1 %v8776_v45  ;;  %v14649_v10 = vld [vmem:[#allocation68_spill] sm:$0xff] }
 0xa9a   : > { %v3732_v49 = vsel %vm1823_vm1, %v14637_v1, %v8202_v19  ;;  %v3505_v48 = vsel %vm1709_vm0, %v14641_v34, %v8206_v27  ;;  %v14642_v19 = vld [vmem:[#allocation34_spill] sm:$0xff]  ;;  %v8227_v43 = vunpack.i.h.bf16 %v8225_v23  ;;  %v8226_v39 = vunpack.i.l.bf16 %v8225_v23  ;;  %v12008_v27 = vpop.permute.xlu1 %8269 }
 0xa9b   : > { %v14643_v50 = vunpack.i.h.bf16 %v14642_v19  ;;  %v3726_v4 = vsel %vm1823_vm1, %v14645_v36, %v8217_v17  ;;  %v3946_v57 = vpack.c.bf16 %v3514_v30, %v3511_v63  ;;  %v3967_v42 = vpack.c.bf16 %v3732_v49, %v3729_v37  ;;  %6624 = vmatmul.mubr.msk.bf16.vlgmr.msra.gmra.mxu0 %vm4065_vm2, %v11981_v25  ;;  %v14647_v17 = vld [vmem:[#allocation48_spill] sm:$0xff]  ;;  %v14651_v37 = vld [vmem:[#allocation75_spill] sm:$0xff]  ;;  %v8245_v19 = vpop.permute.xlu0 %8244 }
 0xa9c   : > { %v8237_v13 = vunpack.i.h.bf16 %v8235_v32  ;;  %v8236_v58 = vunpack.i.l.bf16 %v8235_v32  ;;  %v14648_v1 = vunpack.i.h.bf16 %v14647_v17  ;;  %v14650_v11 = vunpack.i.h.bf16 %v14649_v10  ;;  %4220 = vmatprep.mubr.bf16.mxu0 %v14629_v44 }
 0xa9d   : > { %v3723_v59 = vsel %vm1823_vm1, %v14643_v50, %v8216_v21  ;;  %v14646_v21 = vpack.c.bf16 %v11634_v26, %v11629_v60  ;;  %6740 = vmatpush3.bf16.msra.mxu0 %v3946_v57  ;;  %v3943_v30 = vpack.c.bf16 %v3508_v3, %v3505_v48  ;;  %v14652_v49 = vunpack.i.h.bf16 %v14651_v37  ;;  %v14659_v57 = vld [vmem:[#allocation23_spill] sm:$0xff] }
 0xa9e   : > { %v3169_v20 = vsel %vm1540_vm10, %v14648_v1, %v8211_v40  ;;  %v3172_v23 = vsel %vm1540_vm10, %v14650_v11, %v8212_v31  ;;  %v3964_v63 = vpack.c.bf16 %v3726_v4, %v3723_v59  ;;  %v8242_v32 = vunpack.i.h.bf16 %v11824_v47  ;;  %6741 = vmatprep.subr.bf16.mxu0 %v3967_v42  ;;  %v14653_v40 = vld [vmem:[#allocation70_spill] sm:$0xff]  ;;  %v14657_v59 = vld [vmem:[#allocation32_spill] sm:$0xff]  ;;  %v14660_v42 = vld [vmem:[#allocation21_spill] sm:$0xff] }
 0xa9f   : > { %6718 = vmatpush3.bf16.msra.mxu1 %v14646_v21  ;;  %v3163_v34 = vsel %vm1540_vm10, %v14652_v49, %v8231_v24  ;;  %v8241_v60 = vunpack.i.l.bf16 %v11824_v47  ;;  %v8252_v26 = vunpack.i.h.bf16 %v11890_v8  ;;  %v14654_v50 = vunpack.i.h.bf16 %v14653_v40  ;;  %v14665_v11 = vld [vmem:[#allocation85_spill] sm:$0xff]  ;;  %v8255_v40 = vpop.permute.xlu0 %8254 }
 0xaa0   : > { %6719 = vmatprep.subr.bf16.mxu1 %v3910_v22  ;;  %v8251_v3 = vunpack.i.l.bf16 %v11890_v8  ;;  %v14655_v22 = vld [vmem:[#allocation36_spill] sm:$0xff]  ;;  %v14658_v12 = vunpack.i.h.bf16 %v14657_v59  ;;  %v3907_v36 = vpack.c.bf16 %v3172_v23, %v3169_v20  ;;  %v8247_v4 = vunpack.i.h.bf16 %v8245_v19  ;;  %v14663_v8 = vld [vmem:[#allocation61_spill] sm:$0xff] }
 0xaa1   : > { %v3166_v31 = vsel %vm1540_vm10, %v14654_v50, %v8232_v61  ;;  %v14656_v48 = vunpack.i.h.bf16 %v14655_v22  ;;  %v8246_v45 = vunpack.i.l.bf16 %v8245_v19  ;;  %v14661_v21 = vpack.c.bf16 %v14659_v57, %v14660_v42  ;;  %6742 = vmatpush3.bf16.msra.mxu0 %v3943_v30  ;;  %v14675_v57 = vld [vmem:[#allocation26_spill] sm:$0xff] }
 0xaa2   : > { %v3499_v47 = vsel %vm1709_vm0, %v14658_v12, %v8226_v39  ;;  %v14662_v61 = vunpack.i.h.bf16 %v14516_v51  ;;  %v14664_v1 = vunpack.i.h.bf16 %v14663_v8  ;;  %v8280_v39 = vpop.permute.xlu1 %8279  ;;  %v3904_v20 = vpack.c.bf16 %v3166_v31, %v3163_v34  ;;  %v14667_v51 = vld [vmem:[#allocation89_spill] sm:$0xff]  ;;  %6743 = vmatprep.subr.bf16.mxu0 %v3964_v63 }
 0xaa3   : > { %v3502_v24 = vsel %vm1709_vm0, %v14656_v48, %v8227_v43  ;;  %6720 = vmatpush3.bf16.msra.mxu1 %v14661_v21  ;;  %v12050_v43 = vld [vmem:[%s13899_s8 + $0x38] ss:$20 sps:$4 sm:$0xff]   ;;  %v14666_v23 = vunpack.i.h.bf16 %v14665_v11  ;;  %v14668_v49 = vunpack.i.h.bf16 %v14667_v51  ;;  %v8262_v19 = vunpack.i.h.bf16 %v11960_v5  ;;  %v14669_v48 = vld [vmem:[#allocation72_spill] sm:$0xff]  ;;  %v8265_v21 = vpop.permute.xlu0 %8264 }
 0xaa4   : > { %v3717_v17 = vsel %vm1823_vm1, %v14662_v61, %v8236_v58  ;;  %v3720_v10 = vsel %vm1823_vm1, %v14664_v1, %v8237_v13  ;;  %6721 = vmatprep.subr.bf16.mxu1 %v3907_v36  ;;  %v8261_v13 = vunpack.i.l.bf16 %v11960_v5  ;;  %v3940_v50 = vpack.c.bf16 %v3502_v24, %v3499_v47  ;;  %v14672_v34 = vld [vmem:[#allocation69_spill] sm:$0xff]  ;;  %6625 = vmatmul.mubr.msk.bf16.gmra.mxu0 %vm4065_vm2, %v12050_v43 }
 0xaa5   : > { %v3493_v37 = vsel %vm1709_vm0, %v14666_v23, %v8241_v60  ;;  %v3496_v58 = vsel %vm1709_vm0, %v14668_v49, %v8242_v32  ;;  %v3961_v22 = vpack.c.bf16 %v3720_v10, %v3717_v17  ;;  %v14670_v59 = vunpack.i.h.bf16 %v14669_v48  ;;  %v14676_v32 = vld [vmem:[#allocation27_spill] sm:$0xff]  ;;  %v14680_v17 = vld [vmem:[#allocation77_spill] sm:$0xff] }
 0xaa6   : > { %vm14671_vm7 = vcmask 261120   ;;  %v14673_v31 = vunpack.i.h.bf16 %v14672_v34  ;;  %v8257_v12 = vunpack.i.h.bf16 %v8255_v40  ;;  %v8256_v36 = vunpack.i.l.bf16 %v8255_v40  ;;  %6744 = vmatpush3.bf16.msra.mxu0 %v3940_v50  ;;  %v14688_v50 = vld [vmem:[#allocation52_spill] sm:$0xff]  ;;  %v14690_v48 = vld [vmem:[#allocation29_spill] sm:$0xff] }
 0xaa7   : > { %v3623_v30 = vsel %vm14671_vm7, %v14670_v59, %v8251_v3  ;;  %vm14674_vm13 = vmmov %vm14671_vm7  ;;  %v14677_v42 = vpack.c.bf16 %v14675_v57, %v14676_v32  ;;  %v14678_v5 = vunpack.i.h.bf16 %v14554_v16  ;;  %v14679_v24 = vunpack.i.h.bf16 %v11531_v41  ;;  %6745 = vmatprep.subr.bf16.mxu0 %v3961_v22  ;;  %v14691_v59 = vld [vmem:[#allocation20_spill] sm:$0xff]  ;;  %v14696_v32 = vld [vmem:[#allocation47_spill] sm:$0xff] }
 0xaa8   : > { %v3626_v60 = vsel %vm14674_vm13, %v14673_v31, %v8252_v26  ;;  %v3937_v26 = vpack.c.bf16 %v3496_v58, %v3493_v37  ;;  %v8272_v3 = vunpack.i.h.bf16 %v12008_v27  ;;  %v14681_v8 = vunpack.i.h.bf16 %v14680_v17  ;;  %vm14682_vm4 = vmmov %vm14671_vm7  ;;  %v14686_v58 = vld [vmem:[#allocation64_spill] sm:$0xff]  ;;  %v14700_v17 = vld [vmem:[#allocation67_spill] sm:$0xff] }
 0xaa9   : > { %6722 = vmatpush3.bf16.msra.mxu1 %v14677_v42  ;;  %v3157_v63 = vsel %vm1540_vm10, %v14678_v5, %v8246_v45  ;;  %v3160_v47 = vsel %vm1540_vm10, %v14679_v24, %v8247_v4  ;;  %v3958_v61 = vpack.c.bf16 %v3626_v60, %v3623_v30  ;;  %v14683_v45 = vld [vmem:[#allocation71_spill] sm:$0xff]  ;;  %vm14685_vm14 = vmmov %vm14682_vm4  ;;  %v8271_v10 = vunpack.i.l.bf16 %v12008_v27  ;;  %v8275_v60 = vpop.permute.xlu0 %8274 }
 0xaaa   : > { %6723 = vmatprep.subr.bf16.mxu1 %v3904_v20  ;;  %v3617_v16 = vsel %vm14682_vm4, %v14681_v8, %v8261_v13  ;;  %v14684_v1 = vunpack.i.h.bf16 %v14683_v45  ;;  %v8777_v4 = vld [vmem:[%s13899_s8 + $0xc] ss:$20 sps:$4 sm:$0xff]   ;;  %v8290_v20 = vpop.permute.xlu1 %8289  ;;  %v8267_v11 = vunpack.i.h.bf16 %v8265_v21  ;;  %v8266_v23 = vunpack.i.l.bf16 %v8265_v21  ;;  %6746 = vmatpush3.bf16.msra.mxu0 %v3937_v26  ;;  %vm14705_vm7 = vmmov %vm14627_vm3 }
 0xaab   : > { %4312 = vmatprep.mubr.bf16.mxu0 %v8777_v4  ;;  %v3901_v37 = vpack.c.bf16 %v3160_v47, %v3157_v63  ;;  %v8282_v51 = vunpack.i.h.bf16 %v8280_v39  ;;  %v8281_v49 = vunpack.i.l.bf16 %v8280_v39  ;;  %v14687_v40 = vunpack.i.h.bf16 %v14686_v58  ;;  %6747 = vmatprep.subr.bf16.mxu0 %v3958_v61  ;;  %v14698_v47 = vld [vmem:[#allocation42_spill] sm:$0xff]  ;;  %vm14708_vm13 = vmmov %vm14682_vm4 }
 0xaac   : > { %v3620_v41 = vsel %vm14685_vm14, %v14684_v1, %v8262_v19  ;;  %v14689_v22 = vunpack.i.h.bf16 %v14688_v50  ;;  %v14692_v30 = vpack.c.bf16 %v14690_v48, %v14691_v59  ;;  %v14693_v27 = vunpack.i.h.bf16 %v14505_v55  ;;  %vm14712_vm14 = vmmov %vm14682_vm4  ;;  %v14715_v59 = vld [vmem:[#allocation30_spill] sm:$0xff] }
 0xaad   : > { %v3402_v13 = vsel %vm601_vm6, %v14687_v40, %v8257_v12  ;;  %v14695_v39 = vunpack.i.h.bf16 %v14519_v54  ;;  %v3955_v57 = vpack.c.bf16 %v3620_v41, %v3617_v16  ;;  %v8277_v5 = vunpack.i.h.bf16 %v8275_v60  ;;  %v14701_v54 = vld [vmem:[#allocation66_spill] sm:$0xff]  ;;  %v14706_v41 = vld [vmem:[#allocation80_spill] sm:$0xff]  ;;  %v8285_v58 = vpop.permute.xlu0 %8284 }
 0xaae   : > { %v3399_v19 = vsel %vm601_vm6, %v14689_v22, %v8256_v36  ;;  %6724 = vmatpush3.bf16.msra.mxu1 %v14692_v30  ;;  %v3847_v34 = vsel %vm14694_vm11, %v14693_v27, %v8266_v23  ;;  %v14697_v36 = vunpack.i.h.bf16 %v14696_v32  ;;  %v8276_v63 = vunpack.i.l.bf16 %v8275_v60  ;;  %v8300_v1 = vpop.permute.xlu1 %8299  ;;  %v14713_v22 = vld [vmem:[#allocation38_spill] sm:$0xff]  ;;  %vm14718_vm11 = vmmov %vm14682_vm4  ;;  %v14721_v32 = vld [vmem:[#allocation111_spill] sm:$0xff] }
 0xaaf   : > { %6725 = vmatprep.subr.bf16.mxu1 %v3901_v37  ;;  %v3850_v31 = vsel %vm14627_vm3, %v14695_v39, %v8267_v11  ;;  %v3934_v24 = vpack.c.bf16 %v3402_v13, %v3399_v19  ;;  %v14699_v26 = vunpack.i.h.bf16 %v14698_v47  ;;  %v8291_v21 = vunpack.i.l.bf16 %v8290_v20  ;;  %v14709_v11 = vld [vmem:[#allocation74_spill] sm:$0xff] }
 0xab0   : > { %v3982_v12 = vpack.c.bf16 %v3850_v31, %v3847_v34  ;;  %v3396_v42 = vsel %vm601_vm6, %v14697_v36, %v8272_v3  ;;  %v14702_v8 = vpack.c.bf16 %v14700_v17, %v14701_v54  ;;  %v14703_v61 = vunpack.i.h.bf16 %v14552_v18 }
 0xab1   : > { %v3393_v55 = vsel %vm601_vm6, %v14699_v26, %v8271_v10  ;;  %v3844_v3 = vsel %vm14705_vm7, %v8057_v56, %v8282_v51  ;;  %v8292_v45 = vunpack.i.h.bf16 %v8290_v20  ;;  %6748 = vmatpush3.bf16.msra.mxu0 %v3934_v24  ;;  %v14707_v4 = vunpack.i.h.bf16 %v14706_v41  ;;  %v8295_v39 = vpop.permute.xlu0 %8294  ;;  %vm14725_vm7 = vmmov %vm14627_vm3 }
 0xab2   : > { %6726 = vmatpush3.bf16.msra.mxu1 %v14702_v8  ;;  %v3841_v16 = vsel %vm14704_vm9, %v14703_v61, %v8281_v49  ;;  %v14710_v23 = vunpack.i.h.bf16 %v14709_v11  ;;  %6749 = vmatprep.subr.bf16.mxu0 %v3955_v57  ;;  %v8287_v18 = vunpack.i.h.bf16 %v8285_v58  ;;  %v8286_v49 = vunpack.i.l.bf16 %v8285_v58  ;;  %vm14724_vm9 = vmmov %vm14627_vm3  ;;  %v3998_v8 = vpop.permute.xlu1 %3997 }
 0xab3   : > { %6844 = vmatprep.subr.bf16.mxu1 %v3982_v12  ;;  %v3611_v10 = vsel %vm14708_vm13, %v14707_v4, %v8276_v63  ;;  %v3931_v15 = vpack.c.bf16 %v3396_v42, %v3393_v55  ;;  %v3979_v56 = vpack.c.bf16 %v3844_v3, %v3841_v16  ;;  %v8302_v20 = vunpack.i.h.bf16 %v8300_v1  ;;  %vm14726_vm13 = vmmov %vm14627_vm3 }
 0xab4   : > { %v3614_v37 = vsel %vm14682_vm4, %v14710_v23, %v8277_v5  ;;  %v8301_v51 = vunpack.i.l.bf16 %v8300_v1  ;;  %v14711_v13 = vunpack.i.h.bf16 %v14562_v53  ;;  %v14714_v19 = vunpack.i.h.bf16 %v14713_v22 }
 0xab5   : > { %4264 = vmatmul.mubr.bf16.vlgmr.msra.gmra.mxu1 %v11805_v14  ;;  %v3952_v40 = vpack.c.bf16 %v3614_v37, %v3611_v10  ;;  %v14716_v30 = vunpack.i.h.bf16 %v14715_v59  ;;  %6750 = vmatpush3.bf16.msra.mxu0 %v3931_v15  ;;  %v14717_v27 = vunpack.i.h.bf16 %v11571_v52  ;;  %v8297_v31 = vunpack.i.h.bf16 %v8295_v39  ;;  %v8305_v47 = vpop.permute.xlu0 %8304 }
 0xab6   : > { %6845 = vmatpush3.bf16.msra.mxu1 %v3982_v12  ;;  %v3605_v50 = vsel %vm14712_vm14, %v14711_v13, %v8291_v21  ;;  %4271 = vmatprep.mubr.bf16.mxu1 %v11834_v7  ;;  %v3390_v48 = vsel %vm601_vm6, %v14714_v19, %v8287_v18  ;;  %v8296_v60 = vunpack.i.l.bf16 %v8295_v39  ;;  %v14719_v7 = vld [vmem:[#allocation87_spill] sm:$0xff]  ;;  %v14722_v36 = vunpack.i.h.bf16 %v14721_v32 }
 0xab7   : > { %v3387_v14 = vsel %vm601_vm6, %v14716_v30, %v8286_v49  ;;  %6846 = vmatprep.subr.bf16.mxu1 %v3979_v56  ;;  %v3608_v34 = vsel %vm14718_vm11, %v14717_v27, %v8292_v45  ;;  %6751 = vmatprep.subr.bf16.mxu0 %v3952_v40  ;;  %v14720_v12 = vunpack.i.h.bf16 %v14719_v7  ;;  %v14723_v63 = vunpack.i.h.bf16 %v14561_v33  ;;  %v14729_v49 = vld [vmem:[#allocation8_spill] sm:$0xff] }
 0xab8   : > { %v3928_v53 = vpack.c.bf16 %v3390_v48, %v3387_v14  ;;  %v3384_v42 = vsel %vm601_vm6, %v14722_v36, %v8302_v20  ;;  %v3949_v5 = vpack.c.bf16 %v3608_v34, %v3605_v50  ;;  %v3835_v52 = vsel %vm14627_vm3, %v8112_v2, %v8296_v60 }
 0xab9   : > { %v3381_v57 = vsel %vm601_vm6, %v14720_v12, %v8301_v51  ;;  %v3838_v24 = vsel %vm14724_vm9, %v14723_v63, %v8297_v31  ;;  %v8307_v55 = vunpack.i.h.bf16 %v8305_v47  ;;  %v8306_v21 = vunpack.i.l.bf16 %v8305_v47  ;;  %vm14736_vm9 = vmmov %vm14725_vm7 }
 0xaba   : > { %6847 = vmatpush3.bf16.msra.mxu1 %v3979_v56  ;;  %6752 = vmatpush3.bf16.msra.mxu0 %v3928_v53  ;;  %v3976_v26 = vpack.c.bf16 %v3838_v24, %v3835_v52  ;;  %v3925_v17 = vpack.c.bf16 %v3384_v42, %v3381_v57  ;;  %vm14728_vm4 = vmmov 0   ;;  %v14730_v56 = vld [vmem:[#allocation9_spill] sm:$0xff] }
 0xabb   : > { %6753 = vmatprep.subr.bf16.mxu0 %v3949_v5  ;;  %v3829_v33 = vsel %vm14725_vm7, %v8142_v38, %v8306_v21  ;;  %v3832_v0 = vsel %vm14726_vm13, %v8222_v35, %v8307_v55  ;;  %vm14737_vm13 = vmmov %vm14725_vm7 }
 0xabc   : > { %6848 = vmatprep.subr.bf16.mxu1 %v3976_v26  ;;  %v3973_v2 = vpack.c.bf16 %v3832_v0, %v3829_v33  ;;  %v14731_v33 = vld [vmem:[#allocation10_spill] sm:$0xff] }
 0xabd   : > { %4272 = vmatmul.mubr.bf16.gmra.mxu1 %v11897_v28  ;;  %v14727_v28 = vmov 0.0  }
 0xabe   : > { %6852 = vmatprep.mubr.msk.bf16.mxu1 %vm4065_vm2, %v11981_v25  ;;  %6754 = vmatpush3.bf16.msra.mxu0 %v3925_v17 }
 0xabf   : > { %6849 = vmatpush3.bf16.msra.mxu1 %v3976_v26 }
 0xac0   : > { %6850 = vmatprep.subr.bf16.mxu1 %v3973_v2 }
 0xac1   : > { %4313 = vmatmul.mubr.bf16.vlgmr.msra.gmra.mxu0 %v11848_v9 }
 0xac2   : > { %4320 = vmatprep.mubr.bf16.mxu0 %v11888_v62 }
 0xac3   : > { %6851 = vmatpush3.bf16.msra.mxu1 %v3973_v2 }
 0xac4   : > { %6856 = vmatprep.subr.bf16.mxu1 %v14727_v28 }
 0xac6   : > { %6853 = vmatmul.mubr.msk.bf16.vlgmr.msra.gmra.mxu1 %vm4065_vm2, %v12050_v43  ;;  %vm14732_vm2 = vcmask 408576  }
 0xac7   : > { %6866 = vmatprep.mubr.msk.bf16.mxu1 %vm14728_vm4, %v14727_v28  ;;  %vm14733_vm14 = vmmov %vm14732_vm2 }
 0xac8   : > { %vm14734_vm11 = vmmov %vm14732_vm2 }
 0xac9   : > { %4321 = vmatmul.mubr.bf16.gmra.mxu0 %v11945_v46  ;;  %vm14735_vm3 = vmmov %vm14732_vm2 }
 0xaca   : > { %4593 = vmatprep.mubr.bf16.mxu0 %v14629_v44 }
 0xb46   : > { %v4106_v6 = vpop.f32.mrf.mxu0 }
 0xb47   : > { %v4107_v61 = vadd.f32 %v4106_v6, %v3998_v8 }
 0xb48   : > { %v4108_v38 = vpop.f32.mrf.mxu0 }
 0xb49   : > { %v4109_v46 = vadd.f32 %v4108_v38, %v3998_v8 }
 0xb4a   : > { %v12168_v29 = vpop.f32.mrf.mxu0 }
 0xb4b   : > { %v4159_v35 = vpop.f32.mrf.mxu1 }
 0xb4c   : > { %v12170_v9 = vpop.f32.mrf.mxu0  ;;  %v4160_v3 = vadd.f32 %v4159_v35, %v4107_v61 }
 0xb4d   : > { %v4161_v54 = vpop.f32.mrf.mxu1 }
 0xb4e   : > { %v12172_v62 = vpop.f32.mrf.mxu0  ;;  %v4162_v41 = vadd.f32 %v4161_v54, %v4109_v46 }
 0xb4f   : > { %v12180_v45 = vpop.f32.mrf.mxu1 }
 0xb50   : > { %v12174_v25 = vpop.f32.mrf.mxu0 }
 0xb51   : > { %v12182_v37 = vpop.f32.mrf.mxu1 }
 0xb52   : > { %v12176_v43 = vpop.f32.mrf.mxu0 }
 0xb53   : > { %v12184_v18 = vpop.f32.mrf.mxu1 }
 0xb54   : > { %v12178_v16 = vpop.f32.mrf.mxu0 }
 0xb55   : > { %v12188_v40 = vpop.f32.mrf.mxu1 }
 0xb57   : > { %v12193_v50 = vpop.f32.mrf.mxu1 }
 0xb59   : > { %v12197_v19 = vpop.f32.mrf.mxu1 }
 0xb5b   : > { %v4212_v1 = vpop.f32.mrf.mxu0 }
 0xb5c   : > { %v4213_v4 = vadd.f32 %v4212_v1, %v4160_v3 }
 0xb5d   : > { %v4214_v10 = vpop.f32.mrf.mxu0 }
 0xb5e   : > { %v4378_v11 = vmax.f32 %v4213_v4, 0.0  ;;  %v4215_v23 = vadd.f32 %v4214_v10, %v4162_v41  ;;  %v2825_v10 = vld [vmem:[%s13900_s9 + $0x10] sm:$0xff] }
 0xb5f   : > { %v12191_v13 = vpop.f32.mrf.mxu0 }
 0xb60   : > { %v4379_v58 = vmax.f32 %v4215_v23, 0.0  ;;  %v4390_v15 = vmul.f32 %v4378_v11, %v14729_v49  ;;  %v2826_v11 = vld [vmem:[%s13900_s9 + $0x18] sm:$0xff]  ;;  %v2824_v23 = vld [vmem:[%s13900_s9 + $0x8] sm:$0xff] }
 0xb61   : > { %v12195_v22 = vpop.f32.mrf.mxu0 }
 0xb62   : > { %v4391_v20 = vmul.f32 %v4379_v58, %v14730_v56 }
 0xb64   : > { %v8308_v51 = vpack.i.bf16 %v4391_v20, %v4390_v15  ;;  %v12199_v48 = vpop.f32.mrf.mxu0 }
 0xb66   : > { %8309 = vrot.lane.b32.xlu0 %v8308_v51, %s8803_s28  ;;  %v12201_v14 = vpop.f32.mrf.mxu0 }
 0xb68   : > { %v12205_v53 = vpop.f32.mrf.mxu0 }
 0xb6a   : > { %v12207_v7 = vpop.f32.mrf.mxu0 }
 0xb75   : > { %v6727_v59 = vpop.f32.mrf.mxu1 }
 0xb77   : > { %v6728_v30 = vpop.f32.mrf.mxu1 }
 0xb78   : > { %v6729_v57 = vadd.f32 %v6728_v30, %v6727_v59 }
 0xb79   : > { %v6730_v27 = vpop.f32.mrf.mxu1 }
 0xb7a   : > { %v4266_v63 = vadd.f32 %v6729_v57, %v3998_v8 }
 0xb7b   : > { %v6731_v34 = vpop.f32.mrf.mxu1 }
 0xb7c   : > { %v12203_v39 = vadd.f32 %v6731_v34, %v6730_v27 }
 0xb7d   : > { %v6733_v31 = vpop.f32.mrf.mxu1 }
 0xb7f   : > { %v6734_v60 = vpop.f32.mrf.mxu1 }
 0xb80   : > { %v12209_v12 = vadd.f32 %v6734_v60, %v6733_v31 }
 0xb81   : > { %v6736_v32 = vpop.f32.mrf.mxu1  ;;  %v6755_v36 = vpop.f32.mrf.mxu0 }
 0xb83   : > { %v6737_v42 = vpop.f32.mrf.mxu1  ;;  %v6756_v52 = vpop.f32.mrf.mxu0 }
 0xb84   : > { %v12211_v5 = vadd.f32 %v6737_v42, %v6736_v32  ;;  %v6757_v24 = vadd.f32 %v6756_v52, %v6755_v36 }
 0xb86   : > { %v12213_v47 = vpop.f32.mrf.mxu1  ;;  %v4315_v26 = vadd.f32 %v6757_v24, %v4266_v63 }
 0xb88   : > { %v4363_v55 = vpop.f32.mrf.mxu1 }
 0xb89   : > { %v4364_v21 = vadd.f32 %v4363_v55, %v4315_v26 }
 0xb8b   : > { %v4380_v17 = vmax.f32 %v4364_v21, 0.0 }
 0xb8d   : > { %v4392_v0 = vmul.f32 %v4380_v17, %v14731_v33 }
 0xb8f   : > { %4409 = vrot.lane.b32.xlu1 %v4392_v0, %s8803_s28 }
 0xbd8   : > { %v8310_v2 = vpop.permute.xlu0 %8309 }
 0xbd9   : > { %v8312_v6 = vunpack.i.h.bf16 %v8310_v2  ;;  %v12217_v38 = vunpack.i.l.bf16 %v8310_v2 }
 0xbdb   : > { %v12221_v35 = vsel %vm14732_vm2, %v12217_v38, %v8312_v6  ;;  %v4417_v54 = vsel %vm14733_vm14, 0.0, %v12217_v38  ;;  %vm14738_vm2 = vcmask 1043456  }
 0xbdc   : > { %v8313_v8 = vpack.i.bf16 %v12221_v35, %v4417_v54  ;;  %vm14739_vm14 = vmmov %vm14738_vm2 }
 0xbde   : > { %8314 = vrot.lane.b32.xlu0 %v8313_v8, %s14291_s18 }
 0xc01   : > { %v4410_v61 = vpop.permute.xlu1 %4409 }
 0xc02   : > { %v12228_v46 = vsel %vm14734_vm11, %v8312_v6, %v4410_v61  ;;  %v4418_v3 = vsel %vm14735_vm3, %v4410_v61, 0.0  ;;  %vm14740_vm11 = vmmov %vm14738_vm2  ;;  %vm14741_vm3 = vcmask 261120  }
 0xc03   : > { %v8318_v1 = vpack.i.bf16 %v4418_v3, %v12228_v46  ;;  %v8323_v41 = vpack.i.bf16 %v12228_v46, %v12221_v35  ;;  %v8333_v4 = vpack.i.bf16 %v4418_v3, %v4417_v54 }
 0xc05   : > { %8319 = vrot.lane.b32.xlu1 %v8318_v1, %s14291_s18  ;;  %8324 = vrot.lane.b32.xlu0 %v8323_v41, %s14285_s22  ;;  %s8813_s18 = smov 125  }
 0xc09   : > { %8329 = vrot.lane.b32.xlu1 %v8323_v41, %s14283_s29  ;;  %8334 = vrot.lane.b32.xlu0 %v8333_v4, %s14285_s22  ;;  %s8812_s22 = smov 2  }
 0xc0d   : > { %8339 = vrot.lane.b32.xlu1 %v8333_v4, %s14283_s29  ;;  %8344 = vrot.lane.b32.xlu0 %v8323_v41, %s8788_s15  ;;  %s8811_s29 = smov 24  }
 0xc11   : > { %8349 = vrot.lane.b32.xlu1 %v8323_v41, %s8808_s23  ;;  %8354 = vrot.lane.b32.xlu0 %v8333_v4, %s8788_s15 }
 0xc15   : > { %8359 = vrot.lane.b32.xlu1 %v8333_v4, %s8808_s23  ;;  %8364 = vrot.lane.b32.xlu0 %v8323_v41, %s14284_s30  ;;  %s14768_s23 = smov 127  }
 0xc19   : > { %8369 = vrot.lane.b32.xlu1 %v8323_v41, %s8789_s16  ;;  %8374 = vrot.lane.b32.xlu0 %v8333_v4, %s14284_s30  ;;  %s8814_s30 = smov 1  }
 0xc1d   : > { %8379 = vrot.lane.b32.xlu1 %v8333_v4, %s8789_s16  ;;  %8384 = vrot.lane.b32.xlu0 %v8323_v41, %s8793_s20 }
 0xc21   : > { %4421 = vrot.lane.b32.xlu1 %v4417_v54, %s8793_s20  ;;  %4427 = vrot.lane.b32.xlu0 %v4418_v3, %s8793_s20 }
 0xc25   : > { %4007 = vperm.xlu1 %7082, %v2825_v10   ;;  %4012 = vperm.xlu0 %7001, %v2826_v11  }
 0xc29   : > { %4002 = vperm.xlu1 %7082, %v2824_v23  }
 0xc50   : > { %v8315_v58 = vpop.permute.xlu0 %8314 }
 0xc51   : > { %v8317_v15 = vunpack.i.h.bf16 %v8315_v58  ;;  %v8316_v20 = vunpack.i.l.bf16 %v8315_v58 }
 0xc53   : > { %v4527_v51 = vsel %vm14736_vm9, %v8316_v20, %v8317_v15  ;;  %vm14742_vm9 = vmmov %vm14741_vm3 }
 0xc54   : > { %v4545_v31 = vpack.c.bf16 %v4527_v51, %v4527_v51 }
 0xc56   : > { %v4553_v0 = vsel %vm14739_vm14, %v4545_v31, 0  ;;  %vm14749_vm14 = vcmask 850944  }
 0xc77   : > { %v8320_v59 = vpop.permute.xlu1 %8319  ;;  %v8325_v30 = vpop.permute.xlu0 %8324 }
 0xc78   : > { %v8322_v27 = vunpack.i.h.bf16 %v8320_v59  ;;  %v8321_v34 = vunpack.i.l.bf16 %v8320_v59  ;;  %v8327_v60 = vunpack.i.h.bf16 %v8325_v30  ;;  %v8326_v57 = vunpack.i.l.bf16 %v8325_v30 }
 0xc7a   : > { %v4528_v32 = vsel %vm14725_vm7, %v8317_v15, %v8321_v34  ;;  %v4529_v36 = vsel %vm14737_vm13, %v8321_v34, %v8322_v27  ;;  %v4500_v6 = vsel %vm14741_vm3, %v8326_v57, %v8327_v60  ;;  %vm14743_vm7 = vmmov %vm14741_vm3  ;;  %vm4939_vm13 = vcmask 457728  }
 0xc7b   : > { %v8330_v42 = vpop.permute.xlu1 %8329  ;;  %v8335_v52 = vpop.permute.xlu0 %8334  ;;  %v4546_v63 = vpack.c.bf16 %v4528_v32, %v4528_v32  ;;  %v4547_v24 = vpack.c.bf16 %v4529_v36, %v4529_v36 }
 0xc7c   : > { %v8332_v26 = vunpack.i.h.bf16 %v8330_v42  ;;  %v8331_v55 = vunpack.i.l.bf16 %v8330_v42  ;;  %v8337_v21 = vunpack.i.h.bf16 %v8335_v52  ;;  %v8336_v17 = vunpack.i.l.bf16 %v8335_v52 }
 0xc7d   : > { %6628 = vmatprep.subr.msk.bf16.mxu0 %vm14738_vm2, %v4546_v63  ;;  %v4559_v2 = vsel %vm14740_vm11, %v4547_v24, 0 }
 0xc7e   : > { %4568 = vmatpush1.bf16.msra.mxu0 %v4553_v0  ;;  %6857 = vmatpush3.bf16.msra.mxu1 %v4559_v2  ;;  %v4514_v54 = vsel %vm1823_vm1, %v8331_v55, %v8332_v26  ;;  %v4499_v4 = vsel %vm14742_vm9, %v8336_v17, %v8326_v57  ;;  %v4501_v10 = vsel %vm14743_vm7, %v8327_v60, %v8337_v21  ;;  %v12277_v21 = vpop.f32.mrf.mxu0  ;;  %vm14750_vm9 = vmmov %vm14749_vm14 }
 0xc7f   : > { %v8340_v8 = vpop.permute.xlu1 %8339  ;;  %v8345_v61 = vpop.permute.xlu0 %8344  ;;  %v4543_v3 = vpack.c.bf16 %v4514_v54, %v4500_v6  ;;  %6858 = vmatprep.subr.bf16.mxu1 %v14727_v28  ;;  %vm14751_vm7 = vmmov %vm14750_vm9 }
 0xc80   : > { %v8342_v1 = vunpack.i.h.bf16 %v8340_v8  ;;  %v8341_v41 = vunpack.i.l.bf16 %v8340_v8  ;;  %v8347_v58 = vunpack.i.h.bf16 %v8345_v61  ;;  %v8346_v15 = vunpack.i.l.bf16 %v8345_v61 }
 0xc81   : > { %4569 = vmatprep.subr.bf16.mxu0 %v4543_v3 }
 0xc82   : > { %v4513_v11 = vsel %vm1823_vm1, %v8341_v41, %v8331_v55  ;;  %v4515_v23 = vsel %vm1823_vm1, %v8332_v26, %v8342_v1  ;;  %v4472_v57 = vsel %vm601_vm6, %v8346_v15, %v8347_v58  ;;  %vm14745_vm1 = vcmask 588800  }
 0xc83   : > { %v8350_v20 = vpop.permute.xlu1 %8349  ;;  %v8355_v51 = vpop.permute.xlu0 %8354  ;;  %v4542_v59 = vpack.c.bf16 %v4513_v11, %v4499_v4  ;;  %v4544_v30 = vpack.c.bf16 %v4515_v23, %v4501_v10 }
 0xc84   : > { %v8352_v27 = vunpack.i.h.bf16 %v8350_v20  ;;  %v8351_v34 = vunpack.i.l.bf16 %v8350_v20  ;;  %v8357_v31 = vunpack.i.h.bf16 %v8355_v51  ;;  %v8356_v32 = vunpack.i.l.bf16 %v8355_v51  ;;  %v6759_v10 = vpop.f32.mrf.mxu0 }
 0xc85   : > { %4570 = vmatpush1.bf16.msra.mxu0 %v4542_v59  ;;  %6859 = vmatpush3.bf16.msra.mxu1 %v4544_v30 }
 0xc86   : > { %v4486_v60 = vsel %vm1709_vm0, %v8351_v34, %v8352_v27  ;;  %6860 = vmatprep.subr.bf16.mxu1 %v14727_v28  ;;  %v4471_v26 = vsel %vm601_vm6, %v8356_v32, %v8346_v15  ;;  %v4473_v55 = vsel %vm601_vm6, %v8347_v58, %v8357_v31  ;;  %v6761_v32 = vpop.f32.mrf.mxu0 }
 0xc87   : > { %v8360_v36 = vpop.permute.xlu1 %8359  ;;  %v8365_v42 = vpop.permute.xlu0 %8364  ;;  %v4540_v52 = vpack.c.bf16 %v4486_v60, %v4472_v57 }
 0xc88   : > { %v8362_v63 = vunpack.i.h.bf16 %v8360_v36  ;;  %v8361_v24 = vunpack.i.l.bf16 %v8360_v36  ;;  %v8367_v2 = vunpack.i.h.bf16 %v8365_v42  ;;  %v8366_v6 = vunpack.i.l.bf16 %v8365_v42 }
 0xc89   : > { %4571 = vmatprep.subr.bf16.mxu0 %v4540_v52 }
 0xc8a   : > { %v4485_v17 = vsel %vm1709_vm0, %v8361_v24, %v8351_v34  ;;  %v4487_v0 = vsel %vm1709_vm0, %v8352_v27, %v8362_v63  ;;  %v4444_v23 = vsel %vm1540_vm10, %v8366_v6, %v8367_v2 }
 0xc8b   : > { %v8370_v54 = vpop.permute.xlu1 %8369  ;;  %v8375_v8 = vpop.permute.xlu0 %8374  ;;  %v4539_v61 = vpack.c.bf16 %v4485_v17, %v4471_v26  ;;  %v4541_v3 = vpack.c.bf16 %v4487_v0, %v4473_v55 }
 0xc8c   : > { %v8372_v1 = vunpack.i.h.bf16 %v8370_v54  ;;  %v8371_v41 = vunpack.i.l.bf16 %v8370_v54  ;;  %v8376_v4 = vunpack.i.l.bf16 %v8375_v8  ;;  %v8377_v11 = vunpack.i.h.bf16 %v8375_v8 }
 0xc8d   : > { %4572 = vmatpush1.bf16.msra.mxu0 %v4539_v61  ;;  %6861 = vmatpush3.bf16.msra.mxu1 %v4541_v3 }
 0xc8e   : > { %v4458_v58 = vsel %vm571_vm8, %v8371_v41, %v8372_v1  ;;  %6862 = vmatprep.subr.bf16.mxu1 %v14727_v28  ;;  %v4443_v31 = vsel %vm1540_vm10, %v8376_v4, %v8366_v6  ;;  %v4445_v57 = vsel %vm1540_vm10, %v8367_v2, %v8377_v11  ;;  %v6762_v6 = vpop.f32.mrf.mxu0  ;;  %vm14746_vm10 = vmmov %vm14745_vm1 }
 0xc8f   : > { %v8380_v15 = vpop.permute.xlu1 %8379  ;;  %v8385_v20 = vpop.permute.xlu0 %8384  ;;  %v4537_v51 = vpack.c.bf16 %v4458_v58, %v4444_v23 }
 0xc90   : > { %v8382_v59 = vunpack.i.h.bf16 %v8380_v15  ;;  %v8381_v30 = vunpack.i.l.bf16 %v8380_v15  ;;  %v8387_v27 = vunpack.i.h.bf16 %v8385_v20  ;;  %v8386_v34 = vunpack.i.l.bf16 %v8385_v20  ;;  %v6764_v61 = vpop.f32.mrf.mxu0 }
 0xc91   : > { %4573 = vmatprep.subr.bf16.mxu0 %v4537_v51 }
 0xc92   : > { %v4457_v60 = vsel %vm571_vm8, %v8381_v30, %v8371_v41  ;;  %v4459_v36 = vsel %vm571_vm8, %v8372_v1, %v8382_v59  ;;  %v4430_v42 = vsel %vm511_vm12, %v8386_v34, %v8387_v27  ;;  %v6765_v3 = vpop.f32.mrf.mxu0  ;;  %v6763_v1 = vadd.f32 %v6762_v6, %v6761_v32  ;;  %v6855_v32 = vpop.f32.mrf.mxu1 }
 0xc93   : > { %v4422_v52 = vpop.permute.xlu1 %4421  ;;  %v4428_v63 = vpop.permute.xlu0 %4427  ;;  %v4536_v24 = vpack.c.bf16 %v4457_v60, %v4443_v31  ;;  %v4538_v26 = vpack.c.bf16 %v4459_v36, %v4445_v57  ;;  %v4534_v55 = vpack.c.bf16 %v4430_v42, %v12221_v35  ;;  %v4548_v35 = vld [vmem:[%s13901_s10] sm:$0xf] }
 0xc94   : > { %v4429_v17 = vsel %vm511_vm12, %v4422_v52, %v8386_v34  ;;  %v4431_v0 = vsel %vm511_vm12, %v8387_v27, %v4428_v63 }
 0xc95   : > { %4574 = vmatpush1.bf16.msra.mxu0 %v4536_v24  ;;  %6863 = vmatpush3.bf16.msra.mxu1 %v4538_v26  ;;  %v6631_v2 = vpack.c.bf16 %v4429_v17, %v12217_v38  ;;  %v4535_v54 = vpack.c.bf16 %v4431_v0, %v12228_v46  ;;  %v6766_v38 = vadd.f32 %v6765_v3, %v6764_v61  ;;  %v4366_v24 = vpop.f32.mrf.mxu1 }
 0xc96   : > { %4575 = vmatprep.subr.bf16.mxu0 %v4534_v55  ;;  %6864 = vmatprep.subr.bf16.mxu1 %v14727_v28 }
 0xc99   : > { %6632 = vmatpush1.bf16.msk.msra.mxu0 %vm8947_vm5, %v6631_v2  ;;  %6865 = vmatpush3.bf16.msra.mxu1 %v4535_v54  ;;  %vm4690_vm5 = vcmask 392192  }
 0xc9c   : > { %6633 = vmatmul.mubr.msk.bf16.vlgmr.msra.gmra.mxu0 %vm14745_vm1, %v4548_v35  ;;  %6867 = vmatmul.mubr.msk.bf16.vlgmr.msra.gmra.mxu1 %vm14746_vm10, %v4548_v35  ;;  %vm14752_vm1 = vmmov %vm14751_vm7 }
 0xc9d   : > { %6381 = vmatprep.mubr.bf16.mxu1 %v14629_v44  ;;  %vm14753_vm10 = vmmov %vm14752_vm1 }
 0xca0   : > { %v4008_v41 = vpop.permute.xlu1 %4007  ;;  %v4013_v46 = vpop.permute.xlu0 %4012 }
 0xca1   : > { %v4117_v4 = vadd.f32 %v12172_v62, %v4008_v41  ;;  %v4119_v11 = vadd.f32 %v12174_v25, %v4008_v41  ;;  %v4274_v23 = vadd.f32 %v12209_v12, %v4008_v41  ;;  %v4121_v58 = vadd.f32 %v12176_v43, %v4013_v46 }
 0xca2   : > { %v4123_v15 = vadd.f32 %v12178_v16, %v4013_v46  ;;  %v4277_v20 = vadd.f32 %v12211_v5, %v4013_v46  ;;  %v6760_v5 = vadd.f32 %v6759_v10, %v12277_v21 }
 0xca3   : > { %v4170_v51 = vadd.f32 %v12184_v18, %v4117_v4  ;;  %v4172_v59 = vadd.f32 %v12188_v40, %v4119_v11  ;;  %v4323_v30 = vadd.f32 %v6763_v1, %v4274_v23  ;;  %v4174_v27 = vadd.f32 %v12193_v50, %v4121_v58 }
 0xca4   : > { %v4176_v34 = vadd.f32 %v12197_v19, %v4123_v15  ;;  %v4326_v62 = vadd.f32 %v6766_v38, %v4277_v20  ;;  %v4003_v31 = vpop.permute.xlu1 %4002 }
 0xca5   : > { %v4223_v25 = vadd.f32 %v12199_v48, %v4170_v51  ;;  %v4225_v12 = vadd.f32 %v12201_v14, %v4172_v59  ;;  %v4372_v43 = vadd.f32 %v12213_v47, %v4323_v30  ;;  %v4227_v16 = vadd.f32 %v12205_v53, %v4174_v27 }
 0xca6   : > { %v4229_v18 = vadd.f32 %v12207_v7, %v4176_v34  ;;  %v4111_v40 = vadd.f32 %v12168_v29, %v4003_v31  ;;  %v4113_v50 = vadd.f32 %v12170_v9, %v4003_v31  ;;  %v4269_v19 = vadd.f32 %v12203_v39, %v4003_v31 }
 0xca7   : > { %v4385_v57 = vmax.f32 %v4225_v12, 0.0  ;;  %v4384_v60 = vmax.f32 %v4223_v25, 0.0  ;;  %v4386_v48 = vmax.f32 %v4372_v43, 0.0  ;;  %v4375_v36 = vadd.f32 %v6855_v32, %v4326_v62 }
 0xca8   : > { %v4164_v14 = vadd.f32 %v12180_v45, %v4111_v40  ;;  %v4166_v47 = vadd.f32 %v12182_v37, %v4113_v50  ;;  %v4387_v53 = vmax.f32 %v4227_v16, 0.0  ;;  %v4318_v10 = vadd.f32 %v6760_v5, %v4269_v19 }
 0xca9   : > { %v4397_v21 = vmul.f32 %v4385_v57, %v14730_v56  ;;  %v4396_v7 = vmul.f32 %v4384_v60, %v14729_v49  ;;  %v4398_v9 = vmul.f32 %v4386_v48, %v14731_v33  ;;  %v4388_v42 = vmax.f32 %v4229_v18, 0.0 }
 0xcaa   : > { %v4217_v29 = vadd.f32 %v12191_v13, %v4164_v14  ;;  %v4219_v39 = vadd.f32 %v12195_v22, %v4166_v47  ;;  %v4399_v45 = vmul.f32 %v4387_v53, %v14729_v49  ;;  %v4389_v37 = vmax.f32 %v4375_v36, 0.0 }
 0xcab   : > { %v12329_v52 = vmax.f32 %v4397_v21, 0.0  ;;  %v12331_v63 = vmax.f32 %v4396_v7, 0.0  ;;  %v4367_v13 = vadd.f32 %v4366_v24, %v4318_v10  ;;  %v12338_v26 = vmax.f32 %v4398_v9, 0.0 }
 0xcac   : > { %v4400_v22 = vmul.f32 %v4388_v42, %v14730_v56  ;;  %v12341_v55 = vmax.f32 %v4399_v45, 0.0  ;;  %v4401_v17 = vmul.f32 %v4389_v37, %v14731_v33  ;;  %v4382_v0 = vmax.f32 %v4219_v39, 0.0  ;;  %v12474_v37 = vld [vmem:[%s13892_s1] sm:$0x3f] }
 0xcad   : > { %4680 = vrot.lane.b32.xlu1 %v12329_v52, %s8809_s24  ;;  %4678 = vrot.lane.b32.xlu0 %v12331_v63, %s8809_s24  ;;  %v4381_v6 = vmax.f32 %v4217_v29, 0.0  ;;  %v4383_v61 = vmax.f32 %v4367_v13, 0.0  ;;  %vm460_vm0 = vcmp.eq.s32.totalorder %v12474_v37, 15 }
 0xcae   : > { %v12348_v2 = vmax.f32 %v4400_v22, 0.0  ;;  %v12350_v54 = vmax.f32 %v4401_v17, 0.0  ;;  %v4394_v8 = vmul.f32 %v4382_v0, %v14730_v56  ;;  %v12482_v22 = vsel %vm460_vm0, 1, %v14629_v44  ;;  %v14748_v17 = vld [vmem:[#allocation4_spill] sm:$0xff]  ;;  %vm14755_vm0 = vmmov %vm14752_vm1 }
 0xcaf   : > { %v4393_v35 = vmul.f32 %v4381_v6, %v14729_v49  ;;  %v4395_v38 = vmul.f32 %v4383_v61, %v14731_v33  ;;  %v12485_v0 = vsub.s32 0, %v14748_v17 }
 0xcb0   : > { %v12358_v3 = vmax.f32 %v4394_v8, 0.0 }
 0xcb1   : > { %4682 = vrot.lane.b32.xlu0 %v12338_v26, %s8809_s24  ;;  %4684 = vrot.lane.b32.xlu1 %v12341_v55, %s8809_s24  ;;  %v12360_v1 = vmax.f32 %v4393_v35, 0.0  ;;  %v12367_v41 = vmax.f32 %v4395_v38, 0.0  ;;  %v4819_v35 = vrot.slane %v12482_v22, %v12485_v0  ;;  %v12497_v38 = vsub.s32 2, %v14748_v17 }
 0xcb5   : > { %4686 = vrot.lane.b32.xlu0 %v12348_v2, %s8809_s24  ;;  %4688 = vrot.lane.b32.xlu1 %v12350_v54, %s8809_s24 }
 0xcb9   : > { %4674 = vrot.lane.b32.xlu0 %v12358_v3, %s8809_s24  ;;  %4672 = vrot.lane.b32.xlu1 %v12360_v1, %s8809_s24 }
 0xcbd   : > { %4676 = vrot.lane.b32.xlu1 %v12367_v41, %s8809_s24 }
 0xd1f   : > { %v4681_v46 = vpop.permute.xlu1 %4680  ;;  %v4679_v4 = vpop.permute.xlu0 %4678 }
 0xd20   : > { %v12372_v11 = vsel %vm4690_vm5, 0.0, %v4679_v4  ;;  %v12375_v23 = vsel %vm4690_vm5, %v4679_v4, %v4681_v46 }
 0xd21   : > { %4867 = vrot.lane.b32.xlu0 %v12372_v11, %s14747_s27  ;;  %4869 = vrot.lane.b32.xlu1 %v12375_v23, %s14747_s27 }
 0xd23   : > { %v4683_v30 = vpop.permute.xlu0 %4682  ;;  %v4685_v43 = vpop.permute.xlu1 %4684 }
 0xd24   : > { %v12394_v16 = vsel %vm4690_vm5, %v4683_v30, 0.0  ;;  %v12399_v18 = vsel %vm4690_vm5, %v4681_v46, %v4683_v30  ;;  %v12409_v32 = vsel %vm4690_vm5, 0.0, %v4685_v43  ;;  %v12500_v46 = vsub.s32 4, %v14748_v17 }
 0xd27   : > { %v4687_v5 = vpop.permute.xlu0 %4686  ;;  %v4689_v50 = vpop.permute.xlu1 %4688 }
 0xd28   : > { %v12404_v40 = vsel %vm4690_vm5, %v4685_v43, %v4687_v5  ;;  %v12414_v19 = vsel %vm4690_vm5, %v4689_v50, 0.0  ;;  %v12419_v57 = vsel %vm4690_vm5, %v4687_v5, %v4689_v50 }
 0xd2b   : > { %v4673_v60 = vpop.permute.xlu1 %4672  ;;  %v4675_v48 = vpop.permute.xlu0 %4674 }
 0xd2c   : > { %v12440_v36 = vsel %vm4690_vm5, %v4673_v60, %v4675_v48  ;;  %v12445_v47 = vsel %vm4690_vm5, 0.0, %v4673_v60 }
 0xd2f   : > { %v4677_v14 = vpop.permute.xlu1 %4676 }
 0xd30   : > { %v12450_v53 = vsel %vm4690_vm5, %v4677_v14, 0.0  ;;  %v12455_v21 = vsel %vm4690_vm5, %v4675_v48, %v4677_v14 }
 0xd5c   : > { %v4595_v58 = vpop.f32.mrf.mxu0  ;;  %v4636_v15 = vpop.f32.mrf.mxu1 }
 0xd5d   : > { %v12381_v20 = vmax.f32 %v4595_v58, 0.0  ;;  %v12387_v34 = vmax.f32 %v4636_v15, 0.0  ;;  %v12510_v15 = vrot.slane %v4819_v35, %v12485_v0 }
 0xd5e   : > { %v4597_v51 = vpop.f32.mrf.mxu0  ;;  %v6868_v59 = vpop.f32.mrf.mxu1 }
 0xd5f   : > { %v12383_v27 = vmax.f32 %v4597_v51, 0.0  ;;  %4666 = vrot.lane.b32.xlu0 %v12381_v20, %s8809_s24  ;;  %v4823_v51 = vrot.slane %v12482_v22, %v12497_v38  ;;  %v4827_v59 = vrot.slane %v12482_v22, %v12500_v46  ;;  %vm4840_vm2 = vcmp.eq.s32.totalorder %v12510_v15, 1 }
 0xd60   : > { %v4599_v62 = vpop.f32.mrf.mxu0  ;;  %v4639_v31 = vpop.f32.mrf.mxu1 }
 0xd61   : > { %4668 = vrot.lane.b32.xlu1 %v12383_v27, %s8809_s24  ;;  %v12522_v31 = vrot.slane %v4823_v51, %v12485_v0 }
 0xd62   : > { %v4600_v25 = vpop.f32.mrf.mxu0  ;;  %v6869_v12 = vpop.f32.mrf.mxu1 }
 0xd63   : > { %4670 = vrot.lane.b32.xlu0 %v12387_v34, %s8809_s24  ;;  %v12525_v25 = vrot.slane %v4827_v59, %v12485_v0  ;;  %vm4841_vm11 = vcmp.eq.s32.totalorder %v12522_v31, 1  ;;  %v4810_v31 = vmul.f32 0.75, %v12394_v16  ;;  %s14818_s24 = smov 102  }
 0xd65   : > { %4873 = vrot.lane.b32.xlu1 %v12394_v16, %s14747_s27  ;;  %vm4842_vm3 = vcmp.eq.s32.totalorder %v12525_v25, 1 }
 0xd67   : > { %4871 = vrot.lane.b32.xlu0 %v12399_v18, %s14747_s27 }
 0xd69   : > { %4877 = vrot.lane.b32.xlu1 %v12404_v40, %s14747_s27 }
 0xd6b   : > { %4875 = vrot.lane.b32.xlu0 %v12409_v32, %s14747_s27 }
 0xd6d   : > { %4881 = vrot.lane.b32.xlu1 %v12414_v19, %s14747_s27 }
 0xd6f   : > { %4879 = vrot.lane.b32.xlu0 %v12419_v57, %s14747_s27 }
 0xd71   : > { %4925 = vrot.lane.b32.xlu1 %v12375_v23, %s8810_s17 }
 0xd73   : > { %4923 = vrot.lane.b32.xlu0 %v12372_v11, %s8810_s17 }
 0xd75   : > { %4929 = vrot.lane.b32.xlu1 %v12394_v16, %s8810_s17  ;;  %v4811_v16 = vmul.f32 0.75, %v12409_v32 }
 0xd77   : > { %4927 = vrot.lane.b32.xlu0 %v12399_v18, %s8810_s17 }
 0xd79   : > { %4933 = vrot.lane.b32.xlu1 %v12404_v40, %s8810_s17 }
 0xd7b   : > { %4931 = vrot.lane.b32.xlu0 %v12409_v32, %s8810_s17 }
 0xd7d   : > { %4937 = vrot.lane.b32.xlu1 %v12414_v19, %s8810_s17 }
 0xd7f   : > { %4935 = vrot.lane.b32.xlu0 %v12419_v57, %s8810_s17 }
 0xd81   : > { %4861 = vrot.lane.b32.xlu1 %v12440_v36, %s14747_s27 }
 0xd83   : > { %4859 = vrot.lane.b32.xlu0 %v12445_v47, %s14747_s27 }
 0xd85   : > { %4865 = vrot.lane.b32.xlu1 %v12450_v53, %s14747_s27 }
 0xd87   : > { %4863 = vrot.lane.b32.xlu0 %v12455_v21, %s14747_s27 }
 0xd89   : > { %4917 = vrot.lane.b32.xlu1 %v12440_v36, %s8810_s17 }
 0xd8b   : > { %4915 = vrot.lane.b32.xlu0 %v12445_v47, %s8810_s17 }
 0xd93   : > { %v4868_v7 = vpop.permute.xlu0 %4867  ;;  %v4870_v29 = vpop.permute.xlu1 %4869 }
 0xd94   : > { %v4889_v43 = vsel %vm14749_vm14, %v4868_v7, %v4870_v29  ;;  %vm14756_vm14 = vmmov %vm14755_vm0 }
 0xdd1   : > { %v4667_v10 = vpop.permute.xlu0 %4666 }
 0xdd2   : > { %v12464_v9 = vsel %vm4690_vm5, 0.0, %v4667_v10 }
 0xdd3   : > { %4851 = vrot.lane.b32.xlu0 %v12464_v9, %s14747_s27  ;;  %v4669_v42 = vpop.permute.xlu1 %4668 }
 0xdd4   : > { %v12503_v4 = vsel %vm4690_vm5, %v4667_v10, %v4669_v42 }
 0xdd5   : > { %v4671_v39 = vpop.permute.xlu0 %4670 }
 0xdd6   : > { %v12469_v45 = vsel %vm4690_vm5, %v4671_v39, 0.0  ;;  %v12488_v6 = vsel %vm4690_vm5, %v4669_v42, %v4671_v39  ;;  %vm14754_vm5 = vmmov %vm14752_vm1 }
 0xdd7   : > { %4907 = vrot.lane.b32.xlu0 %v12464_v9, %s8810_s17  ;;  %4857 = vrot.lane.b32.xlu1 %v12469_v45, %s14747_s27  ;;  %v4874_v24 = vpop.permute.xlu1 %4873 }
 0xdd9   : > { %v4872_v13 = vpop.permute.xlu0 %4871 }
 0xdda   : > { %v4890_v10 = vsel %vm14750_vm9, %v4870_v29, %v4872_v13  ;;  %v4891_v42 = vsel %vm14751_vm7, %v4872_v13, %v4874_v24  ;;  %vm14757_vm9 = vmmov %vm14755_vm0 }
 0xddb   : > { %4913 = vrot.lane.b32.xlu1 %v12469_v45, %s8810_s17  ;;  %4855 = vrot.lane.b32.xlu0 %v12488_v6, %s14747_s27  ;;  %v4878_v8 = vpop.permute.xlu1 %4877  ;;  %vm14758_vm7 = vmmov %vm14755_vm0 }
 0xddd   : > { %v4876_v61 = vpop.permute.xlu0 %4875 }
 0xdde   : > { %v4892_v29 = vsel %vm14752_vm1, %v4876_v61, %v4878_v8  ;;  %vm14759_vm1 = vmmov %vm14755_vm0 }
 0xddf   : > { %4911 = vrot.lane.b32.xlu0 %v12488_v6, %s8810_s17  ;;  %4853 = vrot.lane.b32.xlu1 %v12503_v4, %s14747_s27  ;;  %v4882_v58 = vpop.permute.xlu1 %4881 }
 0xde1   : > { %v4880_v30 = vpop.permute.xlu0 %4879 }
 0xde3   : > { %4919 = vrot.lane.b32.xlu0 %v12455_v21, %s8810_s17  ;;  %4909 = vrot.lane.b32.xlu1 %v12503_v4, %s8810_s17  ;;  %v4926_v62 = vpop.permute.xlu1 %4925 }
 0xde5   : > { %v4924_v12 = vpop.permute.xlu0 %4923 }
 0xde6   : > { %v4946_v5 = vsel %vm4939_vm13, %v4924_v12, %v4926_v62 }
 0xde7   : > { %v4970_v50 = vsel %vm4840_vm2, %v4889_v43, %v4946_v5  ;;  %4921 = vrot.lane.b32.xlu1 %v12450_v53, %s8810_s17  ;;  %v4930_v60 = vpop.permute.xlu1 %4929  ;;  %s14819_s17 = smov 103  }
 0xde8   : > { %v4982_v48 = vmul.f32 0.25, %v4970_v50 }
 0xde9   : > { %v4928_v14 = vpop.permute.xlu0 %4927 }
 0xdea   : > { %v4947_v7 = vsel %vm4939_vm13, %v4926_v62, %v4928_v14  ;;  %v4948_v39 = vsel %vm4939_vm13, %v4928_v14, %v4930_v60  ;;  %5012 = vrot.lane.b32.xlu0 %v4982_v48, %s8811_s29  ;;  %v4893_v60 = vsel %vm14753_vm10, %v4878_v8, %v4880_v30  ;;  %v4894_v48 = vsel %vm14754_vm5, %v4880_v30, %v4882_v58 }
 0xdeb   : > { %v4971_v17 = vsel %vm4841_vm11, %v4890_v10, %v4947_v7  ;;  %v4972_v35 = vsel %vm4842_vm3, %v4891_v42, %v4948_v39  ;;  %v4934_v51 = vpop.permute.xlu1 %4933 }
 0xdec   : > { %v4983_v59 = vmul.f32 0.25, %v4971_v17  ;;  %v4984_v12 = vmul.f32 0.25, %v4972_v35 }
 0xded   : > { %v4932_v43 = vpop.permute.xlu0 %4931 }
 0xdee   : > { %v4949_v24 = vsel %vm4939_vm13, %v4932_v43, %v4934_v51  ;;  %5014 = vrot.lane.b32.xlu1 %v4983_v59, %s8811_s29  ;;  %5016 = vrot.lane.b32.xlu0 %v4984_v12, %s8811_s29 }
 0xdef   : > { %v4973_v13 = vsel %vm4840_vm2, %v4892_v29, %v4949_v24  ;;  %v4938_v62 = vpop.permute.xlu1 %4937 }
 0xdf0   : > { %v4985_v5 = vmul.f32 0.25, %v4973_v13 }
 0xdf1   : > { %v4936_v50 = vpop.permute.xlu0 %4935 }
 0xdf2   : > { %v4950_v14 = vsel %vm4939_vm13, %v4934_v51, %v4936_v50  ;;  %v4951_v61 = vsel %vm4939_vm13, %v4936_v50, %v4938_v62  ;;  %5018 = vrot.lane.b32.xlu1 %v4985_v5, %s8811_s29 }
 0xdf3   : > { %v4974_v10 = vsel %vm4841_vm11, %v4893_v60, %v4950_v14  ;;  %v4975_v42 = vsel %vm4842_vm3, %v4894_v48, %v4951_v61  ;;  %v4862_v7 = vpop.permute.xlu1 %4861 }
 0xdf4   : > { %v4986_v39 = vmul.f32 0.25, %v4974_v10  ;;  %v4987_v17 = vmul.f32 0.25, %v4975_v42 }
 0xdf5   : > { %v4860_v35 = vpop.permute.xlu0 %4859 }
 0xdf6   : > { %5020 = vrot.lane.b32.xlu0 %v4986_v39, %s8811_s29  ;;  %5022 = vrot.lane.b32.xlu1 %v4987_v17, %s8811_s29  ;;  %v4886_v59 = vsel %vm14755_vm0, %v4860_v35, %v4862_v7 }
 0xdf7   : > { %v4866_v8 = vpop.permute.xlu1 %4865 }
 0xdf9   : > { %v4864_v58 = vpop.permute.xlu0 %4863 }
 0xdfb   : > { %v4918_v30 = vpop.permute.xlu1 %4917 }
 0xdfd   : > { %v4916_v51 = vpop.permute.xlu0 %4915 }
 0xdfe   : > { %v4943_v12 = vsel %vm4939_vm13, %v4916_v51, %v4918_v30 }
 0xdff   : > { %v4967_v43 = vsel %vm4840_vm2, %v4886_v59, %v4943_v12 }
 0xe00   : > { %v4979_v29 = vmul.f32 0.25, %v4967_v43 }
 0xe02   : > { %5006 = vrot.lane.b32.xlu1 %v4979_v29, %s8811_s29 }
 0xe45   : > { %v4852_v24 = vpop.permute.xlu0 %4851 }
 0xe49   : > { %v4908_v13 = vpop.permute.xlu0 %4907  ;;  %v4858_v62 = vpop.permute.xlu1 %4857 }
 0xe4d   : > { %v4856_v5 = vpop.permute.xlu0 %4855  ;;  %v4914_v50 = vpop.permute.xlu1 %4913 }
 0xe4e   : > { %v4885_v12 = vsel %vm14758_vm7, %v4856_v5, %v4858_v62 }
 0xe51   : > { %v4912_v60 = vpop.permute.xlu0 %4911  ;;  %v4854_v48 = vpop.permute.xlu1 %4853 }
 0xe52   : > { %v4942_v14 = vsel %vm4939_vm13, %v4912_v60, %v4914_v50  ;;  %v4883_v10 = vsel %vm14756_vm14, %v4852_v24, %v4854_v48  ;;  %v4884_v42 = vsel %vm14757_vm9, %v4854_v48, %v4856_v5  ;;  %v4888_v48 = vsel %vm14759_vm1, %v4864_v58, %v4866_v8 }
 0xe53   : > { %v4966_v24 = vsel %vm4842_vm3, %v4885_v12, %v4942_v14  ;;  %v4809_v12 = vmul.f32 0.75, %v12399_v18 }
 0xe54   : > { %v4978_v5 = vmul.f32 0.25, %v4966_v24 }
 0xe55   : > { %v4910_v61 = vpop.permute.xlu1 %4909  ;;  %v4920_v35 = vpop.permute.xlu0 %4919 }
 0xe56   : > { %v4940_v39 = vsel %vm4939_vm13, %v4908_v13, %v4910_v61  ;;  %v4941_v17 = vsel %vm4939_vm13, %v4910_v61, %v4912_v60  ;;  %v4944_v13 = vsel %vm4939_vm13, %v4918_v30, %v4920_v35  ;;  %v4808_v30 = vmul.f32 0.75, %v12375_v23 }
 0xe57   : > { %v4964_v51 = vsel %vm4840_vm2, %v4883_v10, %v4940_v39  ;;  %v4965_v59 = vsel %vm4841_vm11, %v4884_v42, %v4941_v17  ;;  %vm14760_vm2 = vmmov %vm14755_vm0  ;;  %v4807_v39 = vmul.f32 0.75, %v12372_v11 }
 0xe58   : > { %v4976_v43 = vmul.f32 0.25, %v4964_v51  ;;  %v4977_v29 = vmul.f32 0.25, %v4965_v59  ;;  %v4887_v62 = vsel %vm14760_vm2, %v4862_v7, %v4864_v58 }
 0xe59   : > { %v4922_v50 = vpop.permute.xlu1 %4921  ;;  %v4968_v14 = vsel %vm4841_vm11, %v4887_v62, %v4944_v13  ;;  %vm446_vm11 = vcmp.lt.s32.totalorder %v12474_v37, 0 }
 0xe5a   : > { %v4945_v60 = vsel %vm4939_vm13, %v4920_v35, %v4922_v50  ;;  %5002 = vrot.lane.b32.xlu1 %v4977_v29, %s8811_s29  ;;  %5000 = vrot.lane.b32.xlu0 %v4976_v43, %s8811_s29  ;;  %vm5024_vm13 = vcmask 195584   ;;  %v4980_v8 = vmul.f32 0.25, %v4968_v14  ;;  %v4812_v29 = vmul.f32 0.75, %v12404_v40 }
 0xe5b   : > { %v4969_v15 = vsel %vm4842_vm3, %v4888_v48, %v4945_v60  ;;  %v4803_v14 = vmul.f32 0.75, %v12445_v47  ;;  %vm459_vm3 = vcmp.eq.s32.totalorder %v12474_v37, 0 }
 0xe5c   : > { %v4981_v61 = vmul.f32 0.25, %v4969_v15  ;;  %v5013_v10 = vpop.permute.xlu0 %5012  ;;  %v4814_v15 = vmul.f32 0.75, %v12414_v19  ;;  %v447_v19 = vsub.s32 0, %v12474_v37 }
 0xe5d   : > { %v5057_v17 = vadd.f32 %v5013_v10, %v4807_v39 }
 0xe5e   : > { %5004 = vrot.lane.b32.xlu0 %v4978_v5, %s8811_s29  ;;  %5010 = vrot.lane.b32.xlu1 %v4981_v61, %s8811_s29  ;;  %v4813_v5 = vmul.f32 0.75, %v12419_v57 }
 0xe60   : > { %v5015_v42 = vpop.permute.xlu1 %5014  ;;  %v5017_v7 = vpop.permute.xlu0 %5016 }
 0xe61   : > { %v5029_v25 = vsel %vm5024_vm13, %v5013_v10, %v5015_v42  ;;  %v5030_v51 = vsel %vm5024_vm13, %v5015_v42, %v5017_v7  ;;  %v5060_v59 = vadd.f32 %v5017_v7, %v4810_v31  ;;  %v6536_v42 = vmin.u32 %v12474_v37, %v447_v19 }
 0xe62   : > { %v5058_v58 = vadd.f32 %v5029_v25, %v4808_v30  ;;  %5008 = vrot.lane.b32.xlu0 %v4980_v8, %s8811_s29  ;;  %v5059_v43 = vadd.f32 %v5030_v51, %v4809_v12  ;;  %v4799_v37 = vmul.f32 0.75, %v12464_v9  ;;  %s14923_s29 = smul.u32 24, %s14925_s26 }
 0xe63   : > { %v450_v25 = vand.u32 1, %v6536_v42 }
 0xe64   : > { %5127 = vrot.lane.b32.xlu1 %v5058_v58, %s14747_s27  ;;  %v5019_v35 = vpop.permute.xlu1 %5018 }
 0xe65   : > { %v5061_v60 = vadd.f32 %v5019_v35, %v4811_v16  ;;  %v451_v39 = vsub.s32 0, %v450_v25 }
 0xe66   : > { %5125 = vrot.lane.b32.xlu0 %v5057_v17, %s14747_s27  ;;  %v12618_v17 = vsel %vm459_vm3, 1, %v14629_v44 }
 0xe67   : > { %v452_v7 = vsel %vm446_vm11, %v451_v39, %v450_v25  ;;  %v4739_v31 = vrot.slane %v12618_v17, %v12485_v0 }
 0xe68   : > { %v5021_v24 = vpop.permute.xlu0 %5020  ;;  %5131 = vrot.lane.b32.xlu1 %v5060_v59, %s14747_s27  ;;  %v5023_v13 = vpop.permute.xlu1 %5022  ;;  %vm453_vm10 = vcmp.ne.s32.totalorder %v452_v7, 0  ;;  %vm454_vm5 = vcmp.lt.s32.totalorder %v452_v7, 0  ;;  %v456_v58 = vadd.s32 2, %v452_v7  ;;  %v4747_v59 = vrot.slane %v12618_v17, %v12500_v46 }
 0xe69   : > { %v5031_v50 = vsel %vm5024_vm13, %v5019_v35, %v5021_v24  ;;  %v5032_v62 = vsel %vm5024_vm13, %v5021_v24, %v5023_v13  ;;  %v5064_v61 = vadd.f32 %v5023_v13, %v4814_v15  ;;  %vm455_vm0 = vmand %vm454_vm5, %vm453_vm10  ;;  %v12623_v51 = vrot.slane %v4739_v31, %v12485_v0 }
 0xe6a   : > { %v5062_v48 = vadd.f32 %v5031_v50, %v4812_v29  ;;  %5129 = vrot.lane.b32.xlu0 %v5059_v43, %s14747_s27  ;;  %v5063_v10 = vadd.f32 %v5032_v62, %v4813_v5  ;;  %v457_v35 = vsel %vm455_vm0, %v456_v58, %v452_v7  ;;  %v12633_v50 = vrot.slane %v4747_v59, %v12485_v0  ;;  %vm14762_vm10 = vmmov %vm14760_vm2 }
 0xe6b   : > { %vm458_vm14 = vcmp.eq.s32.totalorder %v457_v35, 0  ;;  %vm4760_vm9 = vcmp.eq.s32.totalorder %v12623_v51, 1  ;;  %v4743_v5 = vrot.slane %v12618_v17, %v12497_v38  ;;  %v4729_v31 = vmul.f32 0.75, %v12331_v63  ;;  %vm14763_vm0 = vmmov %vm14760_vm2 }
 0xe6c   : > { %5135 = vrot.lane.b32.xlu1 %v5062_v48, %s14747_s27  ;;  %v12629_v29 = vsel %vm458_vm14, 1, %v14629_v44  ;;  %v4801_v48 = vmul.f32 0.75, %v12488_v6  ;;  %v4769_v44 = vsel %vm4760_vm9, %v12331_v63, %v12372_v11  ;;  %vm4762_vm7 = vcmp.eq.s32.totalorder %v12633_v50, 1  ;;  %vm14764_vm14 = vmmov %vm14763_vm0 }
 0xe6d   : > { %v5069_v16 = vrot.slane %v12629_v29, %v12485_v0  ;;  %v4805_v11 = vmul.f32 0.75, %v12455_v21  ;;  %v4771_v42 = vsel %vm4762_vm7, %v12338_v26, %v12399_v18  ;;  %v12663_v35 = vrot.slane %v4743_v5, %v12485_v0 }
 0xe6e   : > { %5133 = vrot.lane.b32.xlu0 %v5061_v60, %s14747_s27  ;;  %v4802_v18 = vmul.f32 0.75, %v12469_v45  ;;  %v4800_v45 = vmul.f32 0.75, %v12503_v4 }
 0xe6f   : > { %vm4761_vm11 = vcmp.eq.s32.totalorder %v12663_v35, 1 }
 0xe70   : > { %5139 = vrot.lane.b32.xlu1 %v5064_v61, %s14747_s27  ;;  %v12648_v61 = vrot.slane %v5069_v16, %v12485_v0 }
 0xe72   : > { %5137 = vrot.lane.b32.xlu0 %v5063_v10, %s14747_s27  ;;  %v5077_v10 = vrot.slane %v12629_v29, %v12500_v46  ;;  %vm5090_vm1 = vcmp.eq.s32.totalorder %v12648_v61, 1 }
 0xe74   : > { %v5007_v8 = vpop.permute.xlu1 %5006  ;;  %v12667_v59 = vrot.slane %v5077_v10, %v12485_v0  ;;  %v4770_v10 = vsel %vm4761_vm11, %v12329_v52, %v12375_v23  ;;  %v4772_v23 = vsel %vm4760_vm9, %v12341_v55, %v12409_v32 }
 0xe75   : > { %v5053_v30 = vadd.f32 %v5007_v8, %v4803_v14  ;;  %v4781_v14 = vmul.f32 0.25, %v4769_v44  ;;  %v4731_v44 = vmul.f32 0.75, %v12338_v26  ;;  %v5073_v26 = vrot.slane %v12629_v29, %v12497_v38 }
 0xe76   : > { %vm5092_vm3 = vcmp.eq.s32.totalorder %v12667_v59, 1  ;;  %v4806_v38 = vmul.f32 0.75, %v12450_v53  ;;  %v4730_v53 = vmul.f32 0.75, %v12329_v52 }
 0xe77   : > { %5117 = vrot.lane.b32.xlu0 %v5053_v30, %s14747_s27  ;;  %v4804_v30 = vmul.f32 0.75, %v12440_v36 }
 0xecc   : > { %v5001_v12 = vpop.permute.xlu0 %5000  ;;  %v5003_v43 = vpop.permute.xlu1 %5002 }
 0xecd   : > { %v5049_v24 = vadd.f32 %v5001_v12, %v4799_v37  ;;  %v4783_v37 = vmul.f32 0.25, %v4771_v42  ;;  %v4782_v42 = vmul.f32 0.25, %v4770_v10  ;;  %v4727_v10 = vmul.f32 0.75, %v12358_v3 }
 0xecf   : > { %5109 = vrot.lane.b32.xlu0 %v5049_v24, %s14747_s27 }
 0xed0   : > { %v5005_v13 = vpop.permute.xlu0 %5004  ;;  %v5011_v62 = vpop.permute.xlu1 %5010 }
 0xed1   : > { %v5026_v60 = vsel %vm5024_vm13, %v5003_v43, %v5005_v13  ;;  %v5052_v63 = vadd.f32 %v5005_v13, %v4802_v18  ;;  %v4795_v13 = vadd.f32 %v4783_v37, %v4731_v44  ;;  %v4734_v44 = vmul.f32 0.75, %v12350_v54 }
 0xed2   : > { %v5051_v15 = vadd.f32 %v5026_v60, %v4801_v48  ;;  %v5025_v60 = vsel %vm5024_vm13, %v5001_v12, %v5003_v43  ;;  %v4773_v12 = vsel %vm4761_vm11, %v12348_v2, %v12404_v40  ;;  %v12705_v40 = vrot.slane %v5073_v26, %v12485_v0 }
 0xed3   : > { %v4784_v0 = vmul.f32 0.25, %v4772_v23 }
 0xed4   : > { %v5009_v19 = vpop.permute.xlu0 %5008  ;;  %5113 = vrot.lane.b32.xlu0 %v5051_v15, %s14747_s27  ;;  %vm5091_vm5 = vcmp.eq.s32.totalorder %v12705_v40, 1 }
 0xed5   : > { %v5027_v25 = vsel %vm5024_vm13, %v5007_v8, %v5009_v19  ;;  %v5028_v39 = vsel %vm5024_vm13, %v5009_v19, %v5011_v62  ;;  %v4793_v8 = vadd.f32 %v4781_v14, %v4729_v31  ;;  %vm14761_vm13 = vmmov %vm14760_vm2  ;;  %v5050_v14 = vadd.f32 %v5025_v60, %v4800_v45 }
 0xed6   : > { %v5054_v7 = vadd.f32 %v5027_v25, %v4804_v30  ;;  %v5055_v58 = vadd.f32 %v5028_v39, %v4805_v11  ;;  %v5128_v46 = vpop.permute.xlu1 %5127  ;;  %v4785_v11 = vmul.f32 0.25, %v4773_v12  ;;  %v5056_v25 = vadd.f32 %v5011_v62, %v4806_v38 }
 0xed7   : > { %v4733_v39 = vmul.f32 0.75, %v12348_v2  ;;  %v4774_v2 = vsel %vm4762_vm7, %v12350_v54, %v12419_v57  ;;  %v4732_v62 = vmul.f32 0.75, %v12341_v55  ;;  %v4767_v54 = vsel %vm4761_vm11, %v12358_v3, %v12440_v36 }
 0xed8   : > { %v5126_v24 = vpop.permute.xlu0 %5125  ;;  %5119 = vrot.lane.b32.xlu1 %v5054_v7, %s14747_s27  ;;  %5121 = vrot.lane.b32.xlu0 %v5055_v58, %s14747_s27  ;;  %v4779_v26 = vmul.f32 0.25, %v4767_v54  ;;  %v4763_v36 = vsel %vm4760_vm9, %v12381_v20, %v12464_v9 }
 0xed9   : > { %v5147_v16 = vsel %vm14760_vm2, %v5126_v24, %v5128_v46  ;;  %v4797_v37 = vadd.f32 %v4785_v11, %v4733_v39  ;;  %v4794_v24 = vadd.f32 %v4782_v42, %v4730_v53  ;;  %v4796_v57 = vadd.f32 %v4784_v0, %v4732_v62  ;;  %vm14765_vm2 = vmmov %vm14763_vm0 }
 0xeda   : > { %v12675_v48 = vsel %vm5090_vm1, %v4793_v8, %v5147_v16  ;;  %v5132_v15 = vpop.permute.xlu1 %5131  ;;  %v4786_v8 = vmul.f32 0.25, %v4774_v2  ;;  %v4768_v39 = vsel %vm4762_vm7, %v12367_v41, %v12455_v21  ;;  %v4765_v53 = vsel %vm4762_vm7, %v12387_v34, %v12488_v6  ;;  %vm14770_vm7 = vmmov %vm14765_vm2 }
 0xedb   : > { %v4725_v21 = vmul.f32 0.75, %v12387_v34  ;;  %v4728_v6 = vmul.f32 0.75, %v12367_v41 }
 0xedc   : > { %v5130_v5 = vpop.permute.xlu0 %5129  ;;  %5115 = vrot.lane.b32.xlu1 %v5052_v63, %s14747_s27  ;;  %5201 = vrot.lane.b32.xlu0 %v12675_v48, %s8812_s22  ;;  %v4798_v55 = vadd.f32 %v4786_v8, %v4734_v44  ;;  %v4764_v8 = vsel %vm4761_vm11, %v12383_v27, %v12503_v4  ;;  %vm5460_vm11 = vcmask 1022976  }
 0xedd   : > { %v5149_v43 = vsel %vm14761_vm13, %v5130_v5, %v5132_v15  ;;  %v5148_v7 = vsel %vm14762_vm10, %v5128_v46, %v5130_v5  ;;  %vm14766_vm13 = vmmov %vm14763_vm0 }
 0xede   : > { %v12698_v30 = vsel %vm5092_vm3, %v4795_v13, %v5149_v43  ;;  %v5136_v58 = vpop.permute.xlu1 %5135  ;;  %v12729_v32 = vsel %vm5091_vm5, %v4794_v24, %v5148_v7  ;;  %v4766_v13 = vsel %vm4760_vm9, %v12360_v1, %v12445_v47  ;;  %vm14767_vm10 = vmmov %vm14763_vm0 }
 0xedf   : > { %v4778_v12 = vmul.f32 0.25, %v4766_v13  ;;  %vm14769_vm9 = vmmov %vm14765_vm2 }
 0xee0   : > { %v5134_v19 = vpop.permute.xlu0 %5133  ;;  %5111 = vrot.lane.b32.xlu1 %v5050_v14, %s14747_s27  ;;  %5205 = vrot.lane.b32.xlu0 %v12698_v30, %s8812_s22  ;;  %v4726_v14 = vmul.f32 0.75, %v12360_v1  ;;  %v4775_v1 = vmul.f32 0.25, %v4763_v36 }
 0xee1   : > { %v5150_v46 = vsel %vm14764_vm14, %v5134_v19, %v5136_v58  ;;  %v4791_v19 = vadd.f32 %v4779_v26, %v4727_v10  ;;  %vm14771_vm14 = vmmov %vm14765_vm2 }
 0xee2   : > { %v5140_v16 = vpop.permute.xlu1 %5139  ;;  %v12737_v63 = vsel %vm5090_vm1, %v4796_v57, %v5150_v46  ;;  %v4790_v42 = vadd.f32 %v4778_v12, %v4726_v14  ;;  %v4776_v57 = vmul.f32 0.25, %v4764_v8 }
 0xee4   : > { %v5138_v31 = vpop.permute.xlu0 %5137  ;;  %5123 = vrot.lane.b32.xlu1 %v5056_v25, %s14747_s27 }
 0xee5   : > { %v5151_v18 = vsel %vm14763_vm0, %v5136_v58, %v5138_v31  ;;  %v5152_v60 = vsel %vm14765_vm2, %v5138_v31, %v5140_v16  ;;  %vm5213_vm0 = vcmask 15360   ;;  %v4723_v58 = vmul.f32 0.75, %v12381_v20 }
 0xee6   : > { %v12723_v52 = vsel %vm5091_vm5, %v4797_v37, %v5151_v18  ;;  %v12745_v45 = vsel %vm5092_vm3, %v4798_v55, %v5152_v60  ;;  %v4780_v31 = vmul.f32 0.25, %v4768_v39  ;;  %v4777_v37 = vmul.f32 0.25, %v4765_v53 }
 0xee7   : > { %5209 = vrot.lane.b32.xlu0 %v12723_v52, %s8812_s22  ;;  %v4787_v18 = vadd.f32 %v4775_v1, %v4723_v58  ;;  %v4724_v60 = vmul.f32 0.75, %v12383_v27 }
 0xee8   : > { %5203 = vrot.lane.b32.xlu1 %v12729_v32, %s8812_s22  ;;  %v4789_v62 = vadd.f32 %v4777_v37, %v4725_v21  ;;  %v4792_v46 = vadd.f32 %v4780_v31, %v4728_v6  ;;  %v14773_v21 = vld [vmem:[#allocation5_spill] sm:$0xff] }
 0xee9   : > { %v5118_v15 = vpop.permute.xlu0 %5117  ;;  %v5340_v6 = vrot.slane %v12482_v22, %v14773_v21 }
 0xeeb   : > { %v12930_v8 = vrot.slane %v5340_v6, %v14773_v21 }
 0xeec   : > { %5207 = vrot.lane.b32.xlu1 %v12737_v63, %s8812_s22 }
 0xef0   : > { %5211 = vrot.lane.b32.xlu1 %v12745_v45, %s8812_s22 }
 0xf41   : > { %v5110_v5 = vpop.permute.xlu0 %5109 }
 0xf46   : > { %v5114_v43 = vpop.permute.xlu0 %5113 }
 0xf4a   : > { %v5122_v11 = vpop.permute.xlu0 %5121  ;;  %v5120_v38 = vpop.permute.xlu1 %5119 }
 0xf4b   : > { %v5144_v23 = vsel %vm14766_vm13, %v5118_v15, %v5120_v38  ;;  %v5145_v47 = vsel %vm14767_vm10, %v5120_v38, %v5122_v11  ;;  %v4788_v15 = vadd.f32 %v4776_v57, %v4724_v60  ;;  %v14775_v57 = vld [vmem:[#allocation7_spill] sm:$0xff] }
 0xf4c   : > { %v12767_v25 = vsel %vm5091_vm5, %v4791_v19, %v5145_v47  ;;  %v12771_v3 = vsel %vm5090_vm1, %v4790_v42, %v5144_v23 }
 0xf4d   : > { %5197 = vrot.lane.b32.xlu0 %v12767_v25, %s8812_s22  ;;  %5195 = vrot.lane.b32.xlu1 %v12771_v3, %s8812_s22 }
 0xf4e   : > { %v5202_v9 = vpop.permute.xlu0 %5201  ;;  %v5116_v51 = vpop.permute.xlu1 %5115 }
 0xf4f   : > { %v12786_v7 = vsel %vm5213_vm0, 0.0, %v5202_v9  ;;  %v5143_v2 = vsel %vm14770_vm7, %v5114_v43, %v5116_v51 }
 0xf50   : > { %v12808_v61 = vsel %vm5092_vm3, %v4789_v62, %v5143_v2  ;;  %v14774_v2 = vld [vmem:[#allocation6_spill] sm:$0xff] }
 0xf51   : > { %5388 = vrot.lane.b32.xlu0 %v12786_v7, %s14768_s23 }
 0xf52   : > { %v5112_v0 = vpop.permute.xlu1 %5111  ;;  %v5206_v16 = vpop.permute.xlu0 %5205 }
 0xf53   : > { %v5141_v24 = vsel %vm14769_vm9, %v5110_v5, %v5112_v0  ;;  %v12845_v12 = vsel %vm5213_vm0, %v5206_v16, 0.0 }
 0xf54   : > { %v12795_v50 = vsel %vm5090_vm1, %v4787_v18, %v5141_v24  ;;  %vm14772_vm1 = vmmov %vm14765_vm2  ;;  %vm14776_vm2 = vcmask 1039360  }
 0xf55   : > { %5189 = vrot.lane.b32.xlu0 %v12795_v50, %s8812_s22  ;;  %v5142_v59 = vsel %vm14772_vm1, %v5112_v0, %v5114_v43  ;;  %vm14777_vm13 = vmmov %vm14776_vm2 }
 0xf56   : > { %v5124_v20 = vpop.permute.xlu1 %5123  ;;  %v12835_v54 = vsel %vm5091_vm5, %v4788_v15, %v5142_v59 }
 0xf57   : > { %v5146_v34 = vsel %vm14771_vm14, %v5122_v11, %v5124_v20  ;;  %v5344_v20 = vrot.slane %v12482_v22, %v14774_v2 }
 0xf58   : > { %v12812_v41 = vsel %vm5092_vm3, %v4792_v46, %v5146_v34  ;;  %vm5361_vm3 = vcmp.eq.s32.totalorder %v12930_v8, 1 }
 0xf59   : > { %5193 = vrot.lane.b32.xlu0 %v12808_v61, %s8812_s22  ;;  %5199 = vrot.lane.b32.xlu1 %v12812_v41, %s8812_s22  ;;  %v5210_v27 = vpop.permute.xlu0 %5209  ;;  %v12933_v34 = vrot.slane %v5344_v20, %v14773_v21 }
 0xf5a   : > { %v5204_v35 = vpop.permute.xlu1 %5203 }
 0xf5b   : > { %v12819_v4 = vsel %vm5213_vm0, %v5204_v35, %v5206_v16  ;;  %v12822_v44 = vsel %vm5213_vm0, %v5202_v9, %v5204_v35  ;;  %v5348_v16 = vrot.slane %v12482_v22, %v14775_v57  ;;  %vm5362_vm5 = vcmp.eq.s32.totalorder %v12933_v34, 1 }
 0xf5d   : > { %5392 = vrot.lane.b32.xlu0 %v12819_v4, %s14768_s23  ;;  %5390 = vrot.lane.b32.xlu1 %v12822_v44, %s14768_s23  ;;  %v12944_v59 = vrot.slane %v5348_v16, %v14773_v21 }
 0xf5e   : > { %v5208_v55 = vpop.permute.xlu1 %5207 }
 0xf5f   : > { %v12831_v5 = vsel %vm5213_vm0, 0.0, %v5208_v55  ;;  %v12852_v40 = vsel %vm5213_vm0, %v5208_v55, %v5210_v27  ;;  %vm5363_vm10 = vcmp.eq.s32.totalorder %v12944_v59, 1  ;;  %v5331_v59 = vmul.f32 0.75, %v12819_v4 }
 0xf61   : > { %5396 = vrot.lane.b32.xlu0 %v12831_v5, %s14768_s23  ;;  %5191 = vrot.lane.b32.xlu1 %v12835_v54, %s8812_s22 }
 0xf62   : > { %v5212_v13 = vpop.permute.xlu1 %5211 }
 0xf63   : > { %v12842_v26 = vsel %vm5213_vm0, %v5210_v27, %v5212_v13  ;;  %v12859_v43 = vsel %vm5213_vm0, %v5212_v13, 0.0 }
 0xf65   : > { %5400 = vrot.lane.b32.xlu0 %v12842_v26, %s14768_s23  ;;  %5394 = vrot.lane.b32.xlu1 %v12845_v12, %s14768_s23 }
 0xf69   : > { %5444 = vrot.lane.b32.xlu0 %v12786_v7, %s8813_s18  ;;  %5398 = vrot.lane.b32.xlu1 %v12852_v40, %s14768_s23 }
 0xf6d   : > { %5448 = vrot.lane.b32.xlu0 %v12819_v4, %s8813_s18  ;;  %5402 = vrot.lane.b32.xlu1 %v12859_v43, %s14768_s23 }
 0xf71   : > { %5452 = vrot.lane.b32.xlu0 %v12831_v5, %s8813_s18  ;;  %5446 = vrot.lane.b32.xlu1 %v12822_v44, %s8813_s18 }
 0xf75   : > { %5456 = vrot.lane.b32.xlu0 %v12842_v26, %s8813_s18  ;;  %5450 = vrot.lane.b32.xlu1 %v12845_v12, %s8813_s18 }
 0xf79   : > { %5454 = vrot.lane.b32.xlu1 %v12852_v40, %s8813_s18 }
 0xf7d   : > { %5458 = vrot.lane.b32.xlu1 %v12859_v43, %s8813_s18 }
 0xfbf   : > { %v5198_v10 = vpop.permute.xlu0 %5197  ;;  %v5196_v14 = vpop.permute.xlu1 %5195 }
 0xfc0   : > { %v12878_v11 = vsel %vm5213_vm0, 0.0, %v5196_v14  ;;  %v12881_v38 = vsel %vm5213_vm0, %v5196_v14, %v5198_v10 }
 0xfc1   : > { %5380 = vrot.lane.b32.xlu0 %v12878_v11, %s14768_s23  ;;  %5382 = vrot.lane.b32.xlu1 %v12881_v38, %s14768_s23 }
 0xfc3   : > { %v5389_v19 = vpop.permute.xlu0 %5388 }
 0xfc7   : > { %v5190_v42 = vpop.permute.xlu0 %5189 }
 0xfc8   : > { %v12902_v58 = vsel %vm5213_vm0, 0.0, %v5190_v42 }
 0xfcb   : > { %v5194_v36 = vpop.permute.xlu0 %5193  ;;  %v5200_v23 = vpop.permute.xlu1 %5199 }
 0xfcc   : > { %v12888_v47 = vsel %vm5213_vm0, %v5198_v10, %v5200_v23  ;;  %v12891_v1 = vsel %vm5213_vm0, %v5200_v23, 0.0  ;;  %v12915_v24 = vsel %vm5213_vm0, %v5194_v36, 0.0 }
 0xfcd   : > { %5384 = vrot.lane.b32.xlu0 %v12888_v47, %s14768_s23  ;;  %5386 = vrot.lane.b32.xlu1 %v12891_v1, %s14768_s23 }
 0xfcf   : > { %v5393_v9 = vpop.permute.xlu0 %5392  ;;  %v5391_v51 = vpop.permute.xlu1 %5390 }
 0xfd0   : > { %v5410_v15 = vsel %vm14776_vm2, %v5389_v19, %v5391_v51  ;;  %v5411_v22 = vsel %vm14777_vm13, %v5391_v51, %v5393_v9 }
 0xfd1   : > { %5436 = vrot.lane.b32.xlu0 %v12878_v11, %s8813_s18  ;;  %5438 = vrot.lane.b32.xlu1 %v12881_v38, %s8813_s18 }
 0xfd3   : > { %v5397_v39 = vpop.permute.xlu0 %5396  ;;  %v5192_v53 = vpop.permute.xlu1 %5191 }
 0xfd4   : > { %v12905_v31 = vsel %vm5213_vm0, %v5190_v42, %v5192_v53  ;;  %v12912_v18 = vsel %vm5213_vm0, %v5192_v53, %v5194_v36  ;;  %vm14778_vm0 = vmmov %vm14776_vm2 }
 0xfd5   : > { %5372 = vrot.lane.b32.xlu0 %v12902_v58, %s14768_s23  ;;  %5374 = vrot.lane.b32.xlu1 %v12905_v31, %s14768_s23  ;;  %vm14779_vm9 = vmmov %vm14778_vm0 }
 0xfd6   : > { %vm14780_vm7 = vmmov %vm14778_vm0 }
 0xfd7   : > { %v5401_v37 = vpop.permute.xlu0 %5400  ;;  %v5395_v0 = vpop.permute.xlu1 %5394  ;;  %vm14781_vm14 = vmmov %vm14778_vm0 }
 0xfd8   : > { %v5412_v51 = vsel %vm14778_vm0, %v5393_v9, %v5395_v0  ;;  %vm14782_vm1 = vmmov %vm14778_vm0 }
 0xfd9   : > { %5376 = vrot.lane.b32.xlu0 %v12912_v18, %s14768_s23  ;;  %5378 = vrot.lane.b32.xlu1 %v12915_v24, %s14768_s23  ;;  %vm14783_vm2 = vmmov %vm14778_vm0 }
 0xfda   : > { %vm14784_vm13 = vmmov %vm14778_vm0 }
 0xfdb   : > { %v5445_v62 = vpop.permute.xlu0 %5444  ;;  %v5399_v46 = vpop.permute.xlu1 %5398 }
 0xfdd   : > { %5428 = vrot.lane.b32.xlu0 %v12902_v58, %s8813_s18  ;;  %5430 = vrot.lane.b32.xlu1 %v12905_v31, %s8813_s18 }
 0xfdf   : > { %v5449_v35 = vpop.permute.xlu0 %5448  ;;  %v5403_v60 = vpop.permute.xlu1 %5402 }
 0xfe1   : > { %5432 = vrot.lane.b32.xlu0 %v12912_v18, %s8813_s18  ;;  %5434 = vrot.lane.b32.xlu1 %v12915_v24, %s8813_s18 }
 0xfe3   : > { %v5447_v55 = vpop.permute.xlu1 %5446  ;;  %v5453_v10 = vpop.permute.xlu0 %5452 }
 0xfe4   : > { %v5467_v27 = vsel %vm5460_vm11, %v5445_v62, %v5447_v55  ;;  %v5468_v13 = vsel %vm5460_vm11, %v5447_v55, %v5449_v35  ;;  %v5413_v55 = vsel %vm14779_vm9, %v5397_v39, %v5399_v46  ;;  %vm14786_vm9 = vmmov %vm14778_vm0 }
 0xfe5   : > { %v5491_v14 = vsel %vm5361_vm3, %v5410_v15, %v5467_v27  ;;  %v5492_v42 = vsel %vm5362_vm5, %v5411_v22, %v5468_v13  ;;  %5440 = vrot.lane.b32.xlu0 %v12888_v47, %s8813_s18  ;;  %5442 = vrot.lane.b32.xlu1 %v12891_v1, %s8813_s18  ;;  %v5414_v15 = vsel %vm14780_vm7, %v5399_v46, %v5401_v37  ;;  %vm5545_vm7 = vcmask 7168   ;;  %s440_s18 = scalar_lea.vmem %s13904_s13, %s14923_s29 }
 0xfe6   : > { %v5503_v19 = vmul.f32 0.25, %v5491_v14  ;;  %v5504_v36 = vmul.f32 0.25, %v5492_v42  ;;  %v5415_v42 = vsel %vm14781_vm14, %v5401_v37, %v5403_v60 }
 0xfe7   : > { %v5451_v23 = vpop.permute.xlu1 %5450  ;;  %v5457_v62 = vpop.permute.xlu0 %5456 }
 0xfe8   : > { %v5469_v53 = vsel %vm5460_vm11, %v5449_v35, %v5451_v23 }
 0xfe9   : > { %v5493_v6 = vsel %vm5363_vm10, %v5412_v51, %v5469_v53  ;;  %5535 = vrot.lane.b32.xlu1 %v5504_v36, %s8814_s30  ;;  %5533 = vrot.lane.b32.xlu0 %v5503_v19, %s8814_s30 }
 0xfea   : > { %v5505_v20 = vmul.f32 0.25, %v5493_v6 }
 0xfeb   : > { %v5455_v16 = vpop.permute.xlu1 %5454 }
 0xfec   : > { %v5470_v22 = vsel %vm5460_vm11, %v5453_v10, %v5455_v16  ;;  %v5471_v9 = vsel %vm5460_vm11, %v5455_v16, %v5457_v62 }
 0xfed   : > { %v5494_v0 = vsel %vm5361_vm3, %v5413_v55, %v5470_v22  ;;  %v5495_v35 = vsel %vm5362_vm5, %v5414_v15, %v5471_v9  ;;  %5537 = vrot.lane.b32.xlu0 %v5505_v20, %s8814_s30 }
 0xfee   : > { %v5506_v27 = vmul.f32 0.25, %v5494_v0  ;;  %v5507_v13 = vmul.f32 0.25, %v5495_v35 }
 0xfef   : > { %v5459_v14 = vpop.permute.xlu1 %5458 }
 0xff0   : > { %v5472_v39 = vsel %vm5460_vm11, %v5457_v62, %v5459_v14  ;;  %5539 = vrot.lane.b32.xlu1 %v5506_v27, %s8814_s30 }
 0xff1   : > { %v5496_v46 = vsel %vm5363_vm10, %v5415_v42, %v5472_v39  ;;  %5541 = vrot.lane.b32.xlu0 %v5507_v13, %s8814_s30 }
 0xff2   : > { %v5508_v10 = vmul.f32 0.25, %v5496_v46 }
 0xff4   : > { %5543 = vrot.lane.b32.xlu1 %v5508_v10, %s8814_s30 }
0x1033   : > { %v5381_v19 = vpop.permute.xlu0 %5380  ;;  %v5383_v36 = vpop.permute.xlu1 %5382 }
0x1034   : > { %v5407_v37 = vsel %vm14782_vm1, %v5381_v19, %v5383_v36  ;;  %vm14787_vm1 = vmmov %vm14778_vm0 }
0x103f   : > { %v5385_v23 = vpop.permute.xlu0 %5384  ;;  %v5387_v51 = vpop.permute.xlu1 %5386 }
0x1043   : > { %v5437_v53 = vpop.permute.xlu0 %5436  ;;  %v5439_v6 = vpop.permute.xlu1 %5438 }
0x1044   : > { %v5464_v60 = vsel %vm5460_vm11, %v5437_v53, %v5439_v6 }
0x1045   : > { %v5488_v20 = vsel %vm5361_vm3, %v5407_v37, %v5464_v60 }
0x1046   : > { %v5500_v62 = vmul.f32 0.25, %v5488_v20 }
0x1047   : > { %v5373_v16 = vpop.permute.xlu0 %5372  ;;  %v5375_v55 = vpop.permute.xlu1 %5374 }
0x1048   : > { %5527 = vrot.lane.b32.xlu1 %v5500_v62, %s8814_s30  ;;  %v5404_v35 = vsel %vm14783_vm2, %v5373_v16, %v5375_v55 }
0x104b   : > { %v5377_v15 = vpop.permute.xlu0 %5376  ;;  %v5379_v22 = vpop.permute.xlu1 %5378 }
0x104c   : > { %v5405_v46 = vsel %vm14784_vm13, %v5375_v55, %v5377_v15  ;;  %v5406_v10 = vsel %vm14778_vm0, %v5377_v15, %v5379_v22  ;;  %v5409_v15 = vsel %vm14786_vm9, %v5385_v23, %v5387_v51  ;;  %vm14788_vm13 = vmmov %vm14778_vm0 }
0x104d   : > { %vm14790_vm9 = vmmov %vm14787_vm1 }
0x104f   : > { %v5429_v9 = vpop.permute.xlu0 %5428  ;;  %v5431_v0 = vpop.permute.xlu1 %5430 }
0x1050   : > { %v5461_v27 = vsel %vm5460_vm11, %v5429_v9, %v5431_v0 }
0x1051   : > { %v5485_v13 = vsel %vm5361_vm3, %v5404_v35, %v5461_v27  ;;  %vm14785_vm3 = vmmov %vm14778_vm0 }
0x1052   : > { %v5497_v14 = vmul.f32 0.25, %v5485_v13  ;;  %v5408_v62 = vsel %vm14785_vm3, %v5383_v36, %v5385_v23  ;;  %v5330_v23 = vmul.f32 0.75, %v12822_v44  ;;  %vm14789_vm3 = vmmov %vm14787_vm1 }
0x1053   : > { %v5433_v42 = vpop.permute.xlu0 %5432  ;;  %v5435_v39 = vpop.permute.xlu1 %5434 }
0x1054   : > { %v5462_v19 = vsel %vm5460_vm11, %v5431_v0, %v5433_v42  ;;  %v5463_v53 = vsel %vm5460_vm11, %v5433_v42, %v5435_v39  ;;  %5521 = vrot.lane.b32.xlu0 %v5497_v14, %s8814_s30 }
0x1055   : > { %v5486_v37 = vsel %vm5362_vm5, %v5405_v46, %v5462_v19  ;;  %v5487_v8 = vsel %vm5363_vm10, %v5406_v10, %v5463_v53  ;;  %v5332_v46 = vmul.f32 0.75, %v12845_v12 }
0x1056   : > { %v5498_v60 = vmul.f32 0.25, %v5486_v37  ;;  %v5499_v20 = vmul.f32 0.25, %v5487_v8  ;;  %v5334_v8 = vmul.f32 0.75, %v12852_v40 }
0x1057   : > { %v5441_v16 = vpop.permute.xlu0 %5440  ;;  %v5443_v55 = vpop.permute.xlu1 %5442 }
0x1058   : > { %v5465_v22 = vsel %vm5460_vm11, %v5439_v6, %v5441_v16  ;;  %v5466_v9 = vsel %vm5460_vm11, %v5441_v16, %v5443_v55  ;;  %5523 = vrot.lane.b32.xlu1 %v5498_v60, %s8814_s30  ;;  %5525 = vrot.lane.b32.xlu0 %v5499_v20, %s8814_s30  ;;  %v5329_v6 = vmul.f32 0.75, %v12786_v7  ;;  %v5333_v20 = vmul.f32 0.75, %v12831_v5 }
0x1059   : > { %v5489_v0 = vsel %vm5362_vm5, %v5408_v62, %v5465_v22  ;;  %v5490_v35 = vsel %vm5363_vm10, %v5409_v15, %v5466_v9  ;;  %v5335_v22 = vmul.f32 0.75, %v12842_v26  ;;  %v5336_v9 = vmul.f32 0.75, %v12859_v43 }
0x105a   : > { %v5501_v36 = vmul.f32 0.25, %v5489_v0  ;;  %v5502_v27 = vmul.f32 0.25, %v5490_v35  ;;  %v5265_v43 = vrot.slane %v12618_v17, %v14774_v2 }
0x105b   : > { %v5534_v13 = vpop.permute.xlu0 %5533  ;;  %v5536_v51 = vpop.permute.xlu1 %5535 }
0x105c   : > { %v5550_v14 = vsel %vm5545_vm7, %v5534_v13, %v5536_v51  ;;  %5529 = vrot.lane.b32.xlu0 %v5501_v36, %s8814_s30  ;;  %5531 = vrot.lane.b32.xlu1 %v5502_v27, %s8814_s30  ;;  %v5578_v42 = vadd.f32 %v5534_v13, %v5329_v6  ;;  %v5325_v36 = vmul.f32 0.75, %v12878_v11 }
0x105d   : > { %v5579_v34 = vadd.f32 %v5550_v14, %v5330_v23  ;;  %v5261_v23 = vrot.slane %v12618_v17, %v14773_v21  ;;  %v5269_v14 = vrot.slane %v12618_v17, %v14775_v57 }
0x105f   : > { %v5538_v39 = vpop.permute.xlu0 %5537  ;;  %v13039_v6 = vrot.slane %v5261_v23, %v14773_v21  ;;  %v5253_v23 = vmul.f32 0.75, %v12729_v32 }
0x1060   : > { %v5551_v10 = vsel %vm5545_vm7, %v5536_v51, %v5538_v39  ;;  %5645 = vrot.lane.b32.xlu0 %v5578_v42, %s14768_s23  ;;  %5647 = vrot.lane.b32.xlu1 %v5579_v34, %s14768_s23  ;;  %v5581_v53 = vadd.f32 %v5538_v39, %v5332_v46  ;;  %v5321_v51 = vmul.f32 0.75, %v12902_v58  ;;  %v13044_v42 = vrot.slane %v5265_v43, %v14773_v21 }
0x1061   : > { %v5580_v19 = vadd.f32 %v5551_v10, %v5331_v59  ;;  %vm5282_vm11 = vcmp.eq.s32.totalorder %v13039_v6, 1  ;;  %v13049_v39 = vrot.slane %v5269_v14, %v14773_v21  ;;  %v5323_v10 = vmul.f32 0.75, %v12912_v18 }
0x1062   : > { %v5540_v37 = vpop.permute.xlu1 %5539  ;;  %vm5283_vm5 = vcmp.eq.s32.totalorder %v13044_v42, 1  ;;  %v5324_v43 = vmul.f32 0.75, %v12915_v24 }
0x1063   : > { %v5542_v60 = vpop.permute.xlu0 %5541  ;;  %v5582_v16 = vadd.f32 %v5540_v37, %v5333_v20  ;;  %vm5284_vm10 = vcmp.eq.s32.totalorder %v13049_v39, 1  ;;  %v5292_v20 = vsel %vm5283_vm5, %v12729_v32, %v12822_v44 }
0x1064   : > { %v5552_v62 = vsel %vm5545_vm7, %v5540_v37, %v5542_v60  ;;  %5649 = vrot.lane.b32.xlu0 %v5580_v19, %s14768_s23  ;;  %5651 = vrot.lane.b32.xlu1 %v5581_v53, %s14768_s23  ;;  %v5589_v53 = vrot.slane %v12629_v29, %v14773_v21 }
0x1065   : > { %v5583_v12 = vadd.f32 %v5552_v62, %v5334_v8  ;;  %v5291_v8 = vsel %vm5282_vm11, %v12675_v48, %v12786_v7  ;;  %v5326_v62 = vmul.f32 0.75, %v12881_v38 }
0x1066   : > { %v5544_v55 = vpop.permute.xlu1 %5543 }
0x1067   : > { %v5553_v15 = vsel %vm5545_vm7, %v5542_v60, %v5544_v55  ;;  %v5585_v35 = vadd.f32 %v5544_v55, %v5336_v9  ;;  %v5593_v60 = vrot.slane %v12629_v29, %v14774_v2  ;;  %v13073_v2 = vrot.slane %v5589_v53, %v14773_v21 }
0x1068   : > { %5653 = vrot.lane.b32.xlu0 %v5582_v16, %s14768_s23  ;;  %5655 = vrot.lane.b32.xlu1 %v5583_v12, %s14768_s23  ;;  %v5584_v0 = vadd.f32 %v5553_v15, %v5335_v22  ;;  %v5327_v16 = vmul.f32 0.75, %v12888_v47  ;;  %v5597_v22 = vrot.slane %v12629_v29, %v14775_v57  ;;  %v5303_v9 = vmul.f32 0.25, %v5291_v8 }
0x1069   : > { %vm5610_vm14 = vcmp.eq.s32.totalorder %v13073_v2, 1  ;;  %v5255_v8 = vmul.f32 0.75, %v12737_v63 }
0x106c   : > { %5659 = vrot.lane.b32.xlu1 %v5585_v35, %s14768_s23  ;;  %5657 = vrot.lane.b32.xlu0 %v5584_v0, %s14768_s23  ;;  %v5293_v35 = vsel %vm5284_vm10, %v12698_v30, %v12819_v4  ;;  %v5294_v4 = vsel %vm5282_vm11, %v12737_v63, %v12831_v5  ;;  %v5295_v5 = vsel %vm5283_vm5, %v12723_v52, %v12852_v40 }
0x106d   : > { %v5305_v32 = vmul.f32 0.25, %v5293_v35  ;;  %v5306_v53 = vmul.f32 0.25, %v5294_v4 }
0x106f   : > { %v5318_v63 = vadd.f32 %v5306_v53, %v5255_v8  ;;  %v5285_v8 = vsel %vm5282_vm11, %v12795_v50, %v12902_v58 }
0x10ba   : > { %v5528_v27 = vpop.permute.xlu1 %5527 }
0x10bb   : > { %v5574_v13 = vadd.f32 %v5528_v27, %v5325_v36  ;;  %v5304_v36 = vmul.f32 0.25, %v5292_v20 }
0x10bd   : > { %5637 = vrot.lane.b32.xlu0 %v5574_v13, %s14768_s23  ;;  %v13082_v13 = vrot.slane %v5593_v60, %v14773_v21 }
0x10bf   : > { %vm5611_vm2 = vcmp.eq.s32.totalorder %v13082_v13, 1 }
0x10c6   : > { %v5522_v34 = vpop.permute.xlu0 %5521 }
0x10c7   : > { %v5570_v59 = vadd.f32 %v5522_v34, %v5321_v51 }
0x10c9   : > { %5629 = vrot.lane.b32.xlu0 %v5570_v59, %s14768_s23  ;;  %v5254_v59 = vmul.f32 0.75, %v12698_v30 }
0x10ca   : > { %v5526_v46 = vpop.permute.xlu0 %5525  ;;  %v5524_v19 = vpop.permute.xlu1 %5523 }
0x10cb   : > { %v5547_v17 = vsel %vm5545_vm7, %v5524_v19, %v5526_v46  ;;  %v5573_v24 = vadd.f32 %v5526_v46, %v5324_v43 }
0x10cc   : > { %v5572_v37 = vadd.f32 %v5547_v17, %v5323_v10  ;;  %v5546_v10 = vsel %vm5545_vm7, %v5522_v34, %v5524_v19  ;;  %v5316_v17 = vadd.f32 %v5304_v36, %v5253_v23  ;;  %v5296_v34 = vsel %vm5284_vm10, %v12745_v45, %v12842_v26 }
0x10cd   : > { %v5328_v26 = vmul.f32 0.75, %v12891_v1  ;;  %v5256_v36 = vmul.f32 0.75, %v12723_v52 }
0x10ce   : > { %v5530_v12 = vpop.permute.xlu0 %5529  ;;  %5633 = vrot.lane.b32.xlu0 %v5572_v37, %s14768_s23  ;;  %v5532_v55 = vpop.permute.xlu1 %5531  ;;  %v5322_v37 = vmul.f32 0.75, %v12905_v31 }
0x10cf   : > { %v5548_v7 = vsel %vm5545_vm7, %v5528_v27, %v5530_v12  ;;  %v5549_v15 = vsel %vm5545_vm7, %v5530_v12, %v5532_v55  ;;  %v5252_v27 = vmul.f32 0.75, %v12675_v48  ;;  %v13096_v48 = vrot.slane %v5597_v22, %v14773_v21  ;;  %vm14792_vm7 = vmmov %vm14787_vm1 }
0x10d0   : > { %v5575_v44 = vadd.f32 %v5548_v7, %v5326_v62  ;;  %v5576_v0 = vadd.f32 %v5549_v15, %v5327_v16  ;;  %v5571_v60 = vadd.f32 %v5546_v10, %v5322_v37  ;;  %v5317_v62 = vadd.f32 %v5305_v32, %v5254_v59 }
0x10d1   : > { %v5315_v14 = vadd.f32 %v5303_v9, %v5252_v27  ;;  %vm5612_vm0 = vcmp.eq.s32.totalorder %v13096_v48, 1  ;;  %v5307_v12 = vmul.f32 0.25, %v5295_v5  ;;  %v5308_v15 = vmul.f32 0.25, %v5296_v34 }
0x10d2   : > { %v5646_v51 = vpop.permute.xlu0 %5645  ;;  %5639 = vrot.lane.b32.xlu1 %v5575_v44, %s14768_s23  ;;  %5641 = vrot.lane.b32.xlu0 %v5576_v0, %s14768_s23  ;;  %v5648_v29 = vpop.permute.xlu1 %5647  ;;  %v5257_v27 = vmul.f32 0.75, %v12745_v45  ;;  %v5577_v23 = vadd.f32 %v5532_v55, %v5328_v26  ;;  %v5288_v37 = vsel %vm5282_vm11, %v12771_v3, %v12878_v11  ;;  %v5286_v11 = vsel %vm5283_vm5, %v12835_v54, %v12905_v31  ;;  %vm14794_vm11 = vmmov %vm14787_vm1 }
0x10d3   : > { %v5667_v57 = vsel %vm14787_vm1, %v5646_v51, %v5648_v29  ;;  %v5290_v31 = vsel %vm5284_vm10, %v12812_v41, %v12888_v47 }
0x10d4   : > { %v5691_v21 = vsel %vm5610_vm14, %v5315_v14, %v5667_v57  ;;  %v5320_v57 = vadd.f32 %v5308_v15, %v5257_v27  ;;  %v5247_v15 = vmul.f32 0.75, %v12835_v54  ;;  %v5251_v27 = vmul.f32 0.75, %v12812_v41 }
0x10d5   : > { %v5703_v16 = vmul.f32 %v5691_v21, %v14729_v49  ;;  %v5287_v21 = vsel %vm5284_vm10, %v12808_v61, %v12912_v18  ;;  %v5248_v18 = vmul.f32 0.75, %v12808_v61  ;;  %vm14796_vm10 = vmmov %vm14787_vm1 }
0x10d6   : > { %v5650_v46 = vpop.permute.xlu0 %5649  ;;  %5635 = vrot.lane.b32.xlu1 %v5573_v24, %s14768_s23  ;;  %v5652_v30 = vpop.permute.xlu1 %5651  ;;  %v5299_v34 = vmul.f32 0.25, %v5287_v21 }
0x10d7   : > { %v5668_v19 = vsel %vm14788_vm13, %v5648_v29, %v5650_v46  ;;  %v5669_v40 = vsel %vm14789_vm3, %v5650_v46, %v5652_v30  ;;  %v5319_v29 = vadd.f32 %v5307_v12, %v5256_v36  ;;  %v5300_v46 = vmul.f32 0.25, %v5288_v37  ;;  %vm14793_vm13 = vmmov %vm14787_vm1 }
0x10d8   : > { %v5692_v20 = vsel %vm5611_vm2, %v5316_v17, %v5668_v19  ;;  %v5693_v22 = vsel %vm5612_vm0, %v5317_v62, %v5669_v40  ;;  %v5249_v30 = vmul.f32 0.75, %v12771_v3  ;;  %v5289_v3 = vsel %vm5283_vm5, %v12767_v25, %v12881_v38  ;;  %vm14795_vm5 = vmmov %vm14787_vm1 }
0x10d9   : > { %v5704_v7 = vmul.f32 %v5692_v20, %v14730_v56  ;;  %v5705_v1 = vmul.f32 %v5693_v22, %v14731_v33  ;;  %v5297_v62 = vmul.f32 0.25, %v5285_v8  ;;  %v5298_v12 = vmul.f32 0.25, %v5286_v11  ;;  %vm14797_vm3 = vmmov %vm14787_vm1 }
0x10da   : > { %v5654_v9 = vpop.permute.xlu0 %5653  ;;  %5631 = vrot.lane.b32.xlu1 %v5571_v60, %s14768_s23  ;;  %v5656_v44 = vpop.permute.xlu1 %5655  ;;  %v5312_v20 = vadd.f32 %v5300_v46, %v5249_v30  ;;  %v5311_v6 = vadd.f32 %v5299_v34, %v5248_v18  ;;  %v5301_v42 = vmul.f32 0.25, %v5289_v3 }
0x10db   : > { %v8388_v0 = vpack.i.bf16 %v5704_v7, %v5703_v16  ;;  %v5670_v35 = vsel %vm14790_vm9, %v5654_v9, %v5656_v44  ;;  %v5246_v7 = vmul.f32 0.75, %v12795_v50  ;;  %vm14798_vm9 = vmmov %vm14787_vm1 }
0x10dc   : > { %v5694_v43 = vsel %vm5610_vm14, %v5318_v63, %v5670_v35  ;;  %v5250_v63 = vmul.f32 0.75, %v12767_v25 }
0x10dd   : > { %v5706_v51 = vmul.f32 %v5694_v43, %v14729_v49  ;;  %8389 = vrot.lane.b32.xlu0 %v8388_v0, %s14791_s14  ;;  %v5309_v39 = vadd.f32 %v5297_v62, %v5246_v7  ;;  %v5310_v0 = vadd.f32 %v5298_v12, %v5247_v15 }
0x10de   : > { %v5658_v4 = vpop.permute.xlu0 %5657  ;;  %5643 = vrot.lane.b32.xlu1 %v5577_v23, %s14768_s23  ;;  %v5660_v32 = vpop.permute.xlu1 %5659  ;;  %v5313_v23 = vadd.f32 %v5301_v42, %v5250_v63 }
0x10df   : > { %v8393_v24 = vpack.i.bf16 %v5706_v51, %v5705_v1  ;;  %v5671_v52 = vsel %vm14792_vm7, %v5656_v44, %v5658_v4  ;;  %v5672_v45 = vsel %vm14787_vm1, %v5658_v4, %v5660_v32  ;;  %v5302_v44 = vmul.f32 0.25, %v5290_v31 }
0x10e0   : > { %v5695_v55 = vsel %vm5611_vm2, %v5319_v29, %v5671_v52  ;;  %v5696_v14 = vsel %vm5612_vm0, %v5320_v57, %v5672_v45 }
0x10e1   : > { %v5707_v59 = vmul.f32 %v5695_v55, %v14730_v56  ;;  %v5708_v10 = vmul.f32 %v5696_v14, %v14731_v33  ;;  %v5314_v57 = vadd.f32 %v5302_v44, %v5251_v27 }
0x10e2   : > { %8394 = vrot.lane.b32.xlu1 %v8393_v24, %s14791_s14 }
0x10e3   : > { %v8398_v17 = vpack.i.bf16 %v5708_v10, %v5707_v59 }
0x10e5   : > { %8399 = vrot.lane.b32.xlu0 %v8398_v17, %s14791_s14 }
0x112f   : > { %v5638_v53 = vpop.permute.xlu0 %5637 }
0x113b   : > { %v5630_v5 = vpop.permute.xlu0 %5629 }
0x1140   : > { %v5634_v19 = vpop.permute.xlu0 %5633 }
0x1144   : > { %v5640_v40 = vpop.permute.xlu1 %5639  ;;  %v5642_v38 = vpop.permute.xlu0 %5641 }
0x1145   : > { %v5664_v60 = vsel %vm14793_vm13, %v5638_v53, %v5640_v40  ;;  %v5665_v35 = vsel %vm14795_vm5, %v5640_v40, %v5642_v38 }
0x1146   : > { %v5688_v58 = vsel %vm5610_vm14, %v5312_v20, %v5664_v60  ;;  %v5689_v4 = vsel %vm5611_vm2, %v5313_v23, %v5665_v35 }
0x1147   : > { %v5700_v22 = vmul.f32 %v5688_v58, %v14729_v49  ;;  %v5701_v55 = vmul.f32 %v5689_v4, %v14730_v56 }
0x1148   : > { %v5636_v16 = vpop.permute.xlu1 %5635 }
0x1149   : > { %v5663_v61 = vsel %vm14794_vm11, %v5634_v19, %v5636_v16 }
0x114a   : > { %v5687_v26 = vsel %vm5612_vm0, %v5311_v6, %v5663_v61 }
0x114b   : > { %v5699_v9 = vmul.f32 %v5687_v26, %v14731_v33 }
0x114c   : > { %v5632_v47 = vpop.permute.xlu1 %5631 }
0x114d   : > { %v8428_v50 = vpack.i.bf16 %v5700_v22, %v5699_v9  ;;  %v5661_v54 = vsel %vm14796_vm10, %v5630_v5, %v5632_v47  ;;  %v5662_v36 = vsel %vm14797_vm3, %v5632_v47, %v5634_v19 }
0x114e   : > { %v5685_v43 = vsel %vm5610_vm14, %v5309_v39, %v5661_v54  ;;  %v5686_v25 = vsel %vm5611_vm2, %v5310_v0, %v5662_v36  ;;  %vm14799_vm14 = vcmask 203776  }
0x114f   : > { %v5697_v1 = vmul.f32 %v5685_v43, %v14729_v49  ;;  %v5698_v51 = vmul.f32 %v5686_v25, %v14730_v56  ;;  %v8390_v29 = vpop.permute.xlu0 %8389  ;;  %vm14800_vm2 = vmmov %vm14799_vm14 }
0x1150   : > { %v5644_v32 = vpop.permute.xlu1 %5643  ;;  %v8392_v52 = vunpack.i.h.bf16 %v8390_v29  ;;  %v13194_v45 = vunpack.i.l.bf16 %v8390_v29 }
0x1151   : > { %v8423_v24 = vpack.i.bf16 %v5698_v51, %v5697_v1  ;;  %v5666_v41 = vsel %vm14798_vm9, %v5642_v38, %v5644_v32  ;;  %vm14809_vm9 = vcmask 850944  }
0x1152   : > { %v5690_v2 = vsel %vm5612_vm0, %v5314_v57, %v5666_v41  ;;  %v13204_v17 = vsel %vm14799_vm14, %v13194_v45, %v8392_v52  ;;  %vm14801_vm0 = vmmov %vm14800_vm2 }
0x1153   : > { %v5702_v49 = vmul.f32 %v5690_v2, %v14731_v33  ;;  %vm14802_vm7 = vmmov %vm14801_vm0 }
0x1154   : > { %v8395_v14 = vpop.permute.xlu1 %8394  ;;  %vm14803_vm1 = vmmov %vm14801_vm0 }
0x1155   : > { %v8403_v59 = vpack.i.bf16 %v5702_v49, %v5701_v55  ;;  %v13200_v10 = vunpack.i.h.bf16 %v8395_v14  ;;  %v8396_v13 = vunpack.i.l.bf16 %v8395_v14  ;;  %v5772_v37 = vsel %vm14803_vm1, 0.0, %v13194_v45  ;;  %vm14804_vm13 = vmmov %vm14801_vm0 }
0x1156   : > { %vm14805_vm11 = vmmov %vm14801_vm0 }
0x1157   : > { %v5773_v53 = vsel %vm14800_vm2, 0.0, %v13200_v10  ;;  %v13211_v5 = vsel %vm14801_vm0, %v8392_v52, %v8396_v13  ;;  %v5776_v56 = vsel %vm14802_vm7, %v8396_v13, 0.0  ;;  %v8400_v33 = vpop.permute.xlu0 %8399  ;;  %8404 = vrot.lane.b32.xlu1 %v8403_v59, %s14791_s14  ;;  %vm14806_vm5 = vmmov %vm14801_vm0 }
0x1158   : > { %v8402_v21 = vunpack.i.h.bf16 %v8400_v33  ;;  %v8401_v46 = vunpack.i.l.bf16 %v8400_v33  ;;  %v13219_v30 = vpack.i.bf16 %v13211_v5, %v13204_v17  ;;  %v13221_v34 = vpack.i.bf16 %v5773_v53, %v5772_v37  ;;  %vm14807_vm10 = vmmov %vm14801_vm0 }
0x1159   : > { %v13234_v11 = vpack.i.bf16 %v5776_v56, %v13211_v5  ;;  %vm14808_vm3 = vmmov %vm14801_vm0 }
0x115a   : > { %v5777_v19 = vsel %vm14804_vm13, %v8402_v21, 0.0  ;;  %v13226_v40 = vsel %vm14805_vm11, %v13200_v10, %v8401_v46  ;;  %v13229_v8 = vsel %vm14806_vm5, %v8401_v46, %v8402_v21  ;;  %8409 = vrot.lane.b32.xlu0 %v13219_v30, %s14747_s27  ;;  %vm14810_vm14 = vmmov %vm14809_vm9  ;;  %v13422_v21 = vld [vmem:[%s13902_s11] sm:$0xff] }
0x115b   : > { %v13238_v60 = vpack.i.bf16 %v13229_v8, %v13226_v40  ;;  %v13241_v18 = vpack.i.bf16 %v5777_v19, %v13229_v8  ;;  %v13247_v20 = vpack.i.bf16 %v5777_v19, %v5776_v56  ;;  %v13251_v3 = vpack.i.bf16 %v13226_v40, %v13204_v17  ;;  %vm14811_vm2 = vmmov %vm14809_vm9 }
0x115c   : > { %vm14812_vm0 = vmmov %vm14811_vm2  ;;  %v13426_v46 = vcombine.high %v13422_v21, %v13422_v21 }
0x115d   : > { %8414 = vrot.lane.b32.xlu1 %v13238_v60, %s14747_s27  ;;  %vm14813_vm7 = vmmov %vm14803_vm1 }
0x115e   : > { %8419 = vrot.lane.b32.xlu0 %v13221_v34, %s14747_s27  ;;  %vm14814_vm13 = vmmov %vm14803_vm1  ;;  %6340 = vmatprep.mubr.bf16.mxu0 %v13426_v46 }
0x115f   : > { %vm14815_vm11 = vmmov %vm14803_vm1 }
0x1160   : > { %vm14816_vm5 = vmmov %vm14803_vm1 }
0x1161   : > { %8424 = vrot.lane.b32.xlu1 %v8423_v24, %s14791_s14 }
0x1162   : > { %8429 = vrot.lane.b32.xlu0 %v8428_v50, %s14791_s14 }
0x1165   : > { %8444 = vrot.lane.b32.xlu1 %v13238_v60, %s8793_s20 }
0x1169   : > { %8464 = vrot.lane.b32.xlu1 %v13238_v60, %s14768_s23 }
0x116d   : > { %8474 = vrot.lane.b32.xlu1 %v13219_v30, %s8788_s15 }
0x1171   : > { %8484 = vrot.lane.b32.xlu1 %v13221_v34, %s8788_s15 }
0x11c9   : > { %v8405_v58 = vpop.permute.xlu1 %8404 }
0x11ca   : > { %v8407_v6 = vunpack.i.h.bf16 %v8405_v58  ;;  %v8406_v16 = vunpack.i.l.bf16 %v8405_v58 }
0x11cc   : > { %v13268_v31 = vsel %vm14807_vm10, %v8407_v6, 0.0  ;;  %v13271_v61 = vsel %vm14808_vm3, %v8406_v16, %v8407_v6  ;;  %v13273_v7 = vpop.permute.xlu0 %8409  ;;  %vm14820_vm10 = vmmov %vm14803_vm1 }
0x11cd   : > { %v14111_v15 = vunpack.i.h.bf16 %v13273_v7  ;;  %v8411_v42 = vunpack.i.l.bf16 %v13273_v7  ;;  %v13279_v38 = vpack.i.bf16 %v13268_v31, %v13271_v61  ;;  %vm14822_vm3 = vmmov %vm14812_vm0 }
0x11cf   : > { %v13281_v26 = vpop.permute.xlu1 %8414  ;;  %v5937_v47 = vsel %vm14809_vm9, %v8411_v42, %v14111_v15  ;;  %vm14823_vm9 = vmmov %vm14812_vm0 }
0x11d0   : > { %v14114_v22 = vunpack.i.h.bf16 %v13281_v26  ;;  %v8416_v9 = vunpack.i.l.bf16 %v13281_v26  ;;  %v8420_v63 = vpop.permute.xlu0 %8419 }
0x11d1   : > { %v8422_v44 = vunpack.i.h.bf16 %v8420_v63  ;;  %v8421_v39 = vunpack.i.l.bf16 %v8420_v63 }
0x11d2   : > { %v5940_v0 = vsel %vm14810_vm14, %v8416_v9, %v14114_v22  ;;  %vm14824_vm14 = vmmov %vm14812_vm0 }
0x11d3   : > { %v5939_v35 = vsel %vm14811_vm2, %v8422_v44, %v8416_v9  ;;  %v5936_v50 = vsel %vm14812_vm0, %v8421_v39, %v8411_v42  ;;  %v8425_v54 = vpop.permute.xlu1 %8424  ;;  %v6256_v36 = vpack.c.bf16 %v5940_v0, %v5937_v47  ;;  %vm14825_vm2 = vmmov %vm14812_vm0  ;;  %vm14826_vm0 = vcmask 1039360  }
0x11d4   : > { %v6255_v27 = vpack.c.bf16 %v5939_v35, %v5936_v50  ;;  %v13293_v23 = vunpack.i.l.bf16 %v8425_v54  ;;  %v8430_v43 = vpop.permute.xlu0 %8429  ;;  %v8427_v51 = vunpack.i.h.bf16 %v8425_v54 }
0x11d5   : > { %v13295_v25 = vunpack.i.h.bf16 %v8430_v43  ;;  %6308 = vmatprep.subr.bf16.mxu0 %v6256_v36  ;;  %v8431_v57 = vunpack.i.l.bf16 %v8430_v43 }
0x11d6   : > { %6309 = vmatpush1.bf16.msra.mxu0 %v6255_v27  ;;  %v13309_v32 = vsel %vm14803_vm1, %v13293_v23, %v8427_v51  ;;  %v5770_v24 = vsel %vm14814_vm13, 0.0, %v13293_v23  ;;  %vm14828_vm1 = vmmov %vm14826_vm0 }
0x11d7   : > { %v13299_v1 = vsel %vm14813_vm7, %v13295_v25, %v8406_v16  ;;  %v5771_v41 = vsel %vm14815_vm11, 0.0, %v13295_v25  ;;  %v13316_v52 = vsel %vm14816_vm5, %v8427_v51, %v8431_v57  ;;  %v5774_v13 = vsel %vm14820_vm10, %v8431_v57, 0.0  ;;  %v13407_v33 = vpop.permute.xlu1 %8444  ;;  %vm14827_vm7 = vmmov %vm14826_vm0 }
0x11d8   : > { %v8433_v4 = vpack.i.bf16 %v13271_v61, %v13299_v1  ;;  %v8723_v2 = vpack.i.bf16 %v13299_v1, %v13309_v32  ;;  %v13324_v55 = vpack.i.bf16 %v5771_v41, %v5770_v24  ;;  %v8588_v59 = vpack.i.bf16 %v13316_v52, %v13309_v32  ;;  %vm14829_vm13 = vmmov %vm14826_vm0 }
0x11d9   : > { %v8643_v53 = vpack.i.bf16 %v5774_v13, %v13316_v52  ;;  %v8648_v56 = vpack.i.bf16 %v13268_v31, %v5774_v13  ;;  %vm14831_vm11 = vcmask 646144   ;;  %vm14834_vm10 = vmmov %vm14825_vm2 }
0x11da   : > { %8434 = vrot.lane.b32.xlu0 %v8433_v4, %s14747_s27  ;;  %8489 = vrot.lane.b32.xlu1 %v8433_v4, %s14768_s23  ;;  %vm14832_vm5 = vmmov %vm14831_vm11 }
0x11db   : > { %v13414_v37 = vpop.permute.xlu1 %8464 }
0x11de   : > { %8439 = vrot.lane.b32.xlu0 %v13219_v30, %s8793_s20  ;;  %8504 = vrot.lane.b32.xlu1 %v13241_v18, %s14817_s21 }
0x11e2   : > { %8449 = vrot.lane.b32.xlu0 %v13221_v34, %s8793_s20  ;;  %8524 = vrot.lane.b32.xlu1 %v13234_v11, %s8789_s16 }
0x11e6   : > { %8454 = vrot.lane.b32.xlu0 %v8433_v4, %s8793_s20  ;;  %8534 = vrot.lane.b32.xlu1 %v13221_v34, %s14817_s21 }
0x11ea   : > { %8459 = vrot.lane.b32.xlu0 %v13219_v30, %s14768_s23  ;;  %8544 = vrot.lane.b32.xlu1 %v13279_v38, %s8789_s16  ;;  %v13429_v30 = vpop.permute.xlu1 %8474 }
0x11eb   : > { %v14105_v63 = vunpack.i.h.bf16 %v13429_v30  ;;  %v8476_v44 = vunpack.i.l.bf16 %v13429_v30 }
0x11ed   : > { %v6217_v43 = vsel %vm601_vm6, %v8476_v44, %v14105_v63 }
0x11ee   : > { %8469 = vrot.lane.b32.xlu0 %v13221_v34, %s14768_s23  ;;  %8554 = vrot.lane.b32.xlu1 %v13234_v11, %s14818_s24 }
0x11f2   : > { %8479 = vrot.lane.b32.xlu0 %v13238_v60, %s8788_s15  ;;  %8564 = vrot.lane.b32.xlu1 %v13221_v34, %s8789_s16  ;;  %v5709_v60 = vld [vmem:[%s13903_s12] sm:$0xff] }
0x11f6   : > { %8494 = vrot.lane.b32.xlu0 %v8433_v4, %s8788_s15  ;;  %8574 = vrot.lane.b32.xlu1 %v13279_v38, %s14818_s24 }
0x11fa   : > { %8499 = vrot.lane.b32.xlu0 %v13234_v11, %s14817_s21  ;;  %8584 = vrot.lane.b32.xlu1 %v13234_v11, %s14819_s17 }
0x11fe   : > { %8509 = vrot.lane.b32.xlu0 %v13247_v20, %s14747_s27  ;;  %8589 = vrot.lane.b32.xlu1 %v8588_v59, %s14747_s27 }
0x1202   : > { %8514 = vrot.lane.b32.xlu0 %v13279_v38, %s14817_s21  ;;  %8594 = vrot.lane.b32.xlu1 %v13324_v55, %s14747_s27 }
0x1206   : > { %8519 = vrot.lane.b32.xlu0 %v13251_v3, %s14817_s21  ;;  %8599 = vrot.lane.b32.xlu1 %v8588_v59, %s8793_s20 }
0x120a   : > { %8529 = vrot.lane.b32.xlu0 %v13241_v18, %s8789_s16  ;;  %8604 = vrot.lane.b32.xlu1 %v13324_v55, %s8793_s20 }
0x120e   : > { %8539 = vrot.lane.b32.xlu0 %v13247_v20, %s8793_s20  ;;  %8624 = vrot.lane.b32.xlu1 %v13221_v34, %s14818_s24 }
0x1212   : > { %8549 = vrot.lane.b32.xlu0 %v13251_v3, %s8789_s16  ;;  %8634 = vrot.lane.b32.xlu1 %v8588_v59, %s8788_s15 }
0x1216   : > { %8559 = vrot.lane.b32.xlu0 %v13241_v18, %s14818_s24  ;;  %8639 = vrot.lane.b32.xlu1 %v13324_v55, %s8788_s15 }
0x121a   : > { %8569 = vrot.lane.b32.xlu0 %v13247_v20, %s14768_s23  ;;  %8644 = vrot.lane.b32.xlu1 %v8643_v53, %s14817_s21 }
0x121e   : > { %8579 = vrot.lane.b32.xlu0 %v13251_v3, %s14818_s24  ;;  %8649 = vrot.lane.b32.xlu1 %v8648_v56, %s14747_s27 }
0x1222   : > { %8609 = vrot.lane.b32.xlu0 %v8588_v59, %s14768_s23  ;;  %8654 = vrot.lane.b32.xlu1 %v8723_v2, %s14817_s21 }
0x1226   : > { %8614 = vrot.lane.b32.xlu0 %v13324_v55, %s14768_s23  ;;  %8669 = vrot.lane.b32.xlu1 %v8648_v56, %s8793_s20 }
0x122a   : > { %8619 = vrot.lane.b32.xlu0 %v13241_v18, %s14819_s17  ;;  %8674 = vrot.lane.b32.xlu1 %v8723_v2, %s8789_s16 }
0x122e   : > { %8629 = vrot.lane.b32.xlu0 %v13279_v38, %s14819_s17  ;;  %8689 = vrot.lane.b32.xlu1 %v8648_v56, %s14768_s23 }
0x1232   : > { %8659 = vrot.lane.b32.xlu0 %v8643_v53, %s8789_s16  ;;  %8704 = vrot.lane.b32.xlu1 %v8643_v53, %s14819_s17 }
0x1236   : > { %8664 = vrot.lane.b32.xlu0 %v13324_v55, %s14817_s21  ;;  %8709 = vrot.lane.b32.xlu1 %v13324_v55, %s14818_s24 }
0x123a   : > { %8679 = vrot.lane.b32.xlu0 %v8643_v53, %s14818_s24  ;;  %8714 = vrot.lane.b32.xlu1 %v13221_v34, %s14819_s17  ;;  %v8485_v34 = vpop.permute.xlu1 %8484 }
0x123b   : > { %v8486_v39 = vunpack.i.l.bf16 %v8485_v34  ;;  %v8487_v0 = vunpack.i.h.bf16 %v8485_v34 }
0x123d   : > { %v6216_v36 = vsel %vm601_vm6, %v8486_v39, %v8476_v44 }
0x123e   : > { %8684 = vrot.lane.b32.xlu0 %v13324_v55, %s8789_s16  ;;  %8724 = vrot.lane.b32.xlu1 %v8723_v2, %s14819_s17 }
0x1242   : > { %8694 = vrot.lane.b32.xlu0 %v8723_v2, %s14818_s24  ;;  %8734 = vrot.lane.b32.xlu1 %v8648_v56, %s8788_s15 }
0x1246   : > { %8699 = vrot.lane.b32.xlu0 %v13251_v3, %s14819_s17 }
0x124a   : > { %8719 = vrot.lane.b32.xlu0 %v13247_v20, %s8788_s15 }
0x124c   : > { %v13437_v19 = vpop.permute.xlu0 %8434  ;;  %v13439_v11 = vpop.permute.xlu1 %8489 }
0x124d   : > { %v14110_v59 = vunpack.i.h.bf16 %v13437_v19  ;;  %v8436_v13 = vunpack.i.l.bf16 %v13437_v19 }
0x124e   : > { %8729 = vrot.lane.b32.xlu0 %v13324_v55, %s14819_s17 }
0x1250   : > { %v13446_v18 = vpop.permute.xlu0 %8439  ;;  %v13448_v58 = vpop.permute.xlu1 %8504 }
0x1251   : > { %v14107_v56 = vunpack.i.h.bf16 %v13446_v18  ;;  %v8441_v34 = vunpack.i.l.bf16 %v13446_v18 }
0x1252   : > { %6292 = vperm.xlu0 %7001, %v5709_v60  }
0x1254   : > { %v8450_v3 = vpop.permute.xlu0 %8449  ;;  %v13450_v6 = vpop.permute.xlu1 %8524 }
0x1255   : > { %v8452_v63 = vunpack.i.h.bf16 %v8450_v3 }
0x1258   : > { %v13452_v20 = vpop.permute.xlu0 %8454  ;;  %v13454_v16 = vpop.permute.xlu1 %8534 }
0x1259   : > { %v14113_v49 = vunpack.i.h.bf16 %v13452_v20  ;;  %v8456_v48 = vunpack.i.l.bf16 %v13452_v20 }
0x125c   : > { %v13456_v31 = vpop.permute.xlu0 %8459  ;;  %v13458_v42 = vpop.permute.xlu1 %8544 }
0x125d   : > { %v14116_v15 = vunpack.i.h.bf16 %v13456_v31 }
0x1260   : > { %v13460_v38 = vpop.permute.xlu0 %8469  ;;  %v13462_v9 = vpop.permute.xlu1 %8554 }
0x1264   : > { %v13466_v47 = vpop.permute.xlu0 %8479  ;;  %v13470_v54 = vpop.permute.xlu1 %8564 }
0x1265   : > { %v14106_v35 = vunpack.i.h.bf16 %v13466_v47  ;;  %v8481_v50 = vunpack.i.l.bf16 %v13466_v47 }
0x1267   : > { %v6219_v27 = vsel %vm601_vm6, %v8487_v0, %v8481_v50  ;;  %v6220_v51 = vsel %vm601_vm6, %v8481_v50, %v14106_v35  ;;  %v14109_v0 = vunpack.i.h.bf16 %v13407_v33  ;;  %v8446_v50 = vunpack.i.l.bf16 %v13407_v33 }
0x1268   : > { %v6285_v4 = vpack.c.bf16 %v6219_v27, %v6216_v36  ;;  %v13480_v57 = vpop.permute.xlu0 %8494  ;;  %v6286_v24 = vpack.c.bf16 %v6220_v51, %v6217_v43  ;;  %v13482_v41 = vpop.permute.xlu1 %8574  ;;  %v5934_v43 = vsel %vm14823_vm9, %v8436_v13, %v14110_v59  ;;  %v8451_v35 = vunpack.i.l.bf16 %v8450_v3  ;;  %vm14838_vm9 = vmmov %vm14832_vm5 }
0x1269   : > { %14821 = vst [vmem:[#allocation15_spill] sm:$0xff] %v13480_v57  ;;  %v5884_v29 = vsel %vm511_vm12, %v8446_v50, %v14109_v0 }
0x126a   : > { %6361 = vmatprep.subr.bf16.mxu1 %v6286_v24  ;;  %v5881_v24 = vsel %vm511_vm12, %v8441_v34, %v14107_v56 }
0x126b   : > { %6362 = vmatpush1.bf16.msra.mxu1 %v6285_v4  ;;  %v6250_v3 = vpack.c.bf16 %v5884_v29, %v5881_v24  ;;  %v5878_v29 = vsel %vm511_vm12, %v8456_v48, %v14113_v49 }
0x126c   : > { %v13484_v2 = vpop.permute.xlu0 %8499  ;;  %v13486_v55 = vpop.permute.xlu1 %8584 }
0x1270   : > { %v13490_v53 = vpop.permute.xlu0 %8509  ;;  %v13494_v60 = vpop.permute.xlu1 %8589 }
0x1271   : > { %v14108_v44 = vunpack.i.h.bf16 %v13494_v60  ;;  %v8591_v39 = vunpack.i.l.bf16 %v13494_v60 }
0x1273   : > { %v5931_v27 = vsel %vm14822_vm3, %v8591_v39, %v14108_v44  ;;  %vm14836_vm3 = vmmov %vm14825_vm2 }
0x1274   : > { %v13500_v36 = vpop.permute.xlu0 %8514  ;;  %v8595_v51 = vpop.permute.xlu1 %8594  ;;  %v6253_v4 = vpack.c.bf16 %v5934_v43, %v5931_v27 }
0x1275   : > { %v8597_v14 = vunpack.i.h.bf16 %v8595_v51  ;;  %v8596_v12 = vunpack.i.l.bf16 %v8595_v51  ;;  %v5880_v51 = vsel %vm511_vm12, %v8451_v35, %v8441_v34  ;;  %v8466_v35 = vunpack.i.l.bf16 %v13414_v37 }
0x1276   : > { %6310 = vmatprep.subr.bf16.mxu0 %v6253_v4  ;;  %v5883_v4 = vsel %vm511_vm12, %v8452_v63, %v8446_v50  ;;  %v14115_v63 = vunpack.i.h.bf16 %v13414_v37  ;;  %v8471_v50 = vunpack.i.l.bf16 %v13460_v38 }
0x1277   : > { %v5933_v62 = vsel %vm14824_vm14, %v8597_v14, %v8436_v13  ;;  %v5930_v27 = vsel %vm14825_vm2, %v8596_v12, %v8591_v39  ;;  %v8461_v14 = vunpack.i.l.bf16 %v13456_v31  ;;  %v6249_v13 = vpack.c.bf16 %v5883_v4, %v5880_v51  ;;  %vm14840_vm14 = vmmov %vm14832_vm5 }
0x1278   : > { %v13518_v43 = vpop.permute.xlu0 %8519  ;;  %v6252_v56 = vpack.c.bf16 %v5933_v62, %v5930_v27  ;;  %v13520_v44 = vpop.permute.xlu1 %8599  ;;  %vm14841_vm2 = vcmask 261120  }
0x1279   : > { %v14112_v0 = vunpack.i.h.bf16 %v13520_v44  ;;  %v8601_v59 = vunpack.i.l.bf16 %v13520_v44 }
0x127a   : > { %6311 = vmatpush1.bf16.msra.mxu0 %v6252_v56  ;;  %v8472_v56 = vunpack.i.h.bf16 %v13460_v38  ;;  %v5828_v38 = vsel %vm14827_vm7, %v8466_v35, %v14115_v63 }
0x127b   : > { %6312 = vmatprep.subr.bf16.mxu0 %v6250_v3  ;;  %v5875_v62 = vsel %vm511_vm12, %v8601_v59, %v14112_v0  ;;  %v5825_v3 = vsel %vm14826_vm0, %v8461_v14, %v14116_v15  ;;  %vm14844_vm0 = vmmov %vm14836_vm3 }
0x127c   : > { %v13528_v12 = vpop.permute.xlu0 %8529  ;;  %v8605_v34 = vpop.permute.xlu1 %8604  ;;  %v6247_v39 = vpack.c.bf16 %v5878_v29, %v5875_v62  ;;  %v5824_v62 = vsel %vm14828_vm1, %v8471_v50, %v8461_v14  ;;  %v5827_v29 = vsel %vm14829_vm13, %v8472_v56, %v8466_v35  ;;  %v8507_v56 = vunpack.i.h.bf16 %v13448_v58  ;;  %vm14846_vm7 = vmmov %vm14844_vm0 }
0x127d   : > { %v8607_v24 = vunpack.i.h.bf16 %v8605_v34  ;;  %v8606_v27 = vunpack.i.l.bf16 %v8605_v34  ;;  %v14122_v50 = vunpack.i.l.bf16 %v13448_v58  ;;  %vm14851_vm13 = vmmov %vm14828_vm1 }
0x127e   : > { %6313 = vmatpush1.bf16.msra.mxu0 %v6249_v13  ;;  %v6244_v13 = vpack.c.bf16 %v5828_v38, %v5825_v3 }
0x127f   : > { %v5877_v0 = vsel %vm511_vm12, %v8607_v24, %v8456_v48  ;;  %v5874_v49 = vsel %vm511_vm12, %v8606_v27, %v8601_v59  ;;  %6314 = vmatprep.subr.bf16.mxu0 %v6247_v39  ;;  %v14119_v48 = vunpack.i.h.bf16 %v13480_v57  ;;  %v8496_v59 = vunpack.i.l.bf16 %v13480_v57 }
0x1280   : > { %v13545_v22 = vpop.permute.xlu0 %8539  ;;  %v6246_v51 = vpack.c.bf16 %v5877_v0, %v5874_v49  ;;  %v13547_v4 = vpop.permute.xlu1 %8624  ;;  %v6243_v49 = vpack.c.bf16 %v5827_v29, %v5824_v62  ;;  %v8502_v0 = vunpack.i.h.bf16 %v13484_v2  ;;  %v14120_v39 = vunpack.i.l.bf16 %v13484_v2 }
0x1282   : > { %6315 = vmatpush1.bf16.msra.mxu0 %v6246_v51  ;;  %v6214_v51 = vsel %vm601_vm6, %v8496_v59, %v14119_v48  ;;  %v6162_v29 = vsel %vm14831_vm11, %v14120_v39, %v8502_v0  ;;  %vm14852_vm11 = vmmov %vm14828_vm1 }
0x1283   : > { %6316 = vmatprep.subr.bf16.mxu0 %v6244_v13  ;;  %v8512_v13 = vunpack.i.h.bf16 %v13490_v53 }
0x1284   : > { %v13556_v34 = vpop.permute.xlu0 %8549  ;;  %v13560_v24 = vpop.permute.xlu1 %8634 }
0x1285   : > { %14830 = vst [vmem:[#allocation19_spill] sm:$0xff] %v13560_v24  ;;  %v14117_v14 = vunpack.i.h.bf16 %v13560_v24  ;;  %v8636_v35 = vunpack.i.l.bf16 %v13560_v24  ;;  %v8517_v24 = vunpack.i.h.bf16 %v13500_v36 }
0x1286   : > { %6317 = vmatpush1.bf16.msra.mxu0 %v6243_v49  ;;  %v8511_v49 = vunpack.i.l.bf16 %v13490_v53 }
0x1287   : > { %v6211_v3 = vsel %vm601_vm6, %v8636_v35, %v14117_v14  ;;  %v6165_v14 = vsel %vm14832_vm5, %v14122_v50, %v8507_v56  ;;  %v14835_v56 = vunpack.i.h.bf16 %v13273_v7  ;;  %vm14853_vm5 = vmmov %vm14828_vm1 }
0x1288   : > { %v13566_v27 = vpop.permute.xlu0 %8559  ;;  %v8640_v38 = vpop.permute.xlu1 %8639  ;;  %v6283_v62 = vpack.c.bf16 %v6214_v51, %v6211_v3  ;;  %v6281_v53 = vpack.c.bf16 %v6165_v14, %v6162_v29 }
0x1289   : > { %v8642_v63 = vunpack.i.h.bf16 %v8640_v38  ;;  %v8641_v15 = vunpack.i.l.bf16 %v8640_v38  ;;  %v14833_v38 = vunpack.i.h.bf16 %v13281_v26  ;;  %v5938_v50 = vsel %vm14836_vm3, %v14835_v56, %v8511_v49  ;;  %vm6640_vm3 = vmpackc.low %vm8987_vm15, %vm8987_vm15 }
0x128a   : > { %6363 = vmatprep.subr.bf16.mxu1 %v6283_v62 }
0x128b   : > { %v6213_v3 = vsel %vm601_vm6, %v8642_v63, %v8496_v59  ;;  %v6210_v51 = vsel %vm601_vm6, %v8641_v15, %v8636_v35  ;;  %v5941_v62 = vsel %vm14834_vm10, %v14833_v38, %v8512_v13  ;;  %v13601_v15 = vld [vmem:[%s13902_s11 + $0x8] ss:$0 sps:$4 sm:$0xff]   ;;  %v8532_v59 = vunpack.i.h.bf16 %v13528_v12 }
0x128c   : > { %v13586_v0 = vpop.permute.xlu0 %8569  ;;  %v6282_v39 = vpack.c.bf16 %v6213_v3, %v6210_v51  ;;  %v13588_v57 = vpop.permute.xlu1 %8644  ;;  %14837 = vst [vmem:[#allocation25_spill] sm:$0xff] %v13601_v15  ;;  %v14839_v35 = vunpack.i.l.bf16 %v13500_v36  ;;  %v8527_v13 = vunpack.i.h.bf16 %v13450_v6  ;;  %v6257_v3 = vpack.c.bf16 %v5941_v62, %v5938_v50 }
0x128d   : > { %v8647_v48 = vunpack.i.h.bf16 %v13588_v57  ;;  %v14123_v63 = vunpack.i.l.bf16 %v13588_v57  ;;  %v14843_v62 = vunpack.i.h.bf16 %v13437_v19  ;;  %vm14854_vm10 = vcmask 834560  }
0x128e   : > { %6364 = vmatpush1.bf16.msra.mxu1 %v6282_v39  ;;  %v6159_v29 = vsel %vm14840_vm14, %v14839_v35, %v8517_v24  ;;  %v8542_v39 = vunpack.i.h.bf16 %v13545_v22  ;;  %v8491_v24 = vunpack.i.l.bf16 %v13439_v11  ;;  %v14842_v35 = vunpack.i.l.bf16 %v13528_v12  ;;  %vm14859_vm14 = vmmov %vm14838_vm9 }
0x128f   : > { %6779 = vmatprep.subr.bf16.mxu1 %v6281_v53  ;;  %v6156_v7 = vsel %vm14838_vm9, %v14123_v63, %v8647_v48  ;;  %v8541_v53 = vunpack.i.l.bf16 %v13545_v22  ;;  %v14845_v22 = vunpack.i.h.bf16 %v13494_v60  ;;  %v14848_v60 = vunpack.i.h.bf16 %v13446_v18 }
0x1290   : > { %v13605_v26 = vpop.permute.xlu0 %8579  ;;  %v8650_v51 = vpop.permute.xlu1 %8649  ;;  %v6278_v38 = vpack.c.bf16 %v6159_v29, %v6156_v7  ;;  %v6109_v50 = vsel %vm571_vm8, %v14842_v35, %v8532_v59  ;;  %v14847_v59 = vunpack.i.l.bf16 %v13450_v6 }
0x1291   : > { %v8652_v56 = vunpack.i.h.bf16 %v8650_v51  ;;  %v8651_v14 = vunpack.i.l.bf16 %v8650_v51  ;;  %6648 = vmatmul.mubr.msk.bf16.vlgmr.msra.gmra.mxu1 %vm14841_vm2, %v13601_v15  ;;  %v14860_v15 = vpack.c.bf16 %v13200_v10, %v13194_v45  ;;  %vm14861_vm2 = vmmov %vm14838_vm9  ;;  %v14866_v45 = vunpack.i.l.bf16 %v13486_v55 }
0x1292   : > { %6780 = vmatpush3.bf16.msra.mxu1 %v6257_v3  ;;  %v6106_v19 = vsel %vm571_vm8, %v14847_v59, %v8527_v13  ;;  %6422 = vmatprep.mubr.bf16.mxu1 %v13426_v46 }
0x1293   : > { %v5935_v7 = vsel %vm14844_vm0, %v14843_v62, %v8652_v56  ;;  %v5932_v29 = vsel %vm14846_vm7, %v14845_v22, %v8651_v14  ;;  %6781 = vmatprep.subr.bf16.mxu1 %v6278_v38  ;;  %v5882_v14 = vsel %vm511_vm12, %v14848_v60, %v8541_v53  ;;  %v14849_v38 = vunpack.i.h.bf16 %v13407_v33  ;;  %vm14862_vm0 = vmmov %vm14861_vm2 }
0x1294   : > { %v13630_v51 = vpop.permute.xlu0 %8609  ;;  %v6254_v63 = vpack.c.bf16 %v5935_v7, %v5932_v29  ;;  %v13634_v49 = vpop.permute.xlu1 %8654  ;;  %v6275_v35 = vpack.c.bf16 %v6109_v50, %v6106_v19  ;;  %v14850_v7 = vunpack.i.h.bf16 %v13439_v11  ;;  %v8547_v33 = vunpack.i.h.bf16 %v13458_v42  ;;  %vm14865_vm7 = vmmov %vm14854_vm10 }
0x1295   : > { %v14126_v48 = vunpack.i.h.bf16 %v13630_v51  ;;  %v8611_v3 = vunpack.i.l.bf16 %v13630_v51  ;;  %v5885_v56 = vsel %vm511_vm12, %v14849_v38, %v8542_v39  ;;  %v14125_v39 = vunpack.i.l.bf16 %v13458_v42 }
0x1296   : > { %6782 = vmatpush3.bf16.msra.mxu1 %v6254_v63  ;;  %v5822_v13 = vsel %vm14851_vm13, %v8491_v24, %v14850_v7  ;;  %v6251_v18 = vpack.c.bf16 %v5885_v56, %v5882_v14  ;;  %v8557_v63 = vunpack.i.h.bf16 %v13462_v9  ;;  %v14124_v50 = vunpack.i.l.bf16 %v13462_v9  ;;  %vm14869_vm13 = vmmov %vm14865_vm7 }
0x1297   : > { %v5819_v62 = vsel %vm14828_vm1, %v8611_v3, %v14126_v48  ;;  %6783 = vmatprep.subr.bf16.mxu1 %v6275_v35  ;;  %v8522_v14 = vunpack.i.h.bf16 %v13518_v43  ;;  %v8521_v56 = vunpack.i.l.bf16 %v13518_v43  ;;  %v8537_v7 = vunpack.i.h.bf16 %v13454_v16 }
0x1298   : > { %v8615_v46 = vpop.permute.xlu0 %8614  ;;  %v6241_v22 = vpack.c.bf16 %v5822_v13, %v5819_v62  ;;  %v8670_v59 = vpop.permute.xlu1 %8669  ;;  %v8536_v13 = vunpack.i.l.bf16 %v13454_v16  ;;  %v8577_v43 = vunpack.i.h.bf16 %v13482_v41  ;;  %v8587_v16 = vunpack.i.h.bf16 %v13486_v55 }
0x1299   : > { %v8617_v29 = vunpack.i.h.bf16 %v8615_v46  ;;  %v8616_v53 = vunpack.i.l.bf16 %v8615_v46  ;;  %v14857_v48 = vunpack.i.l.bf16 %v13484_v2  ;;  %v14863_v2 = vpack.c.bf16 %v13299_v1, %v13309_v32 }
0x129a   : > { %6318 = vmatprep.subr.bf16.mxu0 %v6241_v22  ;;  %6784 = vmatpush3.bf16.msra.mxu1 %v6251_v18  ;;  %v8672_v18 = vunpack.i.h.bf16 %v8670_v59  ;;  %v8671_v22 = vunpack.i.l.bf16 %v8670_v59  ;;  %vm14867_vm1 = vcmask 842752   ;;  %v14868_v1 = vunpack.i.l.bf16 %v13566_v27 }
0x129b   : > { %v5821_v19 = vsel %vm14852_vm11, %v8617_v29, %v8491_v24  ;;  %v5818_v60 = vsel %vm14853_vm5, %v8616_v53, %v8611_v3  ;;  %v13669_v24 = vsel %vm571_vm8, %v14125_v39, %v8547_v33  ;;  %v13674_v3 = vsel %vm14854_vm10, %v14124_v50, %v8557_v63  ;;  %vm14874_vm11 = vmmov %vm14862_vm0 }
0x129c   : > { %v6240_v38 = vpack.c.bf16 %v5821_v19, %v5818_v60  ;;  %v13658_v35 = vpop.permute.xlu0 %8619  ;;  %v13662_v62 = vpop.permute.xlu1 %8674  ;;  %v14856_v29 = vpack.c.bf16 %v13226_v40, %v13204_v17  ;;  %v8552_v53 = vunpack.i.h.bf16 %v13556_v34  ;;  %v8551_v33 = vunpack.i.l.bf16 %v13556_v34  ;;  %vm14876_vm5 = vmmov %vm14862_vm0 }
0x129d   : > { %v8562_v63 = vunpack.i.h.bf16 %v13566_v27  ;;  %v8566_v50 = vunpack.i.l.bf16 %v13470_v54  ;;  %v6161_v17 = vsel %vm14838_vm9, %v8521_v56, %v14857_v48  ;;  %v14858_v40 = vunpack.i.l.bf16 %v13448_v58  ;;  %vm14883_vm10 = vmmov %vm14862_vm0 }
0x129e   : > { %6319 = vmatpush1.bf16.msra.mxu0 %v6240_v38  ;;  %v8567_v38 = vunpack.i.h.bf16 %v13470_v54  ;;  %v8656_v19 = vunpack.i.l.bf16 %v13634_v49  ;;  %v6160_v54 = vsel %vm14861_vm2, %v8536_v13, %v8521_v56  ;;  %v6163_v58 = vsel %vm14862_vm0, %v8537_v7, %v8522_v14  ;;  %vm14889_vm2 = vmmov %vm14865_vm7 }
0x129f   : > { %6320 = vmatprep.subr.bf16.mxu0 %v14856_v29  ;;  %v6164_v34 = vsel %vm14859_vm14, %v8522_v14, %v14858_v40  ;;  %v8657_v29 = vunpack.i.h.bf16 %v13634_v49  ;;  %v14864_v49 = vunpack.i.l.bf16 %v13482_v41  ;;  %v13725_v10 = vsel %vm14867_vm1, %v14866_v45, %v8587_v16 }
0x12a0   : > { %v13690_v60 = vpop.permute.xlu0 %8629  ;;  %v13694_v39 = vpop.permute.xlu1 %8689  ;;  %v13731_v59 = vsel %vm571_vm8, %v8567_v38, %v8552_v53  ;;  %v6280_v56 = vpack.c.bf16 %v6164_v34, %v6161_v17  ;;  %v6053_v32 = vsel %vm14869_vm13, %v14868_v1, %v8562_v63  ;;  %v8572_v7 = vunpack.i.h.bf16 %v13586_v0 }
0x12a1   : > { %v13720_v48 = vsel %vm14865_vm7, %v14864_v49, %v8577_v43  ;;  %v8571_v13 = vunpack.i.l.bf16 %v13586_v0  ;;  %v14871_v38 = vunpack.i.h.bf16 %v13520_v44  ;;  %v14872_v34 = vpack.c.bf16 %v13295_v25, %v13293_v23  ;;  %vm14893_vm7 = vmmov %vm14889_vm2 }
0x12a2   : > { %6642 = vmatpush1.bf16.msk.msra.mxu0 %vm6640_vm3, %v14860_v15  ;;  %v13728_v15 = vsel %vm571_vm8, %v8566_v50, %v8551_v33  ;;  %v14870_v50 = vunpack.i.h.bf16 %v13452_v20  ;;  %v14873_v0 = vunpack.i.l.bf16 %v13588_v57  ;;  %v14875_v20 = vunpack.i.l.bf16 %v13500_v36 }
0x12a3   : > { %6322 = vmatprep.subr.bf16.mxu0 %v14863_v2  ;;  %v5876_v17 = vsel %vm511_vm12, %v14871_v38, %v8671_v22  ;;  %v6279_v44 = vpack.c.bf16 %v6163_v58, %v6160_v54  ;;  %v8627_v22 = vunpack.i.h.bf16 %v13547_v4  ;;  %v14877_v25 = vunpack.i.l.bf16 %v13450_v6 }
0x12a4   : > { %v8660_v14 = vpop.permute.xlu0 %8659  ;;  %v13738_v16 = vpop.permute.xlu1 %8704  ;;  %v5879_v2 = vsel %vm511_vm12, %v14870_v50, %v8672_v18  ;;  %v6155_v63 = vsel %vm14874_vm11, %v8656_v19, %v14873_v0  ;;  %v6158_v18 = vsel %vm14876_vm5, %v8657_v29, %v14875_v20  ;;  %v6273_v49 = vpack.c.bf16 %v13731_v59, %v13728_v15 }
0x12a5   : > { %v8662_v43 = vunpack.i.h.bf16 %v8660_v14  ;;  %v8661_v40 = vunpack.i.l.bf16 %v8660_v14  ;;  %v6105_v46 = vsel %vm571_vm8, %v8551_v33, %v14877_v25  ;;  %v6269_v36 = vpack.c.bf16 %v6053_v32, %v13674_v3 }
0x12a6   : > { %6647 = vmatpush1.bf16.msk.msra.mxu0 %vm6640_vm3, %v14872_v34  ;;  %v14878_v14 = vunpack.i.l.bf16 %v13528_v12  ;;  %v6248_v58 = vpack.c.bf16 %v5879_v2, %v5876_v17  ;;  %v6277_v6 = vpack.c.bf16 %v6158_v18, %v6155_v63  ;;  %v14879_v33 = vunpack.i.h.bf16 %v13456_v31  ;;  %vm14884_vm3 = vmmov %vm14862_vm0 }
0x12a7   : > { %6324 = vmatprep.subr.bf16.mxu0 %v6280_v56  ;;  %v6100_v23 = vsel %vm571_vm8, %v8661_v40, %v8662_v43  ;;  %vm14880_vm12 = vcmask 1039360   ;;  %v14881_v15 = vunpack.i.h.bf16 %v13414_v37  ;;  %v8692_v3 = vunpack.i.h.bf16 %v13694_v39  ;;  %vm14890_vm0 = vmmov %vm14867_vm1 }
0x12a8   : > { %v8665_v57 = vpop.permute.xlu0 %8664  ;;  %v6272_v45 = vpack.c.bf16 %v13669_v24, %v6100_v23  ;;  %v6108_v54 = vsel %vm571_vm8, %v8552_v53, %v14878_v14  ;;  %v13772_v43 = vpop.permute.xlu1 %8709  ;;  %v5826_v50 = vsel %vm14880_vm12, %v14879_v33, %v8571_v13  ;;  %vm14882_vm15 = vmmov %vm14880_vm12  ;;  %v8691_v12 = vunpack.i.l.bf16 %v13694_v39 }
0x12a9   : > { %v8667_v56 = vunpack.i.h.bf16 %v8665_v57  ;;  %v8666_v1 = vunpack.i.l.bf16 %v8665_v57  ;;  %v5829_v24 = vsel %vm14882_vm15, %v14881_v15, %v8572_v7  ;;  %v8622_v53 = vunpack.i.h.bf16 %v13658_v35  ;;  %vm14886_vm9 = vmmov %vm14880_vm12 }
0x12aa   : > { %6325 = vmatpush2.bf16.msra.mxu0 %v6279_v44  ;;  %6785 = vmatprep.subr.bf16.mxu1 %v6272_v45  ;;  %v8621_v59 = vunpack.i.l.bf16 %v13658_v35  ;;  %v8677_v37 = vunpack.i.h.bf16 %v13662_v62  ;;  %v8676_v7 = vunpack.i.l.bf16 %v13662_v62  ;;  %v6274_v39 = vpack.c.bf16 %v6108_v54, %v6105_v46  ;;  %vm14888_vm14 = vmmov %vm14886_vm9 }
0x12ab   : > { %v6154_v32 = vsel %vm14883_vm10, %v8666_v1, %v8656_v19  ;;  %v6157_v31 = vsel %vm14884_vm3, %v8667_v56, %v8657_v29  ;;  %6326 = vmatprep.subr.bf16.mxu0 %v6277_v6  ;;  %6786 = vmatpush3.bf16.msra.mxu1 %v6248_v58  ;;  %v6245_v38 = vpack.c.bf16 %v5829_v24, %v5826_v50  ;;  %v8582_v17 = vunpack.i.h.bf16 %v13605_v26  ;;  %vm14895_vm1 = vmmov %vm14889_vm2 }
0x12ac   : > { %v6276_v13 = vpack.c.bf16 %v6157_v31, %v6154_v32  ;;  %v8680_v2 = vpop.permute.xlu0 %8679  ;;  %6787 = vmatprep.subr.bf16.mxu1 %v6269_v36  ;;  %v13789_v63 = vpop.permute.xlu1 %8714  ;;  %v8581_v19 = vunpack.i.l.bf16 %v13605_v26  ;;  %v14885_v29 = vunpack.i.h.bf16 %v13439_v11  ;;  %v14887_v18 = vunpack.i.h.bf16 %v13630_v51  ;;  %vm14896_vm13 = vmmov %vm14890_vm0 }
0x12ad   : > { %v8682_v34 = vunpack.i.h.bf16 %v8680_v2  ;;  %v8681_v0 = vunpack.i.l.bf16 %v8680_v2  ;;  %v6099_v44 = vsel %vm571_vm8, %v8676_v7, %v8661_v40  ;;  %v8707_v23 = vunpack.i.h.bf16 %v13738_v16  ;;  %vm14897_vm11 = vmmov %vm14895_vm1 }
0x12ae   : > { %v5823_v20 = vsel %vm14886_vm9, %v14885_v29, %v8692_v3  ;;  %v5820_v62 = vsel %vm14888_vm14, %v14887_v18, %v8691_v12  ;;  %6327 = vmatpush2.bf16.msra.mxu0 %v6276_v13  ;;  %v8706_v25 = vunpack.i.l.bf16 %v13738_v16  ;;  %v5997_v11 = vsel %vm14890_vm0, %v8621_v59, %v8622_v53  ;;  %vm14898_vm5 = vmmov %vm14895_vm1 }
0x12af   : > { %6328 = vmatprep.subr.bf16.mxu0 %v6274_v39  ;;  %6788 = vmatpush3.bf16.msra.mxu1 %v6245_v38  ;;  %v6044_v46 = vsel %vm14889_vm2, %v8681_v0, %v8682_v34  ;;  %v8632_v26 = vunpack.i.h.bf16 %v13690_v60  ;;  %v8631_v51 = vunpack.i.l.bf16 %v13690_v60  ;;  %v14891_v40 = vunpack.i.l.bf16 %v13458_v42  ;;  %vm14899_vm12 = vmmov %vm14890_vm0 }
0x12b0   : > { %v8685_v57 = vpop.permute.xlu0 %8684  ;;  %v6266_v45 = vpack.c.bf16 %v13720_v48, %v6044_v46  ;;  %v6242_v14 = vpack.c.bf16 %v5823_v20, %v5820_v62  ;;  %v8626_v1 = vunpack.i.l.bf16 %v13547_v4  ;;  %v13812_v6 = vpop.permute.xlu1 %8724  ;;  %v6263_v33 = vpack.c.bf16 %v5997_v11, %v13725_v10  ;;  %vm14902_vm15 = vmmov %vm14895_vm1 }
0x12b1   : > { %v6102_v36 = vsel %vm571_vm8, %v8677_v37, %v14891_v40  ;;  %v8687_v54 = vunpack.i.h.bf16 %v8685_v57  ;;  %v8686_v58 = vunpack.i.l.bf16 %v8685_v57  ;;  %v14892_v60 = vunpack.i.l.bf16 %v13462_v9  ;;  %vm14904_vm10 = vmmov %vm14895_vm1 }
0x12b2   : > { %v6271_v56 = vpack.c.bf16 %v6102_v36, %v6099_v44  ;;  %6329 = vmatpush2.bf16.msra.mxu0 %v6273_v49  ;;  %6789 = vmatprep.subr.bf16.mxu1 %v6266_v45  ;;  %v14894_v42 = vunpack.i.l.bf16 %v13566_v27  ;;  %v5988_v49 = vsel %vm14896_vm13, %v8706_v25, %v8707_v23  ;;  %v6048_v10 = vsel %vm14897_vm11, %v8626_v1, %v8581_v19  ;;  %vm14905_vm3 = vmmov %vm14895_vm1  ;;  %v14915_v1 = vld [vmem:[#allocation15_spill] sm:$0xff] }
0x12b3   : > { %v6049_v48 = vsel %vm14893_vm7, %v8581_v19, %v14892_v60  ;;  %v6098_v15 = vsel %vm571_vm8, %v8686_v58, %v8676_v7  ;;  %v6101_v24 = vsel %vm571_vm8, %v8687_v54, %v8677_v37  ;;  %6790 = vmatpush3.bf16.msra.mxu1 %v6242_v14  ;;  %v6051_v9 = vsel %vm14898_vm5, %v8627_v22, %v8582_v17  ;;  %vm14901_vm8 = vmmov %vm14895_vm1  ;;  %v14917_v60 = vld [vmem:[#allocation19_spill] sm:$0xff] }
0x12b4   : > { %v6052_v50 = vsel %vm14895_vm1, %v8582_v17, %v14894_v42  ;;  %6330 = vmatprep.subr.bf16.mxu0 %v6271_v56  ;;  %v6270_v3 = vpack.c.bf16 %v6101_v24, %v6098_v15  ;;  %v8695_v27 = vpop.permute.xlu0 %8694  ;;  %6791 = vmatprep.subr.bf16.mxu1 %v6263_v33  ;;  %v5991_v31 = vsel %vm14899_vm12, %v8631_v51, %v8632_v26  ;;  %v8711_v37 = vunpack.i.l.bf16 %v13772_v43  ;;  %v8735_v34 = vpop.permute.xlu1 %8734  ;;  %vm14908_vm9 = vmmov %vm14890_vm0 }
0x12b5   : > { %v8697_v12 = vunpack.i.h.bf16 %v8695_v27  ;;  %v8696_v53 = vunpack.i.l.bf16 %v8695_v27  ;;  %v6268_v32 = vpack.c.bf16 %v6052_v50, %v6049_v48  ;;  %v6260_v7 = vpack.c.bf16 %v5991_v31, %v5988_v49  ;;  %vm14909_vm14 = vmmov %vm14890_vm0 }
0x12b6   : > { %6331 = vmatpush2.bf16.msra.mxu0 %v6270_v3  ;;  %v8712_v13 = vunpack.i.h.bf16 %v13772_v43  ;;  %v8727_v2 = vunpack.i.h.bf16 %v13812_v6  ;;  %v8726_v4 = vunpack.i.l.bf16 %v13812_v6  ;;  %v14900_v22 = vpack.c.bf16 %v13229_v8, %v13211_v5  ;;  %vm14910_vm2 = vmmov %vm14890_vm0 }
0x12b7   : > { %6332 = vmatprep.subr.bf16.mxu0 %v6268_v32  ;;  %v6043_v39 = vsel %vm14901_vm8, %v8696_v53, %v8681_v0  ;;  %v6267_v38 = vpack.c.bf16 %v6051_v9, %v6048_v10  ;;  %v6042_v17 = vsel %vm14902_vm15, %v8711_v37, %v8696_v53  ;;  %v14903_v29 = vunpack.i.l.bf16 %v13482_v41  ;;  %vm14911_vm7 = vmmov %vm14890_vm0  ;;  %v14921_v10 = vld [vmem:[#allocation25_spill] sm:$0xff] }
0x12b8   : > { %6792 = vmatpush3.bf16.msra.mxu1 %v14900_v22  ;;  %v8700_v19 = vpop.permute.xlu0 %8699  ;;  %v6045_v20 = vsel %vm14905_vm3, %v8712_v13, %v8697_v12  ;;  %v8717_v5 = vunpack.i.h.bf16 %v13789_v63  ;;  %v8716_v8 = vunpack.i.l.bf16 %v13789_v63  ;;  %v6635_v0 = vcombine.low %v13422_v21, %v13422_v21  ;;  %vm14912_vm1 = vmmov %vm14890_vm0 }
0x12b9   : > { %6793 = vmatprep.subr.bf16.mxu1 %v6260_v7  ;;  %v6046_v43 = vsel %vm14904_vm10, %v8697_v12, %v14903_v29  ;;  %v8702_v18 = vunpack.i.h.bf16 %v8700_v19  ;;  %v8701_v62 = vunpack.i.l.bf16 %v8700_v19  ;;  %v8737_v23 = vunpack.i.h.bf16 %v8735_v34  ;;  %vm14919_vm13 = vmmov %vm14890_vm0 }
0x12ba   : > { %v6265_v44 = vpack.c.bf16 %v6046_v43, %v6043_v39  ;;  %6333 = vmatpush2.bf16.msra.mxu0 %v6267_v38  ;;  %v14906_v41 = vpack.c.bf16 %v13271_v61, %v13316_v52  ;;  %v14907_v46 = vunpack.i.l.bf16 %v13486_v55  ;;  %v5987_v26 = vsel %vm14909_vm14, %v8726_v4, %v8706_v25  ;;  %vm14920_vm11 = vmmov %vm14890_vm0 }
0x12bb   : > { %v5990_v63 = vsel %vm14910_vm2, %v8727_v2, %v8631_v51  ;;  %v6264_v57 = vpack.c.bf16 %v6045_v20, %v6042_v17  ;;  %v8736_v45 = vunpack.i.l.bf16 %v8735_v34  ;;  %v5992_v21 = vsel %vm14890_vm0, %v8716_v8, %v8701_v62 }
0x12bc   : > { %6334 = vmatprep.subr.bf16.mxu0 %v6265_v44  ;;  %6794 = vmatpush3.bf16.msra.mxu1 %v14906_v41  ;;  %v5993_v11 = vsel %vm14908_vm9, %v8701_v62, %v14907_v46  ;;  %v8720_v40 = vpop.permute.xlu0 %8719  ;;  %v5996_v61 = vsel %vm14911_vm7, %v8702_v18, %v8621_v59  ;;  %v5995_v52 = vsel %vm14912_vm1, %v8717_v5, %v8702_v18  ;;  %v14913_v25 = vunpack.i.h.bf16 %v13466_v47 }
0x12bd   : > { %6870 = vmatprep.subr.bf16.mxu1 %v14727_v28  ;;  %v8722_v55 = vunpack.i.h.bf16 %v8720_v40  ;;  %v8721_v36 = vunpack.i.l.bf16 %v8720_v40  ;;  %v6262_v16 = vpack.c.bf16 %v5996_v61, %v5993_v11  ;;  %v14914_v14 = vunpack.i.h.bf16 %v13429_v30 }
0x12be   : > { %6335 = vmatpush2.bf16.msra.mxu0 %v6264_v57  ;;  %v6261_v35 = vpack.c.bf16 %v5995_v52, %v5992_v21  ;;  %v6259_v56 = vpack.c.bf16 %v5990_v63, %v5987_v26  ;;  %v14916_v6 = vunpack.i.h.bf16 %v14915_v1  ;;  %v14918_v47 = vunpack.i.h.bf16 %v14917_v60 }
0x12bf   : > { %6423 = vmatmul.mubr.bf16.vlgmr.msra.gmra.mxu1 %v6635_v0  ;;  %v6221_v51 = vsel %vm601_vm6, %v14913_v25, %v8722_v55  ;;  %v6218_v54 = vsel %vm601_vm6, %v14914_v14, %v8721_v36  ;;  %6336 = vmatprep.subr.bf16.mxu0 %v6262_v16 }
0x12c0   : > { %6874 = vmatprep.mubr.msk.bf16.mxu1 %vm14728_vm4, %v14727_v28  ;;  %v6287_v59 = vpack.c.bf16 %v6221_v51, %v6218_v54  ;;  %v8730_v58 = vpop.permute.xlu0 %8729  ;;  %v6215_v33 = vsel %vm601_vm6, %v14916_v6, %v8737_v23  ;;  %v6212_v48 = vsel %vm601_vm6, %v14918_v47, %v8736_v45  ;;  %vm14922_vm4 = vcmask 261120  }
0x12c1   : > { %v8732_v42 = vunpack.i.h.bf16 %v8730_v58  ;;  %v8731_v30 = vunpack.i.l.bf16 %v8730_v58  ;;  %v6284_v24 = vpack.c.bf16 %v6215_v33, %v6212_v48 }
0x12c2   : > { %6337 = vmatpush2.bf16.msra.mxu0 %v6261_v35  ;;  %6871 = vmatpush3.bf16.msra.mxu1 %v6287_v59 }
0x12c3   : > { %v5986_v50 = vsel %vm14919_vm13, %v8731_v30, %v8726_v4  ;;  %v5989_v15 = vsel %vm14920_vm11, %v8732_v42, %v8727_v2  ;;  %6338 = vmatprep.subr.bf16.mxu0 %v6259_v56  ;;  %6872 = vmatprep.subr.bf16.mxu1 %v14727_v28 }
0x12c4   : > { %v6258_v49 = vpack.c.bf16 %v5989_v15, %v5986_v50 }
0x12c6   : > { %6339 = vmatpush2.bf16.msra.mxu0 %v6258_v49  ;;  %6873 = vmatpush3.bf16.msra.mxu1 %v6284_v24 }
0x12c9   : > { %6341 = vmatmul.mubr.bf16.vlgmr.msra.gmra.mxu0 %v6635_v0  ;;  %6875 = vmatmul.mubr.msk.bf16.vlgmr.msra.gmra.mxu1 %vm14922_vm4, %v14921_v10 }
0x12cd   : > { %v6293_v13 = vpop.permute.xlu0 %6292 }
0x1351   : > { %v6383_v9 = vpop.f32.mrf.mxu1 }
0x1353   : > { %v6385_v3 = vpop.f32.mrf.mxu1 }
0x1355   : > { %v6387_v27 = vpop.f32.mrf.mxu1 }
0x1357   : > { %v6388_v12 = vpop.f32.mrf.mxu1 }
0x137f   : > { %v6795_v53 = vpop.f32.mrf.mxu1 }
0x1381   : > { %v6796_v32 = vpop.f32.mrf.mxu1 }
0x1382   : > { %v6797_v37 = vadd.f32 %v6796_v32, %v6795_v53 }
0x1383   : > { %v6798_v31 = vpop.f32.mrf.mxu1 }
0x1384   : > { %v6425_v28 = vadd.f32 %v6797_v37, %v6293_v13 }
0x1385   : > { %v6799_v7 = vpop.f32.mrf.mxu1 }
0x1389   : > { %v6342_v2 = vpop.f32.mrf.mxu0  ;;  %v6464_v4 = vpop.f32.mrf.mxu1 }
0x138a   : > { %v6343_v22 = vadd.f32 %v6342_v2, %v6293_v13  ;;  %v6465_v39 = vadd.f32 %v6464_v4, %v6425_v28 }
0x138b   : > { %v6344_v38 = vpop.f32.mrf.mxu0  ;;  %v6876_v17 = vpop.f32.mrf.mxu1 }
0x138c   : > { %v6384_v34 = vadd.f32 %v6383_v9, %v6343_v22  ;;  %6472 = vst [vmem:[%s440_s18 + $0x10] sm:$0xff] %v6465_v39  ;;  %v6345_v19 = vadd.f32 %v6344_v38, %v6293_v13 }
0x138d   : > { %v6346_v29 = vpop.f32.mrf.mxu0  ;;  %v6467_v43 = vpop.f32.mrf.mxu1 }
0x138e   : > { %6470 = vst [vmem:[%s440_s18] sm:$0xff] %v6384_v34  ;;  %v6386_v20 = vadd.f32 %v6385_v3, %v6345_v19 }
0x138f   : > { %v6347_v18 = vpop.f32.mrf.mxu0  ;;  %v6877_v62 = vpop.f32.mrf.mxu1 }
0x1390   : > { %6471 = vst [vmem:[%s440_s18 + $0x8] sm:$0xff] %v6386_v20 }
0x1391 PF: > { %s23_s25 = sadd.s32 1, %s8785_s25  }
0x1392   : > { %p20_p4 = scmp.ge.s32.totalorder %s23_s25, 4  }
0x1394   :  { %22 = sbr.rel (!%p20_p4) target bundleno = 1 (0x1), region = 102 }

</bundles_post_ra>
